<compile_context>
chip_gen: v6e
topology: v6e:2x2x1
jax: 0.10.0
libtpu: 0.0.40
codegen_flags: <defaults>
</compile_context>

<pallas_src>
import functools

import jax
import jax.numpy as jnp
from jax.experimental import pallas as pl
from jax.experimental.pallas import tpu as pltpu


# ----------------------------------------------------------------------------
# Fused whole-model kernel (one graph per grid step, all weights resident).
# ----------------------------------------------------------------------------
def _gatnet_kernel(x_ref, adj_ref, ids_ref,
                   w1_ref, a1_ref, b1_ref, w2_ref, a2_ref, b2_ref,
                   tab_ref, wcv_ref, bcv_ref, wxt_ref, bxt_ref,
                   fg1w_ref, fg1b_ref,
                   w1g_ref, w1t_ref, b1h_ref, w2h_ref, b2h_ref, wo_ref, bo_ref,
                   o_ref, *, n_heads, hd, n_taps, n_filters):
    f32 = jnp.float32
    bf16 = jnp.bfloat16
    H, HD, K, F = n_heads, hd, n_taps, n_filters
    neg = f32(-1e30)

    # ------------------------- protein branch -------------------------------
    ids = ids_ref[0]                                              # [1024, 1] int32
    vocab = tab_ref.shape[0]                                      # 32
    iota_v = jax.lax.broadcasted_iota(jnp.int32, (ids.shape[0], vocab), 1)
    onehot = jnp.where(ids == iota_v, 1.0, 0.0).astype(bf16)      # [1024, 32]
    emb = jnp.dot(onehot, tab_ref[...],
                  preferred_element_type=f32).astype(bf16)        # [1024, 128] (rows >=1000 hit zero conv cols)

    # Conv1d(1000->32, k=8): all taps in one matmul; row index of wcv = k*32 + f.
    yt = jnp.dot(wcv_ref[...], emb, preferred_element_type=f32)   # [256, 128]
    conv = yt[0:F, :]
    for k in range(1, K):                                         # lane-aligned shifted adds (XLU rolls)
        conv = conv + pltpu.roll(yt[k * F:(k + 1) * F, :], shift=128 - k, axis=1)
    conv = jnp.maximum(conv + bcv_ref[...], 0.0)                  # [32, 128]; valid positions p < 121

    # fc_xt1 fused: one wide matmul + diagonal band extraction (rows p>=121 of wxt are zero).
    t_all = jnp.dot(conv.astype(bf16), wxt_ref[...],
                    preferred_element_type=f32)                   # [32, 32*128]
    xt = bxt_ref[...]                                             # [1, 128]
    for f in range(F):
        xt = xt + t_all[f:f + 1, f * 128:(f + 1) * 128]

    # --------------------------- graph branch -------------------------------
    x = x_ref[0]                                                  # [N, 128] (padded node features)
    adj = adj_ref[0]                                              # [N, N], adj[i, j] = 1 if edge j -> i

    # GAT layer 1: one wide matmul for all 10 heads.
    ht = jnp.dot(x.astype(bf16), w1_ref[...],
                 preferred_element_type=f32)                      # [N, 1280]
    scores = jnp.dot(ht, a1_ref[...], preferred_element_type=f32) # [N, 128]; col h = dst, col 64+h = src
    st = scores.T                                                 # [128, N]

    parts = []
    for h in range(H):
        d_h = scores[:, h:h + 1]                                  # [N, 1]  target score
        s_h = st[64 + h:65 + h, :]                                # [1, N]  source score
        e_h = d_h + s_h                                           # [N_dst, N_src]
        e_h = jnp.where(e_h >= 0.0, e_h, 0.2 * e_h)               # LeakyReLU(0.2)
        e_h = jnp.where(adj > 0.0, e_h, neg)                      # mask non-edges
        e_h = e_h - jnp.max(e_h, axis=-1, keepdims=True)
        p_h = jnp.exp(e_h) * adj
        den = jnp.maximum(jnp.sum(p_h, axis=-1, keepdims=True), 1e-20)   # no 0/0 for edge-less rows
        alpha_h = p_h * pl.reciprocal(den, approx=True)
        parts.append(jnp.dot(alpha_h, ht[:, h * HD:(h + 1) * HD],
                             preferred_element_type=f32))
    g1 = jnp.concatenate(parts, axis=1) + b1_ref[...]             # [N, 1280]
    g1 = jnp.where(g1 > 0.0, g1, jnp.exp(jnp.minimum(g1, 0.0)) - 1.0)   # ELU

    # GAT layer 2: single deep-K matmul + single-head attention.
    h2 = jnp.dot(g1.astype(bf16), w2_ref[...],
                 preferred_element_type=f32)                      # [N, 128]
    sc2 = jnp.dot(h2, a2_ref[...], preferred_element_type=f32)    # [N, 128]; col 0 = dst, col 64 = src
    st2 = sc2.T                                                   # [128, N]
    e2 = sc2[:, 0:1] + st2[64:65, :]                              # [N, N]
    e2 = jnp.where(e2 >= 0.0, e2, 0.2 * e2)
    e2 = jnp.where(adj > 0.0, e2, neg)
    e2 = e2 - jnp.max(e2, axis=-1, keepdims=True)
    p2 = jnp.exp(e2) * adj
    den2 = jnp.maximum(jnp.sum(p2, axis=-1, keepdims=True), 1e-20)
    alpha2 = p2 * pl.reciprocal(den2, approx=True)
    g2 = jnp.dot(alpha2, h2, preferred_element_type=f32) + b2_ref[...]
    g2 = jnp.maximum(g2, 0.0)                                     # ReLU

    # TODO(synk): no per-graph node-validity mask; padded nodes (if any) contribute
    # ReLU(bias) to this max-pool, differing from the PyG flat-batch reference.
    pooled = jnp.max(g2, axis=0, keepdims=True)                   # global max pool -> [1, 128]
    xg = jnp.maximum(jnp.dot(pooled, fg1w_ref[...],
                             preferred_element_type=f32) + fg1b_ref[...], 0.0)   # fc_g1 + ReLU

    # ------------------------------- head -----------------------------------
    # fc1 over cat(xg, xt): split weight halves avoid an in-kernel concat.
    hh = (jnp.dot(xg.astype(bf16), w1g_ref[...], preferred_element_type=f32)
          + jnp.dot(xt.astype(bf16), w1t_ref[...], preferred_element_type=f32)
          + b1h_ref[...])
    hh = jnp.maximum(hh, 0.0)
    hh = jnp.dot(hh.astype(bf16), w2h_ref[...], preferred_element_type=f32) + b2h_ref[...]
    hh = jnp.maximum(hh, 0.0)
    y = jnp.dot(hh, wo_ref[...], preferred_element_type=f32) + bo_ref[...]       # [1, 1]
    o_ref[0] = y.astype(o_ref.dtype)


# ----------------------------------------------------------------------------
# Parameters: logical shapes matching GATNet.__init__, then a one-time prepare
# step that pads / re-lays them out for the kernel (lane-aligned, bf16 matmul
# weights, f32 vector math).
# ----------------------------------------------------------------------------
def init_params(key):
    ks = jax.random.split(key, 13)

    def dense(k, shape):
        return jax.random.normal(k, shape, jnp.float32) / jnp.sqrt(float(shape[0]))

    p = {}
    # gcn1 = GATConv(78, 78, heads=10): weight [78, 780] (col = h*78+c, applied as x @ W),
    # att_src/att_dst [10, 78], bias [780].  (PyG stores lin.weight as [780,78]; transpose
    # before importing trained weights.)
    p["gcn1_w"] = dense(ks[0], (78, 780))
    p["gcn1_asrc"] = jax.random.normal(ks[1], (10, 78), jnp.float32) * 0.1
    p["gcn1_adst"] = jax.random.normal(ks[2], (10, 78), jnp.float32) * 0.1
    p["gcn1_b"] = jnp.zeros((780,), jnp.float32)
    # gcn2 = GATConv(780, 128, heads=1)
    p["gcn2_w"] = dense(ks[3], (780, 128))
    p["gcn2_asrc"] = jax.random.normal(ks[4], (1, 128), jnp.float32) * 0.1
    p["gcn2_adst"] = jax.random.normal(ks[5], (1, 128), jnp.float32) * 0.1
    p["gcn2_b"] = jnp.zeros((1, 128), jnp.float32)
    # fc_g1: Linear(128, 128)
    p["fc_g1_w"] = dense(ks[6], (128, 128))
    p["fc_g1_b"] = jnp.zeros((1, 128), jnp.float32)
    # embedding_xt: Embedding(26, 128)
    p["emb_xt"] = jax.random.normal(ks[7], (26, 128), jnp.float32) * 0.1
    # conv_xt1: Conv1d(1000, 32, kernel_size=8); stored [K, Cin, Cout] (= torch weight.permute(2,1,0))
    p["conv_w"] = jax.random.normal(ks[8], (8, 1000, 32), jnp.float32) / jnp.sqrt(8000.0)
    p["conv_b"] = jnp.zeros((1, 32), jnp.float32)
    # fc_xt1: Linear(32*121, 128); rows indexed f*121 + p (PyTorch channel-major flatten)
    p["fc_xt1_w"] = dense(ks[9], (32 * 121, 128))
    p["fc_xt1_b"] = jnp.zeros((1, 128), jnp.float32)
    # head
    p["fc1_w"] = dense(ks[10], (256, 1024)); p["fc1_b"] = jnp.zeros((1, 1024), jnp.float32)
    p["fc2_w"] = dense(ks[11], (1024, 256)); p["fc2_b"] = jnp.zeros((1, 256), jnp.float32)
    p["out_w"] = dense(ks[12], (256, 1));    p["out_b"] = jnp.zeros((1, 1), jnp.float32)
    return p


def prepare_params(p):
    """Pad / relayout logical params into lane-aligned kernel layouts (one-time)."""
    H, C, CP = 10, 78, 128
    FIN, FINP = 78, 128
    q = {}
    # GAT1 weight [78, 780] -> [128, 10*128] bf16 (col = h*128 + c; zero padding keeps math exact)
    w1 = jnp.pad(p["gcn1_w"].reshape(FIN, H, C), ((0, FINP - FIN), (0, 0), (0, CP - C)))
    q["w1"] = w1.reshape(FINP, H * CP).astype(jnp.bfloat16)
    # Block-diagonal attention-score matrix [1280, 128]: col h = a_dst[h], col 64+h = a_src[h].
    a1d = jnp.pad(p["gcn1_adst"], ((0, 0), (0, CP - C)))
    a1s = jnp.pad(p["gcn1_asrc"], ((0, 0), (0, CP - C)))
    eye = jnp.eye(H, dtype=jnp.float32)
    col_d = jnp.einsum('hc,hg->hcg', a1d, eye).reshape(H * CP, H)
    col_s = jnp.einsum('hc,hg->hcg', a1s, eye).reshape(H * CP, H)
    a1 = jnp.zeros((H * CP, 128), jnp.float32)
    q["a1"] = a1.at[:, 0:H].set(col_d).at[:, 64:64 + H].set(col_s)
    q["b1"] = jnp.pad(p["gcn1_b"].reshape(H, C), ((0, 0), (0, CP - C))).reshape(1, H * CP)
    # GAT2 weight [780, 128] -> [1280, 128] bf16 (row = h*128 + c)
    w2 = jnp.pad(p["gcn2_w"].reshape(H, C, 128), ((0, 0), (0, CP - C), (0, 0)))
    q["w2"] = w2.reshape(H * CP, 128).astype(jnp.bfloat16)
    a2 = jnp.zeros((128, 128), jnp.float32)
    q["a2"] = a2.at[:, 0].set(p["gcn2_adst"][0]).at[:, 64].set(p["gcn2_asrc"][0])
    q["b2"] = p["gcn2_b"]
    # fc_g1 (small, kept f32)
    q["fc_g1_w"] = p["fc_g1_w"]; q["fc_g1_b"] = p["fc_g1_b"]
    # embedding table 26 -> 32 rows, bf16 (used in-kernel via one-hot matmul)
    q["emb_tab"] = jnp.pad(p["emb_xt"], ((0, 32 - 26), (0, 0))).astype(jnp.bfloat16)
    # conv weight [8,1000,32] -> [256, 1024] bf16 (row = k*32 + f, Cin padded 1000 -> 1024)
    wc = p["conv_w"].transpose(0, 2, 1).reshape(8 * 32, 1000)
    q["conv_w"] = jnp.pad(wc, ((0, 0), (0, 1024 - 1000))).astype(jnp.bfloat16)
    q["conv_b"] = p["conv_b"].reshape(32, 1)
    # fc_xt1 [3872,128] -> [128, 32*128] bf16: row p, col f*128+o; rows p>=121 are zero.
    wxt = jnp.pad(p["fc_xt1_w"].reshape(32, 121, 128), ((0, 0), (0, 128 - 121), (0, 0)))
    q["wxt"] = wxt.transpose(1, 0, 2).reshape(128, 32 * 128).astype(jnp.bfloat16)
    q["fc_xt1_b"] = p["fc_xt1_b"]
    # head: fc1 split so cat(xg, xt) becomes two matmuls; big weights bf16.
    q["fc1_wg"] = p["fc1_w"][:128].astype(jnp.bfloat16)
    q["fc1_wt"] = p["fc1_w"][128:].astype(jnp.bfloat16)
    q["fc1_b"] = p["fc1_b"]
    q["fc2_w"] = p["fc2_w"].astype(jnp.bfloat16); q["fc2_b"] = p["fc2_b"]
    q["out_w"] = p["out_w"]; q["out_b"] = p["out_b"]
    return q


# ----------------------------------------------------------------------------
# Full forward pass: one pallas_call, grid over graphs.
# ----------------------------------------------------------------------------
def gatnet_forward(params, x_nodes, adj, target):
    B, N, Fin = x_nodes.shape
    x_pad = jnp.pad(x_nodes, ((0, 0), (0, 0), (0, 128 - Fin)))         # lane-pad 78 -> 128
    L = target.shape[1]                                                 # 1000
    cin = 1024                                                          # Cin padded to a clean tile
    ids = jnp.pad(target, ((0, 0), (0, cin - L))).astype(jnp.int32).reshape(B, cin, 1)

    kernel = functools.partial(_gatnet_kernel, n_heads=10, hd=128, n_taps=8, n_filters=32)
    full = lambda b: (0, 0)                                             # resident-weight index map

    out = pl.pallas_call(
        kernel,
        out_shape=jax.ShapeDtypeStruct((B, 1, 1), jnp.float32),
        grid=(B,),
        in_specs=[
            pl.BlockSpec((1, N, 128), lambda b: (b, 0, 0)),             # node features
            pl.BlockSpec((1, N, N), lambda b: (b, 0, 0)),               # adjacency mask
            pl.BlockSpec((1, cin, 1), lambda b: (b, 0, 0)),             # protein token ids
            pl.BlockSpec((128, 1280), full),                            # GAT1 weight
            pl.BlockSpec((1280, 128), full),                            # GAT1 attention matrix
            pl.BlockSpec((1, 1280), full),                              # GAT1 bias
            pl.BlockSpec((1280, 128), full),                            # GAT2 weight
            pl.BlockSpec((128, 128), full),                             # GAT2 attention matrix
            pl.BlockSpec((1, 128), full),                               # GAT2 bias
            pl.BlockSpec((32, 128), full),                              # embedding table
            pl.BlockSpec((256, 1024), full),                            # conv weight (taps fused)
            pl.BlockSpec((32, 1), full),                                # conv bias
            pl.BlockSpec((128, 4096), full),                            # fc_xt1 weight (fused)
            pl.BlockSpec((1, 128), full),                               # fc_xt1 bias
            pl.BlockSpec((128, 128), full),                             # fc_g1 weight
            pl.BlockSpec((1, 128), full),                               # fc_g1 bias
            pl.BlockSpec((128, 1024), full),                            # fc1 (graph half)
            pl.BlockSpec((128, 1024), full),                            # fc1 (protein half)
            pl.BlockSpec((1, 1024), full),                              # fc1 bias
            pl.BlockSpec((1024, 256), full),                            # fc2 weight
            pl.BlockSpec((1, 256), full),                               # fc2 bias
            pl.BlockSpec((256, 1), full),                               # out weight
            pl.BlockSpec((1, 1), full),                                 # out bias
        ],
        out_specs=pl.BlockSpec((1, 1, 1), lambda b: (b, 0, 0)),
        compiler_params=pltpu.CompilerParams(
            dimension_semantics=("parallel",),
            vmem_limit_bytes=32 * 1024 * 1024,
        ),
    )(x_pad, adj, ids,
      params["w1"], params["a1"], params["b1"], params["w2"], params["a2"], params["b2"],
      params["emb_tab"], params["conv_w"], params["conv_b"], params["wxt"], params["fc_xt1_b"],
      params["fc_g1_w"], params["fc_g1_b"],
      params["fc1_wg"], params["fc1_wt"], params["fc1_b"],
      params["fc2_w"], params["fc2_b"], params["out_w"], params["out_b"])

    # TODO(synk): SMILES branch (DistilBert tokenizer + pretrained TinyBERT) has no Pallas
    # equivalent (string tokenization + checkpoint load); its 312-d output also makes the
    # reference cat() inconsistent with fc1's 256-d input, so the head consumes cat(x_graph, xt).
    return out.reshape(B, 1)


if __name__ == "__main__":
    key = jax.random.PRNGKey(0)
    kp, kx, ke, kt = jax.random.split(key, 4)

    params = prepare_params(init_params(kp))

    B, N = 2, 16
    x_nodes = jax.random.normal(kx, (B, N, 78), jnp.float32)             # node features
    adj = (jax.random.uniform(ke, (B, N, N)) < 0.3).astype(jnp.float32)  # random directed edges
    adj = jnp.maximum(adj, jnp.eye(N, dtype=jnp.float32)[None])          # add self-loops
    target = jax.random.randint(kt, (B, 1000), 0, 26)                    # protein token ids

    fwd = jax.jit(gatnet_forward)
    out = fwd(params, x_nodes, adj, target)
    jax.block_until_ready(out)
    assert out.shape == (B, 1) and out.dtype == jnp.float32
    print("KERNEL_OK")
</pallas_src>

<mosaic_0001>
module attributes {stable_mosaic.version = 11 : i64} {
  func.func @_gatnet_kernel(%arg0: i32, %arg1: memref<1x16x128xf32, #tpu.memory_space<vmem>>, %arg2: memref<1x16x16xf32, #tpu.memory_space<vmem>>, %arg3: memref<1x1024x1xi32, #tpu.memory_space<vmem>>, %arg4: memref<128x1280xbf16, #tpu.memory_space<vmem>>, %arg5: memref<1280x128xf32, #tpu.memory_space<vmem>>, %arg6: memref<1x1280xf32, #tpu.memory_space<vmem>>, %arg7: memref<1280x128xbf16, #tpu.memory_space<vmem>>, %arg8: memref<128x128xf32, #tpu.memory_space<vmem>>, %arg9: memref<1x128xf32, #tpu.memory_space<vmem>>, %arg10: memref<32x128xbf16, #tpu.memory_space<vmem>>, %arg11: memref<256x1024xbf16, #tpu.memory_space<vmem>>, %arg12: memref<32x1xf32, #tpu.memory_space<vmem>>, %arg13: memref<128x4096xbf16, #tpu.memory_space<vmem>>, %arg14: memref<1x128xf32, #tpu.memory_space<vmem>>, %arg15: memref<128x128xf32, #tpu.memory_space<vmem>>, %arg16: memref<1x128xf32, #tpu.memory_space<vmem>>, %arg17: memref<128x1024xbf16, #tpu.memory_space<vmem>>, %arg18: memref<128x1024xbf16, #tpu.memory_space<vmem>>, %arg19: memref<1x1024xf32, #tpu.memory_space<vmem>>, %arg20: memref<1024x256xbf16, #tpu.memory_space<vmem>>, %arg21: memref<1x256xf32, #tpu.memory_space<vmem>>, %arg22: memref<256x1xf32, #tpu.memory_space<vmem>>, %arg23: memref<1x1xf32, #tpu.memory_space<vmem>>, %arg24: memref<1x1x1xf32, #tpu.memory_space<vmem>>) attributes {dimension_semantics = [#tpu.dimension_semantics<parallel>], iteration_bounds = array<i64: 2>, scalar_prefetch = 0 : i64, scratch_operands = 0 : i64, tpu.core_type = #tpu.core_type<tc>, window_params = [{transform_indices = @transform_0, window_bounds = array<i64: 1, 16, 128>}, {transform_indices = @transform_1, window_bounds = array<i64: 1, 16, 16>}, {transform_indices = @transform_2, window_bounds = array<i64: 1, 1024, 1>}, {pipeline_mode = #tpu.pipeline_mode<synchronous>, transform_indices = @transform_3, window_bounds = array<i64: 128, 1280>}, {pipeline_mode = #tpu.pipeline_mode<synchronous>, transform_indices = @transform_4, window_bounds = array<i64: 1280, 128>}, {pipeline_mode = #tpu.pipeline_mode<synchronous>, transform_indices = @transform_5, window_bounds = array<i64: 1, 1280>}, {pipeline_mode = #tpu.pipeline_mode<synchronous>, transform_indices = @transform_6, window_bounds = array<i64: 1280, 128>}, {pipeline_mode = #tpu.pipeline_mode<synchronous>, transform_indices = @transform_7, window_bounds = array<i64: 128, 128>}, {pipeline_mode = #tpu.pipeline_mode<synchronous>, transform_indices = @transform_8, window_bounds = array<i64: 1, 128>}, {pipeline_mode = #tpu.pipeline_mode<synchronous>, transform_indices = @transform_9, window_bounds = array<i64: 32, 128>}, {pipeline_mode = #tpu.pipeline_mode<synchronous>, transform_indices = @transform_10, window_bounds = array<i64: 256, 1024>}, {pipeline_mode = #tpu.pipeline_mode<synchronous>, transform_indices = @transform_11, window_bounds = array<i64: 32, 1>}, {pipeline_mode = #tpu.pipeline_mode<synchronous>, transform_indices = @transform_12, window_bounds = array<i64: 128, 4096>}, {pipeline_mode = #tpu.pipeline_mode<synchronous>, transform_indices = @transform_13, window_bounds = array<i64: 1, 128>}, {pipeline_mode = #tpu.pipeline_mode<synchronous>, transform_indices = @transform_14, window_bounds = array<i64: 128, 128>}, {pipeline_mode = #tpu.pipeline_mode<synchronous>, transform_indices = @transform_15, window_bounds = array<i64: 1, 128>}, {pipeline_mode = #tpu.pipeline_mode<synchronous>, transform_indices = @transform_16, window_bounds = array<i64: 128, 1024>}, {pipeline_mode = #tpu.pipeline_mode<synchronous>, transform_indices = @transform_17, window_bounds = array<i64: 128, 1024>}, {pipeline_mode = #tpu.pipeline_mode<synchronous>, transform_indices = @transform_18, window_bounds = array<i64: 1, 1024>}, {pipeline_mode = #tpu.pipeline_mode<synchronous>, transform_indices = @transform_19, window_bounds = array<i64: 1024, 256>}, {pipeline_mode = #tpu.pipeline_mode<synchronous>, transform_indices = @transform_20, window_bounds = array<i64: 1, 256>}, {pipeline_mode = #tpu.pipeline_mode<synchronous>, transform_indices = @transform_21, window_bounds = array<i64: 256, 1>}, {pipeline_mode = #tpu.pipeline_mode<synchronous>, transform_indices = @transform_22, window_bounds = array<i64: 1, 1>}, {transform_indices = @transform_23, window_bounds = array<i64: 1, 1, 1>}]} {
    %c0 = arith.constant 0 : index
    %c0_0 = arith.constant 0 : index
    %c0_1 = arith.constant 0 : index
    %0 = vector.load %arg3[%c0, %c0_0, %c0_1] : memref<1x1024x1xi32, #tpu.memory_space<vmem>>, vector<1x1024x1xi32>
    %1 = vector.shape_cast %0 : vector<1x1024x1xi32> to vector<1024x1xi32>
    %2 = tpu.iota {dimensions = array<i32: 1>} : vector<1024x32xi32>
    %3 = vector.broadcast %1 : vector<1024x1xi32> to vector<1024x32xi32>
    %4 = arith.cmpi eq, %3, %2 : vector<1024x32xi32>
    %cst = arith.constant 1.000000e+00 : f32
    %cst_2 = arith.constant 0.000000e+00 : f32
    %5 = vector.broadcast %cst : f32 to vector<1024x32xf32>
    %6 = vector.broadcast %cst_2 : f32 to vector<1024x32xf32>
    %7 = arith.select %4, %5, %6 : vector<1024x32xi1>, vector<1024x32xf32>
    %8 = arith.truncf %7 : vector<1024x32xf32> to vector<1024x32xbf16>
    %c0_3 = arith.constant 0 : index
    %c0_4 = arith.constant 0 : index
    %9 = vector.load %arg10[%c0_3, %c0_4] : memref<32x128xbf16, #tpu.memory_space<vmem>>, vector<32x128xbf16>
    %cst_5 = arith.constant dense<0.000000e+00> : vector<1024x128xf32>
    %10 = tpu.matmul %8, %9, %cst_5 {dimension_numbers = #tpu.dot_dimension_numbers<[1], [0], [0], [1], [0, 0, 1, 1], [], []>} : vector<1024x32xbf16>, vector<32x128xbf16>, vector<1024x128xf32> -> vector<1024x128xf32>
    %11 = arith.truncf %10 : vector<1024x128xf32> to vector<1024x128xbf16>
    %c0_6 = arith.constant 0 : index
    %c0_7 = arith.constant 0 : index
    %12 = vector.load %arg11[%c0_6, %c0_7] : memref<256x1024xbf16, #tpu.memory_space<vmem>>, vector<256x1024xbf16>
    %cst_8 = arith.constant dense<0.000000e+00> : vector<256x128xf32>
    %13 = tpu.matmul %12, %11, %cst_8 {dimension_numbers = #tpu.dot_dimension_numbers<[1], [0], [0], [1], [0, 0, 1, 1], [], []>} : vector<256x1024xbf16>, vector<1024x128xbf16>, vector<256x128xf32> -> vector<256x128xf32>
    %14 = vector.extract_strided_slice %13 {offsets = [0, 0], sizes = [32, 128], strides = [1, 1]} : vector<256x128xf32> to vector<32x128xf32>
    %15 = vector.extract_strided_slice %13 {offsets = [32, 0], sizes = [32, 128], strides = [1, 1]} : vector<256x128xf32> to vector<32x128xf32>
    %c127_i32 = arith.constant 127 : i32
    %16 = tpu.dynamic_rotate %15 by %c127_i32 dim 1 : vector<32x128xf32>, i32 -> vector<32x128xf32>
    %17 = arith.addf %14, %16 : vector<32x128xf32>
    %18 = vector.extract_strided_slice %13 {offsets = [64, 0], sizes = [32, 128], strides = [1, 1]} : vector<256x128xf32> to vector<32x128xf32>
    %c126_i32 = arith.constant 126 : i32
    %19 = tpu.dynamic_rotate %18 by %c126_i32 dim 1 : vector<32x128xf32>, i32 -> vector<32x128xf32>
    %20 = arith.addf %17, %19 : vector<32x128xf32>
    %21 = vector.extract_strided_slice %13 {offsets = [96, 0], sizes = [32, 128], strides = [1, 1]} : vector<256x128xf32> to vector<32x128xf32>
    %c125_i32 = arith.constant 125 : i32
    %22 = tpu.dynamic_rotate %21 by %c125_i32 dim 1 : vector<32x128xf32>, i32 -> vector<32x128xf32>
    %23 = arith.addf %20, %22 : vector<32x128xf32>
    %24 = vector.extract_strided_slice %13 {offsets = [128, 0], sizes = [32, 128], strides = [1, 1]} : vector<256x128xf32> to vector<32x128xf32>
    %c124_i32 = arith.constant 124 : i32
    %25 = tpu.dynamic_rotate %24 by %c124_i32 dim 1 : vector<32x128xf32>, i32 -> vector<32x128xf32>
    %26 = arith.addf %23, %25 : vector<32x128xf32>
    %27 = vector.extract_strided_slice %13 {offsets = [160, 0], sizes = [32, 128], strides = [1, 1]} : vector<256x128xf32> to vector<32x128xf32>
    %c123_i32 = arith.constant 123 : i32
    %28 = tpu.dynamic_rotate %27 by %c123_i32 dim 1 : vector<32x128xf32>, i32 -> vector<32x128xf32>
    %29 = arith.addf %26, %28 : vector<32x128xf32>
    %30 = vector.extract_strided_slice %13 {offsets = [192, 0], sizes = [32, 128], strides = [1, 1]} : vector<256x128xf32> to vector<32x128xf32>
    %c122_i32 = arith.constant 122 : i32
    %31 = tpu.dynamic_rotate %30 by %c122_i32 dim 1 : vector<32x128xf32>, i32 -> vector<32x128xf32>
    %32 = arith.addf %29, %31 : vector<32x128xf32>
    %33 = vector.extract_strided_slice %13 {offsets = [224, 0], sizes = [32, 128], strides = [1, 1]} : vector<256x128xf32> to vector<32x128xf32>
    %c121_i32 = arith.constant 121 : i32
    %34 = tpu.dynamic_rotate %33 by %c121_i32 dim 1 : vector<32x128xf32>, i32 -> vector<32x128xf32>
    %35 = arith.addf %32, %34 : vector<32x128xf32>
    %c0_9 = arith.constant 0 : index
    %c0_10 = arith.constant 0 : index
    %36 = vector.load %arg12[%c0_9, %c0_10] : memref<32x1xf32, #tpu.memory_space<vmem>>, vector<32x1xf32>
    %37 = vector.broadcast %36 : vector<32x1xf32> to vector<32x128xf32>
    %38 = arith.addf %35, %37 : vector<32x128xf32>
    %cst_11 = arith.constant 0.000000e+00 : f32
    %39 = vector.broadcast %cst_11 : f32 to vector<32x128xf32>
    %40 = arith.maximumf %38, %39 : vector<32x128xf32>
    %41 = arith.truncf %40 : vector<32x128xf32> to vector<32x128xbf16>
    %c0_12 = arith.constant 0 : index
    %c0_13 = arith.constant 0 : index
    %42 = vector.load %arg13[%c0_12, %c0_13] : memref<128x4096xbf16, #tpu.memory_space<vmem>>, vector<128x4096xbf16>
    %cst_14 = arith.constant dense<0.000000e+00> : vector<32x4096xf32>
    %43 = tpu.matmul %41, %42, %cst_14 {dimension_numbers = #tpu.dot_dimension_numbers<[1], [0], [0], [1], [0, 0, 1, 1], [], []>} : vector<32x128xbf16>, vector<128x4096xbf16>, vector<32x4096xf32> -> vector<32x4096xf32>
    %c0_15 = arith.constant 0 : index
    %c0_16 = arith.constant 0 : index
    %44 = vector.load %arg14[%c0_15, %c0_16] : memref<1x128xf32, #tpu.memory_space<vmem>>, vector<1x128xf32>
    %45 = vector.extract_strided_slice %43 {offsets = [0, 0], sizes = [1, 128], strides = [1, 1]} : vector<32x4096xf32> to vector<1x128xf32>
    %46 = arith.addf %44, %45 : vector<1x128xf32>
    %47 = vector.extract_strided_slice %43 {offsets = [1, 128], sizes = [1, 128], strides = [1, 1]} : vector<32x4096xf32> to vector<1x128xf32>
    %48 = arith.addf %46, %47 : vector<1x128xf32>
    %49 = vector.extract_strided_slice %43 {offsets = [2, 256], sizes = [1, 128], strides = [1, 1]} : vector<32x4096xf32> to vector<1x128xf32>
    %50 = arith.addf %48, %49 : vector<1x128xf32>
    %51 = vector.extract_strided_slice %43 {offsets = [3, 384], sizes = [1, 128], strides = [1, 1]} : vector<32x4096xf32> to vector<1x128xf32>
    %52 = arith.addf %50, %51 : vector<1x128xf32>
    %53 = vector.extract_strided_slice %43 {offsets = [4, 512], sizes = [1, 128], strides = [1, 1]} : vector<32x4096xf32> to vector<1x128xf32>
    %54 = arith.addf %52, %53 : vector<1x128xf32>
    %55 = vector.extract_strided_slice %43 {offsets = [5, 640], sizes = [1, 128], strides = [1, 1]} : vector<32x4096xf32> to vector<1x128xf32>
    %56 = arith.addf %54, %55 : vector<1x128xf32>
    %57 = vector.extract_strided_slice %43 {offsets = [6, 768], sizes = [1, 128], strides = [1, 1]} : vector<32x4096xf32> to vector<1x128xf32>
    %58 = arith.addf %56, %57 : vector<1x128xf32>
    %59 = vector.extract_strided_slice %43 {offsets = [7, 896], sizes = [1, 128], strides = [1, 1]} : vector<32x4096xf32> to vector<1x128xf32>
    %60 = arith.addf %58, %59 : vector<1x128xf32>
    %61 = vector.extract_strided_slice %43 {offsets = [8, 1024], sizes = [1, 128], strides = [1, 1]} : vector<32x4096xf32> to vector<1x128xf32>
    %62 = arith.addf %60, %61 : vector<1x128xf32>
    %63 = vector.extract_strided_slice %43 {offsets = [9, 1152], sizes = [1, 128], strides = [1, 1]} : vector<32x4096xf32> to vector<1x128xf32>
    %64 = arith.addf %62, %63 : vector<1x128xf32>
    %65 = vector.extract_strided_slice %43 {offsets = [10, 1280], sizes = [1, 128], strides = [1, 1]} : vector<32x4096xf32> to vector<1x128xf32>
    %66 = arith.addf %64, %65 : vector<1x128xf32>
    %67 = vector.extract_strided_slice %43 {offsets = [11, 1408], sizes = [1, 128], strides = [1, 1]} : vector<32x4096xf32> to vector<1x128xf32>
    %68 = arith.addf %66, %67 : vector<1x128xf32>
    %69 = vector.extract_strided_slice %43 {offsets = [12, 1536], sizes = [1, 128], strides = [1, 1]} : vector<32x4096xf32> to vector<1x128xf32>
    %70 = arith.addf %68, %69 : vector<1x128xf32>
    %71 = vector.extract_strided_slice %43 {offsets = [13, 1664], sizes = [1, 128], strides = [1, 1]} : vector<32x4096xf32> to vector<1x128xf32>
    %72 = arith.addf %70, %71 : vector<1x128xf32>
    %73 = vector.extract_strided_slice %43 {offsets = [14, 1792], sizes = [1, 128], strides = [1, 1]} : vector<32x4096xf32> to vector<1x128xf32>
    %74 = arith.addf %72, %73 : vector<1x128xf32>
    %75 = vector.extract_strided_slice %43 {offsets = [15, 1920], sizes = [1, 128], strides = [1, 1]} : vector<32x4096xf32> to vector<1x128xf32>
    %76 = arith.addf %74, %75 : vector<1x128xf32>
    %77 = vector.extract_strided_slice %43 {offsets = [16, 2048], sizes = [1, 128], strides = [1, 1]} : vector<32x4096xf32> to vector<1x128xf32>
    %78 = arith.addf %76, %77 : vector<1x128xf32>
    %79 = vector.extract_strided_slice %43 {offsets = [17, 2176], sizes = [1, 128], strides = [1, 1]} : vector<32x4096xf32> to vector<1x128xf32>
    %80 = arith.addf %78, %79 : vector<1x128xf32>
    %81 = vector.extract_strided_slice %43 {offsets = [18, 2304], sizes = [1, 128], strides = [1, 1]} : vector<32x4096xf32> to vector<1x128xf32>
    %82 = arith.addf %80, %81 : vector<1x128xf32>
    %83 = vector.extract_strided_slice %43 {offsets = [19, 2432], sizes = [1, 128], strides = [1, 1]} : vector<32x4096xf32> to vector<1x128xf32>
    %84 = arith.addf %82, %83 : vector<1x128xf32>
    %85 = vector.extract_strided_slice %43 {offsets = [20, 2560], sizes = [1, 128], strides = [1, 1]} : vector<32x4096xf32> to vector<1x128xf32>
    %86 = arith.addf %84, %85 : vector<1x128xf32>
    %87 = vector.extract_strided_slice %43 {offsets = [21, 2688], sizes = [1, 128], strides = [1, 1]} : vector<32x4096xf32> to vector<1x128xf32>
    %88 = arith.addf %86, %87 : vector<1x128xf32>
    %89 = vector.extract_strided_slice %43 {offsets = [22, 2816], sizes = [1, 128], strides = [1, 1]} : vector<32x4096xf32> to vector<1x128xf32>
    %90 = arith.addf %88, %89 : vector<1x128xf32>
    %91 = vector.extract_strided_slice %43 {offsets = [23, 2944], sizes = [1, 128], strides = [1, 1]} : vector<32x4096xf32> to vector<1x128xf32>
    %92 = arith.addf %90, %91 : vector<1x128xf32>
    %93 = vector.extract_strided_slice %43 {offsets = [24, 3072], sizes = [1, 128], strides = [1, 1]} : vector<32x4096xf32> to vector<1x128xf32>
    %94 = arith.addf %92, %93 : vector<1x128xf32>
    %95 = vector.extract_strided_slice %43 {offsets = [25, 3200], sizes = [1, 128], strides = [1, 1]} : vector<32x4096xf32> to vector<1x128xf32>
    %96 = arith.addf %94, %95 : vector<1x128xf32>
    %97 = vector.extract_strided_slice %43 {offsets = [26, 3328], sizes = [1, 128], strides = [1, 1]} : vector<32x4096xf32> to vector<1x128xf32>
    %98 = arith.addf %96, %97 : vector<1x128xf32>
    %99 = vector.extract_strided_slice %43 {offsets = [27, 3456], sizes = [1, 128], strides = [1, 1]} : vector<32x4096xf32> to vector<1x128xf32>
    %100 = arith.addf %98, %99 : vector<1x128xf32>
    %101 = vector.extract_strided_slice %43 {offsets = [28, 3584], sizes = [1, 128], strides = [1, 1]} : vector<32x4096xf32> to vector<1x128xf32>
    %102 = arith.addf %100, %101 : vector<1x128xf32>
    %103 = vector.extract_strided_slice %43 {offsets = [29, 3712], sizes = [1, 128], strides = [1, 1]} : vector<32x4096xf32> to vector<1x128xf32>
    %104 = arith.addf %102, %103 : vector<1x128xf32>
    %105 = vector.extract_strided_slice %43 {offsets = [30, 3840], sizes = [1, 128], strides = [1, 1]} : vector<32x4096xf32> to vector<1x128xf32>
    %106 = arith.addf %104, %105 : vector<1x128xf32>
    %107 = vector.extract_strided_slice %43 {offsets = [31, 3968], sizes = [1, 128], strides = [1, 1]} : vector<32x4096xf32> to vector<1x128xf32>
    %108 = arith.addf %106, %107 : vector<1x128xf32>
    %c0_17 = arith.constant 0 : index
    %c0_18 = arith.constant 0 : index
    %c0_19 = arith.constant 0 : index
    %109 = vector.load %arg1[%c0_17, %c0_18, %c0_19] : memref<1x16x128xf32, #tpu.memory_space<vmem>>, vector<1x16x128xf32>
    %110 = vector.shape_cast %109 : vector<1x16x128xf32> to vector<16x128xf32>
    %c0_20 = arith.constant 0 : index
    %c0_21 = arith.constant 0 : index
    %c0_22 = arith.constant 0 : index
    %111 = vector.load %arg2[%c0_20, %c0_21, %c0_22] : memref<1x16x16xf32, #tpu.memory_space<vmem>>, vector<1x16x16xf32>
    %112 = vector.shape_cast %111 : vector<1x16x16xf32> to vector<16x16xf32>
    %113 = arith.truncf %110 : vector<16x128xf32> to vector<16x128xbf16>
    %c0_23 = arith.constant 0 : index
    %c0_24 = arith.constant 0 : index
    %114 = vector.load %arg4[%c0_23, %c0_24] : memref<128x1280xbf16, #tpu.memory_space<vmem>>, vector<128x1280xbf16>
    %cst_25 = arith.constant dense<0.000000e+00> : vector<16x1280xf32>
    %115 = tpu.matmul %113, %114, %cst_25 {dimension_numbers = #tpu.dot_dimension_numbers<[1], [0], [0], [1], [0, 0, 1, 1], [], []>} : vector<16x128xbf16>, vector<128x1280xbf16>, vector<16x1280xf32> -> vector<16x1280xf32>
    %c0_26 = arith.constant 0 : index
    %c0_27 = arith.constant 0 : index
    %116 = vector.load %arg5[%c0_26, %c0_27] : memref<1280x128xf32, #tpu.memory_space<vmem>>, vector<1280x128xf32>
    %cst_28 = arith.constant dense<0.000000e+00> : vector<16x128xf32>
    %117 = tpu.matmul %115, %116, %cst_28 {dimension_numbers = #tpu.dot_dimension_numbers<[1], [0], [0], [1], [0, 0, 1, 1], [], []>} : vector<16x1280xf32>, vector<1280x128xf32>, vector<16x128xf32> -> vector<16x128xf32>
    %118 = tpu.transpose %117, [1, 0] : vector<16x128xf32> -> vector<128x16xf32>
    %119 = vector.extract_strided_slice %117 {offsets = [0, 0], sizes = [16, 1], strides = [1, 1]} : vector<16x128xf32> to vector<16x1xf32>
    %120 = vector.extract_strided_slice %118 {offsets = [64, 0], sizes = [1, 16], strides = [1, 1]} : vector<128x16xf32> to vector<1x16xf32>
    %121 = vector.broadcast %119 : vector<16x1xf32> to vector<16x16xf32>
    %122 = vector.broadcast %120 : vector<1x16xf32> to vector<16x16xf32>
    %123 = arith.addf %121, %122 : vector<16x16xf32>
    %cst_29 = arith.constant 0.000000e+00 : f32
    %124 = vector.broadcast %cst_29 : f32 to vector<16x16xf32>
    %125 = arith.cmpf oge, %123, %124 : vector<16x16xf32>
    %cst_30 = arith.constant 2.000000e-01 : f32
    %126 = vector.broadcast %cst_30 : f32 to vector<16x16xf32>
    %127 = arith.mulf %126, %123 : vector<16x16xf32>
    %128 = arith.select %125, %123, %127 : vector<16x16xi1>, vector<16x16xf32>
    %cst_31 = arith.constant 0.000000e+00 : f32
    %129 = vector.broadcast %cst_31 : f32 to vector<16x16xf32>
    %130 = arith.cmpf ogt, %112, %129 : vector<16x16xf32>
    %cst_32 = arith.constant -1.000000e+30 : f32
    %131 = vector.broadcast %cst_32 : f32 to vector<16x16xf32>
    %132 = arith.select %130, %128, %131 : vector<16x16xi1>, vector<16x16xf32>
    %cst_33 = arith.constant dense<0xFF800000> : vector<16xf32>
    %133 = vector.multi_reduction <maximumf>, %132, %cst_33 [1] : vector<16x16xf32> to vector<16xf32>
    %134 = vector.shape_cast %133 : vector<16xf32> to vector<16x1xf32>
    %135 = vector.broadcast %134 : vector<16x1xf32> to vector<16x16xf32>
    %136 = arith.subf %132, %135 : vector<16x16xf32>
    %137 = math.exp %136 : vector<16x16xf32>
    %138 = arith.mulf %137, %112 : vector<16x16xf32>
    %cst_34 = arith.constant dense<0.000000e+00> : vector<16xf32>
    %139 = vector.multi_reduction <add>, %138, %cst_34 [1] : vector<16x16xf32> to vector<16xf32>
    %140 = vector.shape_cast %139 : vector<16xf32> to vector<16x1xf32>
    %cst_35 = arith.constant 9.99999968E-21 : f32
    %141 = vector.broadcast %cst_35 : f32 to vector<16x1xf32>
    %142 = arith.maximumf %140, %141 : vector<16x1xf32>
    %143 = tpu.reciprocal %142 {approx = true} : vector<16x1xf32> -> vector<16x1xf32>
    %144 = vector.broadcast %143 : vector<16x1xf32> to vector<16x16xf32>
    %145 = arith.mulf %138, %144 : vector<16x16xf32>
    %146 = vector.extract_strided_slice %115 {offsets = [0, 0], sizes = [16, 128], strides = [1, 1]} : vector<16x1280xf32> to vector<16x128xf32>
    %cst_36 = arith.constant dense<0.000000e+00> : vector<16x128xf32>
    %147 = tpu.matmul %145, %146, %cst_36 {dimension_numbers = #tpu.dot_dimension_numbers<[1], [0], [0], [1], [0, 0, 1, 1], [], []>} : vector<16x16xf32>, vector<16x128xf32>, vector<16x128xf32> -> vector<16x128xf32>
    %148 = vector.extract_strided_slice %117 {offsets = [0, 1], sizes = [16, 1], strides = [1, 1]} : vector<16x128xf32> to vector<16x1xf32>
    %149 = vector.extract_strided_slice %118 {offsets = [65, 0], sizes = [1, 16], strides = [1, 1]} : vector<128x16xf32> to vector<1x16xf32>
    %150 = vector.broadcast %148 : vector<16x1xf32> to vector<16x16xf32>
    %151 = vector.broadcast %149 : vector<1x16xf32> to vector<16x16xf32>
    %152 = arith.addf %150, %151 : vector<16x16xf32>
    %cst_37 = arith.constant 0.000000e+00 : f32
    %153 = vector.broadcast %cst_37 : f32 to vector<16x16xf32>
    %154 = arith.cmpf oge, %152, %153 : vector<16x16xf32>
    %cst_38 = arith.constant 2.000000e-01 : f32
    %155 = vector.broadcast %cst_38 : f32 to vector<16x16xf32>
    %156 = arith.mulf %155, %152 : vector<16x16xf32>
    %157 = arith.select %154, %152, %156 : vector<16x16xi1>, vector<16x16xf32>
    %cst_39 = arith.constant 0.000000e+00 : f32
    %158 = vector.broadcast %cst_39 : f32 to vector<16x16xf32>
    %159 = arith.cmpf ogt, %112, %158 : vector<16x16xf32>
    %cst_40 = arith.constant -1.000000e+30 : f32
    %160 = vector.broadcast %cst_40 : f32 to vector<16x16xf32>
    %161 = arith.select %159, %157, %160 : vector<16x16xi1>, vector<16x16xf32>
    %cst_41 = arith.constant dense<0xFF800000> : vector<16xf32>
    %162 = vector.multi_reduction <maximumf>, %161, %cst_41 [1] : vector<16x16xf32> to vector<16xf32>
    %163 = vector.shape_cast %162 : vector<16xf32> to vector<16x1xf32>
    %164 = vector.broadcast %163 : vector<16x1xf32> to vector<16x16xf32>
    %165 = arith.subf %161, %164 : vector<16x16xf32>
    %166 = math.exp %165 : vector<16x16xf32>
    %167 = arith.mulf %166, %112 : vector<16x16xf32>
    %cst_42 = arith.constant dense<0.000000e+00> : vector<16xf32>
    %168 = vector.multi_reduction <add>, %167, %cst_42 [1] : vector<16x16xf32> to vector<16xf32>
    %169 = vector.shape_cast %168 : vector<16xf32> to vector<16x1xf32>
    %cst_43 = arith.constant 9.99999968E-21 : f32
    %170 = vector.broadcast %cst_43 : f32 to vector<16x1xf32>
    %171 = arith.maximumf %169, %170 : vector<16x1xf32>
    %172 = tpu.reciprocal %171 {approx = true} : vector<16x1xf32> -> vector<16x1xf32>
    %173 = vector.broadcast %172 : vector<16x1xf32> to vector<16x16xf32>
    %174 = arith.mulf %167, %173 : vector<16x16xf32>
    %175 = vector.extract_strided_slice %115 {offsets = [0, 128], sizes = [16, 128], strides = [1, 1]} : vector<16x1280xf32> to vector<16x128xf32>
    %cst_44 = arith.constant dense<0.000000e+00> : vector<16x128xf32>
    %176 = tpu.matmul %174, %175, %cst_44 {dimension_numbers = #tpu.dot_dimension_numbers<[1], [0], [0], [1], [0, 0, 1, 1], [], []>} : vector<16x16xf32>, vector<16x128xf32>, vector<16x128xf32> -> vector<16x128xf32>
    %177 = vector.extract_strided_slice %117 {offsets = [0, 2], sizes = [16, 1], strides = [1, 1]} : vector<16x128xf32> to vector<16x1xf32>
    %178 = vector.extract_strided_slice %118 {offsets = [66, 0], sizes = [1, 16], strides = [1, 1]} : vector<128x16xf32> to vector<1x16xf32>
    %179 = vector.broadcast %177 : vector<16x1xf32> to vector<16x16xf32>
    %180 = vector.broadcast %178 : vector<1x16xf32> to vector<16x16xf32>
    %181 = arith.addf %179, %180 : vector<16x16xf32>
    %cst_45 = arith.constant 0.000000e+00 : f32
    %182 = vector.broadcast %cst_45 : f32 to vector<16x16xf32>
    %183 = arith.cmpf oge, %181, %182 : vector<16x16xf32>
    %cst_46 = arith.constant 2.000000e-01 : f32
    %184 = vector.broadcast %cst_46 : f32 to vector<16x16xf32>
    %185 = arith.mulf %184, %181 : vector<16x16xf32>
    %186 = arith.select %183, %181, %185 : vector<16x16xi1>, vector<16x16xf32>
    %cst_47 = arith.constant 0.000000e+00 : f32
    %187 = vector.broadcast %cst_47 : f32 to vector<16x16xf32>
    %188 = arith.cmpf ogt, %112, %187 : vector<16x16xf32>
    %cst_48 = arith.constant -1.000000e+30 : f32
    %189 = vector.broadcast %cst_48 : f32 to vector<16x16xf32>
    %190 = arith.select %188, %186, %189 : vector<16x16xi1>, vector<16x16xf32>
    %cst_49 = arith.constant dense<0xFF800000> : vector<16xf32>
    %191 = vector.multi_reduction <maximumf>, %190, %cst_49 [1] : vector<16x16xf32> to vector<16xf32>
    %192 = vector.shape_cast %191 : vector<16xf32> to vector<16x1xf32>
    %193 = vector.broadcast %192 : vector<16x1xf32> to vector<16x16xf32>
    %194 = arith.subf %190, %193 : vector<16x16xf32>
    %195 = math.exp %194 : vector<16x16xf32>
    %196 = arith.mulf %195, %112 : vector<16x16xf32>
    %cst_50 = arith.constant dense<0.000000e+00> : vector<16xf32>
    %197 = vector.multi_reduction <add>, %196, %cst_50 [1] : vector<16x16xf32> to vector<16xf32>
    %198 = vector.shape_cast %197 : vector<16xf32> to vector<16x1xf32>
    %cst_51 = arith.constant 9.99999968E-21 : f32
    %199 = vector.broadcast %cst_51 : f32 to vector<16x1xf32>
    %200 = arith.maximumf %198, %199 : vector<16x1xf32>
    %201 = tpu.reciprocal %200 {approx = true} : vector<16x1xf32> -> vector<16x1xf32>
    %202 = vector.broadcast %201 : vector<16x1xf32> to vector<16x16xf32>
    %203 = arith.mulf %196, %202 : vector<16x16xf32>
    %204 = vector.extract_strided_slice %115 {offsets = [0, 256], sizes = [16, 128], strides = [1, 1]} : vector<16x1280xf32> to vector<16x128xf32>
    %cst_52 = arith.constant dense<0.000000e+00> : vector<16x128xf32>
    %205 = tpu.matmul %203, %204, %cst_52 {dimension_numbers = #tpu.dot_dimension_numbers<[1], [0], [0], [1], [0, 0, 1, 1], [], []>} : vector<16x16xf32>, vector<16x128xf32>, vector<16x128xf32> -> vector<16x128xf32>
    %206 = vector.extract_strided_slice %117 {offsets = [0, 3], sizes = [16, 1], strides = [1, 1]} : vector<16x128xf32> to vector<16x1xf32>
    %207 = vector.extract_strided_slice %118 {offsets = [67, 0], sizes = [1, 16], strides = [1, 1]} : vector<128x16xf32> to vector<1x16xf32>
    %208 = vector.broadcast %206 : vector<16x1xf32> to vector<16x16xf32>
    %209 = vector.broadcast %207 : vector<1x16xf32> to vector<16x16xf32>
    %210 = arith.addf %208, %209 : vector<16x16xf32>
    %cst_53 = arith.constant 0.000000e+00 : f32
    %211 = vector.broadcast %cst_53 : f32 to vector<16x16xf32>
    %212 = arith.cmpf oge, %210, %211 : vector<16x16xf32>
    %cst_54 = arith.constant 2.000000e-01 : f32
    %213 = vector.broadcast %cst_54 : f32 to vector<16x16xf32>
    %214 = arith.mulf %213, %210 : vector<16x16xf32>
    %215 = arith.select %212, %210, %214 : vector<16x16xi1>, vector<16x16xf32>
    %cst_55 = arith.constant 0.000000e+00 : f32
    %216 = vector.broadcast %cst_55 : f32 to vector<16x16xf32>
    %217 = arith.cmpf ogt, %112, %216 : vector<16x16xf32>
    %cst_56 = arith.constant -1.000000e+30 : f32
    %218 = vector.broadcast %cst_56 : f32 to vector<16x16xf32>
    %219 = arith.select %217, %215, %218 : vector<16x16xi1>, vector<16x16xf32>
    %cst_57 = arith.constant dense<0xFF800000> : vector<16xf32>
    %220 = vector.multi_reduction <maximumf>, %219, %cst_57 [1] : vector<16x16xf32> to vector<16xf32>
    %221 = vector.shape_cast %220 : vector<16xf32> to vector<16x1xf32>
    %222 = vector.broadcast %221 : vector<16x1xf32> to vector<16x16xf32>
    %223 = arith.subf %219, %222 : vector<16x16xf32>
    %224 = math.exp %223 : vector<16x16xf32>
    %225 = arith.mulf %224, %112 : vector<16x16xf32>
    %cst_58 = arith.constant dense<0.000000e+00> : vector<16xf32>
    %226 = vector.multi_reduction <add>, %225, %cst_58 [1] : vector<16x16xf32> to vector<16xf32>
    %227 = vector.shape_cast %226 : vector<16xf32> to vector<16x1xf32>
    %cst_59 = arith.constant 9.99999968E-21 : f32
    %228 = vector.broadcast %cst_59 : f32 to vector<16x1xf32>
    %229 = arith.maximumf %227, %228 : vector<16x1xf32>
    %230 = tpu.reciprocal %229 {approx = true} : vector<16x1xf32> -> vector<16x1xf32>
    %231 = vector.broadcast %230 : vector<16x1xf32> to vector<16x16xf32>
    %232 = arith.mulf %225, %231 : vector<16x16xf32>
    %233 = vector.extract_strided_slice %115 {offsets = [0, 384], sizes = [16, 128], strides = [1, 1]} : vector<16x1280xf32> to vector<16x128xf32>
    %cst_60 = arith.constant dense<0.000000e+00> : vector<16x128xf32>
    %234 = tpu.matmul %232, %233, %cst_60 {dimension_numbers = #tpu.dot_dimension_numbers<[1], [0], [0], [1], [0, 0, 1, 1], [], []>} : vector<16x16xf32>, vector<16x128xf32>, vector<16x128xf32> -> vector<16x128xf32>
    %235 = vector.extract_strided_slice %117 {offsets = [0, 4], sizes = [16, 1], strides = [1, 1]} : vector<16x128xf32> to vector<16x1xf32>
    %236 = vector.extract_strided_slice %118 {offsets = [68, 0], sizes = [1, 16], strides = [1, 1]} : vector<128x16xf32> to vector<1x16xf32>
    %237 = vector.broadcast %235 : vector<16x1xf32> to vector<16x16xf32>
    %238 = vector.broadcast %236 : vector<1x16xf32> to vector<16x16xf32>
    %239 = arith.addf %237, %238 : vector<16x16xf32>
    %cst_61 = arith.constant 0.000000e+00 : f32
    %240 = vector.broadcast %cst_61 : f32 to vector<16x16xf32>
    %241 = arith.cmpf oge, %239, %240 : vector<16x16xf32>
    %cst_62 = arith.constant 2.000000e-01 : f32
    %242 = vector.broadcast %cst_62 : f32 to vector<16x16xf32>
    %243 = arith.mulf %242, %239 : vector<16x16xf32>
    %244 = arith.select %241, %239, %243 : vector<16x16xi1>, vector<16x16xf32>
    %cst_63 = arith.constant 0.000000e+00 : f32
    %245 = vector.broadcast %cst_63 : f32 to vector<16x16xf32>
    %246 = arith.cmpf ogt, %112, %245 : vector<16x16xf32>
    %cst_64 = arith.constant -1.000000e+30 : f32
    %247 = vector.broadcast %cst_64 : f32 to vector<16x16xf32>
    %248 = arith.select %246, %244, %247 : vector<16x16xi1>, vector<16x16xf32>
    %cst_65 = arith.constant dense<0xFF800000> : vector<16xf32>
    %249 = vector.multi_reduction <maximumf>, %248, %cst_65 [1] : vector<16x16xf32> to vector<16xf32>
    %250 = vector.shape_cast %249 : vector<16xf32> to vector<16x1xf32>
    %251 = vector.broadcast %250 : vector<16x1xf32> to vector<16x16xf32>
    %252 = arith.subf %248, %251 : vector<16x16xf32>
    %253 = math.exp %252 : vector<16x16xf32>
    %254 = arith.mulf %253, %112 : vector<16x16xf32>
    %cst_66 = arith.constant dense<0.000000e+00> : vector<16xf32>
    %255 = vector.multi_reduction <add>, %254, %cst_66 [1] : vector<16x16xf32> to vector<16xf32>
    %256 = vector.shape_cast %255 : vector<16xf32> to vector<16x1xf32>
    %cst_67 = arith.constant 9.99999968E-21 : f32
    %257 = vector.broadcast %cst_67 : f32 to vector<16x1xf32>
    %258 = arith.maximumf %256, %257 : vector<16x1xf32>
    %259 = tpu.reciprocal %258 {approx = true} : vector<16x1xf32> -> vector<16x1xf32>
    %260 = vector.broadcast %259 : vector<16x1xf32> to vector<16x16xf32>
    %261 = arith.mulf %254, %260 : vector<16x16xf32>
    %262 = vector.extract_strided_slice %115 {offsets = [0, 512], sizes = [16, 128], strides = [1, 1]} : vector<16x1280xf32> to vector<16x128xf32>
    %cst_68 = arith.constant dense<0.000000e+00> : vector<16x128xf32>
    %263 = tpu.matmul %261, %262, %cst_68 {dimension_numbers = #tpu.dot_dimension_numbers<[1], [0], [0], [1], [0, 0, 1, 1], [], []>} : vector<16x16xf32>, vector<16x128xf32>, vector<16x128xf32> -> vector<16x128xf32>
    %264 = vector.extract_strided_slice %117 {offsets = [0, 5], sizes = [16, 1], strides = [1, 1]} : vector<16x128xf32> to vector<16x1xf32>
    %265 = vector.extract_strided_slice %118 {offsets = [69, 0], sizes = [1, 16], strides = [1, 1]} : vector<128x16xf32> to vector<1x16xf32>
    %266 = vector.broadcast %264 : vector<16x1xf32> to vector<16x16xf32>
    %267 = vector.broadcast %265 : vector<1x16xf32> to vector<16x16xf32>
    %268 = arith.addf %266, %267 : vector<16x16xf32>
    %cst_69 = arith.constant 0.000000e+00 : f32
    %269 = vector.broadcast %cst_69 : f32 to vector<16x16xf32>
    %270 = arith.cmpf oge, %268, %269 : vector<16x16xf32>
    %cst_70 = arith.constant 2.000000e-01 : f32
    %271 = vector.broadcast %cst_70 : f32 to vector<16x16xf32>
    %272 = arith.mulf %271, %268 : vector<16x16xf32>
    %273 = arith.select %270, %268, %272 : vector<16x16xi1>, vector<16x16xf32>
    %cst_71 = arith.constant 0.000000e+00 : f32
    %274 = vector.broadcast %cst_71 : f32 to vector<16x16xf32>
    %275 = arith.cmpf ogt, %112, %274 : vector<16x16xf32>
    %cst_72 = arith.constant -1.000000e+30 : f32
    %276 = vector.broadcast %cst_72 : f32 to vector<16x16xf32>
    %277 = arith.select %275, %273, %276 : vector<16x16xi1>, vector<16x16xf32>
    %cst_73 = arith.constant dense<0xFF800000> : vector<16xf32>
    %278 = vector.multi_reduction <maximumf>, %277, %cst_73 [1] : vector<16x16xf32> to vector<16xf32>
    %279 = vector.shape_cast %278 : vector<16xf32> to vector<16x1xf32>
    %280 = vector.broadcast %279 : vector<16x1xf32> to vector<16x16xf32>
    %281 = arith.subf %277, %280 : vector<16x16xf32>
    %282 = math.exp %281 : vector<16x16xf32>
    %283 = arith.mulf %282, %112 : vector<16x16xf32>
    %cst_74 = arith.constant dense<0.000000e+00> : vector<16xf32>
    %284 = vector.multi_reduction <add>, %283, %cst_74 [1] : vector<16x16xf32> to vector<16xf32>
    %285 = vector.shape_cast %284 : vector<16xf32> to vector<16x1xf32>
    %cst_75 = arith.constant 9.99999968E-21 : f32
    %286 = vector.broadcast %cst_75 : f32 to vector<16x1xf32>
    %287 = arith.maximumf %285, %286 : vector<16x1xf32>
    %288 = tpu.reciprocal %287 {approx = true} : vector<16x1xf32> -> vector<16x1xf32>
    %289 = vector.broadcast %288 : vector<16x1xf32> to vector<16x16xf32>
    %290 = arith.mulf %283, %289 : vector<16x16xf32>
    %291 = vector.extract_strided_slice %115 {offsets = [0, 640], sizes = [16, 128], strides = [1, 1]} : vector<16x1280xf32> to vector<16x128xf32>
    %cst_76 = arith.constant dense<0.000000e+00> : vector<16x128xf32>
    %292 = tpu.matmul %290, %291, %cst_76 {dimension_numbers = #tpu.dot_dimension_numbers<[1], [0], [0], [1], [0, 0, 1, 1], [], []>} : vector<16x16xf32>, vector<16x128xf32>, vector<16x128xf32> -> vector<16x128xf32>
    %293 = vector.extract_strided_slice %117 {offsets = [0, 6], sizes = [16, 1], strides = [1, 1]} : vector<16x128xf32> to vector<16x1xf32>
    %294 = vector.extract_strided_slice %118 {offsets = [70, 0], sizes = [1, 16], strides = [1, 1]} : vector<128x16xf32> to vector<1x16xf32>
    %295 = vector.broadcast %293 : vector<16x1xf32> to vector<16x16xf32>
    %296 = vector.broadcast %294 : vector<1x16xf32> to vector<16x16xf32>
    %297 = arith.addf %295, %296 : vector<16x16xf32>
    %cst_77 = arith.constant 0.000000e+00 : f32
    %298 = vector.broadcast %cst_77 : f32 to vector<16x16xf32>
    %299 = arith.cmpf oge, %297, %298 : vector<16x16xf32>
    %cst_78 = arith.constant 2.000000e-01 : f32
    %300 = vector.broadcast %cst_78 : f32 to vector<16x16xf32>
    %301 = arith.mulf %300, %297 : vector<16x16xf32>
    %302 = arith.select %299, %297, %301 : vector<16x16xi1>, vector<16x16xf32>
    %cst_79 = arith.constant 0.000000e+00 : f32
    %303 = vector.broadcast %cst_79 : f32 to vector<16x16xf32>
    %304 = arith.cmpf ogt, %112, %303 : vector<16x16xf32>
    %cst_80 = arith.constant -1.000000e+30 : f32
    %305 = vector.broadcast %cst_80 : f32 to vector<16x16xf32>
    %306 = arith.select %304, %302, %305 : vector<16x16xi1>, vector<16x16xf32>
    %cst_81 = arith.constant dense<0xFF800000> : vector<16xf32>
    %307 = vector.multi_reduction <maximumf>, %306, %cst_81 [1] : vector<16x16xf32> to vector<16xf32>
    %308 = vector.shape_cast %307 : vector<16xf32> to vector<16x1xf32>
    %309 = vector.broadcast %308 : vector<16x1xf32> to vector<16x16xf32>
    %310 = arith.subf %306, %309 : vector<16x16xf32>
    %311 = math.exp %310 : vector<16x16xf32>
    %312 = arith.mulf %311, %112 : vector<16x16xf32>
    %cst_82 = arith.constant dense<0.000000e+00> : vector<16xf32>
    %313 = vector.multi_reduction <add>, %312, %cst_82 [1] : vector<16x16xf32> to vector<16xf32>
    %314 = vector.shape_cast %313 : vector<16xf32> to vector<16x1xf32>
    %cst_83 = arith.constant 9.99999968E-21 : f32
    %315 = vector.broadcast %cst_83 : f32 to vector<16x1xf32>
    %316 = arith.maximumf %314, %315 : vector<16x1xf32>
    %317 = tpu.reciprocal %316 {approx = true} : vector<16x1xf32> -> vector<16x1xf32>
    %318 = vector.broadcast %317 : vector<16x1xf32> to vector<16x16xf32>
    %319 = arith.mulf %312, %318 : vector<16x16xf32>
    %320 = vector.extract_strided_slice %115 {offsets = [0, 768], sizes = [16, 128], strides = [1, 1]} : vector<16x1280xf32> to vector<16x128xf32>
    %cst_84 = arith.constant dense<0.000000e+00> : vector<16x128xf32>
    %321 = tpu.matmul %319, %320, %cst_84 {dimension_numbers = #tpu.dot_dimension_numbers<[1], [0], [0], [1], [0, 0, 1, 1], [], []>} : vector<16x16xf32>, vector<16x128xf32>, vector<16x128xf32> -> vector<16x128xf32>
    %322 = vector.extract_strided_slice %117 {offsets = [0, 7], sizes = [16, 1], strides = [1, 1]} : vector<16x128xf32> to vector<16x1xf32>
    %323 = vector.extract_strided_slice %118 {offsets = [71, 0], sizes = [1, 16], strides = [1, 1]} : vector<128x16xf32> to vector<1x16xf32>
    %324 = vector.broadcast %322 : vector<16x1xf32> to vector<16x16xf32>
    %325 = vector.broadcast %323 : vector<1x16xf32> to vector<16x16xf32>
    %326 = arith.addf %324, %325 : vector<16x16xf32>
    %cst_85 = arith.constant 0.000000e+00 : f32
    %327 = vector.broadcast %cst_85 : f32 to vector<16x16xf32>
    %328 = arith.cmpf oge, %326, %327 : vector<16x16xf32>
    %cst_86 = arith.constant 2.000000e-01 : f32
    %329 = vector.broadcast %cst_86 : f32 to vector<16x16xf32>
    %330 = arith.mulf %329, %326 : vector<16x16xf32>
    %331 = arith.select %328, %326, %330 : vector<16x16xi1>, vector<16x16xf32>
    %cst_87 = arith.constant 0.000000e+00 : f32
    %332 = vector.broadcast %cst_87 : f32 to vector<16x16xf32>
    %333 = arith.cmpf ogt, %112, %332 : vector<16x16xf32>
    %cst_88 = arith.constant -1.000000e+30 : f32
    %334 = vector.broadcast %cst_88 : f32 to vector<16x16xf32>
    %335 = arith.select %333, %331, %334 : vector<16x16xi1>, vector<16x16xf32>
    %cst_89 = arith.constant dense<0xFF800000> : vector<16xf32>
    %336 = vector.multi_reduction <maximumf>, %335, %cst_89 [1] : vector<16x16xf32> to vector<16xf32>
    %337 = vector.shape_cast %336 : vector<16xf32> to vector<16x1xf32>
    %338 = vector.broadcast %337 : vector<16x1xf32> to vector<16x16xf32>
    %339 = arith.subf %335, %338 : vector<16x16xf32>
    %340 = math.exp %339 : vector<16x16xf32>
    %341 = arith.mulf %340, %112 : vector<16x16xf32>
    %cst_90 = arith.constant dense<0.000000e+00> : vector<16xf32>
    %342 = vector.multi_reduction <add>, %341, %cst_90 [1] : vector<16x16xf32> to vector<16xf32>
    %343 = vector.shape_cast %342 : vector<16xf32> to vector<16x1xf32>
    %cst_91 = arith.constant 9.99999968E-21 : f32
    %344 = vector.broadcast %cst_91 : f32 to vector<16x1xf32>
    %345 = arith.maximumf %343, %344 : vector<16x1xf32>
    %346 = tpu.reciprocal %345 {approx = true} : vector<16x1xf32> -> vector<16x1xf32>
    %347 = vector.broadcast %346 : vector<16x1xf32> to vector<16x16xf32>
    %348 = arith.mulf %341, %347 : vector<16x16xf32>
    %349 = vector.extract_strided_slice %115 {offsets = [0, 896], sizes = [16, 128], strides = [1, 1]} : vector<16x1280xf32> to vector<16x128xf32>
    %cst_92 = arith.constant dense<0.000000e+00> : vector<16x128xf32>
    %350 = tpu.matmul %348, %349, %cst_92 {dimension_numbers = #tpu.dot_dimension_numbers<[1], [0], [0], [1], [0, 0, 1, 1], [], []>} : vector<16x16xf32>, vector<16x128xf32>, vector<16x128xf32> -> vector<16x128xf32>
    %351 = vector.extract_strided_slice %117 {offsets = [0, 8], sizes = [16, 1], strides = [1, 1]} : vector<16x128xf32> to vector<16x1xf32>
    %352 = vector.extract_strided_slice %118 {offsets = [72, 0], sizes = [1, 16], strides = [1, 1]} : vector<128x16xf32> to vector<1x16xf32>
    %353 = vector.broadcast %351 : vector<16x1xf32> to vector<16x16xf32>
    %354 = vector.broadcast %352 : vector<1x16xf32> to vector<16x16xf32>
    %355 = arith.addf %353, %354 : vector<16x16xf32>
    %cst_93 = arith.constant 0.000000e+00 : f32
    %356 = vector.broadcast %cst_93 : f32 to vector<16x16xf32>
    %357 = arith.cmpf oge, %355, %356 : vector<16x16xf32>
    %cst_94 = arith.constant 2.000000e-01 : f32
    %358 = vector.broadcast %cst_94 : f32 to vector<16x16xf32>
    %359 = arith.mulf %358, %355 : vector<16x16xf32>
    %360 = arith.select %357, %355, %359 : vector<16x16xi1>, vector<16x16xf32>
    %cst_95 = arith.constant 0.000000e+00 : f32
    %361 = vector.broadcast %cst_95 : f32 to vector<16x16xf32>
    %362 = arith.cmpf ogt, %112, %361 : vector<16x16xf32>
    %cst_96 = arith.constant -1.000000e+30 : f32
    %363 = vector.broadcast %cst_96 : f32 to vector<16x16xf32>
    %364 = arith.select %362, %360, %363 : vector<16x16xi1>, vector<16x16xf32>
    %cst_97 = arith.constant dense<0xFF800000> : vector<16xf32>
    %365 = vector.multi_reduction <maximumf>, %364, %cst_97 [1] : vector<16x16xf32> to vector<16xf32>
    %366 = vector.shape_cast %365 : vector<16xf32> to vector<16x1xf32>
    %367 = vector.broadcast %366 : vector<16x1xf32> to vector<16x16xf32>
    %368 = arith.subf %364, %367 : vector<16x16xf32>
    %369 = math.exp %368 : vector<16x16xf32>
    %370 = arith.mulf %369, %112 : vector<16x16xf32>
    %cst_98 = arith.constant dense<0.000000e+00> : vector<16xf32>
    %371 = vector.multi_reduction <add>, %370, %cst_98 [1] : vector<16x16xf32> to vector<16xf32>
    %372 = vector.shape_cast %371 : vector<16xf32> to vector<16x1xf32>
    %cst_99 = arith.constant 9.99999968E-21 : f32
    %373 = vector.broadcast %cst_99 : f32 to vector<16x1xf32>
    %374 = arith.maximumf %372, %373 : vector<16x1xf32>
    %375 = tpu.reciprocal %374 {approx = true} : vector<16x1xf32> -> vector<16x1xf32>
    %376 = vector.broadcast %375 : vector<16x1xf32> to vector<16x16xf32>
    %377 = arith.mulf %370, %376 : vector<16x16xf32>
    %378 = vector.extract_strided_slice %115 {offsets = [0, 1024], sizes = [16, 128], strides = [1, 1]} : vector<16x1280xf32> to vector<16x128xf32>
    %cst_100 = arith.constant dense<0.000000e+00> : vector<16x128xf32>
    %379 = tpu.matmul %377, %378, %cst_100 {dimension_numbers = #tpu.dot_dimension_numbers<[1], [0], [0], [1], [0, 0, 1, 1], [], []>} : vector<16x16xf32>, vector<16x128xf32>, vector<16x128xf32> -> vector<16x128xf32>
    %380 = vector.extract_strided_slice %117 {offsets = [0, 9], sizes = [16, 1], strides = [1, 1]} : vector<16x128xf32> to vector<16x1xf32>
    %381 = vector.extract_strided_slice %118 {offsets = [73, 0], sizes = [1, 16], strides = [1, 1]} : vector<128x16xf32> to vector<1x16xf32>
    %382 = vector.broadcast %380 : vector<16x1xf32> to vector<16x16xf32>
    %383 = vector.broadcast %381 : vector<1x16xf32> to vector<16x16xf32>
    %384 = arith.addf %382, %383 : vector<16x16xf32>
    %cst_101 = arith.constant 0.000000e+00 : f32
    %385 = vector.broadcast %cst_101 : f32 to vector<16x16xf32>
    %386 = arith.cmpf oge, %384, %385 : vector<16x16xf32>
    %cst_102 = arith.constant 2.000000e-01 : f32
    %387 = vector.broadcast %cst_102 : f32 to vector<16x16xf32>
    %388 = arith.mulf %387, %384 : vector<16x16xf32>
    %389 = arith.select %386, %384, %388 : vector<16x16xi1>, vector<16x16xf32>
    %cst_103 = arith.constant 0.000000e+00 : f32
    %390 = vector.broadcast %cst_103 : f32 to vector<16x16xf32>
    %391 = arith.cmpf ogt, %112, %390 : vector<16x16xf32>
    %cst_104 = arith.constant -1.000000e+30 : f32
    %392 = vector.broadcast %cst_104 : f32 to vector<16x16xf32>
    %393 = arith.select %391, %389, %392 : vector<16x16xi1>, vector<16x16xf32>
    %cst_105 = arith.constant dense<0xFF800000> : vector<16xf32>
    %394 = vector.multi_reduction <maximumf>, %393, %cst_105 [1] : vector<16x16xf32> to vector<16xf32>
    %395 = vector.shape_cast %394 : vector<16xf32> to vector<16x1xf32>
    %396 = vector.broadcast %395 : vector<16x1xf32> to vector<16x16xf32>
    %397 = arith.subf %393, %396 : vector<16x16xf32>
    %398 = math.exp %397 : vector<16x16xf32>
    %399 = arith.mulf %398, %112 : vector<16x16xf32>
    %cst_106 = arith.constant dense<0.000000e+00> : vector<16xf32>
    %400 = vector.multi_reduction <add>, %399, %cst_106 [1] : vector<16x16xf32> to vector<16xf32>
    %401 = vector.shape_cast %400 : vector<16xf32> to vector<16x1xf32>
    %cst_107 = arith.constant 9.99999968E-21 : f32
    %402 = vector.broadcast %cst_107 : f32 to vector<16x1xf32>
    %403 = arith.maximumf %401, %402 : vector<16x1xf32>
    %404 = tpu.reciprocal %403 {approx = true} : vector<16x1xf32> -> vector<16x1xf32>
    %405 = vector.broadcast %404 : vector<16x1xf32> to vector<16x16xf32>
    %406 = arith.mulf %399, %405 : vector<16x16xf32>
    %407 = vector.extract_strided_slice %115 {offsets = [0, 1152], sizes = [16, 128], strides = [1, 1]} : vector<16x1280xf32> to vector<16x128xf32>
    %cst_108 = arith.constant dense<0.000000e+00> : vector<16x128xf32>
    %408 = tpu.matmul %406, %407, %cst_108 {dimension_numbers = #tpu.dot_dimension_numbers<[1], [0], [0], [1], [0, 0, 1, 1], [], []>} : vector<16x16xf32>, vector<16x128xf32>, vector<16x128xf32> -> vector<16x128xf32>
    %409 = tpu.concatenate %147, %176, %205, %234, %263, %292, %321, %350, %379, %408 in 1 : vector<16x128xf32>, vector<16x128xf32>, vector<16x128xf32>, vector<16x128xf32>, vector<16x128xf32>, vector<16x128xf32>, vector<16x128xf32>, vector<16x128xf32>, vector<16x128xf32>, vector<16x128xf32> -> vector<16x1280xf32>
    %c0_109 = arith.constant 0 : index
    %c0_110 = arith.constant 0 : index
    %410 = vector.load %arg6[%c0_109, %c0_110] : memref<1x1280xf32, #tpu.memory_space<vmem>>, vector<1x1280xf32>
    %411 = vector.broadcast %410 : vector<1x1280xf32> to vector<16x1280xf32>
    %412 = arith.addf %409, %411 : vector<16x1280xf32>
    %cst_111 = arith.constant 0.000000e+00 : f32
    %413 = vector.broadcast %cst_111 : f32 to vector<16x1280xf32>
    %414 = arith.cmpf ogt, %412, %413 : vector<16x1280xf32>
    %cst_112 = arith.constant 0.000000e+00 : f32
    %415 = vector.broadcast %cst_112 : f32 to vector<16x1280xf32>
    %416 = arith.minimumf %412, %415 : vector<16x1280xf32>
    %417 = math.exp %416 : vector<16x1280xf32>
    %cst_113 = arith.constant 1.000000e+00 : f32
    %418 = vector.broadcast %cst_113 : f32 to vector<16x1280xf32>
    %419 = arith.subf %417, %418 : vector<16x1280xf32>
    %420 = arith.select %414, %412, %419 : vector<16x1280xi1>, vector<16x1280xf32>
    %421 = arith.truncf %420 : vector<16x1280xf32> to vector<16x1280xbf16>
    %c0_114 = arith.constant 0 : index
    %c0_115 = arith.constant 0 : index
    %422 = vector.load %arg7[%c0_114, %c0_115] : memref<1280x128xbf16, #tpu.memory_space<vmem>>, vector<1280x128xbf16>
    %cst_116 = arith.constant dense<0.000000e+00> : vector<16x128xf32>
    %423 = tpu.matmul %421, %422, %cst_116 {dimension_numbers = #tpu.dot_dimension_numbers<[1], [0], [0], [1], [0, 0, 1, 1], [], []>} : vector<16x1280xbf16>, vector<1280x128xbf16>, vector<16x128xf32> -> vector<16x128xf32>
    %c0_117 = arith.constant 0 : index
    %c0_118 = arith.constant 0 : index
    %424 = vector.load %arg8[%c0_117, %c0_118] : memref<128x128xf32, #tpu.memory_space<vmem>>, vector<128x128xf32>
    %cst_119 = arith.constant dense<0.000000e+00> : vector<16x128xf32>
    %425 = tpu.matmul %423, %424, %cst_119 {dimension_numbers = #tpu.dot_dimension_numbers<[1], [0], [0], [1], [0, 0, 1, 1], [], []>} : vector<16x128xf32>, vector<128x128xf32>, vector<16x128xf32> -> vector<16x128xf32>
    %426 = tpu.transpose %425, [1, 0] : vector<16x128xf32> -> vector<128x16xf32>
    %427 = vector.extract_strided_slice %425 {offsets = [0, 0], sizes = [16, 1], strides = [1, 1]} : vector<16x128xf32> to vector<16x1xf32>
    %428 = vector.extract_strided_slice %426 {offsets = [64, 0], sizes = [1, 16], strides = [1, 1]} : vector<128x16xf32> to vector<1x16xf32>
    %429 = vector.broadcast %427 : vector<16x1xf32> to vector<16x16xf32>
    %430 = vector.broadcast %428 : vector<1x16xf32> to vector<16x16xf32>
    %431 = arith.addf %429, %430 : vector<16x16xf32>
    %cst_120 = arith.constant 0.000000e+00 : f32
    %432 = vector.broadcast %cst_120 : f32 to vector<16x16xf32>
    %433 = arith.cmpf oge, %431, %432 : vector<16x16xf32>
    %cst_121 = arith.constant 2.000000e-01 : f32
    %434 = vector.broadcast %cst_121 : f32 to vector<16x16xf32>
    %435 = arith.mulf %434, %431 : vector<16x16xf32>
    %436 = arith.select %433, %431, %435 : vector<16x16xi1>, vector<16x16xf32>
    %cst_122 = arith.constant 0.000000e+00 : f32
    %437 = vector.broadcast %cst_122 : f32 to vector<16x16xf32>
    %438 = arith.cmpf ogt, %112, %437 : vector<16x16xf32>
    %cst_123 = arith.constant -1.000000e+30 : f32
    %439 = vector.broadcast %cst_123 : f32 to vector<16x16xf32>
    %440 = arith.select %438, %436, %439 : vector<16x16xi1>, vector<16x16xf32>
    %cst_124 = arith.constant dense<0xFF800000> : vector<16xf32>
    %441 = vector.multi_reduction <maximumf>, %440, %cst_124 [1] : vector<16x16xf32> to vector<16xf32>
    %442 = vector.shape_cast %441 : vector<16xf32> to vector<16x1xf32>
    %443 = vector.broadcast %442 : vector<16x1xf32> to vector<16x16xf32>
    %444 = arith.subf %440, %443 : vector<16x16xf32>
    %445 = math.exp %444 : vector<16x16xf32>
    %446 = arith.mulf %445, %112 : vector<16x16xf32>
    %cst_125 = arith.constant dense<0.000000e+00> : vector<16xf32>
    %447 = vector.multi_reduction <add>, %446, %cst_125 [1] : vector<16x16xf32> to vector<16xf32>
    %448 = vector.shape_cast %447 : vector<16xf32> to vector<16x1xf32>
    %cst_126 = arith.constant 9.99999968E-21 : f32
    %449 = vector.broadcast %cst_126 : f32 to vector<16x1xf32>
    %450 = arith.maximumf %448, %449 : vector<16x1xf32>
    %451 = tpu.reciprocal %450 {approx = true} : vector<16x1xf32> -> vector<16x1xf32>
    %452 = vector.broadcast %451 : vector<16x1xf32> to vector<16x16xf32>
    %453 = arith.mulf %446, %452 : vector<16x16xf32>
    %cst_127 = arith.constant dense<0.000000e+00> : vector<16x128xf32>
    %454 = tpu.matmul %453, %423, %cst_127 {dimension_numbers = #tpu.dot_dimension_numbers<[1], [0], [0], [1], [0, 0, 1, 1], [], []>} : vector<16x16xf32>, vector<16x128xf32>, vector<16x128xf32> -> vector<16x128xf32>
    %c0_128 = arith.constant 0 : index
    %c0_129 = arith.constant 0 : index
    %455 = vector.load %arg9[%c0_128, %c0_129] : memref<1x128xf32, #tpu.memory_space<vmem>>, vector<1x128xf32>
    %456 = vector.broadcast %455 : vector<1x128xf32> to vector<16x128xf32>
    %457 = arith.addf %454, %456 : vector<16x128xf32>
    %cst_130 = arith.constant 0.000000e+00 : f32
    %458 = vector.broadcast %cst_130 : f32 to vector<16x128xf32>
    %459 = arith.maximumf %457, %458 : vector<16x128xf32>
    %cst_131 = arith.constant dense<0xFF800000> : vector<128xf32>
    %460 = vector.multi_reduction <maximumf>, %459, %cst_131 [0] : vector<16x128xf32> to vector<128xf32>
    %461 = vector.shape_cast %460 : vector<128xf32> to vector<1x128xf32>
    %c0_132 = arith.constant 0 : index
    %c0_133 = arith.constant 0 : index
    %462 = vector.load %arg15[%c0_132, %c0_133] : memref<128x128xf32, #tpu.memory_space<vmem>>, vector<128x128xf32>
    %cst_134 = arith.constant dense<0.000000e+00> : vector<1x128xf32>
    %463 = tpu.matmul %461, %462, %cst_134 {dimension_numbers = #tpu.dot_dimension_numbers<[1], [0], [0], [1], [0, 0, 1, 1], [], []>} : vector<1x128xf32>, vector<128x128xf32>, vector<1x128xf32> -> vector<1x128xf32>
    %c0_135 = arith.constant 0 : index
    %c0_136 = arith.constant 0 : index
    %464 = vector.load %arg16[%c0_135, %c0_136] : memref<1x128xf32, #tpu.memory_space<vmem>>, vector<1x128xf32>
    %465 = arith.addf %463, %464 : vector<1x128xf32>
    %cst_137 = arith.constant 0.000000e+00 : f32
    %466 = vector.broadcast %cst_137 : f32 to vector<1x128xf32>
    %467 = arith.maximumf %465, %466 : vector<1x128xf32>
    %468 = arith.truncf %467 : vector<1x128xf32> to vector<1x128xbf16>
    %c0_138 = arith.constant 0 : index
    %c0_139 = arith.constant 0 : index
    %469 = vector.load %arg17[%c0_138, %c0_139] : memref<128x1024xbf16, #tpu.memory_space<vmem>>, vector<128x1024xbf16>
    %cst_140 = arith.constant dense<0.000000e+00> : vector<1x1024xf32>
    %470 = tpu.matmul %468, %469, %cst_140 {dimension_numbers = #tpu.dot_dimension_numbers<[1], [0], [0], [1], [0, 0, 1, 1], [], []>} : vector<1x128xbf16>, vector<128x1024xbf16>, vector<1x1024xf32> -> vector<1x1024xf32>
    %471 = arith.truncf %108 : vector<1x128xf32> to vector<1x128xbf16>
    %c0_141 = arith.constant 0 : index
    %c0_142 = arith.constant 0 : index
    %472 = vector.load %arg18[%c0_141, %c0_142] : memref<128x1024xbf16, #tpu.memory_space<vmem>>, vector<128x1024xbf16>
    %cst_143 = arith.constant dense<0.000000e+00> : vector<1x1024xf32>
    %473 = tpu.matmul %471, %472, %cst_143 {dimension_numbers = #tpu.dot_dimension_numbers<[1], [0], [0], [1], [0, 0, 1, 1], [], []>} : vector<1x128xbf16>, vector<128x1024xbf16>, vector<1x1024xf32> -> vector<1x1024xf32>
    %474 = arith.addf %470, %473 : vector<1x1024xf32>
    %c0_144 = arith.constant 0 : index
    %c0_145 = arith.constant 0 : index
    %475 = vector.load %arg19[%c0_144, %c0_145] : memref<1x1024xf32, #tpu.memory_space<vmem>>, vector<1x1024xf32>
    %476 = arith.addf %474, %475 : vector<1x1024xf32>
    %cst_146 = arith.constant 0.000000e+00 : f32
    %477 = vector.broadcast %cst_146 : f32 to vector<1x1024xf32>
    %478 = arith.maximumf %476, %477 : vector<1x1024xf32>
    %479 = arith.truncf %478 : vector<1x1024xf32> to vector<1x1024xbf16>
    %c0_147 = arith.constant 0 : index
    %c0_148 = arith.constant 0 : index
    %480 = vector.load %arg20[%c0_147, %c0_148] : memref<1024x256xbf16, #tpu.memory_space<vmem>>, vector<1024x256xbf16>
    %cst_149 = arith.constant dense<0.000000e+00> : vector<1x256xf32>
    %481 = tpu.matmul %479, %480, %cst_149 {dimension_numbers = #tpu.dot_dimension_numbers<[1], [0], [0], [1], [0, 0, 1, 1], [], []>} : vector<1x1024xbf16>, vector<1024x256xbf16>, vector<1x256xf32> -> vector<1x256xf32>
    %c0_150 = arith.constant 0 : index
    %c0_151 = arith.constant 0 : index
    %482 = vector.load %arg21[%c0_150, %c0_151] : memref<1x256xf32, #tpu.memory_space<vmem>>, vector<1x256xf32>
    %483 = arith.addf %481, %482 : vector<1x256xf32>
    %cst_152 = arith.constant 0.000000e+00 : f32
    %484 = vector.broadcast %cst_152 : f32 to vector<1x256xf32>
    %485 = arith.maximumf %483, %484 : vector<1x256xf32>
    %c0_153 = arith.constant 0 : index
    %c0_154 = arith.constant 0 : index
    %486 = vector.load %arg22[%c0_153, %c0_154] : memref<256x1xf32, #tpu.memory_space<vmem>>, vector<256x1xf32>
    %cst_155 = arith.constant dense<0.000000e+00> : vector<1x1xf32>
    %487 = tpu.matmul %485, %486, %cst_155 {dimension_numbers = #tpu.dot_dimension_numbers<[1], [0], [0], [1], [0, 0, 1, 1], [], []>} : vector<1x256xf32>, vector<256x1xf32>, vector<1x1xf32> -> vector<1x1xf32>
    %c0_156 = arith.constant 0 : index
    %c0_157 = arith.constant 0 : index
    %488 = vector.load %arg23[%c0_156, %c0_157] : memref<1x1xf32, #tpu.memory_space<vmem>>, vector<1x1xf32>
    %489 = arith.addf %487, %488 : vector<1x1xf32>
    %c0_158 = arith.constant 0 : index
    %c0_159 = arith.constant 0 : index
    %c0_160 = arith.constant 0 : index
    %490 = vector.load %arg24[%c0_158, %c0_159, %c0_160] : memref<1x1x1xf32, #tpu.memory_space<vmem>>, vector<1x1x1xf32>
    %491 = vector.shape_cast %490 : vector<1x1x1xf32> to vector<1x1xf32>
    %492 = vector.shape_cast %489 : vector<1x1xf32> to vector<1x1x1xf32>
    tpu.vector_store %arg24[%c0_158, %c0_159, %c0_160], %492 {strides = array<i32>} : memref<1x1x1xf32, #tpu.memory_space<vmem>>, vector<1x1x1xf32>,
    return
  }
  func.func @transform_0(%arg0: i32) -> (i32, i32, i32) {
    %c0_i32 = arith.constant 0 : i32
    %c0_i32_0 = arith.constant 0 : i32
    %c0_i32_1 = arith.constant 0 : i32
    return %arg0, %c0_i32, %c0_i32_0 : i32, i32, i32
  }
  func.func @transform_1(%arg0: i32) -> (i32, i32, i32) {
    %c0_i32 = arith.constant 0 : i32
    %c0_i32_0 = arith.constant 0 : i32
    %c0_i32_1 = arith.constant 0 : i32
    return %arg0, %c0_i32, %c0_i32_0 : i32, i32, i32
  }
  func.func @transform_2(%arg0: i32) -> (i32, i32, i32) {
    %c0_i32 = arith.constant 0 : i32
    %c0_i32_0 = arith.constant 0 : i32
    %c0_i32_1 = arith.constant 0 : i32
    return %arg0, %c0_i32, %c0_i32_0 : i32, i32, i32
  }
  func.func @transform_3(%arg0: i32) -> (i32, i32) {
    %c0_i32 = arith.constant 0 : i32
    %c0_i32_0 = arith.constant 0 : i32
    %c0_i32_1 = arith.constant 0 : i32
    return %c0_i32, %c0_i32_0 : i32, i32
  }
  func.func @transform_4(%arg0: i32) -> (i32, i32) {
    %c0_i32 = arith.constant 0 : i32
    %c0_i32_0 = arith.constant 0 : i32
    %c0_i32_1 = arith.constant 0 : i32
    return %c0_i32, %c0_i32_0 : i32, i32
  }
  func.func @transform_5(%arg0: i32) -> (i32, i32) {
    %c0_i32 = arith.constant 0 : i32
    %c0_i32_0 = arith.constant 0 : i32
    %c0_i32_1 = arith.constant 0 : i32
    return %c0_i32, %c0_i32_0 : i32, i32
  }
  func.func @transform_6(%arg0: i32) -> (i32, i32) {
    %c0_i32 = arith.constant 0 : i32
    %c0_i32_0 = arith.constant 0 : i32
    %c0_i32_1 = arith.constant 0 : i32
    return %c0_i32, %c0_i32_0 : i32, i32
  }
  func.func @transform_7(%arg0: i32) -> (i32, i32) {
    %c0_i32 = arith.constant 0 : i32
    %c0_i32_0 = arith.constant 0 : i32
    %c0_i32_1 = arith.constant 0 : i32
    return %c0_i32, %c0_i32_0 : i32, i32
  }
  func.func @transform_8(%arg0: i32) -> (i32, i32) {
    %c0_i32 = arith.constant 0 : i32
    %c0_i32_0 = arith.constant 0 : i32
    %c0_i32_1 = arith.constant 0 : i32
    return %c0_i32, %c0_i32_0 : i32, i32
  }
  func.func @transform_9(%arg0: i32) -> (i32, i32) {
    %c0_i32 = arith.constant 0 : i32
    %c0_i32_0 = arith.constant 0 : i32
    %c0_i32_1 = arith.constant 0 : i32
    return %c0_i32, %c0_i32_0 : i32, i32
  }
  func.func @transform_10(%arg0: i32) -> (i32, i32) {
    %c0_i32 = arith.constant 0 : i32
    %c0_i32_0 = arith.constant 0 : i32
    %c0_i32_1 = arith.constant 0 : i32
    return %c0_i32, %c0_i32_0 : i32, i32
  }
  func.func @transform_11(%arg0: i32) -> (i32, i32) {
    %c0_i32 = arith.constant 0 : i32
    %c0_i32_0 = arith.constant 0 : i32
    %c0_i32_1 = arith.constant 0 : i32
    return %c0_i32, %c0_i32_0 : i32, i32
  }
  func.func @transform_12(%arg0: i32) -> (i32, i32) {
    %c0_i32 = arith.constant 0 : i32
    %c0_i32_0 = arith.constant 0 : i32
    %c0_i32_1 = arith.constant 0 : i32
    return %c0_i32, %c0_i32_0 : i32, i32
  }
  func.func @transform_13(%arg0: i32) -> (i32, i32) {
    %c0_i32 = arith.constant 0 : i32
    %c0_i32_0 = arith.constant 0 : i32
    %c0_i32_1 = arith.constant 0 : i32
    return %c0_i32, %c0_i32_0 : i32, i32
  }
  func.func @transform_14(%arg0: i32) -> (i32, i32) {
    %c0_i32 = arith.constant 0 : i32
    %c0_i32_0 = arith.constant 0 : i32
    %c0_i32_1 = arith.constant 0 : i32
    return %c0_i32, %c0_i32_0 : i32, i32
  }
  func.func @transform_15(%arg0: i32) -> (i32, i32) {
    %c0_i32 = arith.constant 0 : i32
    %c0_i32_0 = arith.constant 0 : i32
    %c0_i32_1 = arith.constant 0 : i32
    return %c0_i32, %c0_i32_0 : i32, i32
  }
  func.func @transform_16(%arg0: i32) -> (i32, i32) {
    %c0_i32 = arith.constant 0 : i32
    %c0_i32_0 = arith.constant 0 : i32
    %c0_i32_1 = arith.constant 0 : i32
    return %c0_i32, %c0_i32_0 : i32, i32
  }
  func.func @transform_17(%arg0: i32) -> (i32, i32) {
    %c0_i32 = arith.constant 0 : i32
    %c0_i32_0 = arith.constant 0 : i32
    %c0_i32_1 = arith.constant 0 : i32
    return %c0_i32, %c0_i32_0 : i32, i32
  }
  func.func @transform_18(%arg0: i32) -> (i32, i32) {
    %c0_i32 = arith.constant 0 : i32
    %c0_i32_0 = arith.constant 0 : i32
    %c0_i32_1 = arith.constant 0 : i32
    return %c0_i32, %c0_i32_0 : i32, i32
  }
  func.func @transform_19(%arg0: i32) -> (i32, i32) {
    %c0_i32 = arith.constant 0 : i32
    %c0_i32_0 = arith.constant 0 : i32
    %c0_i32_1 = arith.constant 0 : i32
    return %c0_i32, %c0_i32_0 : i32, i32
  }
  func.func @transform_20(%arg0: i32) -> (i32, i32) {
    %c0_i32 = arith.constant 0 : i32
    %c0_i32_0 = arith.constant 0 : i32
    %c0_i32_1 = arith.constant 0 : i32
    return %c0_i32, %c0_i32_0 : i32, i32
  }
  func.func @transform_21(%arg0: i32) -> (i32, i32) {
    %c0_i32 = arith.constant 0 : i32
    %c0_i32_0 = arith.constant 0 : i32
    %c0_i32_1 = arith.constant 0 : i32
    return %c0_i32, %c0_i32_0 : i32, i32
  }
  func.func @transform_22(%arg0: i32) -> (i32, i32) {
    %c0_i32 = arith.constant 0 : i32
    %c0_i32_0 = arith.constant 0 : i32
    %c0_i32_1 = arith.constant 0 : i32
    return %c0_i32, %c0_i32_0 : i32, i32
  }
  func.func @transform_23(%arg0: i32) -> (i32, i32, i32) {
    %c0_i32 = arith.constant 0 : i32
    %c0_i32_0 = arith.constant 0 : i32
    %c0_i32_1 = arith.constant 0 : i32
    return %arg0, %c0_i32, %c0_i32_0 : i32, i32, i32
  }
}

</mosaic_0001>

<bundles_post_ra>
// kernel: gatnet_forward.1
= control target key start
LH: loop header
LB: loop body
LE: loop exit
PB: predicated region body
PF: predicated region fallthrough
CT: control target
= control target key end

     0   :  { %s19533_s0 = inlined_call_operand.vmem [shape: f32[2,16,128], index: 0, kind: input, shape index: {}]   ;;  %s19534_s1 = inlined_call_operand.vmem [shape: f32[2,16,16], index: 1, kind: input, shape index: {}]   ;;  %s19535_s2 = inlined_call_operand.vmem [shape: s32[2,1024,1], index: 2, kind: input, shape index: {}]   ;;  %s19536_s3 = inlined_call_operand.hbm [shape: bf16[128,1280], index: 3, kind: input, shape index: {}]   ;;  %s19537_s4 = inlined_call_operand.hbm [shape: f32[1280,128], index: 4, kind: input, shape index: {}]   ;;  %s19538_s5 = inlined_call_operand.vmem [shape: f32[1,1280], index: 5, kind: input, shape index: {}]   ;;  %s19539_s6 = inlined_call_operand.hbm [shape: bf16[1280,128], index: 6, kind: input, shape index: {}]   ;;  %s19540_s7 = inlined_call_operand.vmem [shape: f32[128,128], index: 7, kind: input, shape index: {}]   ;;  %s19541_s8 = inlined_call_operand.vmem [shape: f32[1,128], index: 8, kind: input, shape index: {}]   ;;  %s19542_s9 = inlined_call_operand.vmem [shape: bf16[32,128], index: 9, kind: input, shape index: {}]   ;;  %s19543_s10 = inlined_call_operand.hbm [shape: bf16[256,1024], index: 10, kind: input, shape index: {}]   ;;  %s19544_s11 = inlined_call_operand.vmem [shape: f32[32,1], index: 11, kind: input, shape index: {}]   ;;  %s19545_s12 = inlined_call_operand.vmem [shape: bf16[128,4096], index: 12, kind: input, shape index: {}]   ;;  %s19546_s13 = inlined_call_operand.vmem [shape: f32[1,128], index: 13, kind: input, shape index: {}]   ;;  %s19547_s14 = inlined_call_operand.vmem [shape: f32[128,128], index: 14, kind: input, shape index: {}]   ;;  %s19548_s15 = inlined_call_operand.vmem [shape: f32[1,128], index: 15, kind: input, shape index: {}]   ;;  %s19549_s16 = inlined_call_operand.hbm [shape: bf16[128,1024], index: 16, kind: input, shape index: {}]   ;;  %s19550_s17 = inlined_call_operand.hbm [shape: bf16[128,1024], index: 17, kind: input, shape index: {}]   ;;  %s19551_s18 = inlined_call_operand.vmem [shape: f32[1,1024], index: 18, kind: input, shape index: {}]   ;;  %s19552_s19 = inlined_call_operand.hbm [shape: bf16[1024,256], index: 19, kind: input, shape index: {}]   ;;  %s19553_s20 = inlined_call_operand.vmem [shape: f32[1,256], index: 20, kind: input, shape index: {}]   ;;  %s19554_s21 = inlined_call_operand.vmem [shape: f32[256,1], index: 21, kind: input, shape index: {}]   ;;  %s19555_s22 = inlined_call_operand.<no memory space> [shape: f32[1,1], index: 22, kind: input, shape index: {}]   ;;  %s19556_s23 = inlined_call_operand.vmem [shape: f32[2,1,1], index: 23, kind: output, shape index: {}]  }
   0x1   :  { %19568 = sst [smem:[#allocation28_spill]] %s19533_s0  ;;  %v28_v0 = vstv %s19555_s22 }
   0x2   :  { %19569 = sst [smem:[#allocation29_spill]] %s19534_s1  ;;  %29 = vst [vmem:[#allocation2] sm:$0x1] %v28_v0 }
   0x3   :  { %19570 = sst [smem:[#allocation30_spill]] %s19535_s2 }
   0x4   :  { %19571 = sst [smem:[#allocation31_spill]] %s19536_s3 }
   0x5   :  { %19572 = sst [smem:[#allocation32_spill]] %s19537_s4 }
   0x6   :  { %19573 = sst [smem:[#allocation33_spill]] %s19538_s5 }
   0x7   :  { %19574 = sst [smem:[#allocation34_spill]] %s19539_s6 }
   0x8   :  { %19575 = sst [smem:[#allocation35_spill]] %s19540_s7 }
   0x9   :  { %19576 = sst [smem:[#allocation36_spill]] %s19543_s10 }
   0xa   :  { %30 = vsyncpa [#allocation4], 0 }
   0xb   :  { %31 = vsyncpa [#allocation6], 0 }
   0xc   :  { %32 = vsyncpa [#allocation9], 0 }
   0xd   :  { %33 = vsyncpa [#allocation12], 0  ;;  %s16337_s24 = smov 0  }
   0xe LB: > { %s16179_s25 = smov [#allocation5]   ;;  %s16343_s1 = sadd.s32 4294967295, %s16177_s24   ;;  %s16177_s24 = sphi %s16337_s24, %s39_s24  }
   0xf   : > { %s593_s5 = sshll.u32 %s16179_s25, 4  ;;  %p13177_p0 = scmp.ge.s32.totalorder %s16177_s24, 1  ;;  %s594_s5 = int_to_ptr.vmem [resolvable:$true] %s593_s5 }
  0x10   : > { %p568_p1 = scmp.lt.s32.totalorder %s16177_s24, 3  ;;  %p15371_p2 = scmp.eq.s32.totalorder %s16343_s1, 0 }
  0x11   : > { %s16180_s26 = smov [#allocation8]   ;;  %s16181_s27 = smov [#allocation11]  }
  0x12   : > { %p16348_p3 = pnand %p13177_p0, %p568_p1  ;;  %s631_s2 = sshll.u32 %s16180_s26, 4  ;;  %s16354_s2 = int_to_ptr.vmem [resolvable:$true] %s631_s2 }
  0x13   : > { %s16362_s7 = sshll.u32 %s16181_s27, 4  ;;  %s15984_s29 = scalar_lea.vmem %s594_s5, 20480  ;;  %s673_s7 = int_to_ptr.vmem [resolvable:$true] %s16362_s7 }
  0x14   : > { %p15349_p4 = pneg %p16348_p3  ;;  %p15985_p7 = scmp.ne.s32.totalorder %s594_s5, %s15984_s29 }
  0x15   : > { %p15992_p10 = scmp.lt.s32.totalorder %s594_s5, %s594_s5  ;;  %p15993_p11 = scmp.lt.s32.totalorder %s15984_s29, %s15984_s29 }
  0x16   : > { %p16358_p5 = pnand %p15371_p2, %p15349_p4 }
  0x17   : > { %p15994_p12 = por %p15993_p11, %p15992_p10 }
  0x18   : > { %p16366_p6 = pneg %p16358_p5 }
  0x1a   : > { %p15987_p8 = pnand %p15985_p7, %p16366_p6 }
  0x1c   : > { %p15988_p9 = pneg %p15987_p8 }
  0x1e   : > { %p15995_p13 = pnand %p15994_p12, %p15988_p9 }
  0x20   : > { %15998 = shalt.err (!%p15995_p13)
}
  0x21   : > { %s19559_s3 = smov 128   ;;  %s19560_s0 = smov 8  }
  0x22   : > { %s19580_s25 = sld [smem:[#allocation32_spill]]  ;;  %s16010_s26 = scalar_lea.vmem %s16354_s2, 16384 }
  0x23   : > { %p16011_p0 = scmp.ne.s32.totalorder %s16354_s2, %s16010_s26  ;;  %p16018_p7 = scmp.lt.s32.totalorder %s16354_s2, %s16354_s2 }
  0x24   : > { %p16019_p8 = scmp.lt.s32.totalorder %s16010_s26, %s16010_s26 }
  0x25   : > { %p16013_p1 = pnand %p16011_p0, %p16366_p6 }
  0x26   : > { %p16020_p9 = por %p16019_p8, %p16018_p7 }
  0x27   : > { %p16014_p4 = pneg %p16013_p1 }
  0x28   : > { %15355 = dma.hbm_to_vmem [thread:$0]  (!%p16358_p5), %s19580_s25, 20480, %s594_s5, [#allocation6], %s19559_s3, %s19559_s3, %s19560_s0  }
  0x29   : > { %p16021_p10 = pnand %p16020_p9, %p16014_p4 }
  0x2b   : > { %16024 = shalt.err (!%p16021_p10)
}
  0x2c   : > { %s19561_s27 = smov 512   ;;  %s19562_s29 = smov 32  }
  0x2d   : > { %s19581_s10 = sld [smem:[#allocation36_spill]]  ;;  %s16186_s30 = smov [#allocation3]  }
  0x2e   : > { %s580_s25 = sshll.u32 %s16186_s30, 4  ;;  %s16036_s26 = scalar_lea.vmem %s673_s7, 8192  ;;  %s581_s25 = int_to_ptr.vmem [resolvable:$true] %s580_s25 }
  0x2f   : > { %p16037_p11 = scmp.ne.s32.totalorder %s673_s7, %s16036_s26  ;;  %p16044_p0 = scmp.lt.s32.totalorder %s673_s7, %s673_s7 }
  0x30   : > { %p16045_p1 = scmp.lt.s32.totalorder %s16036_s26, %s16036_s26 }
  0x31   : > { %p16039_p12 = pnand %p16037_p11, %p16366_p6 }
  0x32   : > { %p16046_p4 = por %p16045_p1, %p16044_p0 }
  0x33   : > { %15361 = dma.hbm_to_vmem [thread:$0]  (!%p16358_p5), %s19581_s10, 16384, %s16354_s2, [#allocation9], %s19561_s27, %s19561_s27, %s19562_s29  }
  0x34   : > { %p16040_p13 = pneg %p16039_p12 }
  0x36   : > { %p16047_p7 = pnand %p16046_p4, %p16040_p13 }
  0x38   : > { %16050 = shalt.err (!%p16047_p7)
}
  0x39   : > { %15367 = dma.hbm_to_vmem [thread:$0]  (!%p16358_p5), %s19550_s17, 8192, %s673_s7, [#allocation12], %s19561_s27, %s19561_s27, %s19562_s29  }
  0x3a   : > { %s16062_s4 = scalar_lea.vmem %s581_s25, 10240  ;;  %p16070_p11 = scmp.lt.s32.totalorder %s581_s25, %s581_s25 }
  0x3b   : > { %p16063_p8 = scmp.ne.s32.totalorder %s581_s25, %s16062_s4  ;;  %p16071_p12 = scmp.lt.s32.totalorder %s16062_s4, %s16062_s4 }
  0x3d   : > { %p16065_p9 = pnand %p16063_p8, %p16366_p6  ;;  %p16072_p13 = por %p16071_p12, %p16070_p11 }
  0x3f   : > { %p16066_p10 = pneg %p16065_p9 }
  0x41   : > { %p16073_p0 = pnand %p16072_p13, %p16066_p10 }
  0x43   : > { %16076 = shalt.err (!%p16073_p0)
}
  0x44   : > { %s16187_s30 = smov 640   ;;  %s16188_s26 = smov 40  }
  0x45   : > { %s19582_s2 = sld [smem:[#allocation31_spill]]  ;;  %s16189_s7 = smov [#allocation7]  }
  0x46   : > { %s609_s0 = sshll.u32 %s16189_s7, 4  ;;  %s610_s0 = int_to_ptr.vmem [resolvable:$true] %s609_s0 }
  0x47   : > { %s16088_s27 = scalar_lea.vmem %s610_s0, 10240  ;;  %p16096_p8 = scmp.lt.s32.totalorder %s610_s0, %s610_s0 }
  0x48   : > { %p16089_p1 = scmp.ne.s32.totalorder %s610_s0, %s16088_s27  ;;  %p16097_p9 = scmp.lt.s32.totalorder %s16088_s27, %s16088_s27 }
  0x4a   : > { %p16091_p4 = pnand %p16089_p1, %p16366_p6  ;;  %p16098_p10 = por %p16097_p9, %p16096_p8 }
  0x4b   : > { %15352 = dma.hbm_to_vmem [thread:$0]  (!%p16358_p5), %s19582_s2, 10240, %s581_s25, [#allocation4], %s16187_s30, %s16187_s30, %s16188_s26  }
  0x4c   : > { %p16092_p7 = pneg %p16091_p4 }
  0x4e   : > { %p16099_p11 = pnand %p16098_p10, %p16092_p7 }
  0x50   : > { %16102 = shalt.err (!%p16099_p11)
}
  0x51   : > { %s16190_s4 = smov 64   ;;  %s16191_s29 = smov 4  }
  0x52   : > { %s19583_s30 = sld [smem:[#allocation34_spill]]  ;;  %s16192_s26 = smov [#allocation10]  }
  0x53   : > { %s659_s5 = sshll.u32 %s16192_s26, 4  ;;  %s16193_s2 = smov [#allocation13]   ;;  %s660_s5 = int_to_ptr.vmem [resolvable:$true] %s659_s5 }
  0x54   : > { %s688_s7 = sshll.u32 %s16193_s2, 4  ;;  %s16114_s10 = scalar_lea.vmem %s660_s5, 8192  ;;  %s689_s7 = int_to_ptr.vmem [resolvable:$true] %s688_s7 }
  0x55   : > { %p16115_p12 = scmp.ne.s32.totalorder %s660_s5, %s16114_s10  ;;  %p16122_p1 = scmp.lt.s32.totalorder %s660_s5, %s660_s5 }
  0x56   : > { %p16123_p4 = scmp.lt.s32.totalorder %s16114_s10, %s16114_s10 }
  0x57   : > { %p16117_p13 = pnand %p16115_p12, %p16366_p6 }
  0x58   : > { %15358 = dma.hbm_to_vmem [thread:$0]  (!%p16358_p5), %s19583_s30, 10240, %s610_s0, [#allocation6], %s16190_s4, %s16190_s4, %s16191_s29  }
  0x59   : > { %p16118_p0 = pneg %p16117_p13  ;;  %p16124_p7 = por %p16123_p4, %p16122_p1 }
  0x5b   : > { %p16125_p8 = pnand %p16124_p7, %p16118_p0 }
  0x5d   : > { %16128 = shalt.err (!%p16125_p8)
}
  0x5e   : > { %s19584_s27 = smov 32   ;;  %s19585_s0 = smov 512  }
  0x5f   : > { %15364 = dma.hbm_to_vmem [thread:$0]  (!%p16358_p5), %s19549_s16, 8192, %s660_s5, [#allocation9], %s19585_s0, %s19585_s0, %s19584_s27  }
  0x60   : > { %s16140_s3 = scalar_lea.vmem %s689_s7, 16384  ;;  %p16148_p12 = scmp.lt.s32.totalorder %s689_s7, %s689_s7 }
  0x61   : > { %p16141_p9 = scmp.ne.s32.totalorder %s689_s7, %s16140_s3  ;;  %p16149_p13 = scmp.lt.s32.totalorder %s16140_s3, %s16140_s3 }
  0x63   : > { %p16143_p10 = pnand %p16141_p9, %p16366_p6  ;;  %p16150_p1 = por %p16149_p13, %p16148_p12 }
  0x65   : > { %p16144_p11 = pneg %p16143_p10 }
  0x67   : > { %p16151_p0 = pnand %p16150_p1, %p16144_p11 }
  0x69   : > { %16154 = shalt.err (!%p16151_p0)
}
  0x6a   : > { %s19586_s10 = smov 8   ;;  %s19587_s25 = smov 128  }
  0x6b   : > { %15370 = dma.hbm_to_vmem [thread:$0]  (!%p16358_p5), %s19552_s19, 16384, %s689_s7, [#allocation12], %s19587_s25, %s19587_s25, %s19586_s10  }
  0x6c   : > { %737 = sbr.rel (%p16348_p3) target bundleno = 4795 (0x12bb), region = 112 }
  0x71   : > { %16160 = dma.done.wait (%p15371_p2), [#allocation4], 10240  }
  0x72   : > { %16162 = vsyncadd (%p15371_p2), [#allocation4], 4294957056 }
  0x73   : > { %16164 = dma.done.wait (%p15371_p2), [#allocation6], 30720  }
  0x74   : > { %16166 = vsyncadd (%p15371_p2), [#allocation6], 4294936576 }
  0x75   : > { %16168 = dma.done.wait (%p15371_p2), [#allocation9], 24576  }
  0x76   : > { %16170 = vsyncadd (%p15371_p2), [#allocation9], 4294942720 }
  0x77   : > { %16172 = dma.done.wait (%p15371_p2), [#allocation12], 24576  }
  0x78   : > { %16174 = vsyncadd (%p15371_p2), [#allocation12], 4294942720  ;;  %p833_p3 = scmp.lt.s32.totalorder %s16343_s1, 1  ;;  %v19566_v1 = vmov 0   ;;  %s19588_s5 = sld [smem:[#allocation30_spill]]  ;;  %v15449_v16 = vld [vmem:[%s19542_s9 + $0x8] sm:$0xff]  }
  0x79   : > { %15429 = vset.pattern.permute.xlu1 %v19566_v1  ;;  %15428 = vset.pattern.permute.xlu0 %v19566_v1  ;;  %v15450_v17 = vld [vmem:[%s19542_s9] sm:$0xff]   ;;  %vm1702_vm4 = vcmask 261120   ;;  %s16196_s30 = smov 127   ;;  %s16197_s26 = smov 126  }
  0x7a   : > { %s19617_s1 = smov (!%p833_p3, %s16343_s1), 1  ;;  %15042 = vmatprep.subr.bf16.mxu0 %v15449_v16  ;;  %s16199_s6 = smov 124  }
  0x7b   : > { %s14113_s22 = sshll.u32 %s19617_s1, 10  ;;  %15043 = vmatpush3.bf16.msra.mxu0 %v15449_v16  ;;  %s16200_s3 = smov 123  }
  0x7c   : > { %15044 = vmatprep.subr.bf16.mxu0 %v15450_v17  ;;  %s16201_s27 = smov 122   ;;  %s16202_s4 = smov 121  }
  0x7d   : > { %s14111_s28 = sshll.u32 %s19617_s1, 4  ;;  %s19611_s7 = sld [smem:[#allocation28_spill]] }
  0x7e   : > { %s16468_s2 = scalar_lea.vmem %s19588_s5, %s14113_s22  ;;  %s16198_s22 = smov 125  }
  0x7f   : > { %v854_v2 = vld [vmem:[%s16468_s2 + $0x10] sm:$0xff]  ;;  %v852_v3 = vld [vmem:[%s16468_s2] sm:$0xff]  ;;  %v855_v4 = vld [vmem:[%s16468_s2 + $0x18] sm:$0xff]  ;;  %15045 = vmatpush3.bf16.msra.mxu0 %v15450_v17  ;;  %s19612_s29 = sld [smem:[#allocation29_spill]]  ;;  %s850_s25 = scalar_lea.vmem %s19556_s23, %s19617_s1 }
  0x80   : > { %989 = vperm.xlu1 %15429, %v854_v2   ;;  %983 = vperm.xlu0 %15428, %v852_v3   ;;  %v853_v5 = vld [vmem:[%s16468_s2 + $0x8] sm:$0xff]  ;;  %v856_v7 = vld [vmem:[%s16468_s2 + $0x20] sm:$0xff]  ;;  %v859_v8 = vld [vmem:[%s16468_s2 + $0x38] sm:$0xff]  ;;  %v19565_v3 = vlaneseq  ;;  %s19613_s10 = sld [smem:[#allocation33_spill]] }
  0x81   : > { %v857_v6 = vld [vmem:[%s16468_s2 + $0x28] sm:$0xff]  ;;  %v858_v9 = vld [vmem:[%s16468_s2 + $0x30] sm:$0xff]  ;;  %v860_v11 = vld [vmem:[%s16468_s2 + $0x40] sm:$0xff]  ;;  %s19615_s5 = sld [smem:[#allocation35_spill]] }
  0x82   : > { %v861_v10 = vld [vmem:[%s16468_s2 + $0x48] sm:$0xff]  ;;  %v863_v12 = vld [vmem:[%s16468_s2 + $0x58] sm:$0xff]  ;;  %v862_v13 = vld [vmem:[%s16468_s2 + $0x50] sm:$0xff] }
  0x83   : > { %v865_v14 = vld [vmem:[%s16468_s2 + $0x68] sm:$0xff]  ;;  %v864_v15 = vld [vmem:[%s16468_s2 + $0x60] sm:$0xff]  ;;  %v867_v18 = vld [vmem:[%s16468_s2 + $0x78] sm:$0xff] }
  0x84   : > { %992 = vperm.xlu1 %15429, %v855_v4   ;;  %986 = vperm.xlu0 %15428, %v853_v5   ;;  %v866_v19 = vld [vmem:[%s16468_s2 + $0x70] sm:$0xff]  ;;  %v869_v20 = vld [vmem:[%s16468_s2 + $0x88] sm:$0xff]  ;;  %v868_v21 = vld [vmem:[%s16468_s2 + $0x80] sm:$0xff]  ;;  %v16539_v4 = vand.u32 127, %v19565_v3 }
  0x85   : > { %v871_v22 = vld [vmem:[%s16468_s2 + $0x98] sm:$0xff]  ;;  %v870_v23 = vld [vmem:[%s16468_s2 + $0x90] sm:$0xff]  ;;  %v873_v24 = vld [vmem:[%s16468_s2 + $0xa8] sm:$0xff] }
  0x86   : > { %v872_v25 = vld [vmem:[%s16468_s2 + $0xa0] sm:$0xff]  ;;  %v875_v26 = vld [vmem:[%s16468_s2 + $0xb8] sm:$0xff]  ;;  %v874_v27 = vld [vmem:[%s16468_s2 + $0xb0] sm:$0xff] }
  0x87   : > { %v877_v28 = vld [vmem:[%s16468_s2 + $0xc8] sm:$0xff]  ;;  %v876_v29 = vld [vmem:[%s16468_s2 + $0xc0] sm:$0xff]  ;;  %v879_v30 = vld [vmem:[%s16468_s2 + $0xd8] sm:$0xff] }
  0x88   : > { %998 = vperm.xlu1 %15429, %v857_v6   ;;  %995 = vperm.xlu0 %15428, %v856_v7   ;;  %v878_v31 = vld [vmem:[%s16468_s2 + $0xd0] sm:$0xff]  ;;  %v881_v32 = vld [vmem:[%s16468_s2 + $0xe8] sm:$0xff]  ;;  %v880_v33 = vld [vmem:[%s16468_s2 + $0xe0] sm:$0xff] }
  0x89   : > { %v883_v34 = vld [vmem:[%s16468_s2 + $0xf8] sm:$0xff]  ;;  %v882_v35 = vld [vmem:[%s16468_s2 + $0xf0] sm:$0xff]  ;;  %v885_v36 = vld [vmem:[%s16468_s2 + $0x108] sm:$0xff] }
  0x8a   : > { %v884_v37 = vld [vmem:[%s16468_s2 + $0x100] sm:$0xff]  ;;  %v887_v38 = vld [vmem:[%s16468_s2 + $0x118] sm:$0xff]  ;;  %v886_v39 = vld [vmem:[%s16468_s2 + $0x110] sm:$0xff] }
  0x8b   : > { %v889_v40 = vld [vmem:[%s16468_s2 + $0x128] sm:$0xff]  ;;  %v888_v41 = vld [vmem:[%s16468_s2 + $0x120] sm:$0xff]  ;;  %v891_v42 = vld [vmem:[%s16468_s2 + $0x138] sm:$0xff] }
  0x8c   : > { %1004 = vperm.xlu1 %15429, %v859_v8   ;;  %1001 = vperm.xlu0 %15428, %v858_v9   ;;  %v890_v43 = vld [vmem:[%s16468_s2 + $0x130] sm:$0xff]  ;;  %v893_v44 = vld [vmem:[%s16468_s2 + $0x148] sm:$0xff]  ;;  %v892_v45 = vld [vmem:[%s16468_s2 + $0x140] sm:$0xff] }
  0x8d   : > { %v895_v46 = vld [vmem:[%s16468_s2 + $0x158] sm:$0xff]  ;;  %v894_v47 = vld [vmem:[%s16468_s2 + $0x150] sm:$0xff]  ;;  %v897_v48 = vld [vmem:[%s16468_s2 + $0x168] sm:$0xff] }
  0x8e   : > { %v896_v49 = vld [vmem:[%s16468_s2 + $0x160] sm:$0xff]  ;;  %v899_v50 = vld [vmem:[%s16468_s2 + $0x178] sm:$0xff]  ;;  %v898_v51 = vld [vmem:[%s16468_s2 + $0x170] sm:$0xff] }
  0x8f   : > { %v901_v52 = vld [vmem:[%s16468_s2 + $0x188] sm:$0xff]  ;;  %v900_v53 = vld [vmem:[%s16468_s2 + $0x180] sm:$0xff]  ;;  %v903_v54 = vld [vmem:[%s16468_s2 + $0x198] sm:$0xff] }
  0x90   : > { %1010 = vperm.xlu1 %15429, %v861_v10   ;;  %1007 = vperm.xlu0 %15428, %v860_v11   ;;  %v902_v55 = vld [vmem:[%s16468_s2 + $0x190] sm:$0xff]  ;;  %v905_v56 = vld [vmem:[%s16468_s2 + $0x1a8] sm:$0xff]  ;;  %v904_v57 = vld [vmem:[%s16468_s2 + $0x1a0] sm:$0xff] }
  0x91   : > { %v907_v58 = vld [vmem:[%s16468_s2 + $0x1b8] sm:$0xff]  ;;  %v906_v59 = vld [vmem:[%s16468_s2 + $0x1b0] sm:$0xff]  ;;  %v909_v60 = vld [vmem:[%s16468_s2 + $0x1c8] sm:$0xff] }
  0x92   : > { %v908_v61 = vld [vmem:[%s16468_s2 + $0x1c0] sm:$0xff]  ;;  %v911_v62 = vld [vmem:[%s16468_s2 + $0x1d8] sm:$0xff]  ;;  %v910_v63 = vld [vmem:[%s16468_s2 + $0x1d0] sm:$0xff] }
  0x93   : > { %v913_v0 = vld [vmem:[%s16468_s2 + $0x1e8] sm:$0xff]  ;;  %v912_v2 = vld [vmem:[%s16468_s2 + $0x1e0] sm:$0xff]  ;;  %v915_v5 = vld [vmem:[%s16468_s2 + $0x1f8] sm:$0xff] }
  0x94   : > { %1016 = vperm.xlu1 %15429, %v863_v12   ;;  %1013 = vperm.xlu0 %15428, %v862_v13   ;;  %v914_v6 = vld [vmem:[%s16468_s2 + $0x1f0] sm:$0xff]  ;;  %v917_v9 = vld [vmem:[%s16468_s2 + $0x208] sm:$0xff]  ;;  %v916_v10 = vld [vmem:[%s16468_s2 + $0x200] sm:$0xff]  ;;  %v19563_v13 = vmov 0.0  }
  0x95   : > { %v918_v16 = vld [vmem:[%s16468_s2 + $0x210] sm:$0xff] }
  0x98   : > { %1022 = vperm.xlu1 %15429, %v865_v14   ;;  %1019 = vperm.xlu0 %15428, %v864_v15   ;;  %v919_v15 = vld [vmem:[%s16468_s2 + $0x218] sm:$0xff] }
  0x9c   : > { %1028 = vperm.xlu1 %15429, %v867_v18   ;;  %1025 = vperm.xlu0 %15428, %v866_v19  }
  0xa0   : > { %1034 = vperm.xlu1 %15429, %v869_v20   ;;  %1031 = vperm.xlu0 %15428, %v868_v21  }
  0xa4   : > { %1040 = vperm.xlu1 %15429, %v871_v22   ;;  %1037 = vperm.xlu0 %15428, %v870_v23  }
  0xa8   : > { %1046 = vperm.xlu1 %15429, %v873_v24   ;;  %1043 = vperm.xlu0 %15428, %v872_v25   ;;  %v921_v24 = vld [vmem:[%s16468_s2 + $0x228] sm:$0xff]  ;;  %v920_v25 = vld [vmem:[%s16468_s2 + $0x220] sm:$0xff] }
  0xac   : > { %1052 = vperm.xlu1 %15429, %v875_v26   ;;  %1049 = vperm.xlu0 %15428, %v874_v27  }
  0xb0   : > { %1058 = vperm.xlu1 %15429, %v877_v28   ;;  %1055 = vperm.xlu0 %15428, %v876_v29  }
  0xb4   : > { %1064 = vperm.xlu1 %15429, %v879_v30   ;;  %1061 = vperm.xlu0 %15428, %v878_v31   ;;  %v923_v31 = vld [vmem:[%s16468_s2 + $0x238] sm:$0xff] }
  0xb8   : > { %1070 = vperm.xlu1 %15429, %v881_v32   ;;  %1067 = vperm.xlu0 %15428, %v880_v33   ;;  %v922_v32 = vld [vmem:[%s16468_s2 + $0x230] sm:$0xff] }
  0xbc   : > { %1076 = vperm.xlu1 %15429, %v883_v34   ;;  %1073 = vperm.xlu0 %15428, %v882_v35  }
  0xc0   : > { %1082 = vperm.xlu1 %15429, %v885_v36   ;;  %1079 = vperm.xlu0 %15428, %v884_v37  }
  0xc4   : > { %1088 = vperm.xlu1 %15429, %v887_v38   ;;  %1085 = vperm.xlu0 %15428, %v886_v39   ;;  %v925_v38 = vld [vmem:[%s16468_s2 + $0x248] sm:$0xff]  ;;  %v924_v39 = vld [vmem:[%s16468_s2 + $0x240] sm:$0xff] }
  0xc8   : > { %1094 = vperm.xlu1 %15429, %v889_v40   ;;  %1091 = vperm.xlu0 %15428, %v888_v41  }
  0xcc   : > { %1100 = vperm.xlu1 %15429, %v891_v42   ;;  %1097 = vperm.xlu0 %15428, %v890_v43  }
  0xd0   : > { %1106 = vperm.xlu1 %15429, %v893_v44   ;;  %1103 = vperm.xlu0 %15428, %v892_v45   ;;  %v927_v45 = vld [vmem:[%s16468_s2 + $0x258] sm:$0xff] }
  0xd4   : > { %1112 = vperm.xlu1 %15429, %v895_v46   ;;  %1109 = vperm.xlu0 %15428, %v894_v47   ;;  %v926_v46 = vld [vmem:[%s16468_s2 + $0x250] sm:$0xff] }
  0xd8   : > { %1118 = vperm.xlu1 %15429, %v897_v48   ;;  %1115 = vperm.xlu0 %15428, %v896_v49  }
  0xdc   : > { %1124 = vperm.xlu1 %15429, %v899_v50   ;;  %1121 = vperm.xlu0 %15428, %v898_v51  }
  0xe0   : > { %1130 = vperm.xlu1 %15429, %v901_v52   ;;  %1127 = vperm.xlu0 %15428, %v900_v53   ;;  %v929_v52 = vld [vmem:[%s16468_s2 + $0x268] sm:$0xff]  ;;  %v928_v53 = vld [vmem:[%s16468_s2 + $0x260] sm:$0xff] }
  0xe4   : > { %1136 = vperm.xlu1 %15429, %v903_v54   ;;  %1133 = vperm.xlu0 %15428, %v902_v55  }
  0xe8   : > { %1142 = vperm.xlu1 %15429, %v905_v56   ;;  %1139 = vperm.xlu0 %15428, %v904_v57  }
  0xec   : > { %1148 = vperm.xlu1 %15429, %v907_v58   ;;  %1145 = vperm.xlu0 %15428, %v906_v59   ;;  %v931_v59 = vld [vmem:[%s16468_s2 + $0x278] sm:$0xff] }
  0xf0   : > { %1154 = vperm.xlu1 %15429, %v909_v60   ;;  %1151 = vperm.xlu0 %15428, %v908_v61   ;;  %v930_v60 = vld [vmem:[%s16468_s2 + $0x270] sm:$0xff] }
  0xf4   : > { %1160 = vperm.xlu1 %15429, %v911_v62   ;;  %1157 = vperm.xlu0 %15428, %v910_v63  }
  0xf8   : > { %1166 = vperm.xlu1 %15429, %v913_v0   ;;  %1163 = vperm.xlu0 %15428, %v912_v2  }
  0xfb   : > { %v990_v7 = vpop.permute.xlu1 %989  ;;  %v984_v8 = vpop.permute.xlu0 %983 }
  0xfc   : > { %1172 = vperm.xlu1 %15429, %v915_v5   ;;  %1169 = vperm.xlu0 %15428, %v914_v6   ;;  %vm1368_vm0 = vcmp.eq.s32.totalorder %v990_v7, %v16539_v4  ;;  %vm1366_vm1 = vcmp.eq.s32.totalorder %v984_v8, %v16539_v4  ;;  %v933_v5 = vld [vmem:[%s16468_s2 + $0x288] sm:$0xff]  ;;  %v932_v6 = vld [vmem:[%s16468_s2 + $0x280] sm:$0xff] }
  0xfd   : > { %v1496_v14 = vsel %vm1368_vm0, 1.0, %v19563_v13  ;;  %v1494_v18 = vsel %vm1366_vm1, 1.0, %v19563_v13 }
  0xff   : > { %v993_v11 = vpop.permute.xlu1 %992  ;;  %v987_v12 = vpop.permute.xlu0 %986 }
 0x100   : > { %vm1369_vm2 = vcmp.eq.s32.totalorder %v993_v11, %v16539_v4  ;;  %vm1367_vm3 = vcmp.eq.s32.totalorder %v987_v12, %v16539_v4  ;;  %1178 = vperm.xlu1 %15429, %v917_v9   ;;  %1175 = vperm.xlu0 %15428, %v916_v10   ;;  %v935_v12 = vld [vmem:[%s16468_s2 + $0x298] sm:$0xff] }
 0x101   : > { %v1497_v17 = vsel %vm1369_vm2, 1.0, %v19563_v13  ;;  %v1495_v19 = vsel %vm1367_vm3, 1.0, %v19563_v13 }
 0x102   : > { %v1623_v20 = vpack.c.bf16 %v1497_v17, %v1496_v14  ;;  %v1622_v21 = vpack.c.bf16 %v1495_v19, %v1494_v18  ;;  %v934_v14 = vld [vmem:[%s16468_s2 + $0x290] sm:$0xff] }
 0x103   : > { %v999_v22 = vpop.permute.xlu1 %998  ;;  %v996_v23 = vpop.permute.xlu0 %995 }
 0x104   : > { %vm1371_vm5 = vcmp.eq.s32.totalorder %v999_v22, %v16539_v4  ;;  %vm1370_vm6 = vcmp.eq.s32.totalorder %v996_v23, %v16539_v4  ;;  %1184 = vperm.xlu1 %15429, %v919_v15   ;;  %1181 = vperm.xlu0 %15428, %v918_v16  }
 0x105   : > { %v1499_v26 = vsel %vm1371_vm5, 1.0, %v19563_v13  ;;  %v1498_v27 = vsel %vm1370_vm6, 1.0, %v19563_v13  ;;  %15046 = vmatprep.mubr.msk.bf16.mxu0 %vm1702_vm4, %v1622_v21  ;;  %v936_v21 = vld [vmem:[%s16468_s2 + $0x2a0] sm:$0xff] }
 0x106   : > { %v1624_v28 = vpack.c.bf16 %v1499_v26, %v1498_v27  ;;  %15047 = vmatmul.mubr.msk.bf16.vlgmr.msra.gmra.mxu0 %vm1702_vm4, %v1623_v20  ;;  %v937_v20 = vld [vmem:[%s16468_s2 + $0x2a8] sm:$0xff] }
 0x107   : > { %v1005_v29 = vpop.permute.xlu1 %1004  ;;  %v1002_v30 = vpop.permute.xlu0 %1001 }
 0x108   : > { %vm1373_vm7 = vcmp.eq.s32.totalorder %v1005_v29, %v16539_v4  ;;  %vm1372_vm8 = vcmp.eq.s32.totalorder %v1002_v30, %v16539_v4  ;;  %1190 = vperm.xlu1 %15429, %v921_v24   ;;  %1187 = vperm.xlu0 %15428, %v920_v25   ;;  %v939_v29 = vld [vmem:[%s16468_s2 + $0x2b8] sm:$0xff]  ;;  %v938_v30 = vld [vmem:[%s16468_s2 + $0x2b0] sm:$0xff] }
 0x109   : > { %v1501_v33 = vsel %vm1373_vm7, 1.0, %v19563_v13  ;;  %v1500_v34 = vsel %vm1372_vm8, 1.0, %v19563_v13  ;;  %15050 = vmatprep.mubr.msk.bf16.mxu0 %vm1702_vm4, %v1624_v28 }
 0x10a   : > { %v1625_v35 = vpack.c.bf16 %v1501_v33, %v1500_v34 }
 0x10b   : > { %v1011_v36 = vpop.permute.xlu1 %1010  ;;  %v1008_v37 = vpop.permute.xlu0 %1007 }
 0x10c   : > { %vm1375_vm9 = vcmp.eq.s32.totalorder %v1011_v36, %v16539_v4  ;;  %vm1374_vm10 = vcmp.eq.s32.totalorder %v1008_v37, %v16539_v4  ;;  %1196 = vperm.xlu1 %15429, %v923_v31   ;;  %1193 = vperm.xlu0 %15428, %v922_v32   ;;  %v941_v36 = vld [vmem:[%s16468_s2 + $0x2c8] sm:$0xff]  ;;  %v940_v37 = vld [vmem:[%s16468_s2 + $0x2c0] sm:$0xff] }
 0x10d   : > { %v1503_v40 = vsel %vm1375_vm9, 1.0, %v19563_v13  ;;  %v1502_v41 = vsel %vm1374_vm10, 1.0, %v19563_v13 }
 0x10e   : > { %v1626_v42 = vpack.c.bf16 %v1503_v40, %v1502_v41  ;;  %15051 = vmatmul.mubr.msk.bf16.gmra.mxu0 %vm1702_vm4, %v1625_v35 }
 0x10f   : > { %v1017_v43 = vpop.permute.xlu1 %1016  ;;  %v1014_v44 = vpop.permute.xlu0 %1013 }
 0x110   : > { %vm1377_vm11 = vcmp.eq.s32.totalorder %v1017_v43, %v16539_v4  ;;  %vm1376_vm12 = vcmp.eq.s32.totalorder %v1014_v44, %v16539_v4  ;;  %1202 = vperm.xlu1 %15429, %v925_v38   ;;  %1199 = vperm.xlu0 %15428, %v924_v39   ;;  %v943_v43 = vld [vmem:[%s16468_s2 + $0x2d8] sm:$0xff]  ;;  %v942_v44 = vld [vmem:[%s16468_s2 + $0x2d0] sm:$0xff] }
 0x111   : > { %v1505_v47 = vsel %vm1377_vm11, 1.0, %v19563_v13  ;;  %v1504_v48 = vsel %vm1376_vm12, 1.0, %v19563_v13  ;;  %15054 = vmatprep.mubr.msk.bf16.mxu0 %vm1702_vm4, %v1626_v42 }
 0x112   : > { %v1627_v49 = vpack.c.bf16 %v1505_v47, %v1504_v48 }
 0x113   : > { %v1023_v50 = vpop.permute.xlu1 %1022  ;;  %v1020_v51 = vpop.permute.xlu0 %1019 }
 0x114   : > { %vm1379_vm13 = vcmp.eq.s32.totalorder %v1023_v50, %v16539_v4  ;;  %vm1378_vm14 = vcmp.eq.s32.totalorder %v1020_v51, %v16539_v4  ;;  %1208 = vperm.xlu1 %15429, %v927_v45   ;;  %1205 = vperm.xlu0 %15428, %v926_v46   ;;  %v945_v50 = vld [vmem:[%s16468_s2 + $0x2e8] sm:$0xff]  ;;  %v944_v51 = vld [vmem:[%s16468_s2 + $0x2e0] sm:$0xff] }
 0x115   : > { %v1507_v54 = vsel %vm1379_vm13, 1.0, %v19563_v13  ;;  %v1506_v55 = vsel %vm1378_vm14, 1.0, %v19563_v13 }
 0x116   : > { %v1628_v56 = vpack.c.bf16 %v1507_v54, %v1506_v55  ;;  %15055 = vmatmul.mubr.msk.bf16.gmra.mxu0 %vm1702_vm4, %v1627_v49 }
 0x117   : > { %v1029_v57 = vpop.permute.xlu1 %1028  ;;  %v1026_v58 = vpop.permute.xlu0 %1025 }
 0x118   : > { %vm1381_vm15 = vcmp.eq.s32.totalorder %v1029_v57, %v16539_v4  ;;  %vm1380_vm0 = vcmp.eq.s32.totalorder %v1026_v58, %v16539_v4  ;;  %1214 = vperm.xlu1 %15429, %v929_v52   ;;  %1211 = vperm.xlu0 %15428, %v928_v53   ;;  %v947_v57 = vld [vmem:[%s16468_s2 + $0x2f8] sm:$0xff]  ;;  %v946_v58 = vld [vmem:[%s16468_s2 + $0x2f0] sm:$0xff] }
 0x119   : > { %v1509_v61 = vsel %vm1381_vm15, 1.0, %v19563_v13  ;;  %v1508_v62 = vsel %vm1380_vm0, 1.0, %v19563_v13  ;;  %15058 = vmatprep.mubr.msk.bf16.mxu0 %vm1702_vm4, %v1628_v56 }
 0x11a   : > { %v1629_v63 = vpack.c.bf16 %v1509_v61, %v1508_v62 }
 0x11b   : > { %v1035_v0 = vpop.permute.xlu1 %1034  ;;  %v1032_v2 = vpop.permute.xlu0 %1031 }
 0x11c   : > { %vm1383_vm1 = vcmp.eq.s32.totalorder %v1035_v0, %v16539_v4  ;;  %vm1382_vm2 = vcmp.eq.s32.totalorder %v1032_v2, %v16539_v4  ;;  %1220 = vperm.xlu1 %15429, %v931_v59   ;;  %1217 = vperm.xlu0 %15428, %v930_v60   ;;  %v949_v0 = vld [vmem:[%s16468_s2 + $0x308] sm:$0xff]  ;;  %v948_v2 = vld [vmem:[%s16468_s2 + $0x300] sm:$0xff] }
 0x11d   : > { %v1511_v7 = vsel %vm1383_vm1, 1.0, %v19563_v13  ;;  %v1510_v8 = vsel %vm1382_vm2, 1.0, %v19563_v13 }
 0x11e   : > { %v1630_v9 = vpack.c.bf16 %v1511_v7, %v1510_v8  ;;  %15059 = vmatmul.mubr.msk.bf16.gmra.mxu0 %vm1702_vm4, %v1629_v63 }
 0x11f   : > { %v1041_v10 = vpop.permute.xlu1 %1040  ;;  %v1038_v11 = vpop.permute.xlu0 %1037 }
 0x120   : > { %vm1385_vm3 = vcmp.eq.s32.totalorder %v1041_v10, %v16539_v4  ;;  %vm1384_vm5 = vcmp.eq.s32.totalorder %v1038_v11, %v16539_v4  ;;  %1226 = vperm.xlu1 %15429, %v933_v5   ;;  %1223 = vperm.xlu0 %15428, %v932_v6   ;;  %v951_v10 = vld [vmem:[%s16468_s2 + $0x318] sm:$0xff]  ;;  %v950_v11 = vld [vmem:[%s16468_s2 + $0x310] sm:$0xff] }
 0x121   : > { %v1513_v15 = vsel %vm1385_vm3, 1.0, %v19563_v13  ;;  %v1512_v16 = vsel %vm1384_vm5, 1.0, %v19563_v13  ;;  %15062 = vmatprep.mubr.msk.bf16.mxu0 %vm1702_vm4, %v1630_v9 }
 0x122   : > { %v1631_v17 = vpack.c.bf16 %v1513_v15, %v1512_v16 }
 0x123   : > { %v1047_v18 = vpop.permute.xlu1 %1046  ;;  %v1044_v19 = vpop.permute.xlu0 %1043 }
 0x124   : > { %vm1387_vm6 = vcmp.eq.s32.totalorder %v1047_v18, %v16539_v4  ;;  %vm1386_vm7 = vcmp.eq.s32.totalorder %v1044_v19, %v16539_v4  ;;  %1232 = vperm.xlu1 %15429, %v935_v12   ;;  %1229 = vperm.xlu0 %15428, %v934_v14   ;;  %v953_v18 = vld [vmem:[%s16468_s2 + $0x328] sm:$0xff]  ;;  %v952_v19 = vld [vmem:[%s16468_s2 + $0x320] sm:$0xff] }
 0x125   : > { %v1515_v22 = vsel %vm1387_vm6, 1.0, %v19563_v13  ;;  %v1514_v23 = vsel %vm1386_vm7, 1.0, %v19563_v13 }
 0x126   : > { %v1632_v24 = vpack.c.bf16 %v1515_v22, %v1514_v23  ;;  %15063 = vmatmul.mubr.msk.bf16.gmra.mxu0 %vm1702_vm4, %v1631_v17 }
 0x127   : > { %v1053_v25 = vpop.permute.xlu1 %1052  ;;  %v1050_v26 = vpop.permute.xlu0 %1049 }
 0x128   : > { %vm1389_vm8 = vcmp.eq.s32.totalorder %v1053_v25, %v16539_v4  ;;  %vm1388_vm9 = vcmp.eq.s32.totalorder %v1050_v26, %v16539_v4  ;;  %1238 = vperm.xlu1 %15429, %v937_v20   ;;  %1235 = vperm.xlu0 %15428, %v936_v21   ;;  %v955_v25 = vld [vmem:[%s16468_s2 + $0x338] sm:$0xff]  ;;  %v954_v26 = vld [vmem:[%s16468_s2 + $0x330] sm:$0xff] }
 0x129   : > { %v1517_v27 = vsel %vm1389_vm8, 1.0, %v19563_v13  ;;  %v1516_v28 = vsel %vm1388_vm9, 1.0, %v19563_v13  ;;  %15066 = vmatprep.mubr.msk.bf16.mxu0 %vm1702_vm4, %v1632_v24 }
 0x12a   : > { %v1633_v31 = vpack.c.bf16 %v1517_v27, %v1516_v28 }
 0x12b   : > { %v1059_v32 = vpop.permute.xlu1 %1058  ;;  %v1056_v33 = vpop.permute.xlu0 %1055 }
 0x12c   : > { %vm1391_vm10 = vcmp.eq.s32.totalorder %v1059_v32, %v16539_v4  ;;  %vm1390_vm11 = vcmp.eq.s32.totalorder %v1056_v33, %v16539_v4  ;;  %1244 = vperm.xlu1 %15429, %v939_v29   ;;  %1241 = vperm.xlu0 %15428, %v938_v30   ;;  %v957_v32 = vld [vmem:[%s16468_s2 + $0x348] sm:$0xff]  ;;  %v956_v33 = vld [vmem:[%s16468_s2 + $0x340] sm:$0xff] }
 0x12d   : > { %v1519_v34 = vsel %vm1391_vm10, 1.0, %v19563_v13  ;;  %v1518_v35 = vsel %vm1390_vm11, 1.0, %v19563_v13 }
 0x12e   : > { %v1634_v38 = vpack.c.bf16 %v1519_v34, %v1518_v35  ;;  %15067 = vmatmul.mubr.msk.bf16.gmra.mxu0 %vm1702_vm4, %v1633_v31 }
 0x12f   : > { %v1065_v39 = vpop.permute.xlu1 %1064  ;;  %v1062_v40 = vpop.permute.xlu0 %1061 }
 0x130   : > { %vm1393_vm12 = vcmp.eq.s32.totalorder %v1065_v39, %v16539_v4  ;;  %vm1392_vm13 = vcmp.eq.s32.totalorder %v1062_v40, %v16539_v4  ;;  %1250 = vperm.xlu1 %15429, %v941_v36   ;;  %1247 = vperm.xlu0 %15428, %v940_v37   ;;  %v959_v39 = vld [vmem:[%s16468_s2 + $0x358] sm:$0xff]  ;;  %v958_v40 = vld [vmem:[%s16468_s2 + $0x350] sm:$0xff] }
 0x131   : > { %v1521_v41 = vsel %vm1393_vm12, 1.0, %v19563_v13  ;;  %v1520_v42 = vsel %vm1392_vm13, 1.0, %v19563_v13  ;;  %15070 = vmatprep.mubr.msk.bf16.mxu0 %vm1702_vm4, %v1634_v38 }
 0x132   : > { %v1635_v45 = vpack.c.bf16 %v1521_v41, %v1520_v42 }
 0x133   : > { %v1071_v46 = vpop.permute.xlu1 %1070  ;;  %v1068_v47 = vpop.permute.xlu0 %1067 }
 0x134   : > { %vm1395_vm14 = vcmp.eq.s32.totalorder %v1071_v46, %v16539_v4  ;;  %vm1394_vm15 = vcmp.eq.s32.totalorder %v1068_v47, %v16539_v4  ;;  %1256 = vperm.xlu1 %15429, %v943_v43   ;;  %1253 = vperm.xlu0 %15428, %v942_v44   ;;  %v961_v46 = vld [vmem:[%s16468_s2 + $0x368] sm:$0xff]  ;;  %v960_v47 = vld [vmem:[%s16468_s2 + $0x360] sm:$0xff] }
 0x135   : > { %v1523_v48 = vsel %vm1395_vm14, 1.0, %v19563_v13  ;;  %v1522_v49 = vsel %vm1394_vm15, 1.0, %v19563_v13 }
 0x136   : > { %v1636_v52 = vpack.c.bf16 %v1523_v48, %v1522_v49  ;;  %15071 = vmatmul.mubr.msk.bf16.gmra.mxu0 %vm1702_vm4, %v1635_v45 }
 0x137   : > { %v1077_v53 = vpop.permute.xlu1 %1076  ;;  %v1074_v54 = vpop.permute.xlu0 %1073 }
 0x138   : > { %vm1397_vm0 = vcmp.eq.s32.totalorder %v1077_v53, %v16539_v4  ;;  %vm1396_vm1 = vcmp.eq.s32.totalorder %v1074_v54, %v16539_v4  ;;  %1262 = vperm.xlu1 %15429, %v945_v50   ;;  %1259 = vperm.xlu0 %15428, %v944_v51   ;;  %v963_v53 = vld [vmem:[%s16468_s2 + $0x378] sm:$0xff]  ;;  %v962_v54 = vld [vmem:[%s16468_s2 + $0x370] sm:$0xff] }
 0x139   : > { %v1525_v55 = vsel %vm1397_vm0, 1.0, %v19563_v13  ;;  %v1524_v56 = vsel %vm1396_vm1, 1.0, %v19563_v13  ;;  %15074 = vmatprep.mubr.msk.bf16.mxu0 %vm1702_vm4, %v1636_v52 }
 0x13a   : > { %v1637_v59 = vpack.c.bf16 %v1525_v55, %v1524_v56 }
 0x13b   : > { %v1083_v60 = vpop.permute.xlu1 %1082  ;;  %v1080_v61 = vpop.permute.xlu0 %1079 }
 0x13c   : > { %vm1399_vm2 = vcmp.eq.s32.totalorder %v1083_v60, %v16539_v4  ;;  %vm1398_vm3 = vcmp.eq.s32.totalorder %v1080_v61, %v16539_v4  ;;  %1268 = vperm.xlu1 %15429, %v947_v57   ;;  %1265 = vperm.xlu0 %15428, %v946_v58   ;;  %v965_v60 = vld [vmem:[%s16468_s2 + $0x388] sm:$0xff]  ;;  %v964_v61 = vld [vmem:[%s16468_s2 + $0x380] sm:$0xff] }
 0x13d   : > { %v1527_v62 = vsel %vm1399_vm2, 1.0, %v19563_v13  ;;  %v1526_v63 = vsel %vm1398_vm3, 1.0, %v19563_v13 }
 0x13e   : > { %v1638_v5 = vpack.c.bf16 %v1527_v62, %v1526_v63  ;;  %15075 = vmatmul.mubr.msk.bf16.gmra.mxu0 %vm1702_vm4, %v1637_v59 }
 0x13f   : > { %v1089_v6 = vpop.permute.xlu1 %1088  ;;  %v1086_v7 = vpop.permute.xlu0 %1085 }
 0x140   : > { %vm1401_vm5 = vcmp.eq.s32.totalorder %v1089_v6, %v16539_v4  ;;  %vm1400_vm6 = vcmp.eq.s32.totalorder %v1086_v7, %v16539_v4  ;;  %1274 = vperm.xlu1 %15429, %v949_v0   ;;  %1271 = vperm.xlu0 %15428, %v948_v2   ;;  %v967_v6 = vld [vmem:[%s16468_s2 + $0x398] sm:$0xff]  ;;  %v966_v7 = vld [vmem:[%s16468_s2 + $0x390] sm:$0xff] }
 0x141   : > { %v1529_v8 = vsel %vm1401_vm5, 1.0, %v19563_v13  ;;  %v1528_v9 = vsel %vm1400_vm6, 1.0, %v19563_v13  ;;  %15078 = vmatprep.mubr.msk.bf16.mxu0 %vm1702_vm4, %v1638_v5 }
 0x142   : > { %v1639_v12 = vpack.c.bf16 %v1529_v8, %v1528_v9 }
 0x143   : > { %v1095_v14 = vpop.permute.xlu1 %1094  ;;  %v1092_v15 = vpop.permute.xlu0 %1091 }
 0x144   : > { %vm1403_vm7 = vcmp.eq.s32.totalorder %v1095_v14, %v16539_v4  ;;  %vm1402_vm8 = vcmp.eq.s32.totalorder %v1092_v15, %v16539_v4  ;;  %1280 = vperm.xlu1 %15429, %v951_v10   ;;  %1277 = vperm.xlu0 %15428, %v950_v11   ;;  %v969_v14 = vld [vmem:[%s16468_s2 + $0x3a8] sm:$0xff]  ;;  %v968_v15 = vld [vmem:[%s16468_s2 + $0x3a0] sm:$0xff] }
 0x145   : > { %v1531_v16 = vsel %vm1403_vm7, 1.0, %v19563_v13  ;;  %v1530_v17 = vsel %vm1402_vm8, 1.0, %v19563_v13 }
 0x146   : > { %v1640_v20 = vpack.c.bf16 %v1531_v16, %v1530_v17  ;;  %15079 = vmatmul.mubr.msk.bf16.gmra.mxu0 %vm1702_vm4, %v1639_v12 }
 0x147   : > { %v1101_v21 = vpop.permute.xlu1 %1100  ;;  %v1098_v22 = vpop.permute.xlu0 %1097 }
 0x148   : > { %vm1405_vm9 = vcmp.eq.s32.totalorder %v1101_v21, %v16539_v4  ;;  %vm1404_vm10 = vcmp.eq.s32.totalorder %v1098_v22, %v16539_v4  ;;  %1286 = vperm.xlu1 %15429, %v953_v18   ;;  %1283 = vperm.xlu0 %15428, %v952_v19   ;;  %v971_v21 = vld [vmem:[%s16468_s2 + $0x3b8] sm:$0xff]  ;;  %v970_v22 = vld [vmem:[%s16468_s2 + $0x3b0] sm:$0xff] }
 0x149   : > { %v1533_v23 = vsel %vm1405_vm9, 1.0, %v19563_v13  ;;  %v1532_v24 = vsel %vm1404_vm10, 1.0, %v19563_v13  ;;  %15082 = vmatprep.mubr.msk.bf16.mxu0 %vm1702_vm4, %v1640_v20 }
 0x14a   : > { %v1641_v27 = vpack.c.bf16 %v1533_v23, %v1532_v24 }
 0x14b   : > { %v1107_v28 = vpop.permute.xlu1 %1106  ;;  %v1104_v29 = vpop.permute.xlu0 %1103 }
 0x14c   : > { %vm1407_vm11 = vcmp.eq.s32.totalorder %v1107_v28, %v16539_v4  ;;  %vm1406_vm12 = vcmp.eq.s32.totalorder %v1104_v29, %v16539_v4  ;;  %1292 = vperm.xlu1 %15429, %v955_v25   ;;  %1289 = vperm.xlu0 %15428, %v954_v26   ;;  %v973_v28 = vld [vmem:[%s16468_s2 + $0x3c8] sm:$0xff]  ;;  %v972_v29 = vld [vmem:[%s16468_s2 + $0x3c0] sm:$0xff] }
 0x14d   : > { %v1535_v30 = vsel %vm1407_vm11, 1.0, %v19563_v13  ;;  %v1534_v31 = vsel %vm1406_vm12, 1.0, %v19563_v13 }
 0x14e   : > { %v1642_v34 = vpack.c.bf16 %v1535_v30, %v1534_v31  ;;  %15083 = vmatmul.mubr.msk.bf16.gmra.mxu0 %vm1702_vm4, %v1641_v27 }
 0x14f   : > { %v1113_v35 = vpop.permute.xlu1 %1112  ;;  %v1110_v36 = vpop.permute.xlu0 %1109 }
 0x150   : > { %vm1409_vm13 = vcmp.eq.s32.totalorder %v1113_v35, %v16539_v4  ;;  %vm1408_vm14 = vcmp.eq.s32.totalorder %v1110_v36, %v16539_v4  ;;  %1298 = vperm.xlu1 %15429, %v957_v32   ;;  %1295 = vperm.xlu0 %15428, %v956_v33   ;;  %v975_v35 = vld [vmem:[%s16468_s2 + $0x3d8] sm:$0xff]  ;;  %v974_v36 = vld [vmem:[%s16468_s2 + $0x3d0] sm:$0xff] }
 0x151   : > { %v1537_v37 = vsel %vm1409_vm13, 1.0, %v19563_v13  ;;  %v1536_v38 = vsel %vm1408_vm14, 1.0, %v19563_v13  ;;  %15086 = vmatprep.mubr.msk.bf16.mxu0 %vm1702_vm4, %v1642_v34 }
 0x152   : > { %v1643_v41 = vpack.c.bf16 %v1537_v37, %v1536_v38 }
 0x153   : > { %v1119_v42 = vpop.permute.xlu1 %1118  ;;  %v1116_v43 = vpop.permute.xlu0 %1115 }
 0x154   : > { %vm1411_vm15 = vcmp.eq.s32.totalorder %v1119_v42, %v16539_v4  ;;  %vm1410_vm0 = vcmp.eq.s32.totalorder %v1116_v43, %v16539_v4  ;;  %1304 = vperm.xlu1 %15429, %v959_v39   ;;  %1301 = vperm.xlu0 %15428, %v958_v40   ;;  %v977_v42 = vld [vmem:[%s16468_s2 + $0x3e8] sm:$0xff]  ;;  %v976_v43 = vld [vmem:[%s16468_s2 + $0x3e0] sm:$0xff] }
 0x155   : > { %v1539_v44 = vsel %vm1411_vm15, 1.0, %v19563_v13  ;;  %v1538_v45 = vsel %vm1410_vm0, 1.0, %v19563_v13 }
 0x156   : > { %v1644_v48 = vpack.c.bf16 %v1539_v44, %v1538_v45  ;;  %15087 = vmatmul.mubr.msk.bf16.gmra.mxu0 %vm1702_vm4, %v1643_v41 }
 0x157   : > { %v1125_v49 = vpop.permute.xlu1 %1124  ;;  %v1122_v50 = vpop.permute.xlu0 %1121 }
 0x158   : > { %vm1413_vm1 = vcmp.eq.s32.totalorder %v1125_v49, %v16539_v4  ;;  %vm1412_vm2 = vcmp.eq.s32.totalorder %v1122_v50, %v16539_v4  ;;  %1310 = vperm.xlu1 %15429, %v961_v46   ;;  %1307 = vperm.xlu0 %15428, %v960_v47   ;;  %v979_v49 = vld [vmem:[%s16468_s2 + $0x3f8] sm:$0xff]  ;;  %v978_v50 = vld [vmem:[%s16468_s2 + $0x3f0] sm:$0xff] }
 0x159   : > { %v1541_v51 = vsel %vm1413_vm1, 1.0, %v19563_v13  ;;  %v1540_v52 = vsel %vm1412_vm2, 1.0, %v19563_v13  ;;  %15090 = vmatprep.mubr.msk.bf16.mxu0 %vm1702_vm4, %v1644_v48 }
 0x15a   : > { %v1645_v55 = vpack.c.bf16 %v1541_v51, %v1540_v52 }
 0x15b   : > { %v1131_v56 = vpop.permute.xlu1 %1130  ;;  %v1128_v57 = vpop.permute.xlu0 %1127 }
 0x15c   : > { %vm1415_vm3 = vcmp.eq.s32.totalorder %v1131_v56, %v16539_v4  ;;  %vm1414_vm5 = vcmp.eq.s32.totalorder %v1128_v57, %v16539_v4  ;;  %1316 = vperm.xlu1 %15429, %v963_v53   ;;  %1313 = vperm.xlu0 %15428, %v962_v54   ;;  %v4001_v56 = vld [vmem:[%s19544_s11 + $0x8] sm:$0xff]  ;;  %v4000_v57 = vld [vmem:[%s19544_s11] sm:$0xff] }
 0x15d   : > { %v1543_v58 = vsel %vm1415_vm3, 1.0, %v19563_v13  ;;  %v1542_v59 = vsel %vm1414_vm5, 1.0, %v19563_v13 }
 0x15e   : > { %v1646_v62 = vpack.c.bf16 %v1543_v58, %v1542_v59  ;;  %15091 = vmatmul.mubr.msk.bf16.gmra.mxu0 %vm1702_vm4, %v1645_v55 }
 0x15f   : > { %v1137_v63 = vpop.permute.xlu1 %1136  ;;  %v1134_v0 = vpop.permute.xlu0 %1133 }
 0x160   : > { %vm1417_vm6 = vcmp.eq.s32.totalorder %v1137_v63, %v16539_v4  ;;  %vm1416_vm7 = vcmp.eq.s32.totalorder %v1134_v0, %v16539_v4  ;;  %1322 = vperm.xlu1 %15429, %v965_v60   ;;  %1319 = vperm.xlu0 %15428, %v964_v61  }
 0x161   : > { %v1545_v2 = vsel %vm1417_vm6, 1.0, %v19563_v13  ;;  %v1544_v5 = vsel %vm1416_vm7, 1.0, %v19563_v13  ;;  %15094 = vmatprep.mubr.msk.bf16.mxu0 %vm1702_vm4, %v1646_v62 }
 0x162   : > { %v1647_v8 = vpack.c.bf16 %v1545_v2, %v1544_v5 }
 0x163   : > { %v1143_v9 = vpop.permute.xlu1 %1142  ;;  %v1140_v10 = vpop.permute.xlu0 %1139 }
 0x164   : > { %vm1419_vm8 = vcmp.eq.s32.totalorder %v1143_v9, %v16539_v4  ;;  %vm1418_vm9 = vcmp.eq.s32.totalorder %v1140_v10, %v16539_v4  ;;  %1328 = vperm.xlu1 %15429, %v967_v6   ;;  %1325 = vperm.xlu0 %15428, %v966_v7  }
 0x165   : > { %v1547_v11 = vsel %vm1419_vm8, 1.0, %v19563_v13  ;;  %v1546_v12 = vsel %vm1418_vm9, 1.0, %v19563_v13 }
 0x166   : > { %v1648_v16 = vpack.c.bf16 %v1547_v11, %v1546_v12  ;;  %15095 = vmatmul.mubr.msk.bf16.gmra.mxu0 %vm1702_vm4, %v1647_v8 }
 0x167   : > { %v1149_v17 = vpop.permute.xlu1 %1148  ;;  %v1146_v18 = vpop.permute.xlu0 %1145 }
 0x168   : > { %vm1421_vm10 = vcmp.eq.s32.totalorder %v1149_v17, %v16539_v4  ;;  %vm1420_vm11 = vcmp.eq.s32.totalorder %v1146_v18, %v16539_v4  ;;  %1334 = vperm.xlu1 %15429, %v969_v14   ;;  %1331 = vperm.xlu0 %15428, %v968_v15  }
 0x169   : > { %v1549_v19 = vsel %vm1421_vm10, 1.0, %v19563_v13  ;;  %v1548_v20 = vsel %vm1420_vm11, 1.0, %v19563_v13  ;;  %15098 = vmatprep.mubr.msk.bf16.mxu0 %vm1702_vm4, %v1648_v16 }
 0x16a   : > { %v1649_v23 = vpack.c.bf16 %v1549_v19, %v1548_v20 }
 0x16b   : > { %v1155_v24 = vpop.permute.xlu1 %1154  ;;  %v1152_v25 = vpop.permute.xlu0 %1151 }
 0x16c   : > { %vm1423_vm12 = vcmp.eq.s32.totalorder %v1155_v24, %v16539_v4  ;;  %vm1422_vm13 = vcmp.eq.s32.totalorder %v1152_v25, %v16539_v4  ;;  %1340 = vperm.xlu1 %15429, %v971_v21   ;;  %1337 = vperm.xlu0 %15428, %v970_v22  }
 0x16d   : > { %v1551_v26 = vsel %vm1423_vm12, 1.0, %v19563_v13  ;;  %v1550_v27 = vsel %vm1422_vm13, 1.0, %v19563_v13 }
 0x16e   : > { %v1650_v30 = vpack.c.bf16 %v1551_v26, %v1550_v27  ;;  %15099 = vmatmul.mubr.msk.bf16.gmra.mxu0 %vm1702_vm4, %v1649_v23 }
 0x16f   : > { %v1161_v31 = vpop.permute.xlu1 %1160  ;;  %v1158_v32 = vpop.permute.xlu0 %1157 }
 0x170   : > { %vm1425_vm14 = vcmp.eq.s32.totalorder %v1161_v31, %v16539_v4  ;;  %vm1424_vm15 = vcmp.eq.s32.totalorder %v1158_v32, %v16539_v4  ;;  %1346 = vperm.xlu1 %15429, %v973_v28   ;;  %1343 = vperm.xlu0 %15428, %v972_v29  }
 0x171   : > { %v1553_v33 = vsel %vm1425_vm14, 1.0, %v19563_v13  ;;  %v1552_v34 = vsel %vm1424_vm15, 1.0, %v19563_v13  ;;  %15102 = vmatprep.mubr.msk.bf16.mxu0 %vm1702_vm4, %v1650_v30 }
 0x172   : > { %v1651_v37 = vpack.c.bf16 %v1553_v33, %v1552_v34 }
 0x173   : > { %v1167_v38 = vpop.permute.xlu1 %1166  ;;  %v1164_v39 = vpop.permute.xlu0 %1163 }
 0x174   : > { %vm1427_vm0 = vcmp.eq.s32.totalorder %v1167_v38, %v16539_v4  ;;  %vm1426_vm1 = vcmp.eq.s32.totalorder %v1164_v39, %v16539_v4  ;;  %1352 = vperm.xlu1 %15429, %v975_v35   ;;  %1349 = vperm.xlu0 %15428, %v974_v36  }
 0x175   : > { %v1555_v40 = vsel %vm1427_vm0, 1.0, %v19563_v13  ;;  %v1554_v41 = vsel %vm1426_vm1, 1.0, %v19563_v13 }
 0x176   : > { %v1652_v44 = vpack.c.bf16 %v1555_v40, %v1554_v41  ;;  %15103 = vmatmul.mubr.msk.bf16.gmra.mxu0 %vm1702_vm4, %v1651_v37 }
 0x177   : > { %v1173_v45 = vpop.permute.xlu1 %1172  ;;  %v1170_v46 = vpop.permute.xlu0 %1169 }
 0x178   : > { %vm1429_vm2 = vcmp.eq.s32.totalorder %v1173_v45, %v16539_v4  ;;  %vm1428_vm3 = vcmp.eq.s32.totalorder %v1170_v46, %v16539_v4  ;;  %1358 = vperm.xlu1 %15429, %v977_v42   ;;  %1355 = vperm.xlu0 %15428, %v976_v43   ;;  %v16822_v43 = vld [vmem:[#allocation8] sm:$0xff] }
 0x179   : > { %v1557_v47 = vsel %vm1429_vm2, 1.0, %v19563_v13  ;;  %v1556_v48 = vsel %vm1428_vm3, 1.0, %v19563_v13  ;;  %15106 = vmatprep.mubr.msk.bf16.mxu0 %vm1702_vm4, %v1652_v44  ;;  %v16824_v44 = vld [vmem:[#allocation8 + $0x20] sm:$0xff] }
 0x17a   : > { %v1653_v51 = vpack.c.bf16 %v1557_v47, %v1556_v48  ;;  %v13267_v46 = vcombine.high %v16822_v43, %v16824_v44 }
 0x17b   : > { %v1179_v52 = vpop.permute.xlu1 %1178  ;;  %v1176_v53 = vpop.permute.xlu0 %1175 }
 0x17c   : > { %vm1431_vm5 = vcmp.eq.s32.totalorder %v1179_v52, %v16539_v4  ;;  %vm1430_vm6 = vcmp.eq.s32.totalorder %v1176_v53, %v16539_v4  ;;  %1364 = vperm.xlu1 %15429, %v979_v49   ;;  %1361 = vperm.xlu0 %15428, %v978_v50   ;;  %v13266_v49 = vcombine.low %v16822_v43, %v16824_v44  ;;  %v2528_v44 = vld [vmem:[#allocation8 + $0xc0] sm:$0xff] }
 0x17d   : > { %v1559_v54 = vsel %vm1431_vm5, 1.0, %v19563_v13  ;;  %v1558_v55 = vsel %vm1430_vm6, 1.0, %v19563_v13  ;;  %3304 = vmatprep.mubr.bf16.mxu1 %v13267_v46 }
 0x17e   : > { %v1654_v58 = vpack.c.bf16 %v1559_v54, %v1558_v55  ;;  %15107 = vmatmul.mubr.msk.bf16.gmra.mxu0 %vm1702_vm4, %v1653_v51 }
 0x17f   : > { %v1185_v59 = vpop.permute.xlu1 %1184  ;;  %v1182_v60 = vpop.permute.xlu0 %1181 }
 0x180   : > { %vm1433_vm7 = vcmp.eq.s32.totalorder %v1185_v59, %v16539_v4  ;;  %vm1432_vm8 = vcmp.eq.s32.totalorder %v1182_v60, %v16539_v4  ;;  %4011 = vperm.xlu1 %15429, %v4001_v56   ;;  %4006 = vperm.xlu0 %15428, %v4000_v57  }
 0x181   : > { %v1561_v61 = vsel %vm1433_vm7, 1.0, %v19563_v13  ;;  %v1560_v62 = vsel %vm1432_vm8, 1.0, %v19563_v13  ;;  %15110 = vmatprep.mubr.msk.bf16.mxu0 %vm1702_vm4, %v1654_v58 }
 0x182   : > { %v1655_v63 = vpack.c.bf16 %v1561_v61, %v1560_v62 }
 0x183   : > { %v1191_v0 = vpop.permute.xlu1 %1190  ;;  %v1188_v2 = vpop.permute.xlu0 %1187 }
 0x184   : > { %vm1435_vm9 = vcmp.eq.s32.totalorder %v1191_v0, %v16539_v4  ;;  %vm1434_vm10 = vcmp.eq.s32.totalorder %v1188_v2, %v16539_v4 }
 0x185   : > { %v1563_v5 = vsel %vm1435_vm9, 1.0, %v19563_v13  ;;  %v1562_v6 = vsel %vm1434_vm10, 1.0, %v19563_v13 }
 0x186   : > { %v1656_v7 = vpack.c.bf16 %v1563_v5, %v1562_v6  ;;  %15111 = vmatmul.mubr.msk.bf16.gmra.mxu0 %vm1702_vm4, %v1655_v63 }
 0x187   : > { %v1197_v8 = vpop.permute.xlu1 %1196  ;;  %v1194_v9 = vpop.permute.xlu0 %1193 }
 0x188   : > { %vm1437_vm11 = vcmp.eq.s32.totalorder %v1197_v8, %v16539_v4  ;;  %vm1436_vm12 = vcmp.eq.s32.totalorder %v1194_v9, %v16539_v4  ;;  %15114 = vmatprep.mubr.msk.bf16.mxu0 %vm1702_vm4, %v1656_v7 }
 0x189   : > { %v1565_v10 = vsel %vm1437_vm11, 1.0, %v19563_v13  ;;  %v1564_v11 = vsel %vm1436_vm12, 1.0, %v19563_v13 }
 0x18a   : > { %v1657_v12 = vpack.c.bf16 %v1565_v10, %v1564_v11 }
 0x18b   : > { %v1203_v14 = vpop.permute.xlu1 %1202  ;;  %v1200_v15 = vpop.permute.xlu0 %1199 }
 0x18c   : > { %vm1439_vm13 = vcmp.eq.s32.totalorder %v1203_v14, %v16539_v4  ;;  %vm1438_vm14 = vcmp.eq.s32.totalorder %v1200_v15, %v16539_v4 }
 0x18d   : > { %v1567_v16 = vsel %vm1439_vm13, 1.0, %v19563_v13  ;;  %v1566_v17 = vsel %vm1438_vm14, 1.0, %v19563_v13 }
 0x18e   : > { %v1658_v18 = vpack.c.bf16 %v1567_v16, %v1566_v17  ;;  %15115 = vmatmul.mubr.msk.bf16.gmra.mxu0 %vm1702_vm4, %v1657_v12 }
 0x18f   : > { %v1209_v19 = vpop.permute.xlu1 %1208  ;;  %v1206_v20 = vpop.permute.xlu0 %1205 }
 0x190   : > { %vm1441_vm15 = vcmp.eq.s32.totalorder %v1209_v19, %v16539_v4  ;;  %vm1440_vm0 = vcmp.eq.s32.totalorder %v1206_v20, %v16539_v4  ;;  %15118 = vmatprep.mubr.msk.bf16.mxu0 %vm1702_vm4, %v1658_v18 }
 0x191   : > { %v1569_v21 = vsel %vm1441_vm15, 1.0, %v19563_v13  ;;  %v1568_v22 = vsel %vm1440_vm0, 1.0, %v19563_v13 }
 0x192   : > { %v1659_v23 = vpack.c.bf16 %v1569_v21, %v1568_v22 }
 0x193   : > { %v1215_v24 = vpop.permute.xlu1 %1214  ;;  %v1212_v25 = vpop.permute.xlu0 %1211 }
 0x194   : > { %vm1443_vm1 = vcmp.eq.s32.totalorder %v1215_v24, %v16539_v4  ;;  %vm1442_vm2 = vcmp.eq.s32.totalorder %v1212_v25, %v16539_v4 }
 0x195   : > { %v1571_v26 = vsel %vm1443_vm1, 1.0, %v19563_v13  ;;  %v1570_v27 = vsel %vm1442_vm2, 1.0, %v19563_v13 }
 0x196   : > { %v1660_v28 = vpack.c.bf16 %v1571_v26, %v1570_v27  ;;  %15119 = vmatmul.mubr.msk.bf16.gmra.mxu0 %vm1702_vm4, %v1659_v23 }
 0x197   : > { %v1221_v29 = vpop.permute.xlu1 %1220  ;;  %v1218_v30 = vpop.permute.xlu0 %1217 }
 0x198   : > { %vm1445_vm3 = vcmp.eq.s32.totalorder %v1221_v29, %v16539_v4  ;;  %vm1444_vm5 = vcmp.eq.s32.totalorder %v1218_v30, %v16539_v4  ;;  %15122 = vmatprep.mubr.msk.bf16.mxu0 %vm1702_vm4, %v1660_v28 }
 0x199   : > { %v1573_v31 = vsel %vm1445_vm3, 1.0, %v19563_v13  ;;  %v1572_v32 = vsel %vm1444_vm5, 1.0, %v19563_v13 }
 0x19a   : > { %v1661_v33 = vpack.c.bf16 %v1573_v31, %v1572_v32 }
 0x19b   : > { %v1227_v34 = vpop.permute.xlu1 %1226  ;;  %v1224_v35 = vpop.permute.xlu0 %1223 }
 0x19c   : > { %vm1447_vm6 = vcmp.eq.s32.totalorder %v1227_v34, %v16539_v4  ;;  %vm1446_vm7 = vcmp.eq.s32.totalorder %v1224_v35, %v16539_v4 }
 0x19d   : > { %v1575_v36 = vsel %vm1447_vm6, 1.0, %v19563_v13  ;;  %v1574_v37 = vsel %vm1446_vm7, 1.0, %v19563_v13 }
 0x19e   : > { %v1662_v38 = vpack.c.bf16 %v1575_v36, %v1574_v37  ;;  %15123 = vmatmul.mubr.msk.bf16.gmra.mxu0 %vm1702_vm4, %v1661_v33 }
 0x19f   : > { %v1233_v39 = vpop.permute.xlu1 %1232  ;;  %v1230_v40 = vpop.permute.xlu0 %1229 }
 0x1a0   : > { %vm1449_vm8 = vcmp.eq.s32.totalorder %v1233_v39, %v16539_v4  ;;  %vm1448_vm9 = vcmp.eq.s32.totalorder %v1230_v40, %v16539_v4  ;;  %15126 = vmatprep.mubr.msk.bf16.mxu0 %vm1702_vm4, %v1662_v38 }
 0x1a1   : > { %v1577_v41 = vsel %vm1449_vm8, 1.0, %v19563_v13  ;;  %v1576_v42 = vsel %vm1448_vm9, 1.0, %v19563_v13 }
 0x1a2   : > { %v1663_v45 = vpack.c.bf16 %v1577_v41, %v1576_v42 }
 0x1a3   : > { %v1239_v47 = vpop.permute.xlu1 %1238  ;;  %v1236_v48 = vpop.permute.xlu0 %1235 }
 0x1a4   : > { %vm1451_vm10 = vcmp.eq.s32.totalorder %v1239_v47, %v16539_v4  ;;  %vm1450_vm11 = vcmp.eq.s32.totalorder %v1236_v48, %v16539_v4 }
 0x1a5   : > { %v1579_v50 = vsel %vm1451_vm10, 1.0, %v19563_v13  ;;  %v1578_v51 = vsel %vm1450_vm11, 1.0, %v19563_v13 }
 0x1a6   : > { %v1664_v52 = vpack.c.bf16 %v1579_v50, %v1578_v51  ;;  %15127 = vmatmul.mubr.msk.bf16.gmra.mxu0 %vm1702_vm4, %v1663_v45 }
 0x1a7   : > { %v1245_v53 = vpop.permute.xlu1 %1244  ;;  %v1242_v54 = vpop.permute.xlu0 %1241 }
 0x1a8   : > { %vm1453_vm12 = vcmp.eq.s32.totalorder %v1245_v53, %v16539_v4  ;;  %vm1452_vm13 = vcmp.eq.s32.totalorder %v1242_v54, %v16539_v4  ;;  %15130 = vmatprep.mubr.msk.bf16.mxu0 %vm1702_vm4, %v1664_v52 }
 0x1a9   : > { %v1581_v55 = vsel %vm1453_vm12, 1.0, %v19563_v13  ;;  %v1580_v56 = vsel %vm1452_vm13, 1.0, %v19563_v13 }
 0x1aa   : > { %v1665_v57 = vpack.c.bf16 %v1581_v55, %v1580_v56 }
 0x1ab   : > { %v1251_v58 = vpop.permute.xlu1 %1250  ;;  %v1248_v59 = vpop.permute.xlu0 %1247 }
 0x1ac   : > { %vm1455_vm14 = vcmp.eq.s32.totalorder %v1251_v58, %v16539_v4  ;;  %vm1454_vm15 = vcmp.eq.s32.totalorder %v1248_v59, %v16539_v4 }
 0x1ad   : > { %v1583_v60 = vsel %vm1455_vm14, 1.0, %v19563_v13  ;;  %v1582_v61 = vsel %vm1454_vm15, 1.0, %v19563_v13 }
 0x1ae   : > { %v1666_v62 = vpack.c.bf16 %v1583_v60, %v1582_v61  ;;  %15131 = vmatmul.mubr.msk.bf16.gmra.mxu0 %vm1702_vm4, %v1665_v57 }
 0x1af   : > { %v1257_v63 = vpop.permute.xlu1 %1256  ;;  %v1254_v0 = vpop.permute.xlu0 %1253 }
 0x1b0   : > { %vm1457_vm0 = vcmp.eq.s32.totalorder %v1257_v63, %v16539_v4  ;;  %vm1456_vm1 = vcmp.eq.s32.totalorder %v1254_v0, %v16539_v4  ;;  %15134 = vmatprep.mubr.msk.bf16.mxu0 %vm1702_vm4, %v1666_v62 }
 0x1b1   : > { %v1585_v2 = vsel %vm1457_vm0, 1.0, %v19563_v13  ;;  %v1584_v5 = vsel %vm1456_vm1, 1.0, %v19563_v13 }
 0x1b2   : > { %v1667_v6 = vpack.c.bf16 %v1585_v2, %v1584_v5 }
 0x1b3   : > { %v1263_v7 = vpop.permute.xlu1 %1262  ;;  %v1260_v8 = vpop.permute.xlu0 %1259 }
 0x1b4   : > { %vm1459_vm2 = vcmp.eq.s32.totalorder %v1263_v7, %v16539_v4  ;;  %vm1458_vm3 = vcmp.eq.s32.totalorder %v1260_v8, %v16539_v4 }
 0x1b5   : > { %v1587_v9 = vsel %vm1459_vm2, 1.0, %v19563_v13  ;;  %v1586_v10 = vsel %vm1458_vm3, 1.0, %v19563_v13 }
 0x1b6   : > { %v1668_v11 = vpack.c.bf16 %v1587_v9, %v1586_v10  ;;  %15135 = vmatmul.mubr.msk.bf16.gmra.mxu0 %vm1702_vm4, %v1667_v6 }
 0x1b7   : > { %v1269_v12 = vpop.permute.xlu1 %1268  ;;  %v1266_v14 = vpop.permute.xlu0 %1265 }
 0x1b8   : > { %vm1461_vm5 = vcmp.eq.s32.totalorder %v1269_v12, %v16539_v4  ;;  %vm1460_vm6 = vcmp.eq.s32.totalorder %v1266_v14, %v16539_v4  ;;  %15138 = vmatprep.mubr.msk.bf16.mxu0 %vm1702_vm4, %v1668_v11 }
 0x1b9   : > { %v1589_v15 = vsel %vm1461_vm5, 1.0, %v19563_v13  ;;  %v1588_v16 = vsel %vm1460_vm6, 1.0, %v19563_v13 }
 0x1ba   : > { %v1669_v17 = vpack.c.bf16 %v1589_v15, %v1588_v16 }
 0x1bb   : > { %v1275_v18 = vpop.permute.xlu1 %1274  ;;  %v1272_v19 = vpop.permute.xlu0 %1271 }
 0x1bc   : > { %vm1463_vm7 = vcmp.eq.s32.totalorder %v1275_v18, %v16539_v4  ;;  %vm1462_vm8 = vcmp.eq.s32.totalorder %v1272_v19, %v16539_v4 }
 0x1bd   : > { %v1591_v20 = vsel %vm1463_vm7, 1.0, %v19563_v13  ;;  %v1590_v21 = vsel %vm1462_vm8, 1.0, %v19563_v13 }
 0x1be   : > { %v1670_v22 = vpack.c.bf16 %v1591_v20, %v1590_v21  ;;  %15139 = vmatmul.mubr.msk.bf16.gmra.mxu0 %vm1702_vm4, %v1669_v17 }
 0x1bf   : > { %v1281_v23 = vpop.permute.xlu1 %1280  ;;  %v1278_v24 = vpop.permute.xlu0 %1277 }
 0x1c0   : > { %vm1465_vm9 = vcmp.eq.s32.totalorder %v1281_v23, %v16539_v4  ;;  %vm1464_vm10 = vcmp.eq.s32.totalorder %v1278_v24, %v16539_v4  ;;  %15142 = vmatprep.mubr.msk.bf16.mxu0 %vm1702_vm4, %v1670_v22 }
 0x1c1   : > { %v1593_v25 = vsel %vm1465_vm9, 1.0, %v19563_v13  ;;  %v1592_v26 = vsel %vm1464_vm10, 1.0, %v19563_v13 }
 0x1c2   : > { %v1671_v27 = vpack.c.bf16 %v1593_v25, %v1592_v26 }
 0x1c3   : > { %v1287_v28 = vpop.permute.xlu1 %1286  ;;  %v1284_v29 = vpop.permute.xlu0 %1283 }
 0x1c4   : > { %vm1467_vm11 = vcmp.eq.s32.totalorder %v1287_v28, %v16539_v4  ;;  %vm1466_vm12 = vcmp.eq.s32.totalorder %v1284_v29, %v16539_v4 }
 0x1c5   : > { %v1595_v30 = vsel %vm1467_vm11, 1.0, %v19563_v13  ;;  %v1594_v31 = vsel %vm1466_vm12, 1.0, %v19563_v13 }
 0x1c6   : > { %v1672_v32 = vpack.c.bf16 %v1595_v30, %v1594_v31  ;;  %v16874_v33 = vpop.f32.mrf.mxu0  ;;  %15143 = vmatmul.mubr.msk.bf16.gmra.mxu0 %vm1702_vm4, %v1671_v27 }
 0x1c7   : > { %v1293_v34 = vpop.permute.xlu1 %1292  ;;  %v1290_v35 = vpop.permute.xlu0 %1289 }
 0x1c8   : > { %vm1469_vm13 = vcmp.eq.s32.totalorder %v1293_v34, %v16539_v4  ;;  %v16878_v36 = vpop.f32.mrf.mxu0  ;;  %vm1468_vm14 = vcmp.eq.s32.totalorder %v1290_v35, %v16539_v4  ;;  %15146 = vmatprep.mubr.msk.bf16.mxu0 %vm1702_vm4, %v1672_v32 }
 0x1c9   : > { %v1597_v37 = vsel %vm1469_vm13, 1.0, %v19563_v13  ;;  %v1596_v38 = vsel %vm1468_vm14, 1.0, %v19563_v13 }
 0x1ca   : > { %v1673_v39 = vpack.c.bf16 %v1597_v37, %v1596_v38  ;;  %v16884_v40 = vpop.f32.mrf.mxu0 }
 0x1cb   : > { %v2441_v41 = vpack.c.bf16 %v16884_v40, %v16874_v33  ;;  %v1299_v42 = vpop.permute.xlu1 %1298  ;;  %v1296_v45 = vpop.permute.xlu0 %1295 }
 0x1cc   : > { %vm1471_vm15 = vcmp.eq.s32.totalorder %v1299_v42, %v16539_v4  ;;  %v16889_v46 = vpop.f32.mrf.mxu0  ;;  %vm1470_vm0 = vcmp.eq.s32.totalorder %v1296_v45, %v16539_v4 }
 0x1cd   : > { %v1599_v47 = vsel %vm1471_vm15, 1.0, %v19563_v13  ;;  %v2440_v48 = vpack.c.bf16 %v16889_v46, %v16878_v36  ;;  %v1598_v50 = vsel %vm1470_vm0, 1.0, %v19563_v13  ;;  %v2520_v36 = vld [vmem:[#allocation8 + $0x80] sm:$0xff] }
 0x1ce   : > { %v1674_v51 = vpack.c.bf16 %v1599_v47, %v1598_v50  ;;  %v16896_v52 = vpop.f32.mrf.mxu0  ;;  %15147 = vmatmul.mubr.msk.bf16.gmra.mxu0 %vm1702_vm4, %v1673_v39  ;;  %v2524_v46 = vld [vmem:[#allocation8 + $0xa0] sm:$0xff] }
 0x1cf   : > { %v1305_v53 = vpop.permute.xlu1 %1304  ;;  %v1302_v54 = vpop.permute.xlu0 %1301 }
 0x1d0   : > { %vm1473_vm1 = vcmp.eq.s32.totalorder %v1305_v53, %v16539_v4  ;;  %v16900_v55 = vpop.f32.mrf.mxu0  ;;  %vm1472_vm2 = vcmp.eq.s32.totalorder %v1302_v54, %v16539_v4  ;;  %15150 = vmatprep.mubr.msk.bf16.mxu0 %vm1702_vm4, %v1674_v51 }
 0x1d1   : > { %v1601_v56 = vsel %vm1473_vm1, 1.0, %v19563_v13  ;;  %v1600_v57 = vsel %vm1472_vm2, 1.0, %v19563_v13 }
 0x1d2   : > { %v1675_v58 = vpack.c.bf16 %v1601_v56, %v1600_v57  ;;  %v16906_v59 = vpop.f32.mrf.mxu0 }
 0x1d3   : > { %v2443_v60 = vpack.c.bf16 %v16906_v59, %v16896_v52  ;;  %v1311_v61 = vpop.permute.xlu1 %1310  ;;  %v1308_v62 = vpop.permute.xlu0 %1307  ;;  %v2512_v59 = vld [vmem:[#allocation8 + $0x40] sm:$0xff] }
 0x1d4   : > { %vm1475_vm3 = vcmp.eq.s32.totalorder %v1311_v61, %v16539_v4  ;;  %v16911_v63 = vpop.f32.mrf.mxu0  ;;  %vm1474_vm5 = vcmp.eq.s32.totalorder %v1308_v62, %v16539_v4 }
 0x1d5   : > { %v1603_v0 = vsel %vm1475_vm3, 1.0, %v19563_v13  ;;  %v2442_v2 = vpack.c.bf16 %v16911_v63, %v16900_v55  ;;  %v1602_v5 = vsel %vm1474_vm5, 1.0, %v19563_v13  ;;  %v17049_v63 = vld [vmem:[#allocation8 + $0x10] sm:$0xff] }
 0x1d6   : > { %v1676_v6 = vpack.c.bf16 %v1603_v0, %v1602_v5  ;;  %v16918_v7 = vpop.f32.mrf.mxu0  ;;  %15151 = vmatmul.mubr.msk.bf16.gmra.mxu0 %vm1702_vm4, %v1675_v58 }
 0x1d7   : > { %v1317_v8 = vpop.permute.xlu1 %1316  ;;  %v1314_v9 = vpop.permute.xlu0 %1313 }
 0x1d8   : > { %vm1477_vm6 = vcmp.eq.s32.totalorder %v1317_v8, %v16539_v4  ;;  %v16922_v10 = vpop.f32.mrf.mxu0  ;;  %vm1476_vm7 = vcmp.eq.s32.totalorder %v1314_v9, %v16539_v4  ;;  %15154 = vmatprep.mubr.msk.bf16.mxu0 %vm1702_vm4, %v1676_v6 }
 0x1d9   : > { %v1605_v11 = vsel %vm1477_vm6, 1.0, %v19563_v13  ;;  %v1604_v12 = vsel %vm1476_vm7, 1.0, %v19563_v13 }
 0x1da   : > { %v1677_v14 = vpack.c.bf16 %v1605_v11, %v1604_v12  ;;  %v16928_v15 = vpop.f32.mrf.mxu0 }
 0x1db   : > { %v1323_v16 = vpop.permute.xlu1 %1322  ;;  %v1320_v17 = vpop.permute.xlu0 %1319 }
 0x1dc   : > { %vm1479_vm8 = vcmp.eq.s32.totalorder %v1323_v16, %v16539_v4  ;;  %v16931_v18 = vpop.f32.mrf.mxu0  ;;  %vm1478_vm9 = vcmp.eq.s32.totalorder %v1320_v17, %v16539_v4 }
 0x1dd   : > { %v1607_v19 = vsel %vm1479_vm8, 1.0, %v19563_v13  ;;  %v1606_v20 = vsel %vm1478_vm9, 1.0, %v19563_v13  ;;  %vm8144_vm9 = vcmask 130048  }
 0x1de   : > { %v1678_v21 = vpack.c.bf16 %v1607_v19, %v1606_v20  ;;  %v16936_v22 = vpop.f32.mrf.mxu0  ;;  %15155 = vmatmul.mubr.msk.bf16.gmra.mxu0 %vm1702_vm4, %v1677_v14 }
 0x1df   : > { %v1329_v23 = vpop.permute.xlu1 %1328  ;;  %v1326_v24 = vpop.permute.xlu0 %1325 }
 0x1e0   : > { %vm1481_vm10 = vcmp.eq.s32.totalorder %v1329_v23, %v16539_v4  ;;  %v16940_v25 = vpop.f32.mrf.mxu0  ;;  %vm1480_vm11 = vcmp.eq.s32.totalorder %v1326_v24, %v16539_v4  ;;  %15158 = vmatprep.mubr.msk.bf16.mxu0 %vm1702_vm4, %v1678_v21 }
 0x1e1   : > { %v1609_v26 = vsel %vm1481_vm10, 1.0, %v19563_v13  ;;  %v1608_v27 = vsel %vm1480_vm11, 1.0, %v19563_v13 }
 0x1e2   : > { %v1679_v28 = vpack.c.bf16 %v1609_v26, %v1608_v27  ;;  %v16946_v29 = vpop.f32.mrf.mxu0 }
 0x1e3   : > { %v1335_v30 = vpop.permute.xlu1 %1334  ;;  %v1332_v31 = vpop.permute.xlu0 %1331 }
 0x1e4   : > { %vm1483_vm12 = vcmp.eq.s32.totalorder %v1335_v30, %v16539_v4  ;;  %v16949_v32 = vpop.f32.mrf.mxu0  ;;  %vm1482_vm13 = vcmp.eq.s32.totalorder %v1332_v31, %v16539_v4 }
 0x1e5   : > { %v1611_v34 = vsel %vm1483_vm12, 1.0, %v19563_v13  ;;  %v1610_v35 = vsel %vm1482_vm13, 1.0, %v19563_v13 }
 0x1e6   : > { %v1680_v37 = vpack.c.bf16 %v1611_v34, %v1610_v35  ;;  %v16954_v38 = vpop.f32.mrf.mxu0  ;;  %15159 = vmatmul.mubr.msk.bf16.gmra.mxu0 %vm1702_vm4, %v1679_v28 }
 0x1e7   : > { %v1341_v39 = vpop.permute.xlu1 %1340  ;;  %v1338_v42 = vpop.permute.xlu0 %1337 }
 0x1e8   : > { %vm1485_vm14 = vcmp.eq.s32.totalorder %v1341_v39, %v16539_v4  ;;  %v16958_v45 = vpop.f32.mrf.mxu0  ;;  %vm1484_vm15 = vcmp.eq.s32.totalorder %v1338_v42, %v16539_v4  ;;  %15162 = vmatprep.mubr.msk.bf16.mxu0 %vm1702_vm4, %v1680_v37 }
 0x1e9   : > { %v1613_v47 = vsel %vm1485_vm14, 1.0, %v19563_v13  ;;  %v1612_v50 = vsel %vm1484_vm15, 1.0, %v19563_v13 }
 0x1ea   : > { %v1681_v51 = vpack.c.bf16 %v1613_v47, %v1612_v50  ;;  %v16964_v53 = vpop.f32.mrf.mxu0 }
 0x1eb   : > { %v1347_v54 = vpop.permute.xlu1 %1346  ;;  %v1344_v56 = vpop.permute.xlu0 %1343 }
 0x1ec   : > { %vm1487_vm0 = vcmp.eq.s32.totalorder %v1347_v54, %v16539_v4  ;;  %v16967_v57 = vpop.f32.mrf.mxu0  ;;  %vm1486_vm1 = vcmp.eq.s32.totalorder %v1344_v56, %v16539_v4 }
 0x1ed   : > { %v1615_v58 = vsel %vm1487_vm0, 1.0, %v19563_v13  ;;  %v1614_v61 = vsel %vm1486_vm1, 1.0, %v19563_v13 }
 0x1ee   : > { %v1682_v62 = vpack.c.bf16 %v1615_v58, %v1614_v61  ;;  %v16972_v0 = vpop.f32.mrf.mxu0  ;;  %15163 = vmatmul.mubr.msk.bf16.gmra.mxu0 %vm1702_vm4, %v1681_v51  ;;  %v2447_v51 = vpack.c.bf16 %v16946_v29, %v16936_v22  ;;  %v2446_v58 = vpack.c.bf16 %v16949_v32, %v16940_v25  ;;  %v2445_v22 = vpack.c.bf16 %v16928_v15, %v16918_v7 }
 0x1ef   : > { %v1353_v5 = vpop.permute.xlu1 %1352  ;;  %v1350_v6 = vpop.permute.xlu0 %1349  ;;  %v2444_v25 = vpack.c.bf16 %v16931_v18, %v16922_v10  ;;  %v2449_v18 = vpack.c.bf16 %v16964_v53, %v16954_v38 }
 0x1f0   : > { %vm1489_vm2 = vcmp.eq.s32.totalorder %v1353_v5, %v16539_v4  ;;  %v16976_v8 = vpop.f32.mrf.mxu0  ;;  %vm1488_vm3 = vcmp.eq.s32.totalorder %v1350_v6, %v16539_v4  ;;  %15166 = vmatprep.mubr.msk.bf16.mxu0 %vm1702_vm4, %v1682_v62 }
 0x1f1   : > { %v1617_v9 = vsel %vm1489_vm2, 1.0, %v19563_v13  ;;  %v1616_v11 = vsel %vm1488_vm3, 1.0, %v19563_v13 }
 0x1f2   : > { %v1683_v12 = vpack.c.bf16 %v1617_v9, %v1616_v11  ;;  %v15069_v14 = vpop.f32.mrf.mxu0 }
 0x1f3   : > { %v1359_v16 = vpop.permute.xlu1 %1358  ;;  %v1356_v17 = vpop.permute.xlu0 %1355 }
 0x1f4   : > { %vm1491_vm5 = vcmp.eq.s32.totalorder %v1359_v16, %v16539_v4  ;;  %v2012_v19 = vpop.f32.mrf.mxu0  ;;  %vm1490_vm6 = vcmp.eq.s32.totalorder %v1356_v17, %v16539_v4 }
 0x1f5   : > { %v1619_v20 = vsel %vm1491_vm5, 1.0, %v19563_v13  ;;  %v1618_v21 = vsel %vm1490_vm6, 1.0, %v19563_v13  ;;  %v2450_v17 = vpack.c.bf16 %v2012_v19, %v16976_v8 }
 0x1f6   : > { %v1684_v23 = vpack.c.bf16 %v1619_v20, %v1618_v21  ;;  %v15072_v24 = vpop.f32.mrf.mxu0  ;;  %15167 = vmatmul.mubr.msk.bf16.gmra.mxu0 %vm1702_vm4, %v1683_v12  ;;  %v2451_v12 = vpack.c.bf16 %v15069_v14, %v16972_v0  ;;  %v2448_v14 = vpack.c.bf16 %v16967_v57, %v16958_v45  ;;  %v13283_v21 = vcombine.high %v2520_v36, %v2524_v46 }
 0x1f7   : > { %v1365_v26 = vpop.permute.xlu1 %1364  ;;  %v1362_v27 = vpop.permute.xlu0 %1361 }
 0x1f8   : > { %vm1493_vm7 = vcmp.eq.s32.totalorder %v1365_v26, %v16539_v4  ;;  %v2025_v28 = vpop.f32.mrf.mxu0  ;;  %vm1492_vm8 = vcmp.eq.s32.totalorder %v1362_v27, %v16539_v4  ;;  %15170 = vmatprep.mubr.msk.bf16.mxu0 %vm1702_vm4, %v1684_v23  ;;  %v13282_v26 = vcombine.low %v2520_v36, %v2524_v46 }
 0x1f9   : > { %v1621_v30 = vsel %vm1493_vm7, 1.0, %v19563_v13  ;;  %v1620_v31 = vsel %vm1492_vm8, 1.0, %v19563_v13 }
 0x1fa   : > { %v1685_v34 = vpack.c.bf16 %v1621_v30, %v1620_v31  ;;  %v15073_v35 = vpop.f32.mrf.mxu0 }
 0x1fb   : > { %v2453_v62 = vpack.c.bf16 %v15073_v35, %v15072_v24  ;;  %v2540_v35 = vld [vmem:[#allocation8 + $0x120] sm:$0xff] }
 0x1fc   : > { %v2028_v37 = vpop.f32.mrf.mxu0 }
 0x1fd   : > { %v2452_v9 = vpack.c.bf16 %v2028_v37, %v2025_v28 }
 0x1fe   : > { %v15076_v39 = vpop.f32.mrf.mxu0  ;;  %15171 = vmatmul.mubr.msk.bf16.gmra.mxu0 %vm1702_vm4, %v1685_v34  ;;  %v2536_v34 = vld [vmem:[#allocation8 + $0x100] sm:$0xff] }
 0x200   : > { %v2041_v42 = vpop.f32.mrf.mxu0 }
 0x202   : > { %v15077_v47 = vpop.f32.mrf.mxu0 }
 0x203   : > { %v2455_v50 = vpack.c.bf16 %v15077_v47, %v15076_v39  ;;  %v13299_v47 = vcombine.high %v2536_v34, %v2540_v35 }
 0x204   : > { %v2044_v54 = vpop.f32.mrf.mxu0 }
 0x205   : > { %v2454_v4 = vpack.c.bf16 %v2044_v54, %v2041_v42  ;;  %14180 = vmatprep.subr.bf16.mxu1 %v2455_v50  ;;  %v2544_v54 = vld [vmem:[#allocation8 + $0x140] sm:$0xff] }
 0x206   : > { %v16995_v56 = vpop.f32.mrf.mxu0  ;;  %14181 = vmatpush3.bf16.msra.mxu1 %v2447_v51 }
 0x207   : > { %14182 = vmatprep.subr.bf16.mxu1 %v2454_v4  ;;  %v2548_v4 = vld [vmem:[#allocation8 + $0x160] sm:$0xff] }
 0x208   : > { %v16999_v61 = vpop.f32.mrf.mxu0  ;;  %v13306_v46 = vcombine.low %v2544_v54, %v2548_v4 }
 0x20a   : > { %v17001_v5 = vpop.f32.mrf.mxu0  ;;  %14183 = vmatpush3.bf16.msra.mxu1 %v2446_v58 }
 0x20b   : > { %v2457_v6 = vpack.c.bf16 %v17001_v5, %v16995_v56  ;;  %14184 = vmatprep.subr.bf16.mxu1 %v2453_v62  ;;  %v13298_v62 = vcombine.low %v2536_v34, %v2540_v35  ;;  %v2588_v56 = vld [vmem:[#allocation8 + $0x2a0] sm:$0xff] }
 0x20c   : > { %v17007_v29 = vpop.f32.mrf.mxu0 }
 0x20e   : > { %v17009_v11 = vpop.f32.mrf.mxu0  ;;  %14185 = vmatpush3.bf16.msra.mxu1 %v2445_v22 }
 0x20f   : > { %14186 = vmatprep.subr.bf16.mxu1 %v2452_v9  ;;  %v13307_v9 = vcombine.high %v2544_v54, %v2548_v4 }
 0x210   : > { %v17013_v32 = vpop.f32.mrf.mxu0 }
 0x212   : > { %v17016_v16 = vpop.f32.mrf.mxu0  ;;  %14187 = vmatpush3.bf16.msra.mxu1 %v2444_v25 }
 0x213   : > { %v2459_v7 = vpack.c.bf16 %v17016_v16, %v17009_v11  ;;  %14188 = vmatprep.subr.bf16.mxu1 %v2451_v12 }
 0x214   : > { %v17020_v15 = vpop.f32.mrf.mxu0 }
 0x216   : > { %v17023_v20 = vpop.f32.mrf.mxu0  ;;  %14189 = vmatpush3.bf16.msra.mxu1 %v2443_v60  ;;  %v2516_v60 = vld [vmem:[#allocation8 + $0x60] sm:$0xff] }
 0x217   : > { %14190 = vmatprep.subr.bf16.mxu1 %v2450_v17  ;;  %v13275_v55 = vcombine.high %v2512_v59, %v2516_v60  ;;  %v13274_v57 = vcombine.low %v2512_v59, %v2516_v60  ;;  %v2552_v59 = vld [vmem:[#allocation8 + $0x180] sm:$0xff] }
 0x218   : > { %v17028_v10 = vpop.f32.mrf.mxu0  ;;  %v2556_v60 = vld [vmem:[#allocation8 + $0x1a0] sm:$0xff] }
 0x219   : > { %v13314_v35 = vcombine.low %v2552_v59, %v2556_v60 }
 0x21a   : > { %v17032_v0 = vpop.f32.mrf.mxu0  ;;  %14191 = vmatpush3.bf16.msra.mxu1 %v2442_v2  ;;  %v17051_v2 = vld [vmem:[#allocation8 + $0x30] sm:$0xff] }
 0x21b   : > { %14192 = vmatprep.subr.bf16.mxu1 %v2449_v18  ;;  %v13271_v33 = vcombine.high %v17049_v63, %v17051_v2  ;;  %v13270_v40 = vcombine.low %v17049_v63, %v17051_v2  ;;  %v2529_v2 = vld [vmem:[#allocation8 + $0xc8] sm:$0xff] }
 0x21c   : > { %v17037_v8 = vpop.f32.mrf.mxu0 }
 0x21d   : > { %3626 = vmatprep.mubr.bf16.mxu0 %v13271_v33 }
 0x21e   : > { %v15092_v52 = vpop.f32.mrf.mxu0  ;;  %14193 = vmatpush3.bf16.msra.mxu1 %v2441_v41 }
 0x21f   : > { %14194 = vmatprep.subr.bf16.mxu1 %v2448_v14 }
 0x220   : > { %v17044_v38 = vpop.f32.mrf.mxu0 }
 0x222   : > { %v15093_v53 = vpop.f32.mrf.mxu0  ;;  %14195 = vmatpush3.bf16.msra.mxu1 %v2440_v48 }
 0x223   : > { %v2463_v12 = vpack.c.bf16 %v15093_v53, %v15092_v52  ;;  %v13315_v52 = vcombine.high %v2552_v59, %v2556_v60 }
 0x224   : > { %v2108_v45 = vpop.f32.mrf.mxu0 }
 0x225   : > { %3305 = vmatmul.mubr.bf16.vlgmr.msra.gmra.mxu1 %v13266_v49  ;;  %v2532_v49 = vld [vmem:[#allocation8 + $0xe0] sm:$0xff] }
 0x226   : > { %v17060_v41 = vpop.f32.mrf.mxu0  ;;  %3312 = vmatprep.mubr.bf16.mxu1 %v13275_v55  ;;  %v13291_v28 = vcombine.high %v2528_v44, %v2532_v49  ;;  %v13290_v39 = vcombine.low %v2528_v44, %v2532_v49  ;;  %v2462_v55 = vpack.c.bf16 %v2108_v45, %v17044_v38  ;;  %v2560_v45 = vld [vmem:[#allocation8 + $0x1c0] sm:$0xff] }
 0x228   : > { %v17062_v48 = vpop.f32.mrf.mxu0 }
 0x22a   : > { %v17064_v19 = vpop.f32.mrf.mxu0 }
 0x22c   : > { %v17066_v23 = vpop.f32.mrf.mxu0 }
 0x22d   : > { %3313 = vmatmul.mubr.bf16.gmra.mxu1 %v13274_v57  ;;  %v2464_v16 = vpack.c.bf16 %v17066_v23, %v17062_v48  ;;  %v2584_v23 = vld [vmem:[#allocation8 + $0x280] sm:$0xff] }
 0x22e   : > { %v17068_v43 = vpop.f32.mrf.mxu0  ;;  %3320 = vmatprep.mubr.bf16.mxu1 %v13283_v21  ;;  %v2461_v21 = vpack.c.bf16 %v17032_v0, %v17023_v20 }
 0x230   : > { %v17070_v24 = vpop.f32.mrf.mxu0 }
 0x232   : > { %v15101_v27 = vpop.f32.mrf.mxu0 }
 0x233   : > { %v2467_v34 = vpack.c.bf16 %v15101_v27, %v17068_v43  ;;  %v2572_v43 = vld [vmem:[#allocation8 + $0x220] sm:$0xff]  ;;  %v2458_v27 = vpack.c.bf16 %v17020_v15, %v17013_v32 }
 0x234   : > { %v17072_v30 = vpop.f32.mrf.mxu0  ;;  %v2576_v32 = vld [vmem:[#allocation8 + $0x240] sm:$0xff] }
 0x235   : > { %3321 = vmatmul.mubr.bf16.gmra.mxu1 %v13282_v26  ;;  %v2564_v26 = vld [vmem:[#allocation8 + $0x1e0] sm:$0xff] }
 0x236   : > { %v15104_v31 = vpop.f32.mrf.mxu0  ;;  %3328 = vmatprep.mubr.bf16.mxu1 %v13291_v28  ;;  %v2460_v28 = vpack.c.bf16 %v17037_v8, %v17028_v10  ;;  %v13323_v0 = vcombine.high %v2560_v45, %v2564_v26  ;;  %v2568_v8 = vld [vmem:[#allocation8 + $0x200] sm:$0xff] }
 0x237   : > { %v2580_v15 = vld [vmem:[#allocation8 + $0x260] sm:$0xff]  ;;  %v13330_v54 = vcombine.low %v2568_v8, %v2572_v43 }
 0x238   : > { %v2153_v37 = vpop.f32.mrf.mxu0 }
 0x23a   : > { %v15105_v42 = vpop.f32.mrf.mxu0 }
 0x23b   : > { %v2469_v36 = vpack.c.bf16 %v15105_v42, %v15104_v31  ;;  %v2466_v42 = vpack.c.bf16 %v17072_v30, %v17070_v24  ;;  %v13322_v24 = vcombine.low %v2560_v45, %v2564_v26 }
 0x23c   : > { %v2156_v50 = vpop.f32.mrf.mxu0 }
 0x23d   : > { %3329 = vmatmul.mubr.bf16.gmra.mxu1 %v13290_v39  ;;  %v2468_v49 = vpack.c.bf16 %v2156_v50, %v2153_v37  ;;  %v2465_v50 = vpack.c.bf16 %v17064_v19, %v17060_v41  ;;  %v2456_v41 = vpack.c.bf16 %v17007_v29, %v16999_v61  ;;  %v2592_v29 = vld [vmem:[#allocation8 + $0x2c0] sm:$0xff] }
 0x23e   : > { %v15108_v51 = vpop.f32.mrf.mxu0  ;;  %3336 = vmatprep.mubr.bf16.mxu1 %v13299_v47 }
 0x240   : > { %v2169_v58 = vpop.f32.mrf.mxu0 }
 0x242   : > { %v15109_v22 = vpop.f32.mrf.mxu0 }
 0x243   : > { %v2471_v25 = vpack.c.bf16 %v15109_v22, %v15108_v51  ;;  %v13331_v51 = vcombine.high %v2568_v8, %v2572_v43 }
 0x244   : > { %v2172_v17 = vpop.f32.mrf.mxu0 }
 0x245   : > { %v2470_v18 = vpack.c.bf16 %v2172_v17, %v2169_v58  ;;  %3337 = vmatmul.mubr.bf16.gmra.mxu1 %v13298_v62  ;;  %14292 = vmatprep.subr.bf16.mxu1 %v2471_v25  ;;  %v13339_v58 = vcombine.high %v2576_v32, %v2580_v15 }
 0x246   : > { %v17074_v14 = vpop.f32.mrf.mxu0  ;;  %14293 = vmatpush3.bf16.msra.mxu1 %v2463_v12  ;;  %3344 = vmatprep.mubr.bf16.mxu1 %v13307_v9  ;;  %v13347_v9 = vcombine.high %v2584_v23, %v2588_v56  ;;  %v2596_v12 = vld [vmem:[#allocation8 + $0x2e0] sm:$0xff] }
 0x247   : > { %14294 = vmatprep.subr.bf16.mxu1 %v2470_v18  ;;  %v13346_v18 = vcombine.low %v2584_v23, %v2588_v56  ;;  %v13355_v60 = vcombine.high %v2592_v29, %v2596_v12 }
 0x248   : > { %v17077_v33 = vpop.f32.mrf.mxu0 }
 0x24a   : > { %v17079_v57 = vpop.f32.mrf.mxu0  ;;  %14295 = vmatpush3.bf16.msra.mxu1 %v2462_v55 }
 0x24b   : > { %v2473_v53 = vpack.c.bf16 %v17079_v57, %v17074_v14  ;;  %14296 = vmatprep.subr.bf16.mxu1 %v2469_v36  ;;  %v2525_v57 = vld [vmem:[#allocation8 + $0xa8] sm:$0xff] }
 0x24c   : > { %v17085_v44 = vpop.f32.mrf.mxu0 }
 0x24d   : > { %3345 = vmatmul.mubr.bf16.gmra.mxu1 %v13306_v46  ;;  %v2600_v46 = vld [vmem:[#allocation8 + $0x300] sm:$0xff] }
 0x24e   : > { %v17087_v38 = vpop.f32.mrf.mxu0  ;;  %14297 = vmatpush3.bf16.msra.mxu1 %v2461_v21  ;;  %3352 = vmatprep.mubr.bf16.mxu1 %v13315_v52  ;;  %v2604_v52 = vld [vmem:[#allocation8 + $0x320] sm:$0xff] }
 0x24f   : > { %14298 = vmatprep.subr.bf16.mxu1 %v2468_v49  ;;  %v13354_v49 = vcombine.low %v2592_v29, %v2596_v12  ;;  %v13363_v26 = vcombine.high %v2600_v46, %v2604_v52  ;;  %v13362_v8 = vcombine.low %v2600_v46, %v2604_v52 }
 0x250   : > { %v17091_v31 = vpop.f32.mrf.mxu0 }
 0x252   : > { %v17094_v20 = vpop.f32.mrf.mxu0  ;;  %14299 = vmatpush3.bf16.msra.mxu1 %v2460_v28 }
 0x253   : > { %v2475_v37 = vpack.c.bf16 %v17094_v20, %v17087_v38  ;;  %14300 = vmatprep.subr.bf16.mxu1 %v2467_v34 }
 0x254   : > { %v17098_v39 = vpop.f32.mrf.mxu0 }
 0x255   : > { %3353 = vmatmul.mubr.bf16.gmra.mxu1 %v13314_v35  ;;  %v2608_v35 = vld [vmem:[#allocation8 + $0x340] sm:$0xff] }
 0x256   : > { %v17102_v10 = vpop.f32.mrf.mxu0  ;;  %14301 = vmatpush3.bf16.msra.mxu1 %v2459_v7  ;;  %3360 = vmatprep.mubr.bf16.mxu1 %v13323_v0  ;;  %v2612_v0 = vld [vmem:[#allocation8 + $0x360] sm:$0xff] }
 0x257   : > { %14302 = vmatprep.subr.bf16.mxu1 %v2466_v42  ;;  %v13370_v56 = vcombine.low %v2608_v35, %v2612_v0 }
 0x258   : > { %v17109_v47 = vpop.f32.mrf.mxu0 }
 0x25a   : > { %v17113_v30 = vpop.f32.mrf.mxu0  ;;  %14303 = vmatpush3.bf16.msra.mxu1 %v2458_v27  ;;  %v13371_v27 = vcombine.high %v2608_v35, %v2612_v0  ;;  %v2472_v35 = vpack.c.bf16 %v17085_v44, %v17077_v33  ;;  %v2521_v33 = vld [vmem:[#allocation8 + $0x88] sm:$0xff]  ;;  %v2526_v44 = vld [vmem:[#allocation8 + $0xb0] sm:$0xff] }
 0x25b   : > { %14304 = vmatprep.subr.bf16.mxu1 %v2465_v50 }
 0x25c   : > { %v17115_v11 = vpop.f32.mrf.mxu0 }
 0x25d   : > { %3361 = vmatmul.mubr.bf16.gmra.mxu1 %v13322_v24 }
 0x25e   : > { %v15124_v7 = vpop.f32.mrf.mxu0  ;;  %14305 = vmatpush3.bf16.msra.mxu1 %v2457_v6  ;;  %3368 = vmatprep.mubr.bf16.mxu1 %v13331_v51  ;;  %v13338_v6 = vcombine.low %v2576_v32, %v2580_v15  ;;  %v2616_v15 = vld [vmem:[#allocation8 + $0x380] sm:$0xff] }
 0x25f   : > { %14306 = vmatprep.subr.bf16.mxu1 %v2464_v16 }
 0x260   : > { %v2233_v19 = vpop.f32.mrf.mxu0 }
 0x262   : > { %v15125_v4 = vpop.f32.mrf.mxu0  ;;  %14307 = vmatpush3.bf16.msra.mxu1 %v2456_v41  ;;  %v2620_v41 = vld [vmem:[#allocation8 + $0x3a0] sm:$0xff] }
 0x263   : > { %v2479_v24 = vpack.c.bf16 %v15125_v4, %v15124_v7  ;;  %v13379_v7 = vcombine.high %v2616_v15, %v2620_v41  ;;  %v13378_v52 = vcombine.low %v2616_v15, %v2620_v41 }
 0x264   : > { %v2236_v62 = vpop.f32.mrf.mxu0 }
 0x265   : > { %3369 = vmatmul.mubr.bf16.gmra.mxu1 %v13330_v54  ;;  %v2478_v54 = vpack.c.bf16 %v2236_v62, %v2233_v19  ;;  %v2624_v62 = vld [vmem:[#allocation8 + $0x3c0] sm:$0xff] }
 0x266   : > { %v17124_v48 = vpop.f32.mrf.mxu0  ;;  %3376 = vmatprep.mubr.bf16.mxu1 %v13339_v58 }
 0x268   : > { %v17126_v5 = vpop.f32.mrf.mxu0 }
 0x26a   : > { %v17128_v22 = vpop.f32.mrf.mxu0 }
 0x26c   : > { %v17130_v25 = vpop.f32.mrf.mxu0 }
 0x26d   : > { %3377 = vmatmul.mubr.bf16.gmra.mxu1 %v13338_v6  ;;  %v2480_v20 = vpack.c.bf16 %v17130_v25, %v17126_v5 }
 0x26e   : > { %v17132_v61 = vpop.f32.mrf.mxu0  ;;  %3384 = vmatprep.mubr.bf16.mxu1 %v13347_v9  ;;  %v2477_v9 = vpack.c.bf16 %v17113_v30, %v17102_v10 }
 0x270   : > { %v17134_v17 = vpop.f32.mrf.mxu0 }
 0x272   : > { %v15133_v59 = vpop.f32.mrf.mxu0 }
 0x273   : > { %v2483_v46 = vpack.c.bf16 %v15133_v59, %v17132_v61  ;;  %v2509_v61 = vld [vmem:[#allocation8 + $0x28] sm:$0xff]  ;;  %v2474_v59 = vpack.c.bf16 %v17098_v39, %v17091_v31 }
 0x274   : > { %v17136_v55 = vpop.f32.mrf.mxu0  ;;  %v2513_v31 = vld [vmem:[#allocation8 + $0x48] sm:$0xff] }
 0x275   : > { %3385 = vmatmul.mubr.bf16.gmra.mxu1 %v13346_v18  ;;  %v2628_v18 = vld [vmem:[#allocation8 + $0x3e0] sm:$0xff]  ;;  %v2517_v39 = vld [vmem:[#allocation8 + $0x68] sm:$0xff] }
 0x276   : > { %v15136_v36 = vpop.f32.mrf.mxu0  ;;  %3392 = vmatprep.mubr.bf16.mxu1 %v13355_v60  ;;  %v2476_v60 = vpack.c.bf16 %v17115_v11, %v17109_v47  ;;  %v13387_v30 = vcombine.high %v2624_v62, %v2628_v18  ;;  %v2505_v11 = vld [vmem:[#allocation8 + $0x8] sm:$0xff]  ;;  %v13277_v25 = vcombine.high %v2513_v31, %v2517_v39 }
 0x278   : > { %v2281_v21 = vpop.f32.mrf.mxu0 }
 0x27a   : > { %v15137_v45 = vpop.f32.mrf.mxu0 }
 0x27b   : > { %v2485_v23 = vpack.c.bf16 %v15137_v45, %v15136_v36  ;;  %v2482_v45 = vpack.c.bf16 %v17136_v55, %v17134_v17  ;;  %v13386_v17 = vcombine.low %v2624_v62, %v2628_v18 }
 0x27c   : > { %v2284_v28 = vpop.f32.mrf.mxu0 }
 0x27d   : > { %3393 = vmatmul.mubr.bf16.gmra.mxu1 %v13354_v49  ;;  %v2484_v12 = vpack.c.bf16 %v2284_v28, %v2281_v21  ;;  %v2481_v28 = vpack.c.bf16 %v17128_v22, %v17124_v48  ;;  %v2514_v48 = vld [vmem:[#allocation8 + $0x50] sm:$0xff] }
 0x27e   : > { %v15140_v34 = vpop.f32.mrf.mxu0  ;;  %3400 = vmatprep.mubr.bf16.mxu1 %v13363_v26  ;;  %v2518_v22 = vld [vmem:[#allocation8 + $0x70] sm:$0xff] }
 0x280   : > { %v2297_v42 = vpop.f32.mrf.mxu0 }
 0x282   : > { %v15141_v43 = vpop.f32.mrf.mxu0 }
 0x283   : > { %v2487_v50 = vpack.c.bf16 %v15141_v43, %v15140_v34  ;;  %v13269_v34 = vcombine.high %v2505_v11, %v2509_v61 }
 0x284   : > { %v2300_v51 = vpop.f32.mrf.mxu0 }
 0x285   : > { %v2486_v16 = vpack.c.bf16 %v2300_v51, %v2297_v42  ;;  %3401 = vmatmul.mubr.bf16.gmra.mxu1 %v13362_v8  ;;  %14404 = vmatprep.subr.bf16.mxu0 %v2487_v50  ;;  %v13268_v42 = vcombine.low %v2505_v11, %v2509_v61  ;;  %v13279_v8 = vcombine.high %v2514_v48, %v2518_v22  ;;  %v2542_v11 = vld [vmem:[#allocation8 + $0x130] sm:$0xff] }
 0x286   : > { %v17138_v32 = vpop.f32.mrf.mxu0  ;;  %14405 = vmatpush3.bf16.msra.mxu0 %v2479_v24  ;;  %3408 = vmatprep.mubr.bf16.mxu1 %v13371_v27  ;;  %v13276_v50 = vcombine.low %v2513_v31, %v2517_v39  ;;  %v13278_v24 = vcombine.low %v2514_v48, %v2518_v22  ;;  %v2545_v22 = vld [vmem:[#allocation8 + $0x148] sm:$0xff] }
 0x287   : > { %14406 = vmatprep.subr.bf16.mxu0 %v2486_v16  ;;  %v13285_v16 = vcombine.high %v2521_v33, %v2525_v57 }
 0x288   : > { %v17140_v58 = vpop.f32.mrf.mxu0 }
 0x28a   : > { %v17142_v6 = vpop.f32.mrf.mxu0  ;;  %14407 = vmatpush3.bf16.msra.mxu0 %v2478_v54  ;;  %v2530_v54 = vld [vmem:[#allocation8 + $0xd0] sm:$0xff] }
 0x28b   : > { %v2489_v4 = vpack.c.bf16 %v17142_v6, %v17138_v32  ;;  %14408 = vmatprep.subr.bf16.mxu0 %v2485_v23  ;;  %v2534_v23 = vld [vmem:[#allocation8 + $0xf0] sm:$0xff]  ;;  %v2585_v6 = vld [vmem:[#allocation8 + $0x288] sm:$0xff] }
 0x28c   : > { %v17148_v29 = vpop.f32.mrf.mxu0  ;;  %v13295_v18 = vcombine.high %v2530_v54, %v2534_v23 }
 0x28d   : > { %3409 = vmatmul.mubr.bf16.gmra.mxu1 %v13370_v56 }
 0x28e   : > { %v17150_v19 = vpop.f32.mrf.mxu0  ;;  %14409 = vmatpush3.bf16.msra.mxu0 %v2477_v9  ;;  %3416 = vmatprep.mubr.bf16.mxu1 %v13379_v7  ;;  %v13284_v7 = vcombine.low %v2521_v33, %v2525_v57 }
 0x28f   : > { %14410 = vmatprep.subr.bf16.mxu0 %v2484_v12 }
 0x290   : > { %v17154_v36 = vpop.f32.mrf.mxu0 }
 0x292   : > { %v17157_v10 = vpop.f32.mrf.mxu0  ;;  %14411 = vmatpush3.bf16.msra.mxu0 %v2476_v60 }
 0x293   : > { %v2491_v21 = vpack.c.bf16 %v17157_v10, %v17150_v19  ;;  %14412 = vmatprep.subr.bf16.mxu0 %v2483_v46 }
 0x294   : > { %v17161_v49 = vpop.f32.mrf.mxu0 }
 0x295   : > { %3417 = vmatmul.mubr.bf16.gmra.mxu1 %v13378_v52  ;;  %v2537_v52 = vld [vmem:[#allocation8 + $0x108] sm:$0xff] }
 0x296   : > { %v17165_v47 = vpop.f32.mrf.mxu0  ;;  %14413 = vmatpush3.bf16.msra.mxu0 %v2475_v37  ;;  %3424 = vmatprep.mubr.bf16.mxu1 %v13387_v30  ;;  %v2541_v30 = vld [vmem:[#allocation8 + $0x128] sm:$0xff] }
 0x297   : > { %14414 = vmatprep.subr.bf16.mxu0 %v2482_v45  ;;  %v2538_v45 = vld [vmem:[#allocation8 + $0x110] sm:$0xff] }
 0x298   : > { %v17172_v26 = vpop.f32.mrf.mxu0  ;;  %v13302_v57 = vcombine.low %v2538_v45, %v2542_v11 }
 0x29a   : > { %v17176_v55 = vpop.f32.mrf.mxu0  ;;  %14415 = vmatpush3.bf16.msra.mxu0 %v2474_v59 }
 0x29b   : > { %14416 = vmatprep.subr.bf16.mxu0 %v2481_v28  ;;  %v13294_v28 = vcombine.low %v2530_v54, %v2534_v23  ;;  %v2557_v54 = vld [vmem:[#allocation8 + $0x1a8] sm:$0xff] }
 0x29c   : > { %v17178_v38 = vpop.f32.mrf.mxu0 }
 0x29d   : > { %3425 = vmatmul.mubr.bf16.gmra.mxu1 %v13386_v17 }
 0x29e   : > { %v17182_v37 = vpop.f32.mrf.mxu0  ;;  %14417 = vmatpush3.bf16.msra.mxu0 %v2473_v53  ;;  %3465 = vmatprep.mubr.bf16.mxu1 %v13269_v34  ;;  %v2522_v53 = vld [vmem:[#allocation8 + $0x90] sm:$0xff]  ;;  %v13301_v34 = vcombine.high %v2537_v52, %v2541_v30 }
 0x29f   : > { %14418 = vmatprep.subr.bf16.mxu0 %v2480_v20  ;;  %v13287_v15 = vcombine.high %v2522_v53, %v2526_v44  ;;  %v13286_v9 = vcombine.low %v2522_v53, %v2526_v44  ;;  %v13303_v20 = vcombine.high %v2538_v45, %v2542_v11 }
 0x2a0   : > { %v17189_v0 = vpop.f32.mrf.mxu0 }
 0x2a2   : > { %v17191_v5 = vpop.f32.mrf.mxu0  ;;  %14419 = vmatpush3.bf16.msra.mxu0 %v2472_v35  ;;  %v2549_v35 = vld [vmem:[#allocation8 + $0x168] sm:$0xff] }
 0x2a3   : > { %v13309_v44 = vcombine.high %v2545_v22, %v2549_v35 }
 0x2a4   : > { %v17193_v43 = vpop.f32.mrf.mxu0 }
 0x2a5   : > { %3466 = vmatmul.mubr.bf16.vlgmr.msra.gmra.mxu1 %v13268_v42  ;;  %3627 = vmatmul.mubr.bf16.vlgmr.msra.gmra.mxu0 %v13270_v40  ;;  %v2533_v40 = vld [vmem:[#allocation8 + $0xe8] sm:$0xff]  ;;  %v13300_v42 = vcombine.low %v2537_v52, %v2541_v30 }
 0x2a6   : > { %v17198_v14 = vpop.f32.mrf.mxu0  ;;  %3473 = vmatprep.mubr.bf16.mxu1 %v13277_v25  ;;  %3634 = vmatprep.mubr.bf16.mxu0 %v13279_v8  ;;  %v13293_v62 = vcombine.high %v2529_v2, %v2533_v40  ;;  %v13292_v59 = vcombine.low %v2529_v2, %v2533_v40  ;;  %v2546_v25 = vld [vmem:[#allocation8 + $0x150] sm:$0xff]  ;;  %v2494_v2 = vpack.c.bf16 %v17193_v43, %v17189_v0  ;;  %v2553_v40 = vld [vmem:[#allocation8 + $0x188] sm:$0xff] }
 0x2a7   : > { %v2550_v8 = vld [vmem:[#allocation8 + $0x170] sm:$0xff]  ;;  %v2492_v0 = vpack.c.bf16 %v17178_v38, %v17172_v26  ;;  %v2561_v43 = vld [vmem:[#allocation8 + $0x1c8] sm:$0xff]  ;;  %v13316_v11 = vcombine.low %v2553_v40, %v2557_v54  ;;  %v2490_v26 = vpack.c.bf16 %v17161_v49, %v17154_v36 }
 0x2a8   : > { %v17200_v27 = vpop.f32.mrf.mxu0  ;;  %v2569_v38 = vld [vmem:[#allocation8 + $0x208] sm:$0xff] }
 0x2a9   : > { %v2577_v36 = vld [vmem:[#allocation8 + $0x248] sm:$0xff] }
 0x2aa   : > { %v17202_v51 = vpop.f32.mrf.mxu0  ;;  %v2581_v49 = vld [vmem:[#allocation8 + $0x268] sm:$0xff] }
 0x2ac   : > { %v17204_v41 = vpop.f32.mrf.mxu0 }
 0x2ad   : > { %3474 = vmatmul.mubr.bf16.gmra.mxu1 %v13276_v50  ;;  %3635 = vmatmul.mubr.bf16.gmra.mxu0 %v13278_v24  ;;  %v2495_v50 = vpack.c.bf16 %v17191_v5, %v17182_v37  ;;  %v13310_v37 = vcombine.low %v2546_v25, %v2550_v8  ;;  %v13317_v5 = vcombine.high %v2553_v40, %v2557_v54  ;;  %v2594_v40 = vld [vmem:[#allocation8 + $0x2d0] sm:$0xff] }
 0x2ae   : > { %v17206_v63 = vpop.f32.mrf.mxu0  ;;  %3481 = vmatprep.mubr.bf16.mxu1 %v13285_v16  ;;  %3642 = vmatprep.mubr.bf16.mxu0 %v13287_v15  ;;  %v13311_v16 = vcombine.high %v2546_v25, %v2550_v8  ;;  %v13340_v25 = vcombine.low %v2577_v36, %v2581_v49  ;;  %v2598_v54 = vld [vmem:[#allocation8 + $0x2f0] sm:$0xff] }
 0x2b0   : > { %v17208_v56 = vpop.f32.mrf.mxu0 }
 0x2b2   : > { %v17210_v12 = vpop.f32.mrf.mxu0 }
 0x2b3   : > { %v2499_v45 = vpack.c.bf16 %v17210_v12, %v17206_v63  ;;  %v2573_v63 = vld [vmem:[#allocation8 + $0x228] sm:$0xff]  ;;  %v2497_v12 = vpack.c.bf16 %v17202_v51, %v17198_v14  ;;  %v2488_v14 = vpack.c.bf16 %v17148_v29, %v17140_v58  ;;  %v2578_v51 = vld [vmem:[#allocation8 + $0x250] sm:$0xff] }
 0x2b4   : > { %v17212_v60 = vpop.f32.mrf.mxu0  ;;  %v13333_v19 = vcombine.high %v2569_v38, %v2573_v63  ;;  %v2590_v58 = vld [vmem:[#allocation8 + $0x2b0] sm:$0xff] }
 0x2b5   : > { %3482 = vmatmul.mubr.bf16.gmra.mxu1 %v13284_v7  ;;  %3643 = vmatmul.mubr.bf16.gmra.mxu0 %v13286_v9  ;;  %v13308_v7 = vcombine.low %v2545_v22, %v2549_v35  ;;  %v2554_v9 = vld [vmem:[#allocation8 + $0x190] sm:$0xff] }
 0x2b6   : > { %v15168_v46 = vpop.f32.mrf.mxu0  ;;  %3489 = vmatprep.mubr.bf16.mxu1 %v13293_v62  ;;  %3650 = vmatprep.mubr.bf16.mxu0 %v13295_v18  ;;  %v2558_v62 = vld [vmem:[#allocation8 + $0x1b0] sm:$0xff]  ;;  %v2493_v18 = vpack.c.bf16 %v17176_v55, %v17165_v47 }
 0x2b7   : > { %v13319_v52 = vcombine.high %v2554_v9, %v2558_v62  ;;  %v13318_v47 = vcombine.low %v2554_v9, %v2558_v62 }
 0x2b8   : > { %v2409_v61 = vpop.f32.mrf.mxu0 }
 0x2ba   : > { %v15169_v17 = vpop.f32.mrf.mxu0 }
 0x2bb   : > { %v2501_v23 = vpack.c.bf16 %v15169_v17, %v15168_v46  ;;  %v2565_v46 = vld [vmem:[#allocation8 + $0x1e8] sm:$0xff]  ;;  %v2498_v17 = vpack.c.bf16 %v17212_v60, %v17208_v56  ;;  %v2574_v56 = vld [vmem:[#allocation8 + $0x230] sm:$0xff] }
 0x2bc   : > { %v2412_v31 = vpop.f32.mrf.mxu0  ;;  %v13325_v55 = vcombine.high %v2561_v43, %v2565_v46 }
 0x2bd   : > { %3490 = vmatmul.mubr.bf16.gmra.mxu1 %v13292_v59  ;;  %3651 = vmatmul.mubr.bf16.gmra.mxu0 %v13294_v28  ;;  %v2500_v30 = vpack.c.bf16 %v2412_v31, %v2409_v61  ;;  %v2562_v59 = vld [vmem:[#allocation8 + $0x1d0] sm:$0xff] }
 0x2be   : > { %v15172_v39 = vpop.f32.mrf.mxu0  ;;  %3497 = vmatprep.mubr.bf16.mxu1 %v13301_v34  ;;  %3658 = vmatprep.mubr.bf16.mxu0 %v13303_v20  ;;  %v2566_v28 = vld [vmem:[#allocation8 + $0x1f0] sm:$0xff]  ;;  %v13324_v34 = vcombine.low %v2561_v43, %v2565_v46  ;;  %v2605_v43 = vld [vmem:[#allocation8 + $0x328] sm:$0xff] }
 0x2bf   : > { %v13327_v61 = vcombine.high %v2562_v59, %v2566_v28  ;;  %v2570_v20 = vld [vmem:[#allocation8 + $0x210] sm:$0xff]  ;;  %v13326_v60 = vcombine.low %v2562_v59, %v2566_v28 }
 0x2c0   : > { %v2425_v48 = vpop.f32.mrf.mxu0  ;;  %v13335_v10 = vcombine.high %v2570_v20, %v2574_v56  ;;  %v2582_v31 = vld [vmem:[#allocation8 + $0x270] sm:$0xff] }
 0x2c1   : > { %v13342_v8 = vcombine.low %v2578_v51, %v2582_v31 }
 0x2c2   : > { %v15173_v33 = vpop.f32.mrf.mxu0 }
 0x2c3   : > { %v2503_v53 = vpack.c.bf16 %v15173_v33, %v15172_v39  ;;  %v13332_v39 = vcombine.low %v2569_v38, %v2573_v63 }
 0x2c4   : > { %v2428_v24 = vpop.f32.mrf.mxu0 }
 0x2c5   : > { %v2502_v15 = vpack.c.bf16 %v2428_v24, %v2425_v48  ;;  %3498 = vmatmul.mubr.bf16.gmra.mxu1 %v13300_v42  ;;  %14516 = vmatprep.subr.bf16.mxu1 %v2503_v53  ;;  %v13334_v48 = vcombine.low %v2570_v20, %v2574_v56  ;;  %v2586_v42 = vld [vmem:[#allocation8 + $0x290] sm:$0xff] }
 0x2c6   : > { %14517 = vmatpush3.bf16.msra.mxu1 %v2495_v50  ;;  %3659 = vmatmul.mubr.bf16.gmra.mxu0 %v13302_v57  ;;  %v13351_v53 = vcombine.high %v2586_v42, %v2590_v58  ;;  %v13350_v9 = vcombine.low %v2586_v42, %v2590_v58  ;;  %v2610_v56 = vld [vmem:[#allocation8 + $0x350] sm:$0xff] }
 0x2c7   : > { %14518 = vmatprep.subr.bf16.mxu1 %v2502_v15  ;;  %3505 = vmatprep.mubr.bf16.mxu1 %v13309_v44  ;;  %v2597_v15 = vld [vmem:[#allocation8 + $0x2e8] sm:$0xff] }
 0x2c8   : > { %3666 = vmatprep.mubr.bf16.mxu0 %v13311_v16  ;;  %v2593_v16 = vld [vmem:[#allocation8 + $0x2c8] sm:$0xff] }
 0x2c9   : > { %v13357_v62 = vcombine.high %v2593_v16, %v2597_v15  ;;  %v13356_v28 = vcombine.low %v2593_v16, %v2597_v15  ;;  %v2626_v16 = vld [vmem:[#allocation8 + $0x3d0] sm:$0xff] }
 0x2ca   : > { %14519 = vmatpush3.bf16.msra.mxu1 %v2494_v2  ;;  %v2630_v15 = vld [vmem:[#allocation8 + $0x3f0] sm:$0xff] }
 0x2cb   : > { %14520 = vmatprep.subr.bf16.mxu1 %v2501_v23 }
 0x2cd   : > { %3506 = vmatmul.mubr.bf16.gmra.mxu1 %v13308_v7 }
 0x2ce   : > { %14521 = vmatpush3.bf16.msra.mxu1 %v2493_v18  ;;  %3667 = vmatmul.mubr.bf16.gmra.mxu0 %v13310_v37 }
 0x2cf   : > { %14522 = vmatprep.subr.bf16.mxu1 %v2500_v30  ;;  %3513 = vmatprep.mubr.bf16.mxu1 %v13317_v5  ;;  %v13359_v5 = vcombine.high %v2594_v40, %v2598_v54 }
 0x2d0   : > { %3674 = vmatprep.mubr.bf16.mxu0 %v13319_v52 }
 0x2d2   : > { %14523 = vmatpush3.bf16.msra.mxu1 %v2492_v0  ;;  %v2601_v0 = vld [vmem:[#allocation8 + $0x308] sm:$0xff] }
 0x2d3   : > { %14524 = vmatprep.subr.bf16.mxu1 %v2499_v45  ;;  %v2602_v45 = vld [vmem:[#allocation8 + $0x310] sm:$0xff] }
 0x2d5   : > { %3514 = vmatmul.mubr.bf16.gmra.mxu1 %v13316_v11  ;;  %v2606_v11 = vld [vmem:[#allocation8 + $0x330] sm:$0xff] }
 0x2d6   : > { %14525 = vmatpush3.bf16.msra.mxu1 %v2491_v21  ;;  %3675 = vmatmul.mubr.bf16.gmra.mxu0 %v13318_v47  ;;  %v2496_v21 = vpack.c.bf16 %v17204_v41, %v17200_v27  ;;  %v13341_v27 = vcombine.high %v2577_v36, %v2581_v49  ;;  %v13343_v41 = vcombine.high %v2578_v51, %v2582_v31 }
 0x2d7   : > { %14526 = vmatprep.subr.bf16.mxu1 %v2498_v17  ;;  %3521 = vmatprep.mubr.bf16.mxu1 %v13325_v55  ;;  %v13358_v47 = vcombine.low %v2594_v40, %v2598_v54  ;;  %v13365_v55 = vcombine.high %v2601_v0, %v2605_v43  ;;  %v13367_v17 = vcombine.high %v2602_v45, %v2606_v11 }
 0x2d8   : > { %3682 = vmatprep.mubr.bf16.mxu0 %v13327_v61 }
 0x2da   : > { %14527 = vmatpush3.bf16.msra.mxu1 %v2490_v26 }
 0x2db   : > { %14528 = vmatprep.subr.bf16.mxu1 %v2497_v12  ;;  %v2609_v12 = vld [vmem:[#allocation8 + $0x348] sm:$0xff] }
 0x2dd   : > { %3522 = vmatmul.mubr.bf16.gmra.mxu1 %v13324_v34  ;;  %v2613_v34 = vld [vmem:[#allocation8 + $0x368] sm:$0xff] }
 0x2de   : > { %14529 = vmatpush3.bf16.msra.mxu1 %v2489_v4  ;;  %3683 = vmatmul.mubr.bf16.gmra.mxu0 %v13326_v60  ;;  %v2589_v4 = vld [vmem:[#allocation8 + $0x2a8] sm:$0xff]  ;;  %v2614_v60 = vld [vmem:[#allocation8 + $0x370] sm:$0xff]  ;;  %v13373_v36 = vcombine.high %v2609_v12, %v2613_v34 }
 0x2df   : > { %14530 = vmatprep.subr.bf16.mxu1 %v2496_v21  ;;  %3529 = vmatprep.mubr.bf16.mxu1 %v13333_v19  ;;  %v13349_v33 = vcombine.high %v2585_v6, %v2589_v4  ;;  %v13348_v7 = vcombine.low %v2585_v6, %v2589_v4  ;;  %v13366_v21 = vcombine.low %v2602_v45, %v2606_v11 }
 0x2e0   : > { %3690 = vmatprep.mubr.bf16.mxu0 %v13335_v10  ;;  %v13364_v10 = vcombine.low %v2601_v0, %v2605_v43  ;;  %v13372_v4 = vcombine.low %v2609_v12, %v2613_v34  ;;  %v13374_v42 = vcombine.low %v2610_v56, %v2614_v60  ;;  %v2511_v0 = vld [vmem:[#allocation8 + $0x38] sm:$0xff] }
 0x2e2   : > { %14531 = vmatpush3.bf16.msra.mxu1 %v2488_v14  ;;  %v13375_v14 = vcombine.high %v2610_v56, %v2614_v60 }
 0x2e5   : > { %v14196_v22 = vpop.f32.mrf.mxu1  ;;  %3530 = vmatmul.mubr.bf16.gmra.mxu1 %v13332_v39 }
 0x2e6   : > { %3691 = vmatmul.mubr.bf16.gmra.mxu0 %v13334_v48  ;;  %3537 = vmatprep.mubr.bf16.mxu1 %v13341_v27  ;;  %v2617_v48 = vld [vmem:[#allocation8 + $0x388] sm:$0xff] }
 0x2e7   : > { %v14197_v32 = vpop.f32.mrf.mxu1  ;;  %3698 = vmatprep.mubr.bf16.mxu0 %v13343_v41  ;;  %v2621_v27 = vld [vmem:[#allocation8 + $0x3a8] sm:$0xff] }
 0x2e8   : > { %v17240_v35 = vadd.f32 %v14197_v32, %v14196_v22  ;;  %v2618_v22 = vld [vmem:[#allocation8 + $0x390] sm:$0xff]  ;;  %v13381_v58 = vcombine.high %v2617_v48, %v2621_v27  ;;  %v13380_v54 = vcombine.low %v2617_v48, %v2621_v27 }
 0x2e9   : > { %v14199_v29 = vpop.f32.mrf.mxu1  ;;  %v2622_v32 = vld [vmem:[#allocation8 + $0x3b0] sm:$0xff] }
 0x2eb   : > { %v14200_v57 = vpop.f32.mrf.mxu1 }
 0x2ec   : > { %v17242_v44 = vadd.f32 %v14200_v57, %v14199_v29 }
 0x2ed   : > { %v14202_v50 = vpop.f32.mrf.mxu1  ;;  %3538 = vmatmul.mubr.bf16.gmra.mxu1 %v13340_v25  ;;  %v13383_v25 = vcombine.high %v2618_v22, %v2622_v32 }
 0x2ee   : > { %3699 = vmatmul.mubr.bf16.gmra.mxu0 %v13342_v8  ;;  %3545 = vmatprep.mubr.bf16.mxu1 %v13349_v33 }
 0x2ef   : > { %v14203_v24 = vpop.f32.mrf.mxu1  ;;  %3706 = vmatprep.mubr.bf16.mxu0 %v13351_v53  ;;  %v2625_v53 = vld [vmem:[#allocation8 + $0x3c8] sm:$0xff] }
 0x2f0   : > { %v17244_v2 = vadd.f32 %v14203_v24, %v14202_v50  ;;  %v2629_v50 = vld [vmem:[#allocation8 + $0x3e8] sm:$0xff] }
 0x2f1   : > { %v14205_v23 = vpop.f32.mrf.mxu1  ;;  %v13388_v11 = vcombine.low %v2625_v53, %v2629_v50 }
 0x2f3   : > { %v14206_v37 = vpop.f32.mrf.mxu1 }
 0x2f4   : > { %v17246_v18 = vadd.f32 %v14206_v37, %v14205_v23  ;;  %v13382_v23 = vcombine.low %v2618_v22, %v2622_v32 }
 0x2f5   : > { %v14208_v52 = vpop.f32.mrf.mxu1  ;;  %3546 = vmatmul.mubr.bf16.gmra.mxu1 %v13348_v7  ;;  %v13389_v7 = vcombine.high %v2625_v53, %v2629_v50 }
 0x2f6   : > { %3707 = vmatmul.mubr.bf16.gmra.mxu0 %v13350_v9  ;;  %3553 = vmatprep.mubr.bf16.mxu1 %v13357_v62  ;;  %v13391_v62 = vcombine.high %v2626_v16, %v2630_v15 }
 0x2f7   : > { %v14209_v30 = vpop.f32.mrf.mxu1  ;;  %3714 = vmatprep.mubr.bf16.mxu0 %v13359_v5 }
 0x2f8   : > { %v17248_v46 = vadd.f32 %v14209_v30, %v14208_v52  ;;  %v2507_v30 = vld [vmem:[#allocation8 + $0x18] sm:$0xff] }
 0x2f9   : > { %v14211_v59 = vpop.f32.mrf.mxu1  ;;  %v13272_v56 = vcombine.low %v2507_v30, %v2511_v0 }
 0x2fb   : > { %v14212_v61 = vpop.f32.mrf.mxu1 }
 0x2fc   : > { %v17250_v26 = vadd.f32 %v14212_v61, %v14211_v59  ;;  %v13390_v59 = vcombine.low %v2626_v16, %v2630_v15 }
 0x2fd   : > { %v14214_v38 = vpop.f32.mrf.mxu1  ;;  %3554 = vmatmul.mubr.bf16.gmra.mxu1 %v13356_v28  ;;  %v13273_v28 = vcombine.high %v2507_v30, %v2511_v0 }
 0x2fe   : > { %3715 = vmatmul.mubr.bf16.gmra.mxu0 %v13358_v47  ;;  %3561 = vmatprep.mubr.bf16.mxu1 %v13365_v55 }
 0x2ff   : > { %v14215_v63 = vpop.f32.mrf.mxu1  ;;  %3722 = vmatprep.mubr.bf16.mxu0 %v13367_v17 }
 0x300   : > { %v17252_v20 = vadd.f32 %v14215_v63, %v14214_v38  ;;  %v2515_v38 = vld [vmem:[#allocation8 + $0x58] sm:$0xff] }
 0x301   : > { %v14217_v19 = vpop.f32.mrf.mxu1  ;;  %v2519_v63 = vld [vmem:[#allocation8 + $0x78] sm:$0xff] }
 0x302   : > { %v13281_v60 = vcombine.high %v2515_v38, %v2519_v63  ;;  %v13280_v48 = vcombine.low %v2515_v38, %v2519_v63 }
 0x303   : > { %v14218_v49 = vpop.f32.mrf.mxu1 }
 0x304   : > { %v17254_v51 = vadd.f32 %v14218_v49, %v14217_v19  ;;  %v2523_v49 = vld [vmem:[#allocation8 + $0x98] sm:$0xff] }
 0x305   : > { %v14220_v31 = vpop.f32.mrf.mxu1  ;;  %3562 = vmatmul.mubr.bf16.gmra.mxu1 %v13364_v10 }
 0x306   : > { %3723 = vmatmul.mubr.bf16.gmra.mxu0 %v13366_v21  ;;  %3569 = vmatprep.mubr.bf16.mxu1 %v13373_v36 }
 0x307   : > { %v14221_v39 = vpop.f32.mrf.mxu1  ;;  %3730 = vmatprep.mubr.bf16.mxu0 %v13375_v14  ;;  %v2527_v14 = vld [vmem:[#allocation8 + $0xb8] sm:$0xff] }
 0x308   : > { %v17256_v41 = vadd.f32 %v14221_v39, %v14220_v31  ;;  %v13289_v27 = vcombine.high %v2523_v49, %v2527_v14 }
 0x309   : > { %v14223_v6 = vpop.f32.mrf.mxu1 }
 0x30b   : > { %v14224_v29 = vpop.f32.mrf.mxu1 }
 0x30c   : > { %v17258_v8 = vadd.f32 %v14224_v29, %v14223_v6 }
 0x30d   : > { %v14226_v33 = vpop.f32.mrf.mxu1  ;;  %3570 = vmatmul.mubr.bf16.gmra.mxu1 %v13372_v4 }
 0x30e   : > { %3731 = vmatmul.mubr.bf16.gmra.mxu0 %v13374_v42  ;;  %3577 = vmatprep.mubr.bf16.mxu1 %v13381_v58  ;;  %v2531_v42 = vld [vmem:[#allocation8 + $0xd8] sm:$0xff] }
 0x30f   : > { %v14227_v57 = vpop.f32.mrf.mxu1  ;;  %3738 = vmatprep.mubr.bf16.mxu0 %v13383_v25  ;;  %v2535_v58 = vld [vmem:[#allocation8 + $0xf8] sm:$0xff] }
 0x310   : > { %v17260_v24 = vadd.f32 %v14227_v57, %v14226_v33  ;;  %v13288_v33 = vcombine.low %v2523_v49, %v2527_v14  ;;  %v13297_v57 = vcombine.high %v2531_v42, %v2535_v58 }
 0x311   : > { %v14229_v40 = vpop.f32.mrf.mxu1 }
 0x313   : > { %v14230_v9 = vpop.f32.mrf.mxu1 }
 0x314   : > { %v17262_v37 = vadd.f32 %v14230_v9, %v14229_v40  ;;  %v2539_v40 = vld [vmem:[#allocation8 + $0x118] sm:$0xff]  ;;  %v13296_v9 = vcombine.low %v2531_v42, %v2535_v58 }
 0x315   : > { %v14232_v5 = vpop.f32.mrf.mxu1  ;;  %3578 = vmatmul.mubr.bf16.gmra.mxu1 %v13380_v54  ;;  %v2543_v54 = vld [vmem:[#allocation8 + $0x138] sm:$0xff] }
 0x316   : > { %3739 = vmatmul.mubr.bf16.gmra.mxu0 %v13382_v23  ;;  %3585 = vmatprep.mubr.bf16.mxu1 %v13389_v7 }
 0x317   : > { %v14233_v52 = vpop.f32.mrf.mxu1  ;;  %3746 = vmatprep.mubr.bf16.mxu0 %v13391_v62  ;;  %v13305_v62 = vcombine.high %v2539_v40, %v2543_v54 }
 0x318   : > { %v17264_v43 = vadd.f32 %v14233_v52, %v14232_v5 }
 0x319   : > { %v14235_v45 = vpop.f32.mrf.mxu1 }
 0x31b   : > { %v14236_v47 = vpop.f32.mrf.mxu1 }
 0x31c   : > { %v17266_v55 = vadd.f32 %v14236_v47, %v14235_v45  ;;  %v2547_v45 = vld [vmem:[#allocation8 + $0x158] sm:$0xff]  ;;  %v13304_v47 = vcombine.low %v2539_v40, %v2543_v54 }
 0x31d   : > { %v14238_v61 = vpop.f32.mrf.mxu1  ;;  %3586 = vmatmul.mubr.bf16.gmra.mxu1 %v13388_v11  ;;  %v2551_v11 = vld [vmem:[#allocation8 + $0x178] sm:$0xff] }
 0x31e   : > { %3747 = vmatmul.mubr.bf16.gmra.mxu0 %v13390_v59  ;;  %3787 = vmatprep.mubr.bf16.mxu1 %v13273_v28  ;;  %v2575_v40 = vld [vmem:[#allocation8 + $0x238] sm:$0xff] }
 0x31f   : > { %v14239_v17 = vpop.f32.mrf.mxu1  ;;  %5602 = vmatprep.mubr.bf16.mxu0 %v19566_v1 }
 0x320   : > { %v17269_v12 = vadd.f32 %v14239_v17, %v14238_v61  ;;  %v13313_v61 = vcombine.high %v2547_v45, %v2551_v11 }
 0x321   : > { %v14241_v34 = vpop.f32.mrf.mxu1 }
 0x323   : > { %v14242_v19 = vpop.f32.mrf.mxu1 }
 0x324   : > { %v17271_v10 = vadd.f32 %v14242_v19, %v14241_v34 }
 0x325   : > { %v14244_v21 = vpop.f32.mrf.mxu1  ;;  %3788 = vmatmul.mubr.bf16.vlgmr.msra.gmra.mxu1 %v13272_v56  ;;  %v2555_v56 = vld [vmem:[#allocation8 + $0x198] sm:$0xff] }
 0x326   : > { %3795 = vmatprep.mubr.bf16.mxu1 %v13281_v60  ;;  %v2559_v60 = vld [vmem:[#allocation8 + $0x1b8] sm:$0xff] }
 0x327   : > { %v14245_v36 = vpop.f32.mrf.mxu1  ;;  %v13321_v49 = vcombine.high %v2555_v56, %v2559_v60  ;;  %v13320_v58 = vcombine.low %v2555_v56, %v2559_v60 }
 0x328   : > { %v17273_v31 = vadd.f32 %v14245_v36, %v14244_v21  ;;  %v13312_v36 = vcombine.low %v2547_v45, %v2551_v11  ;;  %v2579_v11 = vld [vmem:[#allocation8 + $0x258] sm:$0xff] }
 0x329   : > { %v14247_v39 = vpop.f32.mrf.mxu1 }
 0x32b   : > { %v14248_v22 = vpop.f32.mrf.mxu1 }
 0x32c   : > { %v17275_v32 = vadd.f32 %v14248_v22, %v14247_v39  ;;  %v2563_v22 = vld [vmem:[#allocation8 + $0x1d8] sm:$0xff] }
 0x32d   : > { %v14250_v6 = vpop.f32.mrf.mxu1  ;;  %3796 = vmatmul.mubr.bf16.gmra.mxu1 %v13280_v48 }
 0x32e   : > { %3803 = vmatprep.mubr.bf16.mxu1 %v13289_v27 }
 0x32f   : > { %v14251_v4 = vpop.f32.mrf.mxu1 }
 0x330   : > { %v17277_v29 = vadd.f32 %v14251_v4, %v14250_v6  ;;  %v2567_v6 = vld [vmem:[#allocation8 + $0x1f8] sm:$0xff] }
 0x331   : > { %v14253_v25 = vpop.f32.mrf.mxu1 }
 0x333   : > { %v14254_v53 = vpop.f32.mrf.mxu1 }
 0x334   : > { %v17279_v50 = vadd.f32 %v14254_v53, %v14253_v25  ;;  %v13329_v25 = vcombine.high %v2563_v22, %v2567_v6 }
 0x335   : > { %v14256_v16 = vpop.f32.mrf.mxu1  ;;  %3804 = vmatmul.mubr.bf16.gmra.mxu1 %v13288_v33 }
 0x336   : > { %3811 = vmatprep.mubr.bf16.mxu1 %v13297_v57 }
 0x337   : > { %v14257_v15 = vpop.f32.mrf.mxu1 }
 0x338   : > { %v17281_v23 = vadd.f32 %v14257_v15, %v14256_v16  ;;  %v2571_v15 = vld [vmem:[#allocation8 + $0x218] sm:$0xff] }
 0x339   : > { %v14259_v7 = vpop.f32.mrf.mxu1 }
 0x33b   : > { %v14260_v5 = vpop.f32.mrf.mxu1 }
 0x33c   : > { %v17283_v52 = vadd.f32 %v14260_v5, %v14259_v7 }
 0x33d   : > { %v14262_v30 = vpop.f32.mrf.mxu1  ;;  %3812 = vmatmul.mubr.bf16.gmra.mxu1 %v13296_v9  ;;  %v13328_v9 = vcombine.low %v2563_v22, %v2567_v6 }
 0x33e   : > { %3819 = vmatprep.mubr.bf16.mxu1 %v13305_v62  ;;  %v13337_v62 = vcombine.high %v2571_v15, %v2575_v40 }
 0x33f   : > { %v14263_v0 = vpop.f32.mrf.mxu1 }
 0x340   : > { %v17285_v59 = vadd.f32 %v14263_v0, %v14262_v30 }
 0x341   : > { %v14265_v28 = vpop.f32.mrf.mxu1 }
 0x343   : > { %v14266_v17 = vpop.f32.mrf.mxu1 }
 0x344   : > { %v17287_v38 = vadd.f32 %v14266_v17, %v14265_v28  ;;  %v2583_v28 = vld [vmem:[#allocation8 + $0x278] sm:$0xff]  ;;  %v13336_v17 = vcombine.low %v2571_v15, %v2575_v40 }
 0x345   : > { %v14268_v63 = vpop.f32.mrf.mxu1  ;;  %3820 = vmatmul.mubr.bf16.gmra.mxu1 %v13304_v47 }
 0x346   : > { %3827 = vmatprep.mubr.bf16.mxu1 %v13313_v61 }
 0x347   : > { %v14269_v34 = vpop.f32.mrf.mxu1 }
 0x348   : > { %v17289_v19 = vadd.f32 %v14269_v34, %v14268_v63  ;;  %v13345_v63 = vcombine.high %v2579_v11, %v2583_v28 }
 0x349   : > { %v14271_v21 = vpop.f32.mrf.mxu1 }
 0x34b   : > { %v14272_v14 = vpop.f32.mrf.mxu1 }
 0x34c   : > { %v17291_v39 = vadd.f32 %v14272_v14, %v14271_v21  ;;  %v2587_v14 = vld [vmem:[#allocation8 + $0x298] sm:$0xff] }
 0x34d   : > { %v14274_v48 = vpop.f32.mrf.mxu1  ;;  %3828 = vmatmul.mubr.bf16.gmra.mxu1 %v13312_v36 }
 0x34e   : > { %3835 = vmatprep.mubr.bf16.mxu1 %v13321_v49 }
 0x34f   : > { %v14275_v27 = vpop.f32.mrf.mxu1 }
 0x350   : > { %v17293_v4 = vadd.f32 %v14275_v27, %v14274_v48  ;;  %v2591_v48 = vld [vmem:[#allocation8 + $0x2b8] sm:$0xff] }
 0x351   : > { %v14277_v42 = vpop.f32.mrf.mxu1 }
 0x353   : > { %v14278_v33 = vpop.f32.mrf.mxu1 }
 0x354   : > { %v17295_v57 = vadd.f32 %v14278_v33, %v14277_v42  ;;  %v13353_v33 = vcombine.high %v2587_v14, %v2591_v48 }
 0x355   : > { %v14280_v53 = vpop.f32.mrf.mxu1  ;;  %3836 = vmatmul.mubr.bf16.gmra.mxu1 %v13320_v58  ;;  %v13344_v58 = vcombine.low %v2579_v11, %v2583_v28 }
 0x356   : > { %3843 = vmatprep.mubr.bf16.mxu1 %v13329_v25 }
 0x357   : > { %v14281_v16 = vpop.f32.mrf.mxu1 }
 0x358   : > { %v17297_v54 = vadd.f32 %v14281_v16, %v14280_v53 }
 0x359   : > { %v14283_v7 = vpop.f32.mrf.mxu1 }
 0x35b   : > { %v14284_v5 = vpop.f32.mrf.mxu1 }
 0x35c   : > { %v17299_v30 = vadd.f32 %v14284_v5, %v14283_v7 }
 0x35d   : > { %v14286_v0 = vpop.f32.mrf.mxu1  ;;  %3844 = vmatmul.mubr.bf16.gmra.mxu1 %v13328_v9 }
 0x35e   : > { %3851 = vmatprep.mubr.bf16.mxu1 %v13337_v62 }
 0x35f   : > { %v14287_v45 = vpop.f32.mrf.mxu1 }
 0x360   : > { %v17301_v47 = vadd.f32 %v14287_v45, %v14286_v0 }
 0x361   : > { %v14289_v61 = vpop.f32.mrf.mxu1 }
 0x363   : > { %v14290_v34 = vpop.f32.mrf.mxu1 }
 0x364   : > { %v17303_v56 = vadd.f32 %v14290_v34, %v14289_v61  ;;  %v2595_v61 = vld [vmem:[#allocation8 + $0x2d8] sm:$0xff] }
 0x365   : > { %v14308_v60 = vpop.f32.mrf.mxu1  ;;  %3852 = vmatmul.mubr.bf16.gmra.mxu1 %v13336_v17  ;;  %v14420_v21 = vpop.f32.mrf.mxu0  ;;  %v2599_v17 = vld [vmem:[#allocation8 + $0x2f8] sm:$0xff] }
 0x366   : > { %3859 = vmatprep.mubr.bf16.mxu1 %v13345_v63 }
 0x367   : > { %v14309_v36 = vpop.f32.mrf.mxu1  ;;  %v14421_v49 = vpop.f32.mrf.mxu0 }
 0x368   : > { %v14310_v27 = vadd.f32 %v14309_v36, %v14308_v60  ;;  %v14422_v22 = vadd.f32 %v14421_v49, %v14420_v21  ;;  %v13352_v60 = vcombine.low %v2587_v14, %v2591_v48  ;;  %v13361_v36 = vcombine.high %v2595_v61, %v2599_v17 }
 0x369   : > { %v14311_v6 = vpop.f32.mrf.mxu1  ;;  %v14423_v42 = vpop.f32.mrf.mxu0 }
 0x36a   : > { %v3468_v25 = vadd.f32 %v14310_v27, %v17240_v35 }
 0x36b   : > { %v14312_v53 = vpop.f32.mrf.mxu1  ;;  %v14424_v16 = vpop.f32.mrf.mxu0 }
 0x36c   : > { %v17306_v15 = vadd.f32 %v14422_v22, %v3468_v25  ;;  %v14313_v40 = vadd.f32 %v14312_v53, %v14311_v6  ;;  %v14425_v7 = vadd.f32 %v14424_v16, %v14423_v42  ;;  %v2607_v53 = vld [vmem:[#allocation8 + $0x338] sm:$0xff] }
 0x36d   : > { %v14314_v9 = vpop.f32.mrf.mxu1  ;;  %3860 = vmatmul.mubr.bf16.gmra.mxu1 %v13344_v58  ;;  %v14426_v62 = vpop.f32.mrf.mxu0 }
 0x36e   : > { %v3471_v5 = vadd.f32 %v14313_v40, %v17242_v44  ;;  %3867 = vmatprep.mubr.bf16.mxu1 %v13353_v33  ;;  %v2603_v33 = vld [vmem:[#allocation8 + $0x318] sm:$0xff] }
 0x36f   : > { %v14315_v0 = vpop.f32.mrf.mxu1  ;;  %v14427_v45 = vpop.f32.mrf.mxu0 }
 0x370   : > { %v17309_v11 = vadd.f32 %v14425_v7, %v3471_v5  ;;  %v14316_v35 = vadd.f32 %v14315_v0, %v14314_v9  ;;  %v14428_v28 = vadd.f32 %v14427_v45, %v14426_v62  ;;  %v13369_v7 = vcombine.high %v2603_v33, %v2607_v53  ;;  %v2611_v45 = vld [vmem:[#allocation8 + $0x358] sm:$0xff] }
 0x371   : > { %v14317_v63 = vpop.f32.mrf.mxu1  ;;  %v14429_v34 = vpop.f32.mrf.mxu0 }
 0x372   : > { %v3476_v21 = vadd.f32 %v14316_v35, %v17244_v2  ;;  %v13360_v2 = vcombine.low %v2595_v61, %v2599_v17  ;;  %v2615_v35 = vld [vmem:[#allocation8 + $0x378] sm:$0xff] }
 0x373   : > { %v14318_v49 = vpop.f32.mrf.mxu1  ;;  %v14430_v27 = vpop.f32.mrf.mxu0 }
 0x374   : > { %v17312_v22 = vadd.f32 %v14428_v28, %v3476_v21  ;;  %v14319_v44 = vadd.f32 %v14318_v49, %v14317_v63  ;;  %v14431_v6 = vadd.f32 %v14430_v27, %v14429_v34  ;;  %v13368_v34 = vcombine.low %v2603_v33, %v2607_v53  ;;  %v2619_v49 = vld [vmem:[#allocation8 + $0x398] sm:$0xff] }
 0x375   : > { %v14320_v42 = vpop.f32.mrf.mxu1  ;;  %3868 = vmatmul.mubr.bf16.gmra.mxu1 %v13352_v60  ;;  %v2623_v27 = vld [vmem:[#allocation8 + $0x3b8] sm:$0xff] }
 0x376   : > { %v3479_v58 = vadd.f32 %v14319_v44, %v17246_v18  ;;  %3875 = vmatprep.mubr.bf16.mxu1 %v13361_v36 }
 0x377   : > { %v14321_v25 = vpop.f32.mrf.mxu1 }
 0x378   : > { %v17315_v16 = vadd.f32 %v14431_v6, %v3479_v58  ;;  %v14322_v14 = vadd.f32 %v14321_v25, %v14320_v42  ;;  %v17329_v6 = vpop.f32.mrf.mxu0  ;;  %v13376_v58 = vcombine.low %v2611_v45, %v2615_v35  ;;  %v13385_v25 = vcombine.high %v2619_v49, %v2623_v27 }
 0x379   : > { %v14323_v48 = vpop.f32.mrf.mxu1 }
 0x37a   : > { %v17318_v40 = vadd.f32 %v14322_v14, %v17248_v46  ;;  %v13377_v46 = vcombine.high %v2611_v45, %v2615_v35  ;;  %v17334_v14 = vpop.f32.mrf.mxu0 }
 0x37b   : > { %v14324_v9 = vpop.f32.mrf.mxu1 }
 0x37c   : > { %v14325_v62 = vadd.f32 %v14324_v9, %v14323_v48  ;;  %v2631_v9 = vld [vmem:[#allocation8 + $0x3f8] sm:$0xff] }
 0x37d   : > { %v14326_v5 = vpop.f32.mrf.mxu1  ;;  %3876 = vmatmul.mubr.bf16.gmra.mxu1 %v13360_v2 }
 0x37e   : > { %v17321_v0 = vadd.f32 %v14325_v62, %v17250_v26  ;;  %3883 = vmatprep.mubr.bf16.mxu1 %v13369_v7  ;;  %v2627_v7 = vld [vmem:[#allocation8 + $0x3d8] sm:$0xff] }
 0x37f   : > { %v14327_v18 = vpop.f32.mrf.mxu1  ;;  %v13393_v35 = vcombine.high %v2627_v7, %v2631_v9 }
 0x380   : > { %v14328_v28 = vadd.f32 %v14327_v18, %v14326_v5  ;;  %v17339_v5 = vpop.f32.mrf.mxu0 }
 0x381   : > { %v14329_v63 = vpop.f32.mrf.mxu1 }
 0x382   : > { %v17324_v61 = vadd.f32 %v14328_v28, %v17252_v20 }
 0x383   : > { %v14330_v17 = vpop.f32.mrf.mxu1 }
 0x384   : > { %v14331_v60 = vadd.f32 %v14330_v17, %v14329_v63 }
 0x385   : > { %v14332_v21 = vpop.f32.mrf.mxu1  ;;  %3884 = vmatmul.mubr.bf16.gmra.mxu1 %v13368_v34  ;;  %v17344_v34 = vpop.f32.mrf.mxu0 }
 0x386   : > { %v17327_v36 = vadd.f32 %v14331_v60, %v17254_v51  ;;  %3891 = vmatprep.mubr.bf16.mxu1 %v13377_v46 }
 0x387   : > { %v14333_v26 = vpop.f32.mrf.mxu1 }
 0x388   : > { %v14334_v44 = vadd.f32 %v14333_v26, %v14332_v21  ;;  %v17349_v21 = vpop.f32.mrf.mxu0 }
 0x389   : > { %v14335_v42 = vpop.f32.mrf.mxu1 }
 0x38a   : > { %v17332_v20 = vadd.f32 %v14334_v44, %v17256_v41  ;;  %v13384_v41 = vcombine.low %v2619_v49, %v2623_v27  ;;  %v13392_v49 = vcombine.low %v2627_v7, %v2631_v9 }
 0x38b   : > { %v14336_v33 = vpop.f32.mrf.mxu1 }
 0x38c   : > { %v14337_v53 = vadd.f32 %v14336_v33, %v14335_v42  ;;  %v17354_v42 = vpop.f32.mrf.mxu0 }
 0x38d   : > { %v14338_v48 = vpop.f32.mrf.mxu1  ;;  %3892 = vmatmul.mubr.bf16.gmra.mxu1 %v13376_v58 }
 0x38e   : > { %v17337_v51 = vadd.f32 %v14337_v53, %v17258_v8  ;;  %3899 = vmatprep.mubr.bf16.mxu1 %v13385_v25  ;;  %v17360_v53 = vpop.f32.mrf.mxu0 }
 0x38f   : > { %v14339_v2 = vpop.f32.mrf.mxu1 }
 0x390   : > { %v14340_v62 = vadd.f32 %v14339_v2, %v14338_v48  ;;  %v17365_v9 = vpop.f32.mrf.mxu0 }
 0x391   : > { %v14341_v18 = vpop.f32.mrf.mxu1 }
 0x392   : > { %v17342_v45 = vadd.f32 %v14340_v62, %v17260_v24 }
 0x393   : > { %v14342_v28 = vpop.f32.mrf.mxu1 }
 0x394   : > { %v14343_v63 = vadd.f32 %v14342_v28, %v14341_v18 }
 0x395   : > { %v14344_v46 = vpop.f32.mrf.mxu1  ;;  %3900 = vmatmul.mubr.bf16.gmra.mxu1 %v13384_v41 }
 0x396   : > { %v17347_v8 = vadd.f32 %v14343_v63, %v17262_v37  ;;  %3907 = vmatprep.mubr.bf16.mxu1 %v13393_v35  ;;  %v17370_v35 = vpop.f32.mrf.mxu0 }
 0x397   : > { %v14345_v17 = vpop.f32.mrf.mxu1 }
 0x398   : > { %v14346_v60 = vadd.f32 %v14345_v17, %v14344_v46 }
 0x399   : > { %v14347_v26 = vpop.f32.mrf.mxu1 }
 0x39a   : > { %v17352_v24 = vadd.f32 %v14346_v60, %v17264_v43 }
 0x39b   : > { %v14348_v27 = vpop.f32.mrf.mxu1 }
 0x39c   : > { %v14349_v44 = vadd.f32 %v14348_v27, %v14347_v26 }
 0x39d   : > { %v14350_v58 = vpop.f32.mrf.mxu1  ;;  %3908 = vmatmul.mubr.bf16.gmra.mxu1 %v13392_v49 }
 0x39e   : > { %v17357_v25 = vadd.f32 %v14349_v44, %v17266_v55  ;;  %5649 = vmatprep.mubr.bf16.mxu1 %v19566_v1 }
 0x39f   : > { %v14351_v37 = vpop.f32.mrf.mxu1 }
 0x3a0   : > { %v14352_v33 = vadd.f32 %v14351_v37, %v14350_v58 }
 0x3a1   : > { %v14353_v48 = vpop.f32.mrf.mxu1 }
 0x3a2   : > { %v17363_v2 = vadd.f32 %v14352_v33, %v17269_v12  ;;  %v17375_v12 = vpop.f32.mrf.mxu0 }
 0x3a3   : > { %v14354_v43 = vpop.f32.mrf.mxu1 }
 0x3a4   : > { %v14355_v7 = vadd.f32 %v14354_v43, %v14353_v48 }
 0x3a5   : > { %v14356_v62 = vpop.f32.mrf.mxu1 }
 0x3a6   : > { %v17368_v18 = vadd.f32 %v14355_v7, %v17271_v10  ;;  %v17380_v10 = vpop.f32.mrf.mxu0 }
 0x3a7   : > { %v14357_v55 = vpop.f32.mrf.mxu1 }
 0x3a8   : > { %v14358_v41 = vadd.f32 %v14357_v55, %v14356_v62 }
 0x3a9   : > { %v14359_v28 = vpop.f32.mrf.mxu1 }
 0x3aa   : > { %v17373_v63 = vadd.f32 %v14358_v41, %v17273_v31  ;;  %v17385_v31 = vpop.f32.mrf.mxu0 }
 0x3ab   : > { %v14360_v46 = vpop.f32.mrf.mxu1 }
 0x3ac   : > { %v14361_v17 = vadd.f32 %v14360_v46, %v14359_v28 }
 0x3ad   : > { %v14362_v60 = vpop.f32.mrf.mxu1 }
 0x3ae   : > { %v17378_v26 = vadd.f32 %v14361_v17, %v17275_v32  ;;  %v17390_v32 = vpop.f32.mrf.mxu0 }
 0x3af   : > { %v14363_v49 = vpop.f32.mrf.mxu1 }
 0x3b0   : > { %v14364_v27 = vadd.f32 %v14363_v49, %v14362_v60 }
 0x3b1   : > { %v14365_v44 = vpop.f32.mrf.mxu1 }
 0x3b2   : > { %v17383_v58 = vadd.f32 %v14364_v27, %v17277_v29  ;;  %v17395_v29 = vpop.f32.mrf.mxu0 }
 0x3b3   : > { %v14366_v37 = vpop.f32.mrf.mxu1 }
 0x3b4   : > { %19589 = vst [vmem:[#allocation18_spill] sm:$0xff] %v17383_v58  ;;  %v14367_v33 = vadd.f32 %v14366_v37, %v14365_v44 }
 0x3b5   : > { %v14368_v48 = vpop.f32.mrf.mxu1 }
 0x3b6   : > { %v17388_v43 = vadd.f32 %v14367_v33, %v17279_v50  ;;  %v17400_v50 = vpop.f32.mrf.mxu0 }
 0x3b7   : > { %v14369_v7 = vpop.f32.mrf.mxu1 }
 0x3b8   : > { %19590 = vst [vmem:[#allocation19_spill] sm:$0xff] %v17388_v43  ;;  %v14370_v62 = vadd.f32 %v14369_v7, %v14368_v48 }
 0x3b9   : > { %v14371_v55 = vpop.f32.mrf.mxu1 }
 0x3ba   : > { %v17393_v41 = vadd.f32 %v14370_v62, %v17281_v23  ;;  %v17405_v23 = vpop.f32.mrf.mxu0 }
 0x3bb   : > { %v14372_v28 = vpop.f32.mrf.mxu1 }
 0x3bc   : > { %v14373_v46 = vadd.f32 %v14372_v28, %v14371_v55 }
 0x3bd   : > { %v14374_v17 = vpop.f32.mrf.mxu1 }
 0x3be   : > { %v17398_v60 = vadd.f32 %v14373_v46, %v17283_v52  ;;  %v17410_v52 = vpop.f32.mrf.mxu0 }
 0x3bf   : > { %v14375_v49 = vpop.f32.mrf.mxu1 }
 0x3c0   : > { %v14376_v27 = vadd.f32 %v14375_v49, %v14374_v17 }
 0x3c1   : > { %v14377_v44 = vpop.f32.mrf.mxu1 }
 0x3c2   : > { %v17403_v37 = vadd.f32 %v14376_v27, %v17285_v59  ;;  %v17415_v59 = vpop.f32.mrf.mxu0 }
 0x3c3   : > { %v14378_v33 = vpop.f32.mrf.mxu1 }
 0x3c4   : > { %19591 = vst [vmem:[#allocation20_spill] sm:$0xff] %v17403_v37  ;;  %v14379_v48 = vadd.f32 %v14378_v33, %v14377_v44 }
 0x3c5   : > { %v14380_v7 = vpop.f32.mrf.mxu1 }
 0x3c6   : > { %v17408_v62 = vadd.f32 %v14379_v48, %v17287_v38  ;;  %v17420_v38 = vpop.f32.mrf.mxu0 }
 0x3c7   : > { %v14381_v55 = vpop.f32.mrf.mxu1 }
 0x3c8   : > { %19592 = vst [vmem:[#allocation21_spill] sm:$0xff] %v17408_v62  ;;  %v14382_v28 = vadd.f32 %v14381_v55, %v14380_v7 }
 0x3c9   : > { %v14383_v46 = vpop.f32.mrf.mxu1 }
 0x3ca   : > { %v17413_v17 = vadd.f32 %v14382_v28, %v17289_v19  ;;  %v17425_v19 = vpop.f32.mrf.mxu0 }
 0x3cb   : > { %v14384_v49 = vpop.f32.mrf.mxu1 }
 0x3cc   : > { %v14385_v13 = vadd.f32 %v14384_v49, %v14383_v46 }
 0x3cd   : > { %v14386_v27 = vpop.f32.mrf.mxu1 }
 0x3ce   : > { %v17418_v44 = vadd.f32 %v14385_v13, %v17291_v39  ;;  %v17430_v13 = vpop.f32.mrf.mxu0 }
 0x3cf   : > { %v14387_v33 = vpop.f32.mrf.mxu1 }
 0x3d0   : > { %v14388_v3 = vadd.f32 %v14387_v33, %v14386_v27 }
 0x3d1   : > { %v14389_v48 = vpop.f32.mrf.mxu1 }
 0x3d2   : > { %v17423_v7 = vadd.f32 %v14388_v3, %v17293_v4  ;;  %v17435_v3 = vpop.f32.mrf.mxu0 }
 0x3d3   : > { %v14390_v55 = vpop.f32.mrf.mxu1 }
 0x3d4   : > { %19593 = vst [vmem:[#allocation22_spill] sm:$0xff] %v17423_v7  ;;  %v14391_v1 = vadd.f32 %v14390_v55, %v14389_v48 }
 0x3d5   : > { %v14392_v28 = vpop.f32.mrf.mxu1 }
 0x3d6   : > { %v17428_v46 = vadd.f32 %v14391_v1, %v17295_v57  ;;  %v17440_v1 = vpop.f32.mrf.mxu0 }
 0x3d7   : > { %v14393_v49 = vpop.f32.mrf.mxu1 }
 0x3d8   : > { %19594 = vst [vmem:[#allocation23_spill] sm:$0xff] %v17428_v46  ;;  %v14394_v62 = vadd.f32 %v14393_v49, %v14392_v28 }
 0x3d9   : > { %v14395_v39 = vpop.f32.mrf.mxu1 }
 0x3da   : > { %v17433_v27 = vadd.f32 %v14394_v62, %v17297_v54  ;;  %v17445_v54 = vpop.f32.mrf.mxu0 }
 0x3db   : > { %v14396_v33 = vpop.f32.mrf.mxu1 }
 0x3dc   : > { %v14397_v37 = vadd.f32 %v14396_v33, %v14395_v39 }
 0x3dd   : > { %v14398_v4 = vpop.f32.mrf.mxu1 }
 0x3de   : > { %v17438_v48 = vadd.f32 %v14397_v37, %v17299_v30  ;;  %v17450_v30 = vpop.f32.mrf.mxu0 }
 0x3df   : > { %v14399_v55 = vpop.f32.mrf.mxu1 }
 0x3e0   : > { %v14400_v7 = vadd.f32 %v14399_v55, %v14398_v4 }
 0x3e1   : > { %v14401_v57 = vpop.f32.mrf.mxu1 }
 0x3e2   : > { %v17443_v28 = vadd.f32 %v14400_v7, %v17301_v47  ;;  %v17455_v47 = vpop.f32.mrf.mxu0 }
 0x3e3   : > { %v14402_v49 = vpop.f32.mrf.mxu1 }
 0x3e4   : > { %19595 = vst [vmem:[#allocation24_spill] sm:$0xff] %v17443_v28  ;;  %v14403_v46 = vadd.f32 %v14402_v49, %v14401_v57 }
 0x3e5   : > { %v14532_v62 = vpop.f32.mrf.mxu1 }
 0x3e6   : > { %v17448_v39 = vadd.f32 %v14403_v46, %v17303_v56  ;;  %v17460_v56 = vpop.f32.mrf.mxu0 }
 0x3e7   : > { %v14533_v33 = vpop.f32.mrf.mxu1 }
 0x3e8   : > { %v14534_v43 = vadd.f32 %v14533_v33, %v14532_v62 }
 0x3e9   : > { %v14535_v37 = vpop.f32.mrf.mxu1 }
 0x3ea   : > { %v17453_v4 = vadd.f32 %v14534_v43, %v17306_v15  ;;  %v14434_v15 = vadd.f32 %v17334_v14, %v17329_v6  ;;  %v14440_v14 = vadd.f32 %v17354_v42, %v17349_v21 }
 0x3eb   : > { %v14536_v55 = vpop.f32.mrf.mxu1 }
 0x3ec   : > { %19596 = vst [vmem:[#allocation25_spill] sm:$0xff] %v17453_v4  ;;  %v14537_v58 = vadd.f32 %v14536_v55, %v14535_v37  ;;  %v17467_v37 = vpop.f32.mrf.mxu0 }
 0x3ed   : > { %v14538_v7 = vpop.f32.mrf.mxu1 }
 0x3ee   : > { %v17458_v57 = vadd.f32 %v14537_v58, %v17309_v11  ;;  %v3645_v58 = vadd.f32 %v14434_v15, %v17318_v40 }
 0x3ef   : > { %v14539_v49 = vpop.f32.mrf.mxu1 }
 0x3f0   : > { %19597 = vst [vmem:[#allocation26_spill] sm:$0xff] %v17458_v57  ;;  %v14540_v28 = vadd.f32 %v14539_v49, %v14538_v7  ;;  %v14437_v7 = vadd.f32 %v17344_v34, %v17339_v5  ;;  %v3653_v5 = vadd.f32 %v14440_v14, %v17324_v61  ;;  %v14443_v34 = vadd.f32 %v17365_v9, %v17360_v53 }
 0x3f1   : > { %v14541_v46 = vpop.f32.mrf.mxu1  ;;  %v14449_v9 = vadd.f32 %v17385_v31, %v17380_v10 }
 0x3f2   : > { %v17463_v62 = vadd.f32 %v14540_v28, %v17312_v22  ;;  %v17475_v22 = vpop.f32.mrf.mxu0  ;;  %v3648_v6 = vadd.f32 %v14437_v7, %v17321_v0  ;;  %v3656_v42 = vadd.f32 %v14443_v34, %v17327_v36 }
 0x3f3   : > { %v14542_v33 = vpop.f32.mrf.mxu1 }
 0x3f4   : > { %19598 = vst [vmem:[#allocation27_spill] sm:$0xff] %v17463_v62  ;;  %v14543_v43 = vadd.f32 %v14542_v33, %v14541_v46 }
 0x3f5   : > { %v14544_v55 = vpop.f32.mrf.mxu1 }
 0x3f6   : > { %v17470_v4 = vadd.f32 %v14543_v43, %v17315_v16  ;;  %v17480_v16 = vpop.f32.mrf.mxu0 }
 0x3f7   : > { %v14545_v11 = vpop.f32.mrf.mxu1 }
 0x3f8   : > { %v14546_v49 = vadd.f32 %v14545_v11, %v14544_v55  ;;  %v17485_v55 = vpop.f32.mrf.mxu0 }
 0x3f9   : > { %v14547_v28 = vpop.f32.mrf.mxu1 }
 0x3fa   : > { %v3806_v62 = vadd.f32 %v14546_v49, %v3645_v58  ;;  %v17490_v58 = vpop.f32.mrf.mxu0 }
 0x3fb   : > { %v14548_v57 = vpop.f32.mrf.mxu1 }
 0x3fc   : > { %v14549_v46 = vadd.f32 %v14548_v57, %v14547_v28  ;;  %3916 = vrot.lane.b32.xlu0 %v3806_v62, %s16196_s30  ;;  %v14446_v57 = vadd.f32 %v17375_v12, %v17370_v35  ;;  %v3664_v35 = vadd.f32 %v14449_v9, %v17337_v51  ;;  %v14452_v12 = vadd.f32 %v17395_v29, %v17390_v32 }
 0x3fd   : > { %v14550_v40 = vpop.f32.mrf.mxu1 }
 0x3fe   : > { %v3809_v33 = vadd.f32 %v14549_v46, %v3648_v6  ;;  %v3661_v53 = vadd.f32 %v14446_v57, %v17332_v20  ;;  %v17495_v6 = vpop.f32.mrf.mxu0  ;;  %v3669_v31 = vadd.f32 %v14452_v12, %v17342_v45 }
 0x3ff   : > { %v14551_v15 = vpop.f32.mrf.mxu1 }
 0x400   : > { %v14552_v43 = vadd.f32 %v14551_v15, %v14550_v40  ;;  %3918 = vrot.lane.b32.xlu1 %v3809_v33, %s16196_s30  ;;  %v17500_v33 = vpop.f32.mrf.mxu0 }
 0x401   : > { %v14553_v0 = vpop.f32.mrf.mxu1 }
 0x402   : > { %v3814_v11 = vadd.f32 %v14552_v43, %v3653_v5  ;;  %v14455_v5 = vadd.f32 %v17405_v23, %v17400_v50  ;;  %v17505_v43 = vpop.f32.mrf.mxu0  ;;  %v14461_v23 = vadd.f32 %v17425_v19, %v17420_v38 }
 0x403   : > { %v14554_v21 = vpop.f32.mrf.mxu1 }
 0x404   : > { %v14555_v62 = vadd.f32 %v14554_v21, %v14553_v0  ;;  %3920 = vrot.lane.b32.xlu0 %v3814_v11, %s16196_s30  ;;  %v3672_v29 = vadd.f32 %v14455_v5, %v17347_v8  ;;  %v14458_v11 = vadd.f32 %v17415_v59, %v17410_v52  ;;  %v3680_v52 = vadd.f32 %v14461_v23, %v17357_v25 }
 0x405   : > { %v14556_v61 = vpop.f32.mrf.mxu1  ;;  %v14470_v25 = vadd.f32 %v17455_v47, %v17450_v30 }
 0x406   : > { %v3817_v7 = vadd.f32 %v14555_v62, %v3656_v42  ;;  %v17510_v42 = vpop.f32.mrf.mxu0  ;;  %v3677_v50 = vadd.f32 %v14458_v11, %v17352_v24  ;;  %v4274_v11 = vld [vmem:[%s19545_s12 + $0x780] sm:$0xff] }
 0x407   : > { %v14557_v49 = vpop.f32.mrf.mxu1 }
 0x408   : > { %v14558_v28 = vadd.f32 %v14557_v49, %v14556_v61  ;;  %3922 = vrot.lane.b32.xlu1 %v3817_v7, %s16196_s30  ;;  %v17515_v7 = vpop.f32.mrf.mxu0 }
 0x409   : > { %v14559_v36 = vpop.f32.mrf.mxu1 }
 0x40a   : > { %v3822_v14 = vadd.f32 %v14558_v28, %v3661_v53  ;;  %v17519_v9 = vpop.f32.mrf.mxu0 }
 0x40b   : > { %v14560_v46 = vpop.f32.mrf.mxu1 }
 0x40c   : > { %v14561_v40 = vadd.f32 %v14560_v46, %v14559_v36  ;;  %3928 = vrot.lane.b32.xlu0 %v3822_v14, %s16197_s26  ;;  %v17526_v38 = vpop.f32.mrf.mxu0 }
 0x40d   : > { %v14562_v20 = vpop.f32.mrf.mxu1 }
 0x40e   : > { %v3825_v15 = vadd.f32 %v14561_v40, %v3664_v35  ;;  %v17534_v46 = vpop.f32.mrf.mxu0  ;;  %v3693_v40 = vadd.f32 %v14470_v25, %v17373_v63 }
 0x40f   : > { %v14563_v10 = vpop.f32.mrf.mxu1 }
 0x410   : > { %v14564_v34 = vadd.f32 %v14563_v10, %v14562_v20  ;;  %3930 = vrot.lane.b32.xlu1 %v3825_v15, %s16197_s26  ;;  %v14473_v20 = vadd.f32 %v17467_v37, %v17460_v56  ;;  %v17539_v10 = vpop.f32.mrf.mxu0 }
 0x411   : > { %v14565_v51 = vpop.f32.mrf.mxu1 }
 0x412   : > { %v3830_v0 = vadd.f32 %v14564_v34, %v3669_v31  ;;  %v17543_v30 = vpop.f32.mrf.mxu0 }
 0x413   : > { %v14566_v32 = vpop.f32.mrf.mxu1 }
 0x414   : > { %v14567_v21 = vadd.f32 %v14566_v32, %v14565_v51  ;;  %3932 = vrot.lane.b32.xlu0 %v3830_v0, %s16197_s26  ;;  %v3696_v51 = vadd.f32 %v14473_v20, %v17378_v26  ;;  %v17550_v56 = vpop.f32.mrf.mxu0  ;;  %v4258_v26 = vld [vmem:[%s19545_s12 + $0x700] sm:$0xff] }
 0x415   : > { %v14568_v45 = vpop.f32.mrf.mxu1 }
 0x416   : > { %v3833_v57 = vadd.f32 %v14567_v21, %v3672_v29  ;;  %v4259_v21 = vld [vmem:[%s19545_s12 + $0x708] sm:$0xff]  ;;  %v17570_v23 = vpop.f32.mrf.mxu0 }
 0x417   : > { %v14569_v62 = vpop.f32.mrf.mxu1 }
 0x418   : > { %v14570_v61 = vadd.f32 %v14569_v62, %v14568_v45  ;;  %3934 = vrot.lane.b32.xlu1 %v3833_v57, %s16197_s26  ;;  %v14482_v45 = vadd.f32 %v17500_v33, %v17495_v6  ;;  %v13618_v57 = vcombine.low %v4258_v26, %v4274_v11  ;;  %v13619_v62 = vcombine.high %v4258_v26, %v4274_v11  ;;  %v4194_v26 = vld [vmem:[%s19545_s12 + $0x500] sm:$0xff] }
 0x419   : > { %v14571_v8 = vpop.f32.mrf.mxu1  ;;  %v14485_v6 = vadd.f32 %v17510_v42, %v17505_v43  ;;  %v4242_v43 = vld [vmem:[%s19545_s12 + $0x680] sm:$0xff]  ;;  %v4227_v42 = vld [vmem:[%s19545_s12 + $0x608] sm:$0xff] }
 0x41a   : > { %v3838_v49 = vadd.f32 %v14570_v61, %v3677_v50  ;;  %v4275_v50 = vld [vmem:[%s19545_s12 + $0x788] sm:$0xff]  ;;  %5570 = vmatprep.subr.bf16.mxu0 %v13619_v62  ;;  %v4210_v11 = vld [vmem:[%s19545_s12 + $0x580] sm:$0xff] }
 0x41b   : > { %v14572_v53 = vpop.f32.mrf.mxu1  ;;  %5571 = vmatpush1.bf16.msra.mxu0 %v13618_v57  ;;  %v13555_v62 = vcombine.high %v4194_v26, %v4210_v11 }
 0x41c   : > { %v14573_v59 = vadd.f32 %v14572_v53, %v14571_v8  ;;  %3940 = vrot.lane.b32.xlu0 %v3838_v49, %s16198_s22  ;;  %v13620_v8 = vcombine.low %v4259_v21, %v4275_v50  ;;  %v13621_v49 = vcombine.high %v4259_v21, %v4275_v50  ;;  %v4195_v21 = vld [vmem:[%s19545_s12 + $0x508] sm:$0xff] }
 0x41d   : > { %v17521_v28 = vpop.f32.mrf.mxu1  ;;  %v4211_v50 = vld [vmem:[%s19545_s12 + $0x588] sm:$0xff] }
 0x41e   : > { %v3841_v24 = vadd.f32 %v14573_v59, %v3680_v52  ;;  %5617 = vmatprep.subr.bf16.mxu1 %v13621_v49  ;;  %v3709_v52 = vadd.f32 %v14482_v45, %v17393_v41  ;;  %v17575_v59 = vpop.f32.mrf.mxu0  ;;  %v4226_v41 = vld [vmem:[%s19545_s12 + $0x600] sm:$0xff]  ;;  %v13557_v49 = vcombine.high %v4195_v21, %v4211_v50 }
 0x41f   : > { %v17523_v36 = vpop.f32.mrf.mxu1  ;;  %5618 = vmatpush1.bf16.msra.mxu1 %v13620_v8  ;;  %v13556_v8 = vcombine.low %v4195_v21, %v4211_v50 }
 0x420   : > { %3942 = vrot.lane.b32.xlu1 %v3841_v24, %s16198_s22  ;;  %v17588_v20 = vpop.f32.mrf.mxu0 }
 0x421   : > { %v17528_v19 = vpop.f32.mrf.mxu1 }
 0x422   : > { %v17607_v45 = vpop.f32.mrf.mxu0 }
 0x423   : > { %v17530_v14 = vpop.f32.mrf.mxu1 }
 0x425   : > { %v14580_v35 = vpop.f32.mrf.mxu1 }
 0x427   : > { %v14581_v12 = vpop.f32.mrf.mxu1 }
 0x428   : > { %v14582_v15 = vadd.f32 %v14581_v12, %v14580_v35  ;;  %v3712_v12 = vadd.f32 %v14485_v6, %v17398_v60  ;;  %v13587_v60 = vcombine.high %v4226_v41, %v4242_v43  ;;  %v4178_v6 = vld [vmem:[%s19545_s12 + $0x480] sm:$0xff] }
 0x429   : > { %v14583_v31 = vpop.f32.mrf.mxu1 }
 0x42a   : > { %v3854_v5 = vadd.f32 %v14582_v15, %v3693_v40  ;;  %5572 = vmatprep.subr.bf16.mxu0 %v13587_v60  ;;  %v4131_v60 = vld [vmem:[%s19545_s12 + $0x308] sm:$0xff] }
 0x42b   : > { %v14584_v34 = vpop.f32.mrf.mxu1 }
 0x42c   : > { %v14585_v0 = vadd.f32 %v14584_v34, %v14583_v31  ;;  %3952 = vrot.lane.b32.xlu0 %v3854_v5, %s16199_s6  ;;  %v4243_v31 = vld [vmem:[%s19545_s12 + $0x688] sm:$0xff]  ;;  %v13586_v34 = vcombine.low %v4226_v41, %v4242_v43  ;;  %v17636_v41 = vpop.f32.mrf.mxu0 }
 0x42d   : > { %v17545_v47 = vpop.f32.mrf.mxu1 }
 0x42e   : > { %v3857_v63 = vadd.f32 %v14585_v0, %v3696_v51  ;;  %v13588_v51 = vcombine.low %v4227_v42, %v4243_v31  ;;  %v13589_v0 = vcombine.high %v4227_v42, %v4243_v31  ;;  %5573 = vmatpush1.bf16.msra.mxu0 %v13586_v34  ;;  %v4147_v31 = vld [vmem:[%s19545_s12 + $0x388] sm:$0xff]  ;;  %v14504_v21 = vpop.f32.mrf.mxu0 }
 0x42f   : > { %v17547_v32 = vpop.f32.mrf.mxu1  ;;  %5574 = vmatprep.subr.bf16.mxu0 %v13555_v62  ;;  %v13493_v34 = vcombine.high %v4131_v60, %v4147_v31 }
 0x430   : > { %3954 = vrot.lane.b32.xlu1 %v3857_v63, %s16199_s6  ;;  %5619 = vmatprep.subr.bf16.mxu1 %v13589_v0 }
 0x431   : > { %v17552_v37 = vpop.f32.mrf.mxu1  ;;  %5620 = vmatpush1.bf16.msra.mxu1 %v13588_v51 }
 0x432   : > { %5621 = vmatprep.subr.bf16.mxu1 %v13557_v49 }
 0x433   : > { %v17554_v29 = vpop.f32.mrf.mxu1 }
 0x435   : > { %v14592_v61 = vpop.f32.mrf.mxu1  ;;  %5622 = vmatpush1.bf16.msra.mxu1 %v13556_v8 }
 0x437   : > { %v14593_v53 = vpop.f32.mrf.mxu1 }
 0x438   : > { %v14594_v33 = vadd.f32 %v14593_v53, %v14592_v61  ;;  %v13554_v61 = vcombine.low %v4194_v26, %v4210_v11  ;;  %v14497_v26 = vadd.f32 %v17570_v23, %v17550_v56  ;;  %v4114_v56 = vld [vmem:[%s19545_s12 + $0x280] sm:$0xff]  ;;  %v4099_v23 = vld [vmem:[%s19545_s12 + $0x208] sm:$0xff] }
 0x439   : > { %v14595_v24 = vpop.f32.mrf.mxu1 }
 0x43a   : > { %v3870_v25 = vadd.f32 %v14594_v33, %v3709_v52  ;;  %v4162_v52 = vld [vmem:[%s19545_s12 + $0x400] sm:$0xff]  ;;  %v4163_v33 = vld [vmem:[%s19545_s12 + $0x408] sm:$0xff]  ;;  %5575 = vmatpush1.bf16.msra.mxu0 %v13554_v61  ;;  %v13492_v61 = vcombine.low %v4131_v60, %v4147_v31 }
 0x43b   : > { %v14596_v35 = vpop.f32.mrf.mxu1  ;;  %v4067_v60 = vld [vmem:[%s19545_s12 + $0x108] sm:$0xff] }
 0x43c   : > { %v14597_v40 = vadd.f32 %v14596_v35, %v14595_v24  ;;  %3964 = vrot.lane.b32.xlu0 %v3870_v25, %s16200_s3  ;;  %v14494_v24 = vadd.f32 %v17543_v30, %v17539_v10  ;;  %v13523_v25 = vcombine.high %v4162_v52, %v4178_v6  ;;  %v4179_v35 = vld [vmem:[%s19545_s12 + $0x488] sm:$0xff]  ;;  %v13522_v10 = vcombine.low %v4162_v52, %v4178_v6 }
 0x43d   : > { %v17590_v15 = vpop.f32.mrf.mxu1  ;;  %v13524_v30 = vcombine.low %v4163_v33, %v4179_v35  ;;  %v13525_v42 = vcombine.high %v4163_v33, %v4179_v35  ;;  %v3728_v52 = vadd.f32 %v14497_v26, %v17418_v44  ;;  %v14505_v33 = vpop.f32.mrf.mxu0 }
 0x43e   : > { %v3873_v5 = vadd.f32 %v14597_v40, %v3712_v12  ;;  %v4130_v12 = vld [vmem:[%s19545_s12 + $0x300] sm:$0xff]  ;;  %5576 = vmatprep.subr.bf16.mxu0 %v13523_v25  ;;  %v3725_v0 = vadd.f32 %v14494_v24, %v17413_v17  ;;  %v4115_v25 = vld [vmem:[%s19545_s12 + $0x288] sm:$0xff] }
 0x43f   : > { %v17595_v63 = vpop.f32.mrf.mxu1  ;;  %v4146_v40 = vld [vmem:[%s19545_s12 + $0x380] sm:$0xff]  ;;  %5623 = vmatprep.subr.bf16.mxu1 %v13525_v42  ;;  %5577 = vmatpush1.bf16.msra.mxu0 %v13522_v10  ;;  %v14507_v31 = vpop.f32.mrf.mxu0 }
 0x440   : > { %3966 = vrot.lane.b32.xlu1 %v3873_v5, %s16200_s3  ;;  %v13491_v5 = vcombine.high %v4130_v12, %v4146_v40  ;;  %5624 = vmatpush1.bf16.msra.mxu1 %v13524_v30  ;;  %v13490_v50 = vcombine.low %v4130_v12, %v4146_v40  ;;  %v4098_v17 = vld [vmem:[%s19545_s12 + $0x200] sm:$0xff]  ;;  %v13460_v40 = vcombine.low %v4099_v23, %v4115_v25 }
 0x441   : > { %v17609_v57 = vpop.f32.mrf.mxu1  ;;  %5625 = vmatprep.subr.bf16.mxu1 %v13493_v34  ;;  %v13459_v44 = vcombine.high %v4098_v17, %v4114_v56  ;;  %v13458_v12 = vcombine.low %v4098_v17, %v4114_v56  ;;  %v4066_v30 = vld [vmem:[%s19545_s12 + $0x100] sm:$0xff] }
 0x442   : > { %5578 = vmatprep.subr.bf16.mxu0 %v13491_v5  ;;  %v4082_v42 = vld [vmem:[%s19545_s12 + $0x180] sm:$0xff] }
 0x443   : > { %v17614_v53 = vpop.f32.mrf.mxu1  ;;  %5579 = vmatpush1.bf16.msra.mxu0 %v13490_v50  ;;  %v13427_v34 = vcombine.high %v4066_v30, %v4082_v42  ;;  %v14506_v50 = vadd.f32 %v14505_v33, %v14504_v21  ;;  %v4051_v21 = vld [vmem:[%s19545_s12 + $0x88] sm:$0xff] }
 0x444   : > { %5626 = vmatpush1.bf16.msra.mxu1 %v13492_v61  ;;  %5580 = vmatprep.subr.bf16.mxu0 %v13459_v44  ;;  %v4034_v61 = vld [vmem:[%s19545_s12] sm:$0xff] }
 0x445   : > { %v14604_v43 = vpop.f32.mrf.mxu1 }
 0x447   : > { %v14605_v51 = vpop.f32.mrf.mxu1  ;;  %5581 = vmatpush1.bf16.msra.mxu0 %v13458_v12 }
 0x448   : > { %v14606_v11 = vadd.f32 %v14605_v51, %v14604_v43  ;;  %v13461_v43 = vcombine.high %v4099_v23, %v4115_v25  ;;  %v4083_v51 = vld [vmem:[%s19545_s12 + $0x188] sm:$0xff]  ;;  %5582 = vmatprep.subr.bf16.mxu0 %v13427_v34  ;;  %v14464_v25 = vadd.f32 %v17435_v3, %v17430_v13  ;;  %v14476_v34 = vadd.f32 %v17480_v16, %v17475_v22 }
 0x449   : > { %v14607_v62 = vpop.f32.mrf.mxu1  ;;  %v13428_v26 = vcombine.low %v4067_v60, %v4083_v51  ;;  %v19599_v22 = vld [vmem:[#allocation18_spill] sm:$0xff] }
 0x44a   : > { %v3886_v8 = vadd.f32 %v14606_v11, %v3725_v0  ;;  %5627 = vmatprep.subr.bf16.mxu1 %v13461_v43  ;;  %v13426_v0 = vcombine.low %v4066_v30, %v4082_v42  ;;  %v13429_v11 = vcombine.high %v4067_v60, %v4083_v51  ;;  %v14576_v30 = vadd.f32 %v17523_v36, %v17521_v28 }
 0x44b   : > { %v14608_v49 = vpop.f32.mrf.mxu1  ;;  %5628 = vmatpush1.bf16.msra.mxu1 %v13460_v40  ;;  %v14467_v60 = vadd.f32 %v17445_v54, %v17440_v1  ;;  %v3685_v13 = vadd.f32 %v14464_v25, %v17363_v2  ;;  %v14579_v28 = vadd.f32 %v17530_v14, %v17528_v19  ;;  %v14588_v36 = vadd.f32 %v17547_v32, %v17545_v47  ;;  %v17722_v19 = vld [vmem:[%s19545_s12 + $0x790] sm:$0xff]  ;;  %v17727_v14 = vld [vmem:[%s19545_s12 + $0x718] sm:$0xff] }
 0x44c   : > { %v14609_v6 = vadd.f32 %v14608_v49, %v14607_v62  ;;  %3976 = vrot.lane.b32.xlu0 %v3886_v8, %s16201_s27  ;;  %5629 = vmatprep.subr.bf16.mxu1 %v13429_v11  ;;  %v4050_v8 = vld [vmem:[%s19545_s12 + $0x80] sm:$0xff]  ;;  %v4035_v49 = vld [vmem:[%s19545_s12 + $0x8] sm:$0xff]  ;;  %v3701_v16 = vadd.f32 %v14476_v34, %v19599_v22  ;;  %v14479_v2 = vadd.f32 %v17490_v58, %v17485_v55  ;;  %v17740_v47 = vld [vmem:[%s19545_s12 + $0x798] sm:$0xff] }
 0x44d   : > { %v17658_v24 = vpop.f32.mrf.mxu1  ;;  %5583 = vmatpush1.bf16.msra.mxu0 %v13426_v0  ;;  %v13395_v17 = vcombine.high %v4034_v61, %v4050_v8  ;;  %v13394_v56 = vcombine.low %v4034_v61, %v4050_v8  ;;  %v13396_v23 = vcombine.low %v4035_v49, %v4051_v21  ;;  %v13397_v33 = vcombine.high %v4035_v49, %v4051_v21  ;;  %v19600_v8 = vld [vmem:[#allocation19_spill] sm:$0xff]  ;;  %v19605_v34 = vld [vmem:[#allocation24_spill] sm:$0xff] }
 0x44e   : > { %v3889_v35 = vadd.f32 %v14609_v6, %v3728_v52  ;;  %v14508_v52 = vpop.f32.mrf.mxu0  ;;  %v3688_v54 = vadd.f32 %v14467_v60, %v17368_v18  ;;  %v14488_v18 = vadd.f32 %v17519_v9, %v17515_v7  ;;  %v13624_v0 = vcombine.low %v17727_v14, %v17740_v47 }
 0x44f   : > { %v17663_v10 = vpop.f32.mrf.mxu1  ;;  %5630 = vmatpush1.bf16.msra.mxu1 %v13428_v26  ;;  %5584 = vmatprep.subr.bf16.mxu0 %v13395_v17  ;;  %v14509_v12 = vadd.f32 %v14508_v52, %v14507_v31  ;;  %v3846_v31 = vadd.f32 %v14576_v30, %v3685_v13  ;;  %v13625_v7 = vcombine.high %v17727_v14, %v17740_v47  ;;  %v19601_v52 = vld [vmem:[#allocation20_spill] sm:$0xff] }
 0x450   : > { %3978 = vrot.lane.b32.xlu1 %v3889_v35, %s16201_s27  ;;  %v3741_v35 = vadd.f32 %v14506_v50, %v17433_v27  ;;  %5631 = vmatprep.subr.bf16.mxu1 %v13397_v33  ;;  %v14510_v32 = vpop.f32.mrf.mxu0  ;;  %v3849_v9 = vadd.f32 %v14579_v28, %v3688_v54  ;;  %v3862_v26 = vadd.f32 %v14588_v36, %v3701_v16  ;;  %v4181_v14 = vld [vmem:[%s19545_s12 + $0x498] sm:$0xff] }
 0x451   : > { %v17675_v5 = vpop.f32.mrf.mxu1  ;;  %5585 = vmatpush1.bf16.msra.mxu0 %v13394_v56  ;;  %v3744_v27 = vadd.f32 %v14509_v12, %v17438_v48  ;;  %v17717_v48 = vld [vmem:[%s19545_s12 + $0x710] sm:$0xff]  ;;  %v14591_v11 = vadd.f32 %v17554_v29, %v17552_v37  ;;  %v14600_v50 = vadd.f32 %v17595_v63, %v17590_v15  ;;  %v3704_v49 = vadd.f32 %v14479_v2, %v19600_v8  ;;  %v19602_v63 = vld [vmem:[#allocation21_spill] sm:$0xff] }
 0x452   : > { %v13622_v55 = vcombine.low %v17717_v48, %v17722_v19  ;;  %v13623_v58 = vcombine.high %v17717_v48, %v17722_v19  ;;  %v14491_v17 = vadd.f32 %v17534_v46, %v17526_v38  ;;  %v14511_v21 = vpop.f32.mrf.mxu0  ;;  %v14603_v29 = vadd.f32 %v17614_v53, %v17609_v57  ;;  %v4002_v46 = vld [vmem:[%s19544_s11 + $0x10] sm:$0xff]  ;;  %v19603_v53 = vld [vmem:[#allocation22_spill] sm:$0xff]  ;;  %v4165_v19 = vld [vmem:[%s19545_s12 + $0x418] sm:$0xff] }
 0x453   : > { %v17680_v62 = vpop.f32.mrf.mxu1  ;;  %5632 = vmatpush1.bf16.msra.mxu1 %v13396_v23  ;;  %v3865_v56 = vadd.f32 %v14591_v11, %v3704_v49  ;;  %v14500_v33 = vadd.f32 %v17588_v20, %v17575_v59  ;;  %v14612_v25 = vadd.f32 %v17663_v10, %v17658_v24  ;;  %v14503_v12 = vadd.f32 %v17636_v41, %v17607_v45  ;;  %v4180_v48 = vld [vmem:[%s19545_s12 + $0x490] sm:$0xff] }
 0x454   : > { %5664 = vmatprep.subr.bf16.mxu0 %v13623_v58  ;;  %5711 = vmatprep.subr.bf16.mxu1 %v13625_v7  ;;  %v3720_v23 = vadd.f32 %v14491_v17, %v19602_v63  ;;  %v14513_v38 = vpop.f32.mrf.mxu0  ;;  %v14512_v59 = vadd.f32 %v14511_v21, %v14510_v32  ;;  %v14615_v30 = vadd.f32 %v17680_v62, %v17675_v5  ;;  %v4007_v62 = vpop.permute.xlu0 %4006  ;;  %v19606_v7 = vld [vmem:[#allocation25_spill] sm:$0xff] }
 0x455   : > { %v14616_v6 = vpop.f32.mrf.mxu1 }
 0x456   : > { %v14514_v20 = vpop.f32.mrf.mxu0 }
 0x457   : > { %v14617_v44 = vpop.f32.mrf.mxu1  ;;  %v14515_v45 = vadd.f32 %v14514_v20, %v14513_v38  ;;  %v4245_v20 = vld [vmem:[%s19545_s12 + $0x698] sm:$0xff] }
 0x458   : > { %v14618_v40 = vadd.f32 %v14617_v44, %v14616_v6  ;;  %v3717_v6 = vadd.f32 %v14488_v18, %v19601_v52  ;;  %v3881_v44 = vadd.f32 %v14603_v29, %v3720_v23 }
 0x459   : > { %v14619_v43 = vpop.f32.mrf.mxu1 }
 0x45a   : > { %v3902_v42 = vadd.f32 %v14618_v40, %v3741_v35  ;;  %v3878_v37 = vadd.f32 %v14600_v50, %v3717_v6  ;;  %v3733_v35 = vadd.f32 %v14500_v33, %v19603_v53  ;;  %v4003_v40 = vld [vmem:[%s19544_s11 + $0x18] sm:$0xff] }
 0x45b   : > { %v14620_v51 = vpop.f32.mrf.mxu1 }
 0x45c   : > { %v14621_v3 = vadd.f32 %v14620_v51, %v14619_v43  ;;  %3988 = vrot.lane.b32.xlu0 %v3902_v42, %s16202_s4  ;;  %v3894_v43 = vadd.f32 %v14612_v25, %v3733_v35  ;;  %v19604_v42 = vld [vmem:[#allocation23_spill] sm:$0xff]  ;;  %v3749_v51 = vadd.f32 %v14512_v59, %v19605_v34  ;;  %v4229_v59 = vld [vmem:[%s19545_s12 + $0x618] sm:$0xff] }
 0x45d   : > { %v14622_v61 = vpop.f32.mrf.mxu1  ;;  %v3736_v60 = vadd.f32 %v14503_v12, %v19604_v42  ;;  %v4228_v35 = vld [vmem:[%s19545_s12 + $0x610] sm:$0xff]  ;;  %v13593_v42 = vcombine.high %v4229_v59, %v4245_v20 }
 0x45e   : > { %v3905_v1 = vadd.f32 %v14621_v3, %v3744_v27  ;;  %v3752_v3 = vadd.f32 %v14515_v45, %v17448_v39  ;;  %v4244_v12 = vld [vmem:[%s19545_s12 + $0x690] sm:$0xff]  ;;  %v4213_v45 = vld [vmem:[%s19545_s12 + $0x598] sm:$0xff] }
 0x45f   : > { %v14623_v15 = vpop.f32.mrf.mxu1  ;;  %v3897_v41 = vadd.f32 %v14615_v30, %v3736_v60  ;;  %v4196_v60 = vld [vmem:[%s19545_s12 + $0x510] sm:$0xff] }
 0x460   : > { %3990 = vrot.lane.b32.xlu1 %v3905_v1, %s16202_s4  ;;  %3944 = vrot.lane.b32.xlu0 %v3846_v31, %s16198_s22  ;;  %v14624_v24 = vadd.f32 %v14623_v15, %v14622_v61  ;;  %v4012_v31 = vpop.permute.xlu1 %4011  ;;  %v19607_v61 = vld [vmem:[#allocation26_spill] sm:$0xff]  ;;  %v4212_v34 = vld [vmem:[%s19545_s12 + $0x590] sm:$0xff] }
 0x461   : > { %v14625_v57 = vpop.f32.mrf.mxu1  ;;  %v13558_v47 = vcombine.low %v4196_v60, %v4212_v34 }
 0x462   : > { %v3910_v13 = vadd.f32 %v14624_v24, %v3749_v51  ;;  %v4197_v51 = vld [vmem:[%s19545_s12 + $0x518] sm:$0xff] }
 0x463   : > { %v14626_v10 = vpop.f32.mrf.mxu1 }
 0x464   : > { %3946 = vrot.lane.b32.xlu1 %v3849_v9, %s16198_s22  ;;  %3956 = vrot.lane.b32.xlu0 %v3862_v26, %s16199_s6  ;;  %v14627_v27 = vadd.f32 %v14626_v10, %v14625_v57  ;;  %v13591_v10 = vcombine.high %v4228_v35, %v4244_v12  ;;  %s837_s22 = scalar_lea.vmem %s19611_s7, %s14111_s28 }
 0x466   : > { %v3913_v5 = vadd.f32 %v14627_v27, %v3752_v3  ;;  %v13592_v27 = vcombine.low %v4229_v59, %v4245_v20 }
 0x468   : > { %3958 = vrot.lane.b32.xlu1 %v3865_v56, %s16199_s6  ;;  %3968 = vrot.lane.b32.xlu0 %v3878_v37, %s16200_s3 }
 0x46c   : > { %3970 = vrot.lane.b32.xlu1 %v3881_v44, %s16200_s3  ;;  %4016 = vperm.xlu0 %15428, %v4002_v46   ;;  %s18707_s3 = scalar_lea.vmem %s19612_s29, %s14111_s28 }
 0x46e   : > { %v3917_v28 = vpop.permute.xlu0 %3916 }
 0x46f   : > { %v3924_v9 = vadd.f32 %v3917_v28, %v19606_v7 }
 0x470   : > { %4021 = vperm.xlu1 %15429, %v4003_v40   ;;  %3980 = vrot.lane.b32.xlu0 %v3894_v43, %s16201_s27 }
 0x472   : > { %v3919_v36 = vpop.permute.xlu1 %3918 }
 0x473   : > { %v3925_v8 = vadd.f32 %v3919_v36, %v19607_v61 }
 0x474   : > { %3982 = vrot.lane.b32.xlu1 %v3897_v41, %s16201_s27  ;;  %3992 = vrot.lane.b32.xlu0 %v3910_v13, %s16202_s4  ;;  %v13590_v13 = vcombine.low %v4228_v35, %v4244_v12 }
 0x476   : > { %v17784_v1 = vpop.permute.xlu0 %3920 }
 0x478   : > { %3994 = vrot.lane.b32.xlu1 %v3913_v5, %s16202_s4  ;;  %v13559_v5 = vcombine.high %v4196_v60, %v4212_v34  ;;  %v4053_v60 = vld [vmem:[%s19545_s12 + $0x98] sm:$0xff] }
 0x47a   : > { %v17786_v54 = vpop.permute.xlu1 %3922 }
 0x47e   : > { %v3929_v22 = vpop.permute.xlu0 %3928 }
 0x47f   : > { %v3936_v26 = vadd.f32 %v3929_v22, %v3924_v9  ;;  %v13529_v22 = vcombine.high %v4165_v19, %v4181_v14  ;;  %v19609_v9 = vld [vmem:[#allocation27_spill] sm:$0xff] }
 0x482   : > { %v3931_v16 = vpop.permute.xlu1 %3930 }
 0x483   : > { %v3937_v52 = vadd.f32 %v3931_v16, %v3925_v8  ;;  %v4132_v16 = vld [vmem:[%s19545_s12 + $0x310] sm:$0xff] }
 0x486   : > { %v17788_v2 = vpop.permute.xlu0 %3932 }
 0x48a   : > { %v17790_v39 = vpop.permute.xlu1 %3934 }
 0x48e   : > { %v3941_v18 = vpop.permute.xlu0 %3940 }
 0x48f   : > { %v3948_v49 = vadd.f32 %v3941_v18, %v3936_v26  ;;  %v4148_v18 = vld [vmem:[%s19545_s12 + $0x390] sm:$0xff]  ;;  %v3926_v26 = vadd.f32 %v17784_v1, %v19609_v9  ;;  %v4101_v1 = vld [vmem:[%s19545_s12 + $0x218] sm:$0xff] }
 0x490   : > { %v13495_v61 = vcombine.high %v4132_v16, %v4148_v18 }
 0x492   : > { %v3943_v58 = vpop.permute.xlu1 %3942 }
 0x493   : > { %v3949_v56 = vadd.f32 %v3943_v58, %v3937_v52  ;;  %v4133_v58 = vld [vmem:[%s19545_s12 + $0x318] sm:$0xff]  ;;  %v3938_v52 = vadd.f32 %v17788_v2, %v3926_v26  ;;  %v4230_v26 = vld [vmem:[%s19545_s12 + $0x620] sm:$0xff] }
 0x49e   : > { %v3953_v32 = vpop.permute.xlu0 %3952 }
 0x49f   : > { %v3960_v6 = vadd.f32 %v3953_v32, %v3948_v49  ;;  %v4149_v32 = vld [vmem:[%s19545_s12 + $0x398] sm:$0xff]  ;;  %v4100_v49 = vld [vmem:[%s19545_s12 + $0x210] sm:$0xff] }
 0x4a0   : > { %v13497_v8 = vcombine.high %v4133_v58, %v4149_v32  ;;  %v13496_v2 = vcombine.low %v4133_v58, %v4149_v32 }
 0x4a2   : > { %v3955_v11 = vpop.permute.xlu1 %3954 }
 0x4a3   : > { %v3961_v29 = vadd.f32 %v3955_v11, %v3949_v56 }
 0x4ae   : > { %v3965_v50 = vpop.permute.xlu0 %3964 }
 0x4af   : > { %v3972_v37 = vadd.f32 %v3965_v50, %v3960_v6  ;;  %v13528_v50 = vcombine.low %v4165_v19, %v4181_v14  ;;  %v4116_v6 = vld [vmem:[%s19545_s12 + $0x290] sm:$0xff]  ;;  %v4263_v19 = vld [vmem:[%s19545_s12 + $0x728] sm:$0xff] }
 0x4b0   : > { %v4279_v14 = vld [vmem:[%s19545_s12 + $0x7a8] sm:$0xff] }
 0x4b2   : > { %v3967_v17 = vpop.permute.xlu1 %3966 }
 0x4b3   : > { %v3973_v33 = vadd.f32 %v3967_v17, %v3961_v29  ;;  %v4117_v17 = vld [vmem:[%s19545_s12 + $0x298] sm:$0xff]  ;;  %v3927_v29 = vadd.f32 %v17786_v54, %v17470_v4 }
 0x4b4   : > { %v4069_v4 = vld [vmem:[%s19545_s12 + $0x118] sm:$0xff] }
 0x4b5   : > { %v4085_v54 = vld [vmem:[%s19545_s12 + $0x198] sm:$0xff] }
 0x4b6   : > { %v13433_v20 = vcombine.high %v4069_v4, %v4085_v54 }
 0x4be   : > { %v3977_v21 = vpop.permute.xlu0 %3976 }
 0x4bf   : > { %v3984_v15 = vadd.f32 %v3977_v21, %v3972_v37  ;;  %v13494_v37 = vcombine.low %v4132_v16, %v4148_v18  ;;  %v13629_v18 = vcombine.high %v4263_v19, %v4279_v14 }
 0x4c2   : > { %v3979_v63 = vpop.permute.xlu1 %3978 }
 0x4c3   : > { %v3985_v46 = vadd.f32 %v3979_v63, %v3973_v33  ;;  %v13463_v63 = vcombine.high %v4100_v49, %v4116_v6  ;;  %v4068_v33 = vld [vmem:[%s19545_s12 + $0x110] sm:$0xff] }
 0x4ce   : > { %v3989_v23 = vpop.permute.xlu0 %3988 }
 0x4cf   : > { %v3996_v38 = vadd.f32 %v3989_v23, %v3984_v15  ;;  %v13465_v23 = vcombine.high %v4101_v1, %v4117_v17 }
 0x4d1   : > { %v4024_v25 = vadd.f32 %v4007_v62, %v3996_v38  ;;  %v13561_v62 = vcombine.high %v4197_v51, %v4213_v45  ;;  %v3939_v38 = vadd.f32 %v17790_v39, %v3927_v29  ;;  %v13464_v39 = vcombine.low %v4101_v1, %v4117_v17  ;;  %v4198_v1 = vld [vmem:[%s19545_s12 + $0x520] sm:$0xff] }
 0x4d2   : > { %v3991_v44 = vpop.permute.xlu1 %3990  ;;  %v3945_v30 = vpop.permute.xlu0 %3944  ;;  %v4214_v17 = vld [vmem:[%s19545_s12 + $0x5a0] sm:$0xff] }
 0x4d3   : > { %v3997_v57 = vadd.f32 %v3991_v44, %v3985_v46  ;;  %v4028_v40 = vmax.f32 %v4024_v25, 0.0  ;;  %v3950_v15 = vadd.f32 %v3945_v30, %v3938_v52  ;;  %v4084_v44 = vld [vmem:[%s19545_s12 + $0x190] sm:$0xff] }
 0x4d4   : > { %v13431_v59 = vcombine.high %v4068_v33, %v4084_v44 }
 0x4d5   : > { %v4025_v53 = vadd.f32 %v4012_v31, %v3997_v57  ;;  %v4164_v31 = vld [vmem:[%s19545_s12 + $0x410] sm:$0xff] }
 0x4d6   : > { %v17820_v41 = vpop.permute.xlu1 %3946  ;;  %v3957_v3 = vpop.permute.xlu0 %3956  ;;  %v13527_v36 = vcombine.high %v4164_v31, %v4180_v48  ;;  %v13526_v11 = vcombine.low %v4164_v31, %v4180_v48  ;;  %v4278_v48 = vld [vmem:[%s19545_s12 + $0x7a0] sm:$0xff] }
 0x4d7   : > { %v4029_v43 = vmax.f32 %v4025_v53, 0.0  ;;  %v3962_v46 = vadd.f32 %v3957_v3, %v3950_v15  ;;  %v13462_v53 = vcombine.low %v4100_v49, %v4116_v6  ;;  %v3951_v35 = vadd.f32 %v17820_v41, %v3939_v38  ;;  %v4183_v38 = vld [vmem:[%s19545_s12 + $0x4a8] sm:$0xff] }
 0x4d8   : > { %v13628_v49 = vcombine.low %v4263_v19, %v4279_v14  ;;  %v13563_v15 = vcombine.high %v4198_v1, %v4214_v17  ;;  %v4054_v19 = vld [vmem:[%s19545_s12 + $0xa0] sm:$0xff]  ;;  %v4039_v14 = vld [vmem:[%s19545_s12 + $0x28] sm:$0xff] }
 0x4d9   : > { %v17806_v24 = vpack.c.bf16 %v4029_v43, %v4028_v40  ;;  %v4036_v40 = vld [vmem:[%s19545_s12 + $0x10] sm:$0xff] }
 0x4da   : > { %v3959_v28 = vpop.permute.xlu1 %3958  ;;  %v3969_v7 = vpop.permute.xlu0 %3968 }
 0x4db   : > { %5603 = vmatmul.mubr.bf16.vlgmr.msra.gmra.mxu0 %v17806_v24  ;;  %5650 = vmatmul.mubr.bf16.vlgmr.msra.gmra.mxu1 %v17806_v24  ;;  %v3974_v12 = vadd.f32 %v3969_v7, %v3962_v46  ;;  %v3963_v43 = vadd.f32 %v3959_v28, %v3951_v35  ;;  %v13562_v46 = vcombine.low %v4198_v1, %v4214_v17  ;;  %v4151_v35 = vld [vmem:[%s19545_s12 + $0x3a8] sm:$0xff] }
 0x4dc   : > { %5665 = vmatpush1.bf16.msra.mxu0 %v13622_v55  ;;  %5712 = vmatpush1.bf16.msra.mxu1 %v13624_v0  ;;  %v19608_v55 = vmov 0   ;;  %v13560_v0 = vcombine.low %v4197_v51, %v4213_v45  ;;  %v13430_v45 = vcombine.low %v4068_v33, %v4084_v44  ;;  %v4167_v33 = vld [vmem:[%s19545_s12 + $0x428] sm:$0xff] }
 0x4dd   : > { %5666 = vmatprep.subr.bf16.mxu0 %v13591_v10  ;;  %5713 = vmatprep.subr.bf16.mxu1 %v13593_v42  ;;  %v4052_v10 = vld [vmem:[%s19545_s12 + $0x90] sm:$0xff]  ;;  %v4037_v42 = vld [vmem:[%s19545_s12 + $0x18] sm:$0xff] }
 0x4de   : > { %5610 = vmatprep.mubr.bf16.mxu0 %v19608_v55  ;;  %5657 = vmatprep.mubr.bf16.mxu1 %v19608_v55  ;;  %v3971_v21 = vpop.permute.xlu1 %3970  ;;  %v13399_v3 = vcombine.high %v4036_v40, %v4052_v10 }
 0x4df   : > { %v3975_v41 = vadd.f32 %v3971_v21, %v3963_v43  ;;  %v4199_v21 = vld [vmem:[%s19545_s12 + $0x528] sm:$0xff]  ;;  %v4118_v43 = vld [vmem:[%s19545_s12 + $0x2a0] sm:$0xff] }
 0x4e0   : > { %5667 = vmatpush1.bf16.msra.mxu0 %v13590_v13  ;;  %5714 = vmatpush1.bf16.msra.mxu1 %v13592_v27  ;;  %v13432_v27 = vcombine.low %v4069_v4, %v4085_v54  ;;  %v13533_v54 = vcombine.high %v4167_v33, %v4183_v38 }
 0x4e1   : > { %5668 = vmatprep.subr.bf16.mxu0 %v13559_v5  ;;  %5715 = vmatprep.subr.bf16.mxu1 %v13561_v62  ;;  %v13401_v5 = vcombine.high %v4037_v42, %v4053_v60  ;;  %v4262_v62 = vld [vmem:[%s19545_s12 + $0x720] sm:$0xff] }
 0x4e2   : > { %v13627_v16 = vcombine.high %v4262_v62, %v4278_v48 }
 0x4e4   : > { %5669 = vmatpush1.bf16.msra.mxu0 %v13558_v47  ;;  %5716 = vmatpush1.bf16.msra.mxu1 %v13560_v0  ;;  %v13398_v0 = vcombine.low %v4036_v40, %v4052_v10  ;;  %v4102_v40 = vld [vmem:[%s19545_s12 + $0x220] sm:$0xff]  ;;  %v4119_v10 = vld [vmem:[%s19545_s12 + $0x2a8] sm:$0xff] }
 0x4e5   : > { %5670 = vmatprep.subr.bf16.mxu0 %v13527_v36  ;;  %5717 = vmatprep.subr.bf16.mxu1 %v13529_v22  ;;  %v13400_v22 = vcombine.low %v4037_v42, %v4053_v60 }
 0x4e7   : > { %v4017_v56 = vpop.permute.xlu0 %4016 }
 0x4e8   : > { %5671 = vmatpush1.bf16.msra.mxu0 %v13526_v11  ;;  %5718 = vmatpush1.bf16.msra.mxu1 %v13528_v50  ;;  %v4246_v11 = vld [vmem:[%s19545_s12 + $0x6a0] sm:$0xff]  ;;  %v4231_v50 = vld [vmem:[%s19545_s12 + $0x628] sm:$0xff] }
 0x4e9   : > { %5672 = vmatprep.subr.bf16.mxu0 %v13495_v61  ;;  %5719 = vmatprep.subr.bf16.mxu1 %v13497_v8  ;;  %v4247_v61 = vld [vmem:[%s19545_s12 + $0x6a8] sm:$0xff]  ;;  %v13626_v8 = vcombine.low %v4262_v62, %v4278_v48  ;;  %v13595_v52 = vcombine.high %v4230_v26, %v4246_v11  ;;  %v4038_v48 = vld [vmem:[%s19545_s12 + $0x20] sm:$0xff] }
 0x4ea   : > { %v13597_v6 = vcombine.high %v4231_v50, %v4247_v61  ;;  %v13596_v29 = vcombine.low %v4231_v50, %v4247_v61  ;;  %v4232_v61 = vld [vmem:[%s19545_s12 + $0x630] sm:$0xff] }
 0x4eb   : > { %v4022_v25 = vpop.permute.xlu1 %4021  ;;  %v3981_v57 = vpop.permute.xlu0 %3980 }
 0x4ec   : > { %5673 = vmatpush1.bf16.msra.mxu0 %v13494_v37  ;;  %5720 = vmatpush1.bf16.msra.mxu1 %v13496_v2  ;;  %v3986_v30 = vadd.f32 %v3981_v57, %v3974_v12  ;;  %v13594_v37 = vcombine.low %v4230_v26, %v4246_v11  ;;  %v4150_v57 = vld [vmem:[%s19545_s12 + $0x3a0] sm:$0xff] }
 0x4ed   : > { %5674 = vmatprep.subr.bf16.mxu0 %v13463_v63  ;;  %5721 = vmatprep.subr.bf16.mxu1 %v13465_v23  ;;  %v4166_v63 = vld [vmem:[%s19545_s12 + $0x420] sm:$0xff] }
 0x4ee   : > { %v4182_v23 = vld [vmem:[%s19545_s12 + $0x4a0] sm:$0xff] }
 0x4ef   : > { %v3983_v34 = vpop.permute.xlu1 %3982  ;;  %v3993_v51 = vpop.permute.xlu0 %3992  ;;  %v13531_v4 = vcombine.high %v4166_v63, %v4182_v23  ;;  %v13530_v12 = vcombine.low %v4166_v63, %v4182_v23 }
 0x4f0   : > { %v3998_v13 = vadd.f32 %v3993_v51, %v3986_v30  ;;  %5675 = vmatpush1.bf16.msra.mxu0 %v13462_v53  ;;  %5722 = vmatpush1.bf16.msra.mxu1 %v13464_v39  ;;  %v3987_v31 = vadd.f32 %v3983_v34, %v3975_v41  ;;  %v4135_v53 = vld [vmem:[%s19545_s12 + $0x328] sm:$0xff]  ;;  %v13532_v39 = vcombine.low %v4167_v33, %v4183_v38  ;;  %v4086_v41 = vld [vmem:[%s19545_s12 + $0x1a0] sm:$0xff]  ;;  %v4168_v38 = vld [vmem:[%s19545_s12 + $0x430] sm:$0xff] }
 0x4f1   : > { %5676 = vmatprep.subr.bf16.mxu0 %v13431_v59  ;;  %5723 = vmatprep.subr.bf16.mxu1 %v13433_v20  ;;  %v13501_v20 = vcombine.high %v4135_v53, %v4151_v35  ;;  %v4103_v30 = vld [vmem:[%s19545_s12 + $0x228] sm:$0xff]  ;;  %v13500_v60 = vcombine.low %v4135_v53, %v4151_v35  ;;  %v13467_v34 = vcombine.high %v4102_v40, %v4118_v43  ;;  %v4136_v35 = vld [vmem:[%s19545_s12 + $0x330] sm:$0xff] }
 0x4f2   : > { %v4026_v28 = vadd.f32 %v4017_v56, %v3998_v13  ;;  %v4215_v56 = vld [vmem:[%s19545_s12 + $0x5a8] sm:$0xff]  ;;  %v13469_v51 = vcombine.high %v4103_v30, %v4119_v10 }
 0x4f3   : > { %v3995_v47 = vpop.permute.xlu1 %3994  ;;  %v13565_v2 = vcombine.high %v4199_v21, %v4215_v56  ;;  %v13564_v44 = vcombine.low %v4199_v21, %v4215_v56  ;;  %v4071_v13 = vld [vmem:[%s19545_s12 + $0x128] sm:$0xff]  ;;  %v4200_v56 = vld [vmem:[%s19545_s12 + $0x530] sm:$0xff] }
 0x4f4   : > { %v3999_v36 = vadd.f32 %v3995_v47, %v3987_v31  ;;  %5677 = vmatpush1.bf16.msra.mxu0 %v13430_v45  ;;  %5724 = vmatpush1.bf16.msra.mxu1 %v13432_v27  ;;  %v4030_v32 = vmax.f32 %v4026_v28, 0.0  ;;  %v4070_v45 = vld [vmem:[%s19545_s12 + $0x120] sm:$0xff]  ;;  %v4087_v27 = vld [vmem:[%s19545_s12 + $0x1a8] sm:$0xff] }
 0x4f5   : > { %5678 = vmatprep.subr.bf16.mxu0 %v13399_v3  ;;  %5725 = vmatprep.subr.bf16.mxu1 %v13401_v5  ;;  %v13466_v3 = vcombine.low %v4102_v40, %v4118_v43  ;;  %v13468_v5 = vcombine.low %v4103_v30, %v4119_v10  ;;  %v13435_v62 = vcombine.high %v4070_v45, %v4086_v41  ;;  %v4055_v47 = vld [vmem:[%s19545_s12 + $0xa8] sm:$0xff]  ;;  %v4104_v10 = vld [vmem:[%s19545_s12 + $0x230] sm:$0xff] }
 0x4f6   : > { %v4027_v58 = vadd.f32 %v4022_v25, %v3999_v36  ;;  %v4134_v25 = vld [vmem:[%s19545_s12 + $0x320] sm:$0xff]  ;;  %v13437_v31 = vcombine.high %v4071_v13, %v4087_v27  ;;  %v13436_v28 = vcombine.low %v4071_v13, %v4087_v27  ;;  %v13403_v36 = vcombine.high %v4038_v48, %v4054_v19  ;;  %v4072_v27 = vld [vmem:[%s19545_s12 + $0x130] sm:$0xff] }
 0x4f7   : > { %v13499_v59 = vcombine.high %v4134_v25, %v4150_v57  ;;  %v13498_v42 = vcombine.low %v4134_v25, %v4150_v57  ;;  %v13404_v26 = vcombine.low %v4039_v14, %v4055_v47 }
 0x4f8   : > { %v4031_v7 = vmax.f32 %v4027_v58, 0.0  ;;  %5679 = vmatpush1.bf16.msra.mxu0 %v13398_v0  ;;  %5726 = vmatpush1.bf16.msra.mxu1 %v13400_v22  ;;  %v13434_v0 = vcombine.low %v4070_v45, %v4086_v41  ;;  %v13405_v22 = vcombine.high %v4039_v14, %v4055_v47  ;;  %v4265_v58 = vld [vmem:[%s19545_s12 + $0x738] sm:$0xff]  ;;  %v4040_v47 = vld [vmem:[%s19545_s12 + $0x30] sm:$0xff] }
 0x4f9   : > { %5758 = vmatprep.subr.bf16.mxu0 %v13627_v16  ;;  %5805 = vmatprep.subr.bf16.mxu1 %v13629_v18  ;;  %v4264_v16 = vld [vmem:[%s19545_s12 + $0x730] sm:$0xff] }
 0x4fa   : > { %v17911_v9 = vpack.c.bf16 %v4031_v7, %v4030_v32  ;;  %v4280_v18 = vld [vmem:[%s19545_s12 + $0x7b0] sm:$0xff]  ;;  %v4281_v32 = vld [vmem:[%s19545_s12 + $0x7b8] sm:$0xff]  ;;  %v13402_v7 = vcombine.low %v4038_v48, %v4054_v19 }
 0x4fb   : > { %v13631_v11 = vcombine.high %v4264_v16, %v4280_v18  ;;  %v13633_v50 = vcombine.high %v4265_v58, %v4281_v32  ;;  %v13632_v1 = vcombine.low %v4265_v58, %v4281_v32  ;;  %v4266_v32 = vld [vmem:[%s19545_s12 + $0x740] sm:$0xff] }
 0x4fc   : > { %5611 = vmatmul.mubr.bf16.gmra.mxu0 %v17911_v9  ;;  %5658 = vmatmul.mubr.bf16.gmra.mxu1 %v17911_v9 }
 0x4fd   : > { %5696 = vmatprep.mubr.bf16.mxu0 %v19608_v55  ;;  %5743 = vmatprep.mubr.bf16.mxu1 %v19608_v55 }
 0x504   : > { %5697 = vmatmul.mubr.bf16.vlgmr.msra.gmra.mxu0 %v17806_v24  ;;  %5744 = vmatmul.mubr.bf16.vlgmr.msra.gmra.mxu1 %v17806_v24 }
 0x505   : > { %5759 = vmatpush1.bf16.msra.mxu0 %v13626_v8  ;;  %5806 = vmatpush1.bf16.msra.mxu1 %v13628_v49  ;;  %v4248_v8 = vld [vmem:[%s19545_s12 + $0x6b0] sm:$0xff]  ;;  %v4233_v49 = vld [vmem:[%s19545_s12 + $0x638] sm:$0xff] }
 0x506   : > { %5760 = vmatprep.subr.bf16.mxu0 %v13595_v52  ;;  %5807 = vmatprep.subr.bf16.mxu1 %v13597_v6  ;;  %v4249_v52 = vld [vmem:[%s19545_s12 + $0x6b8] sm:$0xff]  ;;  %v13630_v6 = vcombine.low %v4264_v16, %v4280_v18  ;;  %v13599_v17 = vcombine.high %v4232_v61, %v4248_v8 }
 0x507   : > { %5704 = vmatprep.mubr.bf16.mxu0 %v19608_v55  ;;  %5751 = vmatprep.mubr.bf16.mxu1 %v19608_v55  ;;  %v13601_v21 = vcombine.high %v4233_v49, %v4249_v52  ;;  %v13600_v63 = vcombine.low %v4233_v49, %v4249_v52  ;;  %v4234_v52 = vld [vmem:[%s19545_s12 + $0x640] sm:$0xff] }
 0x509   : > { %5761 = vmatpush1.bf16.msra.mxu0 %v13594_v37  ;;  %5808 = vmatpush1.bf16.msra.mxu1 %v13596_v29  ;;  %v4216_v37 = vld [vmem:[%s19545_s12 + $0x5b0] sm:$0xff]  ;;  %v4201_v29 = vld [vmem:[%s19545_s12 + $0x538] sm:$0xff] }
 0x50a   : > { %5762 = vmatprep.subr.bf16.mxu0 %v13563_v15  ;;  %5809 = vmatprep.subr.bf16.mxu1 %v13565_v2  ;;  %v4217_v15 = vld [vmem:[%s19545_s12 + $0x5b8] sm:$0xff]  ;;  %v13598_v2 = vcombine.low %v4232_v61, %v4248_v8  ;;  %v13567_v23 = vcombine.high %v4200_v56, %v4216_v37 }
 0x50b   : > { %v13569_v33 = vcombine.high %v4201_v29, %v4217_v15  ;;  %v13568_v25 = vcombine.low %v4201_v29, %v4217_v15  ;;  %v4202_v15 = vld [vmem:[%s19545_s12 + $0x540] sm:$0xff] }
 0x50c   : > { %5705 = vmatmul.mubr.bf16.gmra.mxu0 %v17911_v9  ;;  %5752 = vmatmul.mubr.bf16.gmra.mxu1 %v17911_v9 }
 0x50d   : > { %5763 = vmatpush1.bf16.msra.mxu0 %v13562_v46  ;;  %5810 = vmatpush1.bf16.msra.mxu1 %v13564_v44  ;;  %v4184_v46 = vld [vmem:[%s19545_s12 + $0x4b0] sm:$0xff]  ;;  %v4169_v44 = vld [vmem:[%s19545_s12 + $0x438] sm:$0xff] }
 0x50e   : > { %5764 = vmatprep.subr.bf16.mxu0 %v13531_v4  ;;  %5811 = vmatprep.subr.bf16.mxu1 %v13533_v54  ;;  %v4185_v4 = vld [vmem:[%s19545_s12 + $0x4b8] sm:$0xff]  ;;  %v13566_v54 = vcombine.low %v4200_v56, %v4216_v37  ;;  %v13535_v57 = vcombine.high %v4168_v38, %v4184_v46 }
 0x50f   : > { %5790 = vmatprep.mubr.bf16.mxu0 %v19608_v55  ;;  %5837 = vmatprep.mubr.bf16.mxu1 %v19608_v55  ;;  %v13537_v53 = vcombine.high %v4169_v44, %v4185_v4  ;;  %v13536_v40 = vcombine.low %v4169_v44, %v4185_v4  ;;  %v4170_v4 = vld [vmem:[%s19545_s12 + $0x440] sm:$0xff] }
 0x511   : > { %5765 = vmatpush1.bf16.msra.mxu0 %v13530_v12  ;;  %5812 = vmatpush1.bf16.msra.mxu1 %v13532_v39  ;;  %v4152_v12 = vld [vmem:[%s19545_s12 + $0x3b0] sm:$0xff]  ;;  %v4137_v39 = vld [vmem:[%s19545_s12 + $0x338] sm:$0xff] }
 0x512   : > { %5766 = vmatprep.subr.bf16.mxu0 %v13499_v59  ;;  %5813 = vmatprep.subr.bf16.mxu1 %v13501_v20  ;;  %v4153_v59 = vld [vmem:[%s19545_s12 + $0x3b8] sm:$0xff]  ;;  %v13534_v20 = vcombine.low %v4168_v38, %v4184_v46  ;;  %v13503_v43 = vcombine.high %v4136_v35, %v4152_v12 }
 0x513   : > { %v13505_v30 = vcombine.high %v4137_v39, %v4153_v59  ;;  %v13504_v45 = vcombine.low %v4137_v39, %v4153_v59  ;;  %v4138_v59 = vld [vmem:[%s19545_s12 + $0x340] sm:$0xff] }
 0x515   : > { %5767 = vmatpush1.bf16.msra.mxu0 %v13498_v42  ;;  %5814 = vmatpush1.bf16.msra.mxu1 %v13500_v60  ;;  %v4120_v42 = vld [vmem:[%s19545_s12 + $0x2b0] sm:$0xff]  ;;  %v4105_v60 = vld [vmem:[%s19545_s12 + $0x238] sm:$0xff] }
 0x516   : > { %5768 = vmatprep.subr.bf16.mxu0 %v13467_v34  ;;  %5815 = vmatprep.subr.bf16.mxu1 %v13469_v51  ;;  %v4121_v34 = vld [vmem:[%s19545_s12 + $0x2b8] sm:$0xff]  ;;  %v13502_v51 = vcombine.low %v4136_v35, %v4152_v12  ;;  %v13471_v41 = vcombine.high %v4104_v10, %v4120_v42 }
 0x517   : > { %v13473_v13 = vcombine.high %v4105_v60, %v4121_v34  ;;  %v13472_v48 = vcombine.low %v4105_v60, %v4121_v34  ;;  %v4106_v34 = vld [vmem:[%s19545_s12 + $0x240] sm:$0xff] }
 0x519   : > { %5769 = vmatpush1.bf16.msra.mxu0 %v13466_v3  ;;  %5816 = vmatpush1.bf16.msra.mxu1 %v13468_v5  ;;  %v4088_v3 = vld [vmem:[%s19545_s12 + $0x1b0] sm:$0xff]  ;;  %v4073_v5 = vld [vmem:[%s19545_s12 + $0x138] sm:$0xff] }
 0x51a   : > { %5770 = vmatprep.subr.bf16.mxu0 %v13435_v62  ;;  %5817 = vmatprep.subr.bf16.mxu1 %v13437_v31  ;;  %v4089_v62 = vld [vmem:[%s19545_s12 + $0x1b8] sm:$0xff]  ;;  %v13470_v31 = vcombine.low %v4104_v10, %v4120_v42  ;;  %v13439_v19 = vcombine.high %v4072_v27, %v4088_v3 }
 0x51b   : > { %v13441_v14 = vcombine.high %v4073_v5, %v4089_v62  ;;  %v13440_v16 = vcombine.low %v4073_v5, %v4089_v62  ;;  %v4074_v62 = vld [vmem:[%s19545_s12 + $0x140] sm:$0xff] }
 0x51d   : > { %5771 = vmatpush1.bf16.msra.mxu0 %v13434_v0  ;;  %5818 = vmatpush1.bf16.msra.mxu1 %v13436_v28  ;;  %v4056_v0 = vld [vmem:[%s19545_s12 + $0xb0] sm:$0xff]  ;;  %v4041_v28 = vld [vmem:[%s19545_s12 + $0x38] sm:$0xff] }
 0x51e   : > { %5772 = vmatprep.subr.bf16.mxu0 %v13403_v36  ;;  %5819 = vmatprep.subr.bf16.mxu1 %v13405_v22  ;;  %v4057_v36 = vld [vmem:[%s19545_s12 + $0xb8] sm:$0xff]  ;;  %v13438_v22 = vcombine.low %v4072_v27, %v4088_v3  ;;  %v13407_v18 = vcombine.high %v4040_v47, %v4056_v0 }
 0x51f   : > { %v13409_v58 = vcombine.high %v4041_v28, %v4057_v36  ;;  %v13408_v61 = vcombine.low %v4041_v28, %v4057_v36  ;;  %v4042_v36 = vld [vmem:[%s19545_s12 + $0x40] sm:$0xff] }
 0x521   : > { %5773 = vmatpush1.bf16.msra.mxu0 %v13402_v7  ;;  %5820 = vmatpush1.bf16.msra.mxu1 %v13404_v26  ;;  %v4282_v7 = vld [vmem:[%s19545_s12 + $0x7c0] sm:$0xff]  ;;  %v4267_v26 = vld [vmem:[%s19545_s12 + $0x748] sm:$0xff] }
 0x522   : > { %5852 = vmatprep.subr.bf16.mxu0 %v13631_v11  ;;  %5899 = vmatprep.subr.bf16.mxu1 %v13633_v50  ;;  %v4283_v11 = vld [vmem:[%s19545_s12 + $0x7c8] sm:$0xff]  ;;  %v13406_v50 = vcombine.low %v4040_v47, %v4056_v0  ;;  %v13635_v8 = vcombine.high %v4266_v32, %v4282_v7 }
 0x523   : > { %v13637_v49 = vcombine.high %v4267_v26, %v4283_v11  ;;  %v13636_v56 = vcombine.low %v4267_v26, %v4283_v11  ;;  %v4268_v11 = vld [vmem:[%s19545_s12 + $0x750] sm:$0xff] }
 0x524   : > { %5791 = vmatmul.mubr.bf16.vlgmr.msra.gmra.mxu0 %v17806_v24  ;;  %5838 = vmatmul.mubr.bf16.vlgmr.msra.gmra.mxu1 %v17806_v24 }
 0x525   : > { %5853 = vmatpush1.bf16.msra.mxu0 %v13630_v6  ;;  %5900 = vmatpush1.bf16.msra.mxu1 %v13632_v1  ;;  %v4250_v6 = vld [vmem:[%s19545_s12 + $0x6c0] sm:$0xff]  ;;  %v4235_v1 = vld [vmem:[%s19545_s12 + $0x648] sm:$0xff] }
 0x526   : > { %5854 = vmatprep.subr.bf16.mxu0 %v13599_v17  ;;  %5901 = vmatprep.subr.bf16.mxu1 %v13601_v21  ;;  %v4251_v17 = vld [vmem:[%s19545_s12 + $0x6c8] sm:$0xff]  ;;  %v13634_v21 = vcombine.low %v4266_v32, %v4282_v7  ;;  %v13603_v37 = vcombine.high %v4234_v52, %v4250_v6 }
 0x527   : > { %5798 = vmatprep.mubr.bf16.mxu0 %v19608_v55  ;;  %5845 = vmatprep.mubr.bf16.mxu1 %v19608_v55  ;;  %v13605_v29 = vcombine.high %v4235_v1, %v4251_v17  ;;  %v13604_v38 = vcombine.low %v4235_v1, %v4251_v17  ;;  %v4236_v17 = vld [vmem:[%s19545_s12 + $0x650] sm:$0xff] }
 0x529   : > { %5855 = vmatpush1.bf16.msra.mxu0 %v13598_v2  ;;  %5902 = vmatpush1.bf16.msra.mxu1 %v13600_v63  ;;  %v4218_v2 = vld [vmem:[%s19545_s12 + $0x5c0] sm:$0xff]  ;;  %v4203_v63 = vld [vmem:[%s19545_s12 + $0x548] sm:$0xff] }
 0x52a   : > { %5856 = vmatprep.subr.bf16.mxu0 %v13567_v23  ;;  %5903 = vmatprep.subr.bf16.mxu1 %v13569_v33  ;;  %v4219_v23 = vld [vmem:[%s19545_s12 + $0x5c8] sm:$0xff]  ;;  %v13602_v33 = vcombine.low %v4234_v52, %v4250_v6  ;;  %v13571_v46 = vcombine.high %v4202_v15, %v4218_v2 }
 0x52b   : > { %v13573_v44 = vcombine.high %v4203_v63, %v4219_v23  ;;  %v13572_v35 = vcombine.low %v4203_v63, %v4219_v23  ;;  %v4204_v23 = vld [vmem:[%s19545_s12 + $0x550] sm:$0xff] }
 0x52c   : > { %5799 = vmatmul.mubr.bf16.gmra.mxu0 %v17911_v9  ;;  %5846 = vmatmul.mubr.bf16.gmra.mxu1 %v17911_v9 }
 0x52d   : > { %5857 = vmatpush1.bf16.msra.mxu0 %v13566_v54  ;;  %5904 = vmatpush1.bf16.msra.mxu1 %v13568_v25  ;;  %v4186_v54 = vld [vmem:[%s19545_s12 + $0x4c0] sm:$0xff]  ;;  %v4171_v25 = vld [vmem:[%s19545_s12 + $0x448] sm:$0xff] }
 0x52e   : > { %5858 = vmatprep.subr.bf16.mxu0 %v13535_v57  ;;  %5905 = vmatprep.subr.bf16.mxu1 %v13537_v53  ;;  %v4187_v57 = vld [vmem:[%s19545_s12 + $0x4c8] sm:$0xff]  ;;  %v13570_v53 = vcombine.low %v4202_v15, %v4218_v2  ;;  %v13539_v12 = vcombine.high %v4170_v4, %v4186_v54 }
 0x52f   : > { %5884 = vmatprep.mubr.bf16.mxu0 %v19608_v55  ;;  %5931 = vmatprep.mubr.bf16.mxu1 %v19608_v55  ;;  %v13541_v39 = vcombine.high %v4171_v25, %v4187_v57  ;;  %v13540_v10 = vcombine.low %v4171_v25, %v4187_v57  ;;  %v4172_v57 = vld [vmem:[%s19545_s12 + $0x450] sm:$0xff] }
 0x531   : > { %5859 = vmatpush1.bf16.msra.mxu0 %v13534_v20  ;;  %5906 = vmatpush1.bf16.msra.mxu1 %v13536_v40  ;;  %v4154_v20 = vld [vmem:[%s19545_s12 + $0x3c0] sm:$0xff]  ;;  %v4139_v40 = vld [vmem:[%s19545_s12 + $0x348] sm:$0xff] }
 0x532   : > { %5860 = vmatprep.subr.bf16.mxu0 %v13503_v43  ;;  %5907 = vmatprep.subr.bf16.mxu1 %v13505_v30  ;;  %v4155_v43 = vld [vmem:[%s19545_s12 + $0x3c8] sm:$0xff]  ;;  %v13538_v30 = vcombine.low %v4170_v4, %v4186_v54  ;;  %v13507_v42 = vcombine.high %v4138_v59, %v4154_v20 }
 0x533   : > { %v13509_v60 = vcombine.high %v4139_v40, %v4155_v43  ;;  %v13508_v27 = vcombine.low %v4139_v40, %v4155_v43  ;;  %v4140_v43 = vld [vmem:[%s19545_s12 + $0x350] sm:$0xff] }
 0x535   : > { %5861 = vmatpush1.bf16.msra.mxu0 %v13502_v51  ;;  %5908 = vmatpush1.bf16.msra.mxu1 %v13504_v45  ;;  %v4122_v51 = vld [vmem:[%s19545_s12 + $0x2c0] sm:$0xff]  ;;  %v4107_v45 = vld [vmem:[%s19545_s12 + $0x248] sm:$0xff] }
 0x536   : > { %5862 = vmatprep.subr.bf16.mxu0 %v13471_v41  ;;  %5909 = vmatprep.subr.bf16.mxu1 %v13473_v13  ;;  %v4123_v41 = vld [vmem:[%s19545_s12 + $0x2c8] sm:$0xff]  ;;  %v13506_v13 = vcombine.low %v4138_v59, %v4154_v20  ;;  %v13475_v3 = vcombine.high %v4106_v34, %v4122_v51 }
 0x537   : > { %v13477_v5 = vcombine.high %v4107_v45, %v4123_v41  ;;  %v13476_v47 = vcombine.low %v4107_v45, %v4123_v41  ;;  %v4108_v41 = vld [vmem:[%s19545_s12 + $0x250] sm:$0xff] }
 0x539   : > { %5863 = vmatpush1.bf16.msra.mxu0 %v13470_v31  ;;  %5910 = vmatpush1.bf16.msra.mxu1 %v13472_v48  ;;  %v4090_v31 = vld [vmem:[%s19545_s12 + $0x1c0] sm:$0xff]  ;;  %v4075_v48 = vld [vmem:[%s19545_s12 + $0x148] sm:$0xff] }
 0x53a   : > { %5864 = vmatprep.subr.bf16.mxu0 %v13439_v19  ;;  %5911 = vmatprep.subr.bf16.mxu1 %v13441_v14  ;;  %v4091_v19 = vld [vmem:[%s19545_s12 + $0x1c8] sm:$0xff]  ;;  %v13474_v14 = vcombine.low %v4106_v34, %v4122_v51  ;;  %v13443_v0 = vcombine.high %v4074_v62, %v4090_v31 }
 0x53b   : > { %v13445_v28 = vcombine.high %v4075_v48, %v4091_v19  ;;  %v13444_v32 = vcombine.low %v4075_v48, %v4091_v19  ;;  %v4076_v19 = vld [vmem:[%s19545_s12 + $0x150] sm:$0xff] }
 0x53d   : > { %5865 = vmatpush1.bf16.msra.mxu0 %v13438_v22  ;;  %5912 = vmatpush1.bf16.msra.mxu1 %v13440_v16  ;;  %v4058_v22 = vld [vmem:[%s19545_s12 + $0xc0] sm:$0xff]  ;;  %v4043_v16 = vld [vmem:[%s19545_s12 + $0x48] sm:$0xff] }
 0x53e   : > { %5866 = vmatprep.subr.bf16.mxu0 %v13407_v18  ;;  %5913 = vmatprep.subr.bf16.mxu1 %v13409_v58  ;;  %v4059_v18 = vld [vmem:[%s19545_s12 + $0xc8] sm:$0xff]  ;;  %v13442_v58 = vcombine.low %v4074_v62, %v4090_v31  ;;  %v13411_v7 = vcombine.high %v4042_v36, %v4058_v22 }
 0x53f   : > { %v13413_v26 = vcombine.high %v4043_v16, %v4059_v18  ;;  %v13412_v52 = vcombine.low %v4043_v16, %v4059_v18  ;;  %v4044_v18 = vld [vmem:[%s19545_s12 + $0x50] sm:$0xff] }
 0x541   : > { %5867 = vmatpush1.bf16.msra.mxu0 %v13406_v50  ;;  %5914 = vmatpush1.bf16.msra.mxu1 %v13408_v61  ;;  %v4284_v50 = vld [vmem:[%s19545_s12 + $0x7d0] sm:$0xff]  ;;  %v4269_v61 = vld [vmem:[%s19545_s12 + $0x758] sm:$0xff] }
 0x542   : > { %5946 = vmatprep.subr.bf16.mxu0 %v13635_v8  ;;  %5993 = vmatprep.subr.bf16.mxu1 %v13637_v49  ;;  %v4285_v8 = vld [vmem:[%s19545_s12 + $0x7d8] sm:$0xff]  ;;  %v13410_v49 = vcombine.low %v4042_v36, %v4058_v22  ;;  %v13639_v6 = vcombine.high %v4268_v11, %v4284_v50 }
 0x543   : > { %v13641_v1 = vcombine.high %v4269_v61, %v4285_v8  ;;  %v13640_v15 = vcombine.low %v4269_v61, %v4285_v8  ;;  %v4270_v8 = vld [vmem:[%s19545_s12 + $0x760] sm:$0xff] }
 0x544   : > { %5885 = vmatmul.mubr.bf16.vlgmr.msra.gmra.mxu0 %v17806_v24  ;;  %5932 = vmatmul.mubr.bf16.vlgmr.msra.gmra.mxu1 %v17806_v24 }
 0x545   : > { %5947 = vmatpush1.bf16.msra.mxu0 %v13634_v21  ;;  %5994 = vmatpush1.bf16.msra.mxu1 %v13636_v56  ;;  %v4252_v21 = vld [vmem:[%s19545_s12 + $0x6d0] sm:$0xff]  ;;  %v4237_v56 = vld [vmem:[%s19545_s12 + $0x658] sm:$0xff] }
 0x546   : > { %5948 = vmatprep.subr.bf16.mxu0 %v13603_v37  ;;  %5995 = vmatprep.subr.bf16.mxu1 %v13605_v29  ;;  %v4253_v37 = vld [vmem:[%s19545_s12 + $0x6d8] sm:$0xff]  ;;  %v13638_v29 = vcombine.low %v4268_v11, %v4284_v50  ;;  %v13607_v2 = vcombine.high %v4236_v17, %v4252_v21 }
 0x547   : > { %5892 = vmatprep.mubr.bf16.mxu0 %v19608_v55  ;;  %5939 = vmatprep.mubr.bf16.mxu1 %v19608_v55  ;;  %v13609_v63 = vcombine.high %v4237_v56, %v4253_v37  ;;  %v13608_v4 = vcombine.low %v4237_v56, %v4253_v37  ;;  %v4238_v37 = vld [vmem:[%s19545_s12 + $0x660] sm:$0xff] }
 0x549   : > { %5949 = vmatpush1.bf16.msra.mxu0 %v13602_v33  ;;  %5996 = vmatpush1.bf16.msra.mxu1 %v13604_v38  ;;  %v4220_v33 = vld [vmem:[%s19545_s12 + $0x5d0] sm:$0xff]  ;;  %v4205_v38 = vld [vmem:[%s19545_s12 + $0x558] sm:$0xff] }
 0x54a   : > { %5950 = vmatprep.subr.bf16.mxu0 %v13571_v46  ;;  %5997 = vmatprep.subr.bf16.mxu1 %v13573_v44  ;;  %v4221_v46 = vld [vmem:[%s19545_s12 + $0x5d8] sm:$0xff]  ;;  %v13606_v44 = vcombine.low %v4236_v17, %v4252_v21  ;;  %v13575_v54 = vcombine.high %v4204_v23, %v4220_v33 }
 0x54b   : > { %v13577_v25 = vcombine.high %v4205_v38, %v4221_v46  ;;  %v13576_v59 = vcombine.low %v4205_v38, %v4221_v46  ;;  %v4206_v46 = vld [vmem:[%s19545_s12 + $0x560] sm:$0xff] }
 0x54c   : > { %5893 = vmatmul.mubr.bf16.gmra.mxu0 %v17911_v9  ;;  %5940 = vmatmul.mubr.bf16.gmra.mxu1 %v17911_v9 }
 0x54d   : > { %5951 = vmatpush1.bf16.msra.mxu0 %v13570_v53  ;;  %5998 = vmatpush1.bf16.msra.mxu1 %v13572_v35  ;;  %v4188_v53 = vld [vmem:[%s19545_s12 + $0x4d0] sm:$0xff]  ;;  %v4173_v35 = vld [vmem:[%s19545_s12 + $0x458] sm:$0xff] }
 0x54e   : > { %5952 = vmatprep.subr.bf16.mxu0 %v13539_v12  ;;  %5999 = vmatprep.subr.bf16.mxu1 %v13541_v39  ;;  %v4189_v12 = vld [vmem:[%s19545_s12 + $0x4d8] sm:$0xff]  ;;  %v13574_v39 = vcombine.low %v4204_v23, %v4220_v33  ;;  %v13543_v20 = vcombine.high %v4172_v57, %v4188_v53 }
 0x54f   : > { %5978 = vmatprep.mubr.bf16.mxu0 %v19608_v55  ;;  %6025 = vmatprep.mubr.bf16.mxu1 %v19608_v55  ;;  %v13545_v40 = vcombine.high %v4173_v35, %v4189_v12  ;;  %v13544_v34 = vcombine.low %v4173_v35, %v4189_v12  ;;  %v4174_v12 = vld [vmem:[%s19545_s12 + $0x460] sm:$0xff] }
 0x551   : > { %5953 = vmatpush1.bf16.msra.mxu0 %v13538_v30  ;;  %6000 = vmatpush1.bf16.msra.mxu1 %v13540_v10  ;;  %v4156_v30 = vld [vmem:[%s19545_s12 + $0x3d0] sm:$0xff]  ;;  %v4141_v10 = vld [vmem:[%s19545_s12 + $0x358] sm:$0xff] }
 0x552   : > { %5954 = vmatprep.subr.bf16.mxu0 %v13507_v42  ;;  %6001 = vmatprep.subr.bf16.mxu1 %v13509_v60  ;;  %v4157_v42 = vld [vmem:[%s19545_s12 + $0x3d8] sm:$0xff]  ;;  %v13542_v60 = vcombine.low %v4172_v57, %v4188_v53  ;;  %v13511_v51 = vcombine.high %v4140_v43, %v4156_v30 }
 0x553   : > { %v13513_v45 = vcombine.high %v4141_v10, %v4157_v42  ;;  %v13512_v62 = vcombine.low %v4141_v10, %v4157_v42  ;;  %v4142_v42 = vld [vmem:[%s19545_s12 + $0x360] sm:$0xff] }
 0x555   : > { %5955 = vmatpush1.bf16.msra.mxu0 %v13506_v13  ;;  %6002 = vmatpush1.bf16.msra.mxu1 %v13508_v27  ;;  %v4124_v13 = vld [vmem:[%s19545_s12 + $0x2d0] sm:$0xff]  ;;  %v4109_v27 = vld [vmem:[%s19545_s12 + $0x258] sm:$0xff] }
 0x556   : > { %5956 = vmatprep.subr.bf16.mxu0 %v13475_v3  ;;  %6003 = vmatprep.subr.bf16.mxu1 %v13477_v5  ;;  %v4125_v3 = vld [vmem:[%s19545_s12 + $0x2d8] sm:$0xff]  ;;  %v13510_v5 = vcombine.low %v4140_v43, %v4156_v30  ;;  %v13479_v31 = vcombine.high %v4108_v41, %v4124_v13 }
 0x557   : > { %v13481_v48 = vcombine.high %v4109_v27, %v4125_v3  ;;  %v13480_v36 = vcombine.low %v4109_v27, %v4125_v3  ;;  %v4110_v3 = vld [vmem:[%s19545_s12 + $0x260] sm:$0xff] }
 0x559   : > { %5957 = vmatpush1.bf16.msra.mxu0 %v13474_v14  ;;  %6004 = vmatpush1.bf16.msra.mxu1 %v13476_v47  ;;  %v4092_v14 = vld [vmem:[%s19545_s12 + $0x1d0] sm:$0xff]  ;;  %v4077_v47 = vld [vmem:[%s19545_s12 + $0x158] sm:$0xff] }
 0x55a   : > { %5958 = vmatprep.subr.bf16.mxu0 %v13443_v0  ;;  %6005 = vmatprep.subr.bf16.mxu1 %v13445_v28  ;;  %v4093_v0 = vld [vmem:[%s19545_s12 + $0x1d8] sm:$0xff]  ;;  %v13478_v28 = vcombine.low %v4108_v41, %v4124_v13  ;;  %v13447_v22 = vcombine.high %v4076_v19, %v4092_v14 }
 0x55b   : > { %v13449_v16 = vcombine.high %v4077_v47, %v4093_v0  ;;  %v13448_v11 = vcombine.low %v4077_v47, %v4093_v0 }
 0x55d   : > { %5959 = vmatpush1.bf16.msra.mxu0 %v13442_v58  ;;  %6006 = vmatpush1.bf16.msra.mxu1 %v13444_v32  ;;  %v4060_v58 = vld [vmem:[%s19545_s12 + $0xd0] sm:$0xff]  ;;  %v4045_v32 = vld [vmem:[%s19545_s12 + $0x58] sm:$0xff] }
 0x55e   : > { %5960 = vmatprep.subr.bf16.mxu0 %v13411_v7  ;;  %6007 = vmatprep.subr.bf16.mxu1 %v13413_v26  ;;  %v4061_v7 = vld [vmem:[%s19545_s12 + $0xd8] sm:$0xff]  ;;  %v13446_v26 = vcombine.low %v4076_v19, %v4092_v14  ;;  %v13415_v50 = vcombine.high %v4044_v18, %v4060_v58 }
 0x55f   : > { %v13417_v61 = vcombine.high %v4045_v32, %v4061_v7  ;;  %v13416_v17 = vcombine.low %v4045_v32, %v4061_v7  ;;  %v19610_v32 = vlaneseq }
 0x561   : > { %5961 = vmatpush1.bf16.msra.mxu0 %v13410_v49  ;;  %6008 = vmatpush1.bf16.msra.mxu1 %v13412_v52  ;;  %v4286_v49 = vld [vmem:[%s19545_s12 + $0x7e0] sm:$0xff]  ;;  %v4271_v52 = vld [vmem:[%s19545_s12 + $0x768] sm:$0xff]  ;;  %v18414_v7 = vshrl.u32 %v19610_v32, 7  ;;  %v4176_v32 = vld [vmem:[%s19545_s12 + $0x470] sm:$0xff] }
 0x562   : > { %6040 = vmatprep.subr.bf16.mxu0 %v13639_v6  ;;  %6087 = vmatprep.subr.bf16.mxu1 %v13641_v1  ;;  %v4287_v6 = vld [vmem:[%s19545_s12 + $0x7e8] sm:$0xff]  ;;  %v13414_v1 = vcombine.low %v4044_v18, %v4060_v58  ;;  %v13643_v21 = vcombine.high %v4270_v8, %v4286_v49 }
 0x563   : > { %v13645_v56 = vcombine.high %v4271_v52, %v4287_v6  ;;  %v13644_v23 = vcombine.low %v4271_v52, %v4287_v6  ;;  %v4095_v18 = vld [vmem:[%s19545_s12 + $0x1e8] sm:$0xff] }
 0x564   : > { %5979 = vmatmul.mubr.bf16.vlgmr.msra.gmra.mxu0 %v17806_v24  ;;  %6026 = vmatmul.mubr.bf16.vlgmr.msra.gmra.mxu1 %v17806_v24  ;;  %v4047_v52 = vld [vmem:[%s19545_s12 + $0x68] sm:$0xff] }
 0x565   : > { %6041 = vmatpush1.bf16.msra.mxu0 %v13638_v29  ;;  %6088 = vmatpush1.bf16.msra.mxu1 %v13640_v15  ;;  %v4254_v29 = vld [vmem:[%s19545_s12 + $0x6e0] sm:$0xff]  ;;  %v4239_v15 = vld [vmem:[%s19545_s12 + $0x668] sm:$0xff] }
 0x566   : > { %6042 = vmatprep.subr.bf16.mxu0 %v13607_v2  ;;  %6089 = vmatprep.subr.bf16.mxu1 %v13609_v63  ;;  %v4255_v2 = vld [vmem:[%s19545_s12 + $0x6e8] sm:$0xff]  ;;  %v13642_v63 = vcombine.low %v4270_v8, %v4286_v49  ;;  %v13611_v33 = vcombine.high %v4238_v37, %v4254_v29  ;;  %v4046_v8 = vld [vmem:[%s19545_s12 + $0x60] sm:$0xff] }
 0x567   : > { %5984 = vmatprep.mubr.bf16.mxu0 %v19608_v55  ;;  %6031 = vmatprep.mubr.bf16.mxu1 %v19608_v55  ;;  %v13613_v38 = vcombine.high %v4239_v15, %v4255_v2  ;;  %v13612_v57 = vcombine.low %v4239_v15, %v4255_v2  ;;  %v4062_v49 = vld [vmem:[%s19545_s12 + $0xe0] sm:$0xff]  ;;  %v4063_v6 = vld [vmem:[%s19545_s12 + $0xe8] sm:$0xff]  ;;  %v4288_v15 = vld [vmem:[%s19545_s12 + $0x7f0] sm:$0xff] }
 0x569   : > { %6043 = vmatpush1.bf16.msra.mxu0 %v13606_v44  ;;  %6090 = vmatpush1.bf16.msra.mxu1 %v13608_v4  ;;  %v4222_v44 = vld [vmem:[%s19545_s12 + $0x5e0] sm:$0xff]  ;;  %v4207_v4 = vld [vmem:[%s19545_s12 + $0x568] sm:$0xff] }
 0x56a   : > { %6044 = vmatprep.subr.bf16.mxu0 %v13575_v54  ;;  %6091 = vmatprep.subr.bf16.mxu1 %v13577_v25  ;;  %v4223_v54 = vld [vmem:[%s19545_s12 + $0x5e8] sm:$0xff]  ;;  %v13610_v25 = vcombine.low %v4238_v37, %v4254_v29  ;;  %v13579_v53 = vcombine.high %v4206_v46, %v4222_v44  ;;  %v13421_v37 = vcombine.high %v4047_v52, %v4063_v6  ;;  %v4272_v29 = vld [vmem:[%s19545_s12 + $0x770] sm:$0xff] }
 0x56b   : > { %v13581_v35 = vcombine.high %v4207_v4, %v4223_v54  ;;  %v13580_v43 = vcombine.low %v4207_v4, %v4223_v54  ;;  %v13418_v4 = vcombine.low %v4046_v8, %v4062_v49  ;;  %v13420_v54 = vcombine.low %v4047_v52, %v4063_v6 }
 0x56c   : > { %5985 = vmatmul.mubr.bf16.gmra.mxu0 %v17911_v9  ;;  %6032 = vmatmul.mubr.bf16.gmra.mxu1 %v17911_v9 }
 0x56d   : > { %6045 = vmatpush1.bf16.msra.mxu0 %v13574_v39  ;;  %6092 = vmatpush1.bf16.msra.mxu1 %v13576_v59  ;;  %v4190_v39 = vld [vmem:[%s19545_s12 + $0x4e0] sm:$0xff]  ;;  %v4175_v59 = vld [vmem:[%s19545_s12 + $0x468] sm:$0xff] }
 0x56e   : > { %6046 = vmatprep.subr.bf16.mxu0 %v13543_v20  ;;  %6093 = vmatprep.subr.bf16.mxu1 %v13545_v40  ;;  %v4191_v20 = vld [vmem:[%s19545_s12 + $0x4e8] sm:$0xff]  ;;  %v13578_v40 = vcombine.low %v4206_v46, %v4222_v44  ;;  %v13547_v30 = vcombine.high %v4174_v12, %v4190_v39 }
 0x56f   : > { %6072 = vmatprep.mubr.bf16.mxu0 %v19608_v55  ;;  %6119 = vmatprep.mubr.bf16.mxu1 %v19608_v55  ;;  %v13549_v10 = vcombine.high %v4175_v59, %v4191_v20  ;;  %v13548_v41 = vcombine.low %v4175_v59, %v4191_v20  ;;  %v4241_v59 = vld [vmem:[%s19545_s12 + $0x678] sm:$0xff] }
 0x570   : > { %v4257_v20 = vld [vmem:[%s19545_s12 + $0x6f8] sm:$0xff] }
 0x571   : > { %6047 = vmatpush1.bf16.msra.mxu0 %v13542_v60  ;;  %6094 = vmatpush1.bf16.msra.mxu1 %v13544_v34  ;;  %v4158_v60 = vld [vmem:[%s19545_s12 + $0x3e0] sm:$0xff]  ;;  %v4143_v34 = vld [vmem:[%s19545_s12 + $0x368] sm:$0xff] }
 0x572   : > { %6048 = vmatprep.subr.bf16.mxu0 %v13511_v51  ;;  %6095 = vmatprep.subr.bf16.mxu1 %v13513_v45  ;;  %v4159_v51 = vld [vmem:[%s19545_s12 + $0x3e8] sm:$0xff]  ;;  %v13546_v45 = vcombine.low %v4174_v12, %v4190_v39  ;;  %v13515_v13 = vcombine.high %v4142_v42, %v4158_v60  ;;  %v13514_v14 = vcombine.low %v4142_v42, %v4158_v60  ;;  %v4256_v39 = vld [vmem:[%s19545_s12 + $0x6f0] sm:$0xff] }
 0x573   : > { %v13517_v27 = vcombine.high %v4143_v34, %v4159_v51  ;;  %v13516_v47 = vcombine.low %v4143_v34, %v4159_v51  ;;  %v13646_v34 = vcombine.low %v4272_v29, %v4288_v15 }
 0x575   : > { %6049 = vmatpush1.bf16.msra.mxu0 %v13510_v5  ;;  %6096 = vmatpush1.bf16.msra.mxu1 %v13512_v62  ;;  %v4126_v5 = vld [vmem:[%s19545_s12 + $0x2e0] sm:$0xff]  ;;  %v4111_v62 = vld [vmem:[%s19545_s12 + $0x268] sm:$0xff] }
 0x576   : > { %6050 = vmatprep.subr.bf16.mxu0 %v13479_v31  ;;  %6097 = vmatprep.subr.bf16.mxu1 %v13481_v48  ;;  %v4127_v31 = vld [vmem:[%s19545_s12 + $0x2e8] sm:$0xff]  ;;  %v16203_v48 = vmov 1966171168   ;;  %v13483_v0 = vcombine.high %v4110_v3, %v4126_v5 }
 0x577   : > { %v6326_v19 = vunpack.c.l.s4 %v16203_v48  ;;  %v4224_v48 = vld [vmem:[%s19545_s12 + $0x5f0] sm:$0xff] }
 0x579   : > { %6051 = vmatpush1.bf16.msra.mxu0 %v13478_v28  ;;  %6098 = vmatpush1.bf16.msra.mxu1 %v13480_v36  ;;  %v13485_v28 = vcombine.high %v4111_v62, %v4127_v31  ;;  %v4078_v36 = vld [vmem:[%s19545_s12 + $0x160] sm:$0xff]  ;;  %v6327_v58 = vunpack.c.0.s8 %v6326_v19  ;;  %v4209_v19 = vld [vmem:[%s19545_s12 + $0x578] sm:$0xff] }
 0x57a   : > { %6052 = vmatprep.subr.bf16.mxu0 %v13447_v22  ;;  %6099 = vmatprep.subr.bf16.mxu1 %v13449_v16  ;;  %v4094_v22 = vld [vmem:[%s19545_s12 + $0x1e0] sm:$0xff]  ;;  %v4079_v16 = vld [vmem:[%s19545_s12 + $0x168] sm:$0xff] }
 0x57d   : > { %6053 = vmatpush1.bf16.msra.mxu0 %v13446_v26  ;;  %6100 = vmatpush1.bf16.msra.mxu1 %v13448_v11  ;;  %v13482_v26 = vcombine.low %v4110_v3, %v4126_v5  ;;  %v13484_v11 = vcombine.low %v4111_v62, %v4127_v31  ;;  %v4208_v31 = vld [vmem:[%s19545_s12 + $0x570] sm:$0xff] }
 0x57e   : > { %6054 = vmatprep.subr.bf16.mxu0 %v13415_v50  ;;  %6101 = vmatprep.subr.bf16.mxu1 %v13417_v61  ;;  %v13451_v50 = vcombine.high %v4078_v36, %v4094_v22  ;;  %v13453_v61 = vcombine.high %v4079_v16, %v4095_v18 }
 0x581   : > { %6055 = vmatpush1.bf16.msra.mxu0 %v13414_v1  ;;  %6102 = vmatpush1.bf16.msra.mxu1 %v13416_v17  ;;  %v18429_v1 = vsub.s32 %v6327_v58, %v18414_v7  ;;  %v13450_v17 = vcombine.low %v4078_v36, %v4094_v22  ;;  %v13616_v36 = vcombine.low %v4241_v59, %v4257_v20 }
 0x582   : > { %6134 = vmatprep.subr.bf16.mxu0 %v13643_v21  ;;  %6181 = vmatprep.subr.bf16.mxu1 %v13645_v56  ;;  %v13452_v21 = vcombine.low %v4079_v16, %v4095_v18  ;;  %v13419_v56 = vcombine.high %v4046_v8, %v4062_v49  ;;  %v13583_v22 = vcombine.high %v4208_v31, %v4224_v48 }
 0x583   : > { %v13582_v8 = vcombine.low %v4208_v31, %v4224_v48  ;;  %v15453_v31 = vld [vmem:[#allocation3 + $0x234] ss:$40 sps:$4 sm:$0xff]  }
 0x584   : > { %6073 = vmatmul.mubr.bf16.vlgmr.msra.gmra.mxu0 %v17806_v24  ;;  %6120 = vmatmul.mubr.bf16.vlgmr.msra.gmra.mxu1 %v17806_v24  ;;  %v15477_v48 = vld [vmem:[#allocation3 + $0x23c] ss:$40 sps:$4 sm:$0xff]  }
 0x585   : > { %6135 = vmatpush1.bf16.msra.mxu0 %v13642_v63  ;;  %6182 = vmatpush1.bf16.msra.mxu1 %v13644_v23  ;;  %v4273_v23 = vld [vmem:[%s19545_s12 + $0x778] sm:$0xff] }
 0x586   : > { %6136 = vmatprep.subr.bf16.mxu0 %v13611_v33  ;;  %6183 = vmatprep.subr.bf16.mxu1 %v13613_v38  ;;  %v4289_v33 = vld [vmem:[%s19545_s12 + $0x7f8] sm:$0xff] }
 0x587   : > { %6078 = vmatprep.mubr.bf16.mxu0 %v19608_v55  ;;  %6125 = vmatprep.mubr.bf16.mxu1 %v19608_v55  ;;  %v13649_v12 = vcombine.high %v4273_v23, %v4289_v33 }
 0x589   : > { %6137 = vmatpush1.bf16.msra.mxu0 %v13610_v25  ;;  %6184 = vmatpush1.bf16.msra.mxu1 %v13612_v57  ;;  %v13647_v25 = vcombine.high %v4272_v29, %v4288_v15  ;;  %v4240_v57 = vld [vmem:[%s19545_s12 + $0x670] sm:$0xff] }
 0x58a   : > { %6138 = vmatprep.subr.bf16.mxu0 %v13579_v53  ;;  %6185 = vmatprep.subr.bf16.mxu1 %v13581_v35 }
 0x58c   : > { %6079 = vmatmul.mubr.bf16.gmra.mxu0 %v17911_v9  ;;  %6126 = vmatmul.mubr.bf16.gmra.mxu1 %v17911_v9 }
 0x58d   : > { %6139 = vmatpush1.bf16.msra.mxu0 %v13578_v40  ;;  %6186 = vmatpush1.bf16.msra.mxu1 %v13580_v43  ;;  %v6322_v40 = vld [vmem:[%s19546_s13] sm:$0x1] }
 0x58e   : > { %6140 = vmatprep.subr.bf16.mxu0 %v13547_v30  ;;  %6187 = vmatprep.subr.bf16.mxu1 %v13549_v10 }
 0x58f   : > { %6166 = vmatprep.mubr.bf16.mxu0 %v19608_v55  ;;  %6213 = vmatprep.mubr.bf16.mxu1 %v19608_v55 }
 0x591   : > { %6141 = vmatpush1.bf16.msra.mxu0 %v13546_v45  ;;  %6188 = vmatpush1.bf16.msra.mxu1 %v13548_v41  ;;  %v13648_v41 = vcombine.low %v4273_v23, %v4289_v33  ;;  %v4112_v23 = vld [vmem:[%s19545_s12 + $0x270] sm:$0xff] }
 0x592   : > { %6142 = vmatprep.subr.bf16.mxu0 %v13515_v13  ;;  %6189 = vmatprep.subr.bf16.mxu1 %v13517_v27  ;;  %v13615_v13 = vcombine.high %v4240_v57, %v4256_v39  ;;  %v13617_v27 = vcombine.high %v4241_v59, %v4257_v20  ;;  %v4128_v33 = vld [vmem:[%s19545_s12 + $0x2f0] sm:$0xff] }
 0x595   : > { %6143 = vmatpush1.bf16.msra.mxu0 %v13514_v14  ;;  %6190 = vmatpush1.bf16.msra.mxu1 %v13516_v47  ;;  %v4225_v14 = vld [vmem:[%s19545_s12 + $0x5f8] sm:$0xff] }
 0x596   : > { %6144 = vmatprep.subr.bf16.mxu0 %v13483_v0  ;;  %6191 = vmatprep.subr.bf16.mxu1 %v13485_v28  ;;  %v13614_v28 = vcombine.low %v4240_v57, %v4256_v39  ;;  %v13585_v58 = vcombine.high %v4209_v19, %v4225_v14  ;;  %v13584_v49 = vcombine.low %v4209_v19, %v4225_v14  ;;  %v4080_v57 = vld [vmem:[%s19545_s12 + $0x170] sm:$0xff] }
 0x597   : > { %v13486_v39 = vcombine.low %v4112_v23, %v4128_v33 }
 0x599   : > { %6145 = vmatpush1.bf16.msra.mxu0 %v13482_v26  ;;  %6192 = vmatpush1.bf16.msra.mxu1 %v13484_v11  ;;  %v4192_v26 = vld [vmem:[%s19545_s12 + $0x4f0] sm:$0xff]  ;;  %v4177_v11 = vld [vmem:[%s19545_s12 + $0x478] sm:$0xff] }
 0x59a   : > { %6146 = vmatprep.subr.bf16.mxu0 %v13451_v50  ;;  %6193 = vmatprep.subr.bf16.mxu1 %v13453_v61  ;;  %v4193_v50 = vld [vmem:[%s19545_s12 + $0x4f8] sm:$0xff]  ;;  %v13551_v52 = vcombine.high %v4176_v32, %v4192_v26  ;;  %v13550_v29 = vcombine.low %v4176_v32, %v4192_v26 }
 0x59b   : > { %v5604_v2 = vpop.f32.mrf.mxu0  ;;  %v5651_v63 = vpop.f32.mrf.mxu1  ;;  %v13553_v6 = vcombine.high %v4177_v11, %v4193_v50  ;;  %v13552_v15 = vcombine.low %v4177_v11, %v4193_v50  ;;  %v15454_v11 = vld [vmem:[#allocation3 + $0x1e0] ss:$40 sps:$4 sm:$0xff]  }
 0x59c   : > { %v6349_v38 = vrot.slane %v5651_v63, %v18429_v1  ;;  %v6323_v3 = vadd.f32 %v6322_v40, %v5604_v2 }
 0x59d   : > { %6147 = vmatpush1.bf16.msra.mxu0 %v13450_v17  ;;  %6194 = vmatpush1.bf16.msra.mxu1 %v13452_v21  ;;  %v5606_v46 = vpop.f32.mrf.mxu0  ;;  %v5653_v44 = vpop.f32.mrf.mxu1  ;;  %v4144_v17 = vld [vmem:[%s19545_s12 + $0x370] sm:$0xff] }
 0x59e   : > { %v6331_v53 = vrot.slane %v5606_v46, %v18429_v1  ;;  %v6367_v35 = vrot.slane %v5653_v44, %v18429_v1  ;;  %6148 = vmatprep.subr.bf16.mxu0 %v13419_v56  ;;  %6195 = vmatprep.subr.bf16.mxu1 %v13421_v37  ;;  %v6356_v10 = vrot.slane %v6349_v38, %v18429_v1  ;;  %v4160_v21 = vld [vmem:[%s19545_s12 + $0x3f0] sm:$0xff]  ;;  %v4145_v56 = vld [vmem:[%s19545_s12 + $0x378] sm:$0xff] }
 0x59f   : > { %v5608_v43 = vpop.f32.mrf.mxu0  ;;  %v5655_v30 = vpop.f32.mrf.mxu1  ;;  %v4161_v37 = vld [vmem:[%s19545_s12 + $0x3f8] sm:$0xff]  ;;  %v13519_v2 = vcombine.high %v4144_v17, %v4160_v21  ;;  %v13518_v44 = vcombine.low %v4144_v17, %v4160_v21  ;;  %v15481_v21 = vld [vmem:[#allocation3 + $0x1e8] ss:$40 sps:$4 sm:$0xff]  }
 0x5a0   : > { %v6332_v42 = vcombine.high %v6331_v53, %v6331_v53  ;;  %v6368_v60 = vcombine.high %v6367_v35, %v6367_v35  ;;  %v6357_v47 = vcombine.high %v6356_v10, %v6356_v10  ;;  %v13521_v63 = vcombine.high %v4145_v56, %v4161_v37  ;;  %v4113_v38 = vld [vmem:[%s19545_s12 + $0x278] sm:$0xff]  ;;  %v4096_v53 = vld [vmem:[%s19545_s12 + $0x1f0] sm:$0xff] }
 0x5a1   : > { %6149 = vmatpush1.bf16.msra.mxu0 %v13418_v4  ;;  %6196 = vmatpush1.bf16.msra.mxu1 %v13420_v54  ;;  %v5609_v51 = vpop.f32.mrf.mxu0  ;;  %v5656_v45 = vpop.f32.mrf.mxu1  ;;  %v4129_v46 = vld [vmem:[%s19545_s12 + $0x2f8] sm:$0xff]  ;;  %v13520_v4 = vcombine.low %v4145_v56, %v4161_v37  ;;  %v13487_v54 = vcombine.high %v4112_v23, %v4128_v33  ;;  %v13455_v20 = vcombine.high %v4080_v57, %v4096_v53  ;;  %v4048_v43 = vld [vmem:[%s19545_s12 + $0x70] sm:$0xff] }
 0x5a2   : > { %v6339_v5 = vrot.slane %v6332_v42, %v18429_v1  ;;  %v6375_v62 = vrot.slane %v6368_v60, %v18429_v1  ;;  %6228 = vmatprep.subr.bf16.mxu0 %v13647_v25  ;;  %6275 = vmatprep.subr.bf16.mxu1 %v13649_v12  ;;  %v13489_v25 = vcombine.high %v4113_v38, %v4129_v46  ;;  %v4081_v35 = vld [vmem:[%s19545_s12 + $0x178] sm:$0xff]  ;;  %v4064_v30 = vld [vmem:[%s19545_s12 + $0xf0] sm:$0xff] }
 0x5a3   : > { %v4097_v12 = vld [vmem:[%s19545_s12 + $0x1f8] sm:$0xff]  ;;  %v13488_v59 = vcombine.low %v4113_v38, %v4129_v46  ;;  %v13454_v60 = vcombine.low %v4080_v57, %v4096_v53  ;;  %v13423_v51 = vcombine.high %v4048_v43, %v4064_v30  ;;  %v15462_v38 = vld [vmem:[#allocation3 + $0x144] ss:$40 sps:$4 sm:$0xff]  }
 0x5a4   : > { %v6341_v0 = vadd.f32 %v6339_v5, %v6323_v3  ;;  %6167 = vmatmul.mubr.bf16.vlgmr.msra.gmra.mxu0 %v17806_v24  ;;  %6214 = vmatmul.mubr.bf16.vlgmr.msra.gmra.mxu1 %v17806_v24  ;;  %v6376_v18 = vcombine.high %v6375_v62, %v6375_v62  ;;  %v13457_v40 = vcombine.high %v4081_v35, %v4097_v12  ;;  %v4049_v10 = vld [vmem:[%s19545_s12 + $0x78] sm:$0xff] }
 0x5a5   : > { %6229 = vmatpush1.bf16.msra.mxu0 %v13646_v34  ;;  %6276 = vmatpush1.bf16.msra.mxu1 %v13648_v41  ;;  %v4065_v42 = vld [vmem:[%s19545_s12 + $0xf8] sm:$0xff]  ;;  %v13456_v34 = vcombine.low %v4081_v35, %v4097_v12 }
 0x5a6   : > { %v6359_v16 = vadd.f32 %v6357_v47, %v6341_v0  ;;  %6230 = vmatprep.subr.bf16.mxu0 %v13615_v13  ;;  %6277 = vmatprep.subr.bf16.mxu1 %v13617_v27  ;;  %v13425_v45 = vcombine.high %v4049_v10, %v4065_v42  ;;  %v13422_v27 = vcombine.low %v4048_v43, %v4064_v30  ;;  %v15451_v47 = vld [vmem:[#allocation3 + $0x230] ss:$40 sps:$4 sm:$0xff]   ;;  %v15489_v46 = vld [vmem:[#allocation3 + $0x19c] ss:$40 sps:$4 sm:$0xff]   ;;  %v15495_v12 = vld [vmem:[#allocation3 + $0x14c] ss:$40 sps:$4 sm:$0xff]  }
 0x5a7   : > { %6172 = vmatprep.mubr.bf16.mxu0 %v19608_v55  ;;  %6219 = vmatprep.mubr.bf16.mxu1 %v19608_v55  ;;  %v13424_v3 = vcombine.low %v4049_v10, %v4065_v42  ;;  %v15487_v57 = vld [vmem:[#allocation3 + $0x198] ss:$40 sps:$4 sm:$0xff]   ;;  %v15465_v43 = vld [vmem:[#allocation3 + $0xf4] ss:$40 sps:$4 sm:$0xff]  }
 0x5a8   : > { %v18492_v61 = vadd.f32 %v6376_v18, %v6359_v16 }
 0x5a9   : > { %6231 = vmatpush1.bf16.msra.mxu0 %v13614_v28  ;;  %6278 = vmatpush1.bf16.msra.mxu1 %v13616_v36  ;;  %v15456_v36 = vld [vmem:[#allocation3 + $0x1e4] ss:$40 sps:$4 sm:$0xff]  }
 0x5aa   : > { %6232 = vmatprep.subr.bf16.mxu0 %v13583_v22  ;;  %6279 = vmatprep.subr.bf16.mxu1 %v13585_v58  ;;  %v15475_v22 = vld [vmem:[#allocation3 + $0x238] ss:$40 sps:$4 sm:$0xff]   ;;  %v15483_v58 = vld [vmem:[#allocation3 + $0x1ec] ss:$40 sps:$4 sm:$0xff]  }
 0x5ac   : > { %6173 = vmatmul.mubr.bf16.gmra.mxu0 %v17911_v9  ;;  %6220 = vmatmul.mubr.bf16.gmra.mxu1 %v17911_v9 }
 0x5ad   : > { %6233 = vmatpush1.bf16.msra.mxu0 %v13582_v8  ;;  %6280 = vmatpush1.bf16.msra.mxu1 %v13584_v49  ;;  %v15459_v49 = vld [vmem:[#allocation3 + $0x194] ss:$40 sps:$4 sm:$0xff]  }
 0x5ae   : > { %6234 = vmatprep.subr.bf16.mxu0 %v13551_v52  ;;  %6281 = vmatprep.subr.bf16.mxu1 %v13553_v6 }
 0x5af   : > { %6260 = vmatprep.mubr.bf16.mxu0 %v19608_v55  ;;  %6307 = vmatprep.mubr.bf16.mxu1 %v19608_v55 }
 0x5b1   : > { %6235 = vmatpush1.bf16.msra.mxu0 %v13550_v29  ;;  %6282 = vmatpush1.bf16.msra.mxu1 %v13552_v15 }
 0x5b2   : > { %6236 = vmatprep.subr.bf16.mxu0 %v13519_v2  ;;  %6283 = vmatprep.subr.bf16.mxu1 %v13521_v63  ;;  %v15457_v63 = vld [vmem:[#allocation3 + $0x190] ss:$40 sps:$4 sm:$0xff]  }
 0x5b5   : > { %6237 = vmatpush1.bf16.msra.mxu0 %v13518_v44  ;;  %6284 = vmatpush1.bf16.msra.mxu1 %v13520_v4 }
 0x5b6   : > { %6238 = vmatprep.subr.bf16.mxu0 %v13487_v54  ;;  %6285 = vmatprep.subr.bf16.mxu1 %v13489_v25 }
 0x5b9   : > { %6239 = vmatpush1.bf16.msra.mxu0 %v13486_v39  ;;  %6286 = vmatpush1.bf16.msra.mxu1 %v13488_v59  ;;  %v15460_v59 = vld [vmem:[#allocation3 + $0x140] ss:$40 sps:$4 sm:$0xff]  }
 0x5ba   : > { %6240 = vmatprep.subr.bf16.mxu0 %v13455_v20  ;;  %6287 = vmatprep.subr.bf16.mxu1 %v13457_v40 }
 0x5bc   : > { %v5612_v41 = vpop.f32.mrf.mxu0  ;;  %v5659_v13 = vpop.f32.mrf.mxu1 }
 0x5bd   : > { %6241 = vmatpush1.bf16.msra.mxu0 %v13454_v60  ;;  %6288 = vmatpush1.bf16.msra.mxu1 %v13456_v34  ;;  %v15501_v34 = vld [vmem:[#allocation3 + $0xfc] ss:$40 sps:$4 sm:$0xff]  }
 0x5be   : > { %v5613_v5 = vpop.f32.mrf.mxu0  ;;  %v5660_v62 = vpop.f32.mrf.mxu1  ;;  %6242 = vmatprep.subr.bf16.mxu0 %v13423_v51  ;;  %6289 = vmatprep.subr.bf16.mxu1 %v13425_v45  ;;  %v15463_v51 = vld [vmem:[#allocation3 + $0xf0] ss:$40 sps:$4 sm:$0xff]  }
 0x5bf   : > { %v15499_v62 = vld [vmem:[#allocation3 + $0xf8] ss:$40 sps:$4 sm:$0xff]  }
 0x5c0   : > { %v5614_v19 = vpop.f32.mrf.mxu0  ;;  %v5661_v14 = vpop.f32.mrf.mxu1 }
 0x5c1   : > { %6243 = vmatpush1.bf16.msra.mxu0 %v13422_v27  ;;  %6290 = vmatpush1.bf16.msra.mxu1 %v13424_v3  ;;  %v15468_v3 = vld [vmem:[#allocation3 + $0xa4] ss:$40 sps:$4 sm:$0xff]   ;;  %v15471_v19 = vld [vmem:[#allocation3 + $0x54] ss:$40 sps:$4 sm:$0xff]   ;;  %v15505_v14 = vld [vmem:[#allocation3 + $0xa8] ss:$40 sps:$4 sm:$0xff]  }
 0x5c2   : > { %v5615_v0 = vpop.f32.mrf.mxu0  ;;  %v5662_v28 = vpop.f32.mrf.mxu1  ;;  %7336 = vmatprep.subr.bf16.mxu0 %v15453_v31  ;;  %7379 = vmatprep.subr.bf16.mxu1 %v15477_v48  ;;  %v15507_v31 = vld [vmem:[#allocation3 + $0xac] ss:$40 sps:$4 sm:$0xff]   ;;  %v15466_v48 = vld [vmem:[#allocation3 + $0xa0] ss:$40 sps:$4 sm:$0xff]  }
 0x5c3   : > { %v15469_v0 = vld [vmem:[#allocation3 + $0x50] ss:$40 sps:$4 sm:$0xff]   ;;  %v15474_v28 = vld [vmem:[#allocation3 + $0x4] ss:$40 sps:$4 sm:$0xff]  }
 0x5c4   : > { %6261 = vmatmul.mubr.bf16.vlgmr.msra.gmra.mxu0 %v17806_v24  ;;  %6308 = vmatmul.mubr.bf16.vlgmr.msra.gmra.mxu1 %v17806_v24  ;;  %v5698_v16 = vpop.f32.mrf.mxu0  ;;  %v5745_v18 = vpop.f32.mrf.mxu1 }
 0x5c5   : > { %v6380_v32 = vcombine.high %v5698_v16, %v5698_v16  ;;  %v6417_v26 = vcombine.high %v5745_v18, %v5745_v18  ;;  %7337 = vmatpush1.bf16.msra.mxu0 %v15451_v47  ;;  %6266 = vmatprep.mubr.bf16.mxu0 %v19608_v55  ;;  %v15513_v47 = vld [vmem:[#allocation3 + $0x5c] ss:$40 sps:$4 sm:$0xff]   ;;  %v15472_v16 = vld [vmem:[#allocation3] ss:$40 sps:$4 sm:$0xff]  }
 0x5c6   : > { %v5700_v50 = vpop.f32.mrf.mxu0  ;;  %v5747_v8 = vpop.f32.mrf.mxu1  ;;  %7338 = vmatprep.subr.bf16.mxu0 %v15456_v36  ;;  %6313 = vmatprep.mubr.bf16.mxu1 %v19608_v55  ;;  %v15511_v36 = vld [vmem:[#allocation3 + $0x58] ss:$40 sps:$4 sm:$0xff]  }
 0x5c7   : > { %v6387_v52 = vrot.slane %v6380_v32, %v18429_v1  ;;  %v6424_v6 = vrot.slane %v6417_v26, %v18429_v1  ;;  %v6398_v24 = vcombine.high %v5700_v50, %v5700_v50  ;;  %v6436_v17 = vcombine.high %v5747_v8, %v5747_v8  ;;  %7380 = vmatpush1.bf16.msra.mxu1 %v15475_v22  ;;  %v15519_v22 = vld [vmem:[#allocation3 + $0xc] ss:$40 sps:$4 sm:$0xff]   ;;  %v6851_v18 = vld [vmem:[%s837_s22] sm:$0xff]  ;;  %v15517_v26 = vld [vmem:[#allocation3 + $0x8] ss:$40 sps:$4 sm:$0xff]  }
 0x5c8   : > { %v5702_v56 = vpop.f32.mrf.mxu0  ;;  %v5749_v37 = vpop.f32.mrf.mxu1  ;;  %7381 = vmatprep.subr.bf16.mxu1 %v15483_v58  ;;  %v6852_v58 = vld [vmem:[%s837_s22 + $0x8] sm:$0xff] }
 0x5c9   : > { %v6394_v29 = vrot.slane %v6387_v52, %v18429_v1  ;;  %v6405_v15 = vrot.slane %v6398_v24, %v18429_v1  ;;  %v6443_v2 = vrot.slane %v6436_v17, %v18429_v1  ;;  %7339 = vmatpush1.bf16.msra.mxu0 %v15454_v11  ;;  %v6431_v4 = vrot.slane %v6424_v6, %v18429_v1  ;;  %v15480_v32 = vld [vmem:[#allocation3 + $0x244] ss:$40 sps:$4 sm:$0xff]   ;;  %v15478_v8 = vld [vmem:[#allocation3 + $0x240] ss:$40 sps:$4 sm:$0xff]  }
 0x5ca   : > { %v5703_v23 = vpop.f32.mrf.mxu0  ;;  %v5750_v33 = vpop.f32.mrf.mxu1  ;;  %7340 = vmatprep.subr.bf16.mxu0 %v15459_v49  ;;  %v18569_v11 = vpack.c.bf16 %v6852_v58, %v6851_v18  ;;  %v15525_v50 = vld [vmem:[#allocation3 + $0x24c] ss:$40 sps:$4 sm:$0xff]   ;;  %v15523_v52 = vld [vmem:[#allocation3 + $0x248] ss:$40 sps:$4 sm:$0xff]   ;;  %v15531_v17 = vld [vmem:[#allocation3 + $0x1fc] ss:$40 sps:$4 sm:$0xff]  }
 0x5cb   : > { %v6396_v44 = vadd.f32 %v6394_v29, %v18492_v61  ;;  %v6406_v54 = vcombine.high %v6405_v15, %v6405_v15  ;;  %v6444_v25 = vcombine.high %v6443_v2, %v6443_v2  ;;  %7382 = vmatpush1.bf16.msra.mxu1 %v15481_v21  ;;  %v6432_v30 = vcombine.high %v6431_v4, %v6431_v4  ;;  %v15486_v49 = vld [vmem:[#allocation3 + $0x1f4] ss:$40 sps:$4 sm:$0xff]   ;;  %v15484_v21 = vld [vmem:[#allocation3 + $0x1f0] ss:$40 sps:$4 sm:$0xff]   ;;  %v15492_v29 = vld [vmem:[#allocation3 + $0x1a4] ss:$40 sps:$4 sm:$0xff]  }
 0x5cc   : > { %6267 = vmatmul.mubr.bf16.gmra.mxu0 %v17911_v9  ;;  %6314 = vmatmul.mubr.bf16.gmra.mxu1 %v17911_v9  ;;  %v5706_v53 = vpop.f32.mrf.mxu0  ;;  %v5753_v35 = vpop.f32.mrf.mxu1  ;;  %v15493_v9 = vld [vmem:[#allocation3 + $0x148] ss:$40 sps:$4 sm:$0xff]   ;;  %v15529_v15 = vld [vmem:[#allocation3 + $0x1f8] ss:$40 sps:$4 sm:$0xff]   ;;  %v15537_v23 = vld [vmem:[#allocation3 + $0x1ac] ss:$40 sps:$4 sm:$0xff]  }
 0x5cd   : > { %v6413_v39 = vrot.slane %v6406_v54, %v18429_v1  ;;  %7341 = vmatpush1.bf16.msra.mxu0 %v15457_v63  ;;  %7368 = vmatprep.mubr.bf16.mxu0 %v19608_v55  ;;  %v6451_v61 = vrot.slane %v6444_v25, %v18429_v1  ;;  %v15498_v54 = vld [vmem:[#allocation3 + $0x154] ss:$40 sps:$4 sm:$0xff]   ;;  %v15535_v53 = vld [vmem:[#allocation3 + $0x1a8] ss:$40 sps:$4 sm:$0xff]  }
 0x5ce   : > { %v5707_v20 = vpop.f32.mrf.mxu0  ;;  %v5754_v40 = vpop.f32.mrf.mxu1  ;;  %7342 = vmatprep.subr.bf16.mxu0 %v15462_v38  ;;  %7383 = vmatprep.subr.bf16.mxu1 %v15489_v46  ;;  %v15490_v46 = vld [vmem:[#allocation3 + $0x1a0] ss:$40 sps:$4 sm:$0xff]   ;;  %v15522_v18 = vld [vmem:[#allocation3 + $0x14] ss:$40 sps:$4 sm:$0xff]  }
 0x5cf   : > { %v6415_v10 = vadd.f32 %v6413_v39, %v6396_v44  ;;  %7384 = vmatpush1.bf16.msra.mxu1 %v15487_v57  ;;  %7411 = vmatprep.mubr.bf16.mxu1 %v19608_v55  ;;  %v6452_v41 = vcombine.high %v6451_v61, %v6451_v61  ;;  %v15543_v39 = vld [vmem:[#allocation3 + $0x15c] ss:$40 sps:$4 sm:$0xff]   ;;  %v15496_v40 = vld [vmem:[#allocation3 + $0x150] ss:$40 sps:$4 sm:$0xff]  }
 0x5d0   : > { %v5708_v42 = vpop.f32.mrf.mxu0  ;;  %v5755_v60 = vpop.f32.mrf.mxu1  ;;  %7385 = vmatprep.subr.bf16.mxu1 %v15495_v12  ;;  %v15559_v58 = vld [vmem:[#allocation3 + $0x68] ss:$40 sps:$4 sm:$0xff]  }
 0x5d1   : > { %7343 = vmatpush1.bf16.msra.mxu0 %v15460_v59  ;;  %v6434_v45 = vadd.f32 %v6432_v30, %v6415_v10  ;;  %v15504_v10 = vld [vmem:[#allocation3 + $0x104] ss:$40 sps:$4 sm:$0xff]   ;;  %v15541_v60 = vld [vmem:[#allocation3 + $0x158] ss:$40 sps:$4 sm:$0xff]  }
 0x5d2   : > { %v5709_v13 = vpop.f32.mrf.mxu0  ;;  %v5756_v27 = vpop.f32.mrf.mxu1  ;;  %7344 = vmatprep.subr.bf16.mxu0 %v15465_v43 }
 0x5d3   : > { %v6454_v5 = vadd.f32 %v6452_v41, %v6434_v45  ;;  %7386 = vmatpush1.bf16.msra.mxu1 %v15493_v9  ;;  %v15549_v45 = vld [vmem:[#allocation3 + $0x10c] ss:$40 sps:$4 sm:$0xff]   ;;  %v15502_v27 = vld [vmem:[#allocation3 + $0x100] ss:$40 sps:$4 sm:$0xff]  }
 0x5d4   : > { %7387 = vmatprep.subr.bf16.mxu1 %v15501_v34 }
 0x5d5   : > { %7345 = vmatpush1.bf16.msra.mxu0 %v15463_v51 }
 0x5d6   : > { %7346 = vmatprep.subr.bf16.mxu0 %v15468_v3 }
 0x5d7   : > { %7388 = vmatpush1.bf16.msra.mxu1 %v15499_v62  ;;  %v15510_v62 = vld [vmem:[#allocation3 + $0xb4] ss:$40 sps:$4 sm:$0xff]  }
 0x5d8   : > { %7389 = vmatprep.subr.bf16.mxu1 %v15507_v31 }
 0x5d9   : > { %7347 = vmatpush1.bf16.msra.mxu0 %v15466_v48 }
 0x5da   : > { %7348 = vmatprep.subr.bf16.mxu0 %v15471_v19  ;;  %v15547_v19 = vld [vmem:[#allocation3 + $0x108] ss:$40 sps:$4 sm:$0xff]  }
 0x5db   : > { %7390 = vmatpush1.bf16.msra.mxu1 %v15505_v14  ;;  %v15555_v14 = vld [vmem:[#allocation3 + $0xbc] ss:$40 sps:$4 sm:$0xff]  }
 0x5dc   : > { %7391 = vmatprep.subr.bf16.mxu1 %v15513_v47 }
 0x5dd   : > { %7349 = vmatpush1.bf16.msra.mxu0 %v15469_v0  ;;  %v15508_v0 = vld [vmem:[#allocation3 + $0xb0] ss:$40 sps:$4 sm:$0xff]  }
 0x5de   : > { %7350 = vmatprep.subr.bf16.mxu0 %v15474_v28  ;;  %v15516_v28 = vld [vmem:[#allocation3 + $0x64] ss:$40 sps:$4 sm:$0xff]  }
 0x5df   : > { %7392 = vmatpush1.bf16.msra.mxu1 %v15511_v36  ;;  %v15553_v36 = vld [vmem:[#allocation3 + $0xb8] ss:$40 sps:$4 sm:$0xff]  }
 0x5e0   : > { %7393 = vmatprep.subr.bf16.mxu1 %v15519_v22  ;;  %v15561_v22 = vld [vmem:[#allocation3 + $0x6c] ss:$40 sps:$4 sm:$0xff]  }
 0x5e1   : > { %7351 = vmatpush1.bf16.msra.mxu0 %v15472_v16  ;;  %v15514_v16 = vld [vmem:[#allocation3 + $0x60] ss:$40 sps:$4 sm:$0xff]  }
 0x5e2   : > { %7422 = vmatprep.subr.bf16.mxu0 %v15480_v32  ;;  %v15567_v32 = vld [vmem:[#allocation3 + $0x1c] ss:$40 sps:$4 sm:$0xff]  }
 0x5e3   : > { %7394 = vmatpush1.bf16.msra.mxu1 %v15517_v26  ;;  %v15520_v26 = vld [vmem:[#allocation3 + $0x10] ss:$40 sps:$4 sm:$0xff]  }
 0x5e4   : > { %v5792_v6 = vpop.f32.mrf.mxu0  ;;  %v5839_v24 = vpop.f32.mrf.mxu1  ;;  %7369 = vmatmul.mubr.bf16.vlgmr.msra.gmra.mxu0 %v18569_v11  ;;  %7465 = vmatprep.subr.bf16.mxu1 %v15525_v50  ;;  %v15528_v50 = vld [vmem:[#allocation3 + $0x254] ss:$40 sps:$4 sm:$0xff]  }
 0x5e5   : > { %7423 = vmatpush1.bf16.msra.mxu0 %v15478_v8  ;;  %7454 = vmatprep.mubr.bf16.mxu0 %v19608_v55  ;;  %v15565_v8 = vld [vmem:[#allocation3 + $0x18] ss:$40 sps:$4 sm:$0xff]  }
 0x5e6   : > { %v5793_v56 = vpop.f32.mrf.mxu0  ;;  %v5840_v37 = vpop.f32.mrf.mxu1  ;;  %7424 = vmatprep.subr.bf16.mxu0 %v15486_v49  ;;  %7412 = vmatmul.mubr.bf16.vlgmr.msra.gmra.mxu1 %v18569_v11  ;;  %v15526_v49 = vld [vmem:[#allocation3 + $0x250] ss:$40 sps:$4 sm:$0xff]  }
 0x5e7   : > { %7466 = vmatpush1.bf16.msra.mxu1 %v15523_v52  ;;  %7497 = vmatprep.mubr.bf16.mxu1 %v19608_v55  ;;  %v15534_v52 = vld [vmem:[#allocation3 + $0x204] ss:$40 sps:$4 sm:$0xff]   ;;  %v15540_v37 = vld [vmem:[#allocation3 + $0x1b4] ss:$40 sps:$4 sm:$0xff]  }
 0x5e8   : > { %v5794_v2 = vpop.f32.mrf.mxu0  ;;  %v5841_v63 = vpop.f32.mrf.mxu1  ;;  %7467 = vmatprep.subr.bf16.mxu1 %v15531_v17  ;;  %v15532_v17 = vld [vmem:[#allocation3 + $0x200] ss:$40 sps:$4 sm:$0xff]  }
 0x5e9   : > { %v6455_v33 = vadd.f32 %v6454_v5, %v5794_v2  ;;  %v6481_v38 = vrot.slane %v5841_v63, %v18429_v1  ;;  %7425 = vmatpush1.bf16.msra.mxu0 %v15484_v21  ;;  %v7582_v2 = vld [vmem:[#allocation5 + $0xf8] sm:$0xff] }
 0x5ea   : > { %v5796_v44 = vpop.f32.mrf.mxu0  ;;  %v5843_v4 = vpop.f32.mrf.mxu1  ;;  %7426 = vmatprep.subr.bf16.mxu0 %v15492_v29  ;;  %v7566_v63 = vld [vmem:[#allocation5 + $0x78] sm:$0xff] }
 0x5eb   : > { %v6463_v25 = vrot.slane %v5796_v44, %v18429_v1  ;;  %v6499_v57 = vrot.slane %v5843_v4, %v18429_v1  ;;  %7468 = vmatpush1.bf16.msra.mxu1 %v15529_v15  ;;  %v6488_v59 = vrot.slane %v6481_v38, %v18429_v1  ;;  %v15538_v38 = vld [vmem:[#allocation3 + $0x1b0] ss:$40 sps:$4 sm:$0xff]   ;;  %v15546_v4 = vld [vmem:[#allocation3 + $0x164] ss:$40 sps:$4 sm:$0xff]  }
 0x5ec   : > { %v5800_v35 = vpop.f32.mrf.mxu0  ;;  %v5847_v12 = vpop.f32.mrf.mxu1  ;;  %7469 = vmatprep.subr.bf16.mxu1 %v15537_v23 }
 0x5ed   : > { %v6464_v61 = vcombine.high %v6463_v25, %v6463_v25  ;;  %v6500_v20 = vcombine.high %v6499_v57, %v6499_v57  ;;  %7427 = vmatpush1.bf16.msra.mxu0 %v15490_v46  ;;  %v6489_v41 = vcombine.high %v6488_v59, %v6488_v59  ;;  %v7565_v25 = vld [vmem:[#allocation5 + $0x70] sm:$0xff] }
 0x5ee   : > { %v5801_v43 = vpop.f32.mrf.mxu0  ;;  %v5848_v30 = vpop.f32.mrf.mxu1  ;;  %7428 = vmatprep.subr.bf16.mxu0 %v15498_v54  ;;  %v7581_v54 = vld [vmem:[#allocation5 + $0xf0] sm:$0xff] }
 0x5ef   : > { %v6471_v9 = vrot.slane %v6464_v61, %v18429_v1  ;;  %v6507_v42 = vrot.slane %v6500_v20, %v18429_v1  ;;  %7470 = vmatpush1.bf16.msra.mxu1 %v15535_v53  ;;  %v7580_v61 = vld [vmem:[#allocation5 + $0xe8] sm:$0xff] }
 0x5f0   : > { %v5802_v34 = vpop.f32.mrf.mxu0  ;;  %v5849_v51 = vpop.f32.mrf.mxu1  ;;  %7471 = vmatprep.subr.bf16.mxu1 %v15543_v39  ;;  %v7564_v20 = vld [vmem:[#allocation5 + $0x68] sm:$0xff] }
 0x5f1   : > { %v6473_v13 = vadd.f32 %v6471_v9, %v6455_v33  ;;  %7429 = vmatpush1.bf16.msra.mxu0 %v15496_v40  ;;  %v6508_v48 = vcombine.high %v6507_v42, %v6507_v42  ;;  %v7579_v34 = vld [vmem:[#allocation5 + $0xe0] sm:$0xff] }
 0x5f2   : > { %v5803_v3 = vpop.f32.mrf.mxu0  ;;  %v5850_v5 = vpop.f32.mrf.mxu1  ;;  %7430 = vmatprep.subr.bf16.mxu0 %v15504_v10  ;;  %v15544_v10 = vld [vmem:[#allocation3 + $0x160] ss:$40 sps:$4 sm:$0xff]  }
 0x5f3   : > { %v6491_v31 = vadd.f32 %v6489_v41, %v6473_v13  ;;  %7472 = vmatpush1.bf16.msra.mxu1 %v15541_v60  ;;  %v15552_v60 = vld [vmem:[#allocation3 + $0x114] ss:$40 sps:$4 sm:$0xff]   ;;  %v7563_v51 = vld [vmem:[#allocation5 + $0x60] sm:$0xff] }
 0x5f4   : > { %7473 = vmatprep.subr.bf16.mxu1 %v15549_v45 }
 0x5f5   : > { %v18581_v47 = vadd.f32 %v6508_v48, %v6491_v31  ;;  %7431 = vmatpush1.bf16.msra.mxu0 %v15502_v27  ;;  %v15550_v48 = vld [vmem:[#allocation3 + $0x110] ss:$40 sps:$4 sm:$0xff]  }
 0x5f6   : > { %7432 = vmatprep.subr.bf16.mxu0 %v15510_v62  ;;  %v7578_v62 = vld [vmem:[#allocation5 + $0xd8] sm:$0xff] }
 0x5f7   : > { %7474 = vmatpush1.bf16.msra.mxu1 %v15547_v19 }
 0x5f8   : > { %7475 = vmatprep.subr.bf16.mxu1 %v15555_v14  ;;  %v7562_v14 = vld [vmem:[#allocation5 + $0x58] sm:$0xff] }
 0x5f9   : > { %7433 = vmatpush1.bf16.msra.mxu0 %v15508_v0 }
 0x5fa   : > { %7434 = vmatprep.subr.bf16.mxu0 %v15516_v28 }
 0x5fb   : > { %7476 = vmatpush1.bf16.msra.mxu1 %v15553_v36  ;;  %v7577_v36 = vld [vmem:[#allocation5 + $0xd0] sm:$0xff] }
 0x5fc   : > { %7477 = vmatprep.subr.bf16.mxu1 %v15561_v22 }
 0x5fd   : > { %7435 = vmatpush1.bf16.msra.mxu0 %v15514_v16 }
 0x5fe   : > { %7436 = vmatprep.subr.bf16.mxu0 %v15522_v18  ;;  %v7561_v18 = vld [vmem:[#allocation5 + $0x50] sm:$0xff] }
 0x5ff   : > { %7478 = vmatpush1.bf16.msra.mxu1 %v15559_v58  ;;  %v7576_v58 = vld [vmem:[#allocation5 + $0xc8] sm:$0xff] }
 0x600   : > { %7479 = vmatprep.subr.bf16.mxu1 %v15567_v32  ;;  %v15556_v32 = vld [vmem:[#allocation3 + $0xc0] ss:$40 sps:$4 sm:$0xff]  }
 0x601   : > { %7437 = vmatpush1.bf16.msra.mxu0 %v15520_v26 }
 0x602   : > { %7508 = vmatprep.subr.bf16.mxu0 %v15528_v50 }
 0x603   : > { %7480 = vmatpush1.bf16.msra.mxu1 %v15565_v8  ;;  %v7560_v8 = vld [vmem:[#allocation5 + $0x48] sm:$0xff] }
 0x604   : > { %v5886_v6 = vpop.f32.mrf.mxu0  ;;  %v5933_v24 = vpop.f32.mrf.mxu1  ;;  %7455 = vmatmul.mubr.bf16.vlgmr.msra.gmra.mxu0 %v18569_v11  ;;  %14628 = vmatprep.subr.mxu1 %v7582_v2  ;;  %v7572_v2 = vld [vmem:[#allocation5 + $0xa8] sm:$0xff] }
 0x605   : > { %7509 = vmatpush1.bf16.msra.mxu0 %v15526_v49  ;;  %7540 = vmatprep.mubr.bf16.mxu0 %v19608_v55  ;;  %v15564_v49 = vld [vmem:[#allocation3 + $0x74] ss:$40 sps:$4 sm:$0xff]   ;;  %v7559_v24 = vld [vmem:[#allocation5 + $0x40] sm:$0xff] }
 0x606   : > { %v5887_v21 = vpop.f32.mrf.mxu0  ;;  %v5934_v56 = vpop.f32.mrf.mxu1  ;;  %7510 = vmatprep.subr.bf16.mxu0 %v15534_v52  ;;  %7498 = vmatmul.mubr.bf16.vlgmr.msra.gmra.mxu1 %v18569_v11  ;;  %v7575_v52 = vld [vmem:[#allocation5 + $0xc0] sm:$0xff] }
 0x607   : > { %14629 = vmatpush3.msra.mxu1 %v7566_v63  ;;  %v15562_v21 = vld [vmem:[#allocation3 + $0x70] ss:$40 sps:$4 sm:$0xff]   ;;  %v15568_v63 = vld [vmem:[#allocation3 + $0x20] ss:$40 sps:$4 sm:$0xff]  }
 0x608   : > { %v5888_v29 = vpop.f32.mrf.mxu0  ;;  %v5935_v15 = vpop.f32.mrf.mxu1  ;;  %14630 = vmatprep.subr.mxu1 %v7581_v54  ;;  %v7558_v56 = vld [vmem:[#allocation5 + $0x38] sm:$0xff]  ;;  %v7569_v54 = vld [vmem:[#allocation5 + $0x90] sm:$0xff] }
 0x609   : > { %v6512_v23 = vcombine.high %v5888_v29, %v5888_v29  ;;  %v6549_v33 = vcombine.high %v5935_v15, %v5935_v15  ;;  %7511 = vmatpush1.bf16.msra.mxu0 %v15532_v17  ;;  %14631 = vmatpush3.msra.mxu1 %v7565_v25  ;;  %v7574_v17 = vld [vmem:[#allocation5 + $0xb8] sm:$0xff]  ;;  %v7573_v29 = vld [vmem:[#allocation5 + $0xb0] sm:$0xff] }
 0x60a   : > { %v5890_v46 = vpop.f32.mrf.mxu0  ;;  %v5937_v44 = vpop.f32.mrf.mxu1  ;;  %7512 = vmatprep.subr.bf16.mxu0 %v15540_v37  ;;  %14632 = vmatprep.subr.mxu1 %v7580_v61  ;;  %v15570_v37 = vld [vmem:[#allocation3 + $0x24] ss:$40 sps:$4 sm:$0xff]   ;;  %v7557_v15 = vld [vmem:[#allocation5 + $0x30] sm:$0xff] }
 0x60b   : > { %v6519_v57 = vrot.slane %v6512_v23, %v18429_v1  ;;  %v6556_v53 = vrot.slane %v6549_v33, %v18429_v1  ;;  %v6530_v35 = vcombine.high %v5890_v46, %v5890_v46  ;;  %v6568_v12 = vcombine.high %v5937_v44, %v5937_v44  ;;  %14633 = vmatpush3.msra.mxu1 %v7564_v20  ;;  %v7556_v23 = vld [vmem:[#allocation5 + $0x28] sm:$0xff]  ;;  %v7571_v33 = vld [vmem:[#allocation5 + $0xa0] sm:$0xff]  ;;  %v7614_v46 = vld [vmem:[#allocation5 + $0x1f8] sm:$0xff] }
 0x60c   : > { %v5894_v39 = vpop.f32.mrf.mxu0  ;;  %v5941_v59 = vpop.f32.mrf.mxu1  ;;  %14634 = vmatprep.subr.mxu1 %v7579_v34  ;;  %v7570_v44 = vld [vmem:[#allocation5 + $0x98] sm:$0xff]  ;;  %v7553_v25 = vld [vmem:[#allocation5 + $0x10] sm:$0xff]  ;;  %v7567_v20 = vld [vmem:[#allocation5 + $0x80] sm:$0xff] }
 0x60d   : > { %v6526_v40 = vrot.slane %v6519_v57, %v18429_v1  ;;  %v6537_v43 = vrot.slane %v6530_v35, %v18429_v1  ;;  %v6575_v30 = vrot.slane %v6568_v12, %v18429_v1  ;;  %7513 = vmatpush1.bf16.msra.mxu0 %v15538_v38  ;;  %v6563_v41 = vrot.slane %v6556_v53, %v18429_v1  ;;  %v7555_v38 = vld [vmem:[#allocation5 + $0x20] sm:$0xff]  ;;  %v7598_v57 = vld [vmem:[#allocation5 + $0x178] sm:$0xff]  ;;  %v7568_v53 = vld [vmem:[#allocation5 + $0x88] sm:$0xff] }
 0x60e   : > { %v5895_v9 = vpop.f32.mrf.mxu0  ;;  %v5942_v42 = vpop.f32.mrf.mxu1  ;;  %7514 = vmatprep.subr.bf16.mxu0 %v15546_v4  ;;  %14635 = vmatpush3.msra.mxu1 %v7563_v51  ;;  %v7554_v4 = vld [vmem:[#allocation5 + $0x18] sm:$0xff]  ;;  %v7613_v35 = vld [vmem:[#allocation5 + $0x1f0] sm:$0xff]  ;;  %v7552_v59 = vld [vmem:[#allocation5 + $0x8] sm:$0xff] }
 0x60f   : > { %v6528_v45 = vadd.f32 %v6526_v40, %v18581_v47  ;;  %v6538_v13 = vcombine.high %v6537_v43, %v6537_v43  ;;  %v6576_v27 = vcombine.high %v6575_v30, %v6575_v30  ;;  %v15558_v47 = vld [vmem:[#allocation3 + $0xc4] ss:$40 sps:$4 sm:$0xff]   ;;  %14636 = vmatprep.subr.mxu1 %v7578_v62  ;;  %v6564_v22 = vcombine.high %v6563_v41, %v6563_v41  ;;  %v7597_v61 = vld [vmem:[#allocation5 + $0x170] sm:$0xff]  ;;  %v7646_v42 = vld [vmem:[#allocation5 + $0x2f8] sm:$0xff] }
 0x610   : > { %v5896_v3 = vpop.f32.mrf.mxu0  ;;  %v5943_v5 = vpop.f32.mrf.mxu1  ;;  %14637 = vmatpush3.msra.mxu1 %v7562_v14  ;;  %v7612_v40 = vld [vmem:[#allocation5 + $0x1e8] sm:$0xff] }
 0x611   : > { %v6545_v31 = vrot.slane %v6538_v13, %v18429_v1  ;;  %7515 = vmatpush1.bf16.msra.mxu0 %v15544_v10  ;;  %v6583_v19 = vrot.slane %v6576_v27, %v18429_v1  ;;  %14638 = vmatprep.subr.mxu1 %v7577_v36  ;;  %v7551_v10 = vld [vmem:[#allocation5] sm:$0xff]  ;;  %v7596_v9 = vld [vmem:[#allocation5 + $0x168] sm:$0xff]  ;;  %v7594_v27 = vld [vmem:[#allocation5 + $0x158] sm:$0xff] }
 0x612   : > { %v5897_v0 = vpop.f32.mrf.mxu0  ;;  %v5944_v28 = vpop.f32.mrf.mxu1  ;;  %7516 = vmatprep.subr.bf16.mxu0 %v15552_v60  ;;  %14639 = vmatpush3.msra.mxu1 %v7561_v18  ;;  %v7611_v60 = vld [vmem:[#allocation5 + $0x1e0] sm:$0xff]  ;;  %v7609_v3 = vld [vmem:[#allocation5 + $0x1d0] sm:$0xff]  ;;  %v7608_v14 = vld [vmem:[#allocation5 + $0x1c8] sm:$0xff] }
 0x613   : > { %v6547_v16 = vadd.f32 %v6545_v31, %v6528_v45  ;;  %v6584_v50 = vcombine.high %v6583_v19, %v6583_v19  ;;  %14640 = vmatprep.subr.mxu1 %v7576_v58  ;;  %v7610_v45 = vld [vmem:[#allocation5 + $0x1d8] sm:$0xff]  ;;  %v7593_v31 = vld [vmem:[#allocation5 + $0x150] sm:$0xff] }
 0x614   : > { %14641 = vmatpush3.msra.mxu1 %v7560_v8 }
 0x615   : > { %7517 = vmatpush1.bf16.msra.mxu0 %v15550_v48  ;;  %v6566_v26 = vadd.f32 %v6564_v22, %v6547_v16  ;;  %14642 = vmatprep.subr.mxu1 %v7575_v52  ;;  %v7607_v16 = vld [vmem:[#allocation5 + $0x1c0] sm:$0xff] }
 0x616   : > { %7518 = vmatprep.subr.bf16.mxu0 %v15558_v47  ;;  %14643 = vmatpush3.msra.mxu1 %v7559_v24  ;;  %v7592_v47 = vld [vmem:[#allocation5 + $0x148] sm:$0xff]  ;;  %v7590_v24 = vld [vmem:[#allocation5 + $0x138] sm:$0xff] }
 0x617   : > { %v18595_v6 = vadd.f32 %v6584_v50, %v6566_v26  ;;  %14644 = vmatprep.subr.mxu1 %v7574_v17 }
 0x618   : > { %14645 = vmatpush3.msra.mxu1 %v7558_v56  ;;  %v7605_v56 = vld [vmem:[#allocation5 + $0x1b0] sm:$0xff] }
 0x619   : > { %7519 = vmatpush1.bf16.msra.mxu0 %v15556_v32  ;;  %14646 = vmatprep.subr.mxu1 %v7573_v29  ;;  %v7591_v32 = vld [vmem:[#allocation5 + $0x140] sm:$0xff] }
 0x61a   : > { %7520 = vmatprep.subr.bf16.mxu0 %v15564_v49  ;;  %14647 = vmatpush3.msra.mxu1 %v7557_v15  ;;  %v7606_v49 = vld [vmem:[#allocation5 + $0x1b8] sm:$0xff] }
 0x61b   : > { %14648 = vmatprep.subr.mxu1 %v7572_v2  ;;  %v7604_v2 = vld [vmem:[#allocation5 + $0x1a8] sm:$0xff] }
 0x61c   : > { %14649 = vmatpush3.msra.mxu1 %v7556_v23 }
 0x61d   : > { %7521 = vmatpush1.bf16.msra.mxu0 %v15562_v21  ;;  %14650 = vmatprep.subr.mxu1 %v7571_v33 }
 0x61e   : > { %7522 = vmatprep.subr.bf16.mxu0 %v15570_v37  ;;  %14651 = vmatpush3.msra.mxu1 %v7555_v38  ;;  %v7589_v37 = vld [vmem:[#allocation5 + $0x130] sm:$0xff]  ;;  %v7603_v38 = vld [vmem:[#allocation5 + $0x1a0] sm:$0xff] }
 0x61f   : > { %14652 = vmatprep.subr.mxu1 %v7570_v44 }
 0x620   : > { %14653 = vmatpush3.msra.mxu1 %v7554_v4  ;;  %v7602_v4 = vld [vmem:[#allocation5 + $0x198] sm:$0xff] }
 0x621   : > { %7523 = vmatpush1.bf16.msra.mxu0 %v15568_v63  ;;  %14654 = vmatprep.subr.mxu1 %v7569_v54  ;;  %v7588_v63 = vld [vmem:[#allocation5 + $0x128] sm:$0xff]  ;;  %v7586_v54 = vld [vmem:[#allocation5 + $0x118] sm:$0xff] }
 0x622   : > { %14666 = vmatprep.subr.mxu0 %v7614_v46  ;;  %14655 = vmatpush3.msra.mxu1 %v7553_v25  ;;  %v7587_v46 = vld [vmem:[#allocation5 + $0x120] sm:$0xff]  ;;  %v7601_v25 = vld [vmem:[#allocation5 + $0x190] sm:$0xff] }
 0x623   : > { %14656 = vmatprep.subr.mxu1 %v7568_v53  ;;  %v7600_v53 = vld [vmem:[#allocation5 + $0x188] sm:$0xff] }
 0x624   : > { %v5980_v12 = vpop.f32.mrf.mxu0  ;;  %v6027_v39 = vpop.f32.mrf.mxu1  ;;  %7541 = vmatmul.mubr.bf16.vlgmr.msra.gmra.mxu0 %v18569_v11  ;;  %14657 = vmatpush3.msra.mxu1 %v7552_v59  ;;  %v7595_v11 = vld [vmem:[#allocation5 + $0x160] sm:$0xff]  ;;  %v7678_v59 = vld [vmem:[#allocation5 + $0x3f8] sm:$0xff] }
 0x625   : > { %14667 = vmatpush3.msra.mxu0 %v7598_v57  ;;  %14658 = vmatprep.subr.mxu1 %v7567_v20  ;;  %v7585_v57 = vld [vmem:[#allocation5 + $0x110] sm:$0xff]  ;;  %v7599_v12 = vld [vmem:[#allocation5 + $0x180] sm:$0xff] }
 0x626   : > { %v5981_v43 = vpop.f32.mrf.mxu0  ;;  %v6028_v30 = vpop.f32.mrf.mxu1  ;;  %14668 = vmatprep.subr.mxu0 %v7613_v35  ;;  %14659 = vmatpush3.msra.mxu1 %v7551_v10  ;;  %v7584_v35 = vld [vmem:[#allocation5 + $0x108] sm:$0xff]  ;;  %v7583_v39 = vld [vmem:[#allocation5 + $0x100] sm:$0xff] }
 0x627   : > { %14669 = vmatpush3.msra.mxu0 %v7597_v61  ;;  %14704 = vmatprep.subr.mxu1 %v7646_v42 }
 0x628   : > { %v5982_v34 = vpop.f32.mrf.mxu0  ;;  %v6029_v51 = vpop.f32.mrf.mxu1  ;;  %14670 = vmatprep.subr.mxu0 %v7612_v40 }
 0x629   : > { %14671 = vmatpush3.msra.mxu0 %v7596_v9 }
 0x62a   : > { %v5983_v41 = vpop.f32.mrf.mxu0  ;;  %v6030_v13 = vpop.f32.mrf.mxu1  ;;  %14672 = vmatprep.subr.mxu0 %v7611_v60 }
 0x62b   : > { %14673 = vmatpush3.msra.mxu0 %v7595_v11 }
 0x62c   : > { %v5986_v5 = vpop.f32.mrf.mxu0  ;;  %v6033_v62 = vpop.f32.mrf.mxu1  ;;  %14674 = vmatprep.subr.mxu0 %v7610_v45 }
 0x62d   : > { %v6587_v48 = vadd.f32 %v18595_v6, %v5986_v5  ;;  %v6613_v19 = vrot.slane %v6033_v62, %v18429_v1  ;;  %14675 = vmatpush3.msra.mxu0 %v7594_v27 }
 0x62e   : > { %v5988_v0 = vpop.f32.mrf.mxu0  ;;  %v6035_v28 = vpop.f32.mrf.mxu1  ;;  %14676 = vmatprep.subr.mxu0 %v7609_v3 }
 0x62f   : > { %v6595_v36 = vrot.slane %v5988_v0, %v18429_v1  ;;  %v6631_v22 = vrot.slane %v6035_v28, %v18429_v1  ;;  %14677 = vmatpush3.msra.mxu0 %v7593_v31  ;;  %v6620_v26 = vrot.slane %v6613_v19, %v18429_v1 }
 0x630   : > { %v5990_v18 = vpop.f32.mrf.mxu0  ;;  %v6037_v58 = vpop.f32.mrf.mxu1  ;;  %14678 = vmatprep.subr.mxu0 %v7608_v14 }
 0x631   : > { %v6596_v50 = vcombine.high %v6595_v36, %v6595_v36  ;;  %v6632_v8 = vcombine.high %v6631_v22, %v6631_v22  ;;  %14679 = vmatpush3.msra.mxu0 %v7592_v47  ;;  %v6621_v29 = vcombine.high %v6620_v26, %v6620_v26 }
 0x632   : > { %v5991_v52 = vpop.f32.mrf.mxu0  ;;  %v6038_v6 = vpop.f32.mrf.mxu1  ;;  %14680 = vmatprep.subr.mxu0 %v7607_v16 }
 0x633   : > { %v6603_v17 = vrot.slane %v6596_v50, %v18429_v1  ;;  %v6639_v21 = vrot.slane %v6632_v8, %v18429_v1  ;;  %14681 = vmatpush3.msra.mxu0 %v7591_v32 }
 0x634   : > { %14682 = vmatprep.subr.mxu0 %v7606_v49 }
 0x635   : > { %v6605_v15 = vadd.f32 %v6603_v17, %v6587_v48  ;;  %14683 = vmatpush3.msra.mxu0 %v7590_v24  ;;  %v6640_v33 = vcombine.high %v6639_v21, %v6639_v21 }
 0x636   : > { %14684 = vmatprep.subr.mxu0 %v7605_v56 }
 0x637   : > { %v6623_v23 = vadd.f32 %v6621_v29, %v6605_v15  ;;  %14685 = vmatpush3.msra.mxu0 %v7589_v37 }
 0x638   : > { %14686 = vmatprep.subr.mxu0 %v7604_v2 }
 0x639   : > { %v6642_v44 = vadd.f32 %v6640_v33, %v6623_v23  ;;  %14687 = vmatpush3.msra.mxu0 %v7588_v63 }
 0x63a   : > { %14688 = vmatprep.subr.mxu0 %v7603_v38 }
 0x63b   : > { %14689 = vmatpush3.msra.mxu0 %v7587_v46 }
 0x63c   : > { %14690 = vmatprep.subr.mxu0 %v7602_v4 }
 0x63d   : > { %14691 = vmatpush3.msra.mxu0 %v7586_v54 }
 0x63e   : > { %14692 = vmatprep.subr.mxu0 %v7601_v25 }
 0x63f   : > { %14693 = vmatpush3.msra.mxu0 %v7585_v57 }
 0x640   : > { %14694 = vmatprep.subr.mxu0 %v7600_v53 }
 0x641   : > { %14695 = vmatpush3.msra.mxu0 %v7584_v35 }
 0x642   : > { %14696 = vmatprep.subr.mxu0 %v7599_v12 }
 0x643   : > { %14697 = vmatpush3.msra.mxu0 %v7583_v39 }
 0x644   : > { %v6074_v61 = vpop.f32.mrf.mxu0  ;;  %v6121_v20 = vpop.f32.mrf.mxu1  ;;  %14742 = vmatprep.subr.mxu0 %v7678_v59 }
 0x646   : > { %v6075_v40 = vpop.f32.mrf.mxu0  ;;  %v6122_v43 = vpop.f32.mrf.mxu1 }
 0x648   : > { %v6076_v30 = vpop.f32.mrf.mxu0  ;;  %v6123_v10 = vpop.f32.mrf.mxu1 }
 0x64a   : > { %v6077_v9 = vpop.f32.mrf.mxu0  ;;  %v6124_v42 = vpop.f32.mrf.mxu1 }
 0x64c   : > { %v6080_v60 = vpop.f32.mrf.mxu0  ;;  %v6127_v34 = vpop.f32.mrf.mxu1 }
 0x64d   : > { %v6644_v51 = vcombine.high %v6080_v60, %v6080_v60  ;;  %v6681_v11 = vcombine.high %v6127_v34, %v6127_v34 }
 0x64e   : > { %v6082_v45 = vpop.f32.mrf.mxu0  ;;  %v6129_v41 = vpop.f32.mrf.mxu1 }
 0x64f   : > { %v6651_v13 = vrot.slane %v6644_v51, %v18429_v1  ;;  %v6688_v27 = vrot.slane %v6681_v11, %v18429_v1  ;;  %v6662_v3 = vcombine.high %v6082_v45, %v6082_v45  ;;  %v6700_v5 = vcombine.high %v6129_v41, %v6129_v41 }
 0x650   : > { %v6084_v62 = vpop.f32.mrf.mxu0  ;;  %v6131_v31 = vpop.f32.mrf.mxu1 }
 0x651   : > { %v6658_v48 = vrot.slane %v6651_v13, %v18429_v1  ;;  %v6669_v19 = vrot.slane %v6662_v3, %v18429_v1  ;;  %v6707_v14 = vrot.slane %v6700_v5, %v18429_v1  ;;  %v6695_v36 = vrot.slane %v6688_v27, %v18429_v1 }
 0x652   : > { %v6085_v0 = vpop.f32.mrf.mxu0  ;;  %v6132_v28 = vpop.f32.mrf.mxu1 }
 0x653   : > { %v6660_v47 = vadd.f32 %v6658_v48, %v6642_v44  ;;  %v6670_v22 = vcombine.high %v6669_v19, %v6669_v19  ;;  %v6708_v16 = vcombine.high %v6707_v14, %v6707_v14  ;;  %v6696_v32 = vcombine.high %v6695_v36, %v6695_v36 }
 0x655   : > { %v6677_v18 = vrot.slane %v6670_v22, %v18429_v1  ;;  %v6715_v58 = vrot.slane %v6708_v16, %v18429_v1 }
 0x657   : > { %v6679_v26 = vadd.f32 %v6677_v18, %v6660_v47  ;;  %v6716_v8 = vcombine.high %v6715_v58, %v6715_v58 }
 0x659   : > { %v6698_v50 = vadd.f32 %v6696_v32, %v6679_v26 }
 0x65b   : > { %v6718_v49 = vadd.f32 %v6716_v8, %v6698_v50 }
 0x664   : > { %v6168_v52 = vpop.f32.mrf.mxu0  ;;  %v6215_v6 = vpop.f32.mrf.mxu1 }
 0x666   : > { %v6169_v24 = vpop.f32.mrf.mxu0  ;;  %v6216_v17 = vpop.f32.mrf.mxu1 }
 0x668   : > { %v6170_v21 = vpop.f32.mrf.mxu0  ;;  %v6217_v56 = vpop.f32.mrf.mxu1 }
 0x66a   : > { %v6171_v37 = vpop.f32.mrf.mxu0  ;;  %v6218_v29 = vpop.f32.mrf.mxu1 }
 0x66b   : > { %v7630_v29 = vld [vmem:[#allocation5 + $0x278] sm:$0xff] }
 0x66c   : > { %v6174_v15 = vpop.f32.mrf.mxu0  ;;  %v6221_v2 = vpop.f32.mrf.mxu1 }
 0x66d   : > { %v7645_v2 = vld [vmem:[#allocation5 + $0x2f0] sm:$0xff] }
 0x66e   : > { %v6175_v63 = vpop.f32.mrf.mxu0  ;;  %v6222_v23 = vpop.f32.mrf.mxu1 }
 0x66f   : > { %v7629_v63 = vld [vmem:[#allocation5 + $0x270] sm:$0xff] }
 0x670   : > { %v6176_v33 = vpop.f32.mrf.mxu0  ;;  %v6223_v38 = vpop.f32.mrf.mxu1 }
 0x671   : > { %v6719_v46 = vadd.f32 %v6718_v49, %v6176_v33  ;;  %v6745_v44 = vrot.slane %v6223_v38, %v18429_v1  ;;  %v7644_v33 = vld [vmem:[#allocation5 + $0x2e8] sm:$0xff] }
 0x672   : > { %v6178_v4 = vpop.f32.mrf.mxu0  ;;  %v6225_v54 = vpop.f32.mrf.mxu1  ;;  %v7628_v38 = vld [vmem:[#allocation5 + $0x268] sm:$0xff] }
 0x673   : > { %v6727_v25 = vrot.slane %v6178_v4, %v18429_v1  ;;  %v6763_v57 = vrot.slane %v6225_v54, %v18429_v1  ;;  %v6752_v53 = vrot.slane %v6745_v44, %v18429_v1  ;;  %v7662_v44 = vld [vmem:[#allocation5 + $0x378] sm:$0xff]  ;;  %v7643_v4 = vld [vmem:[#allocation5 + $0x2e0] sm:$0xff]  ;;  %v7677_v54 = vld [vmem:[#allocation5 + $0x3f0] sm:$0xff] }
 0x675   : > { %v6728_v35 = vcombine.high %v6727_v25, %v6727_v25  ;;  %v6764_v12 = vcombine.high %v6763_v57, %v6763_v57  ;;  %v6753_v61 = vcombine.high %v6752_v53, %v6752_v53  ;;  %v7627_v25 = vld [vmem:[#allocation5 + $0x260] sm:$0xff]  ;;  %v7661_v57 = vld [vmem:[#allocation5 + $0x370] sm:$0xff]  ;;  %v7642_v53 = vld [vmem:[#allocation5 + $0x2d8] sm:$0xff] }
 0x677   : > { %v6735_v39 = vrot.slane %v6728_v35, %v18429_v1  ;;  %v6771_v59 = vrot.slane %v6764_v12, %v18429_v1  ;;  %v7676_v35 = vld [vmem:[#allocation5 + $0x3e8] sm:$0xff]  ;;  %v7626_v12 = vld [vmem:[#allocation5 + $0x258] sm:$0xff] }
 0x679   : > { %v6737_v20 = vadd.f32 %v6735_v39, %v6719_v46  ;;  %v6772_v43 = vcombine.high %v6771_v59, %v6771_v59  ;;  %v7660_v39 = vld [vmem:[#allocation5 + $0x368] sm:$0xff]  ;;  %v7641_v59 = vld [vmem:[#allocation5 + $0x2d0] sm:$0xff] }
 0x67b   : > { %v6755_v40 = vadd.f32 %v6753_v61, %v6737_v20  ;;  %v7675_v61 = vld [vmem:[#allocation5 + $0x3e0] sm:$0xff]  ;;  %v7625_v20 = vld [vmem:[#allocation5 + $0x250] sm:$0xff] }
 0x67d   : > { %v6774_v30 = vadd.f32 %v6772_v43, %v6755_v40  ;;  %v7659_v40 = vld [vmem:[#allocation5 + $0x360] sm:$0xff]  ;;  %v7640_v43 = vld [vmem:[#allocation5 + $0x2c8] sm:$0xff] }
 0x684   : > { %v6262_v10 = vpop.f32.mrf.mxu0  ;;  %v6309_v9 = vpop.f32.mrf.mxu1 }
 0x685   : > { %v7624_v10 = vld [vmem:[#allocation5 + $0x248] sm:$0xff]  ;;  %v7658_v9 = vld [vmem:[#allocation5 + $0x358] sm:$0xff] }
 0x686   : > { %v6263_v42 = vpop.f32.mrf.mxu0  ;;  %v6310_v60 = vpop.f32.mrf.mxu1 }
 0x687   : > { %v7639_v42 = vld [vmem:[#allocation5 + $0x2c0] sm:$0xff]  ;;  %v7673_v60 = vld [vmem:[#allocation5 + $0x3d0] sm:$0xff] }
 0x688   : > { %v6264_v34 = vpop.f32.mrf.mxu0  ;;  %v6311_v51 = vpop.f32.mrf.mxu1 }
 0x689   : > { %v7623_v34 = vld [vmem:[#allocation5 + $0x240] sm:$0xff]  ;;  %v7657_v51 = vld [vmem:[#allocation5 + $0x350] sm:$0xff] }
 0x68a   : > { %v6265_v11 = vpop.f32.mrf.mxu0  ;;  %v6312_v45 = vpop.f32.mrf.mxu1 }
 0x68b   : > { %v7638_v11 = vld [vmem:[#allocation5 + $0x2b8] sm:$0xff]  ;;  %v7672_v45 = vld [vmem:[#allocation5 + $0x3c8] sm:$0xff] }
 0x68c   : > { %v6268_v41 = vpop.f32.mrf.mxu0  ;;  %v6315_v13 = vpop.f32.mrf.mxu1 }
 0x68d   : > { %v7622_v41 = vld [vmem:[#allocation5 + $0x238] sm:$0xff]  ;;  %v7656_v13 = vld [vmem:[#allocation5 + $0x348] sm:$0xff] }
 0x68e   : > { %v6269_v27 = vpop.f32.mrf.mxu0  ;;  %v6316_v3 = vpop.f32.mrf.mxu1 }
 0x68f   : > { %v7637_v27 = vld [vmem:[#allocation5 + $0x2b0] sm:$0xff]  ;;  %v7671_v3 = vld [vmem:[#allocation5 + $0x3c0] sm:$0xff] }
 0x690   : > { %v6270_v5 = vpop.f32.mrf.mxu0  ;;  %v6317_v62 = vpop.f32.mrf.mxu1 }
 0x691   : > { %v6776_v31 = vcombine.high %v6270_v5, %v6270_v5  ;;  %v6813_v48 = vcombine.high %v6317_v62, %v6317_v62  ;;  %v7621_v5 = vld [vmem:[#allocation5 + $0x230] sm:$0xff]  ;;  %v7655_v62 = vld [vmem:[#allocation5 + $0x340] sm:$0xff] }
 0x692   : > { %v6272_v19 = vpop.f32.mrf.mxu0  ;;  %v6319_v14 = vpop.f32.mrf.mxu1 }
 0x693   : > { %v6783_v0 = vrot.slane %v6776_v31, %v18429_v1  ;;  %v6820_v28 = vrot.slane %v6813_v48, %v18429_v1  ;;  %v6794_v47 = vcombine.high %v6272_v19, %v6272_v19  ;;  %v6832_v36 = vcombine.high %v6319_v14, %v6319_v14  ;;  %v7636_v31 = vld [vmem:[#allocation5 + $0x2a8] sm:$0xff]  ;;  %v7670_v48 = vld [vmem:[#allocation5 + $0x3b8] sm:$0xff] }
 0x694   : > { %v7620_v19 = vld [vmem:[#allocation5 + $0x228] sm:$0xff]  ;;  %v7654_v14 = vld [vmem:[#allocation5 + $0x338] sm:$0xff] }
 0x695   : > { %v6790_v22 = vrot.slane %v6783_v0, %v18429_v1  ;;  %v6801_v16 = vrot.slane %v6794_v47, %v18429_v1  ;;  %v6839_v18 = vrot.slane %v6832_v36, %v18429_v1  ;;  %v6827_v32 = vrot.slane %v6820_v28, %v18429_v1  ;;  %v7635_v0 = vld [vmem:[#allocation5 + $0x2a0] sm:$0xff]  ;;  %v7669_v28 = vld [vmem:[#allocation5 + $0x3b0] sm:$0xff] }
 0x696   : > { %v7619_v47 = vld [vmem:[#allocation5 + $0x220] sm:$0xff]  ;;  %v7653_v36 = vld [vmem:[#allocation5 + $0x330] sm:$0xff] }
 0x697   : > { %v6792_v58 = vadd.f32 %v6790_v22, %v6774_v30  ;;  %v6802_v26 = vcombine.high %v6801_v16, %v6801_v16  ;;  %v6840_v50 = vcombine.high %v6839_v18, %v6839_v18  ;;  %v6828_v52 = vcombine.high %v6827_v32, %v6827_v32  ;;  %v7674_v30 = vld [vmem:[#allocation5 + $0x3d8] sm:$0xff]  ;;  %v7668_v16 = vld [vmem:[#allocation5 + $0x3a8] sm:$0xff]  ;;  %v7633_v32 = vld [vmem:[#allocation5 + $0x290] sm:$0xff] }
 0x698   : > { %v7634_v22 = vld [vmem:[#allocation5 + $0x298] sm:$0xff] }
 0x699   : > { %v6809_v8 = vrot.slane %v6802_v26, %v18429_v1  ;;  %v6847_v49 = vrot.slane %v6840_v50, %v18429_v1  ;;  %v7618_v18 = vld [vmem:[#allocation5 + $0x218] sm:$0xff]  ;;  %v7667_v26 = vld [vmem:[#allocation5 + $0x3a0] sm:$0xff]  ;;  %v7617_v50 = vld [vmem:[#allocation5 + $0x210] sm:$0xff] }
 0x69b   : > { %v6811_v6 = vadd.f32 %v6809_v8, %v6792_v58  ;;  %v6848_v17 = vcombine.high %v6847_v49, %v6847_v49  ;;  %v7652_v58 = vld [vmem:[#allocation5 + $0x328] sm:$0xff]  ;;  %v7651_v8 = vld [vmem:[#allocation5 + $0x320] sm:$0xff] }
 0x69c   : > { %v7632_v49 = vld [vmem:[#allocation5 + $0x288] sm:$0xff] }
 0x69d   : > { %v6830_v24 = vadd.f32 %v6828_v52, %v6811_v6  ;;  %v7666_v6 = vld [vmem:[#allocation5 + $0x398] sm:$0xff] }
 0x69f   : > { %v18627_v21 = vadd.f32 %v6848_v17, %v6830_v24  ;;  %v7616_v24 = vld [vmem:[#allocation5 + $0x208] sm:$0xff]  ;;  %v7650_v17 = vld [vmem:[#allocation5 + $0x318] sm:$0xff] }
 0x6a4   : > { %v18629_v56 = vpop.f32.mrf.mxu0 }
 0x6a6   : > { %v18631_v37 = vpop.f32.mrf.mxu0  ;;  %v18633_v15 = vpop.f32.mrf.mxu1 }
 0x6a7   : > { %7775 = vmatprep.mubr.f32.mxu1 %v18631_v37 }
 0x6a8   : > { %7776 = vmatmul.mubr.f32.vlgmr.msra.gmra.mxu1 %v18629_v56  ;;  %v18637_v1 = vpop.f32.mrf.mxu0  ;;  %v18639_v23 = vpop.f32.mrf.mxu1 }
 0x6a9   : > { %14705 = vmatpush3.msra.mxu1 %v7630_v29  ;;  %7850 = vmatprep.mubr.f32.mxu0 %v18639_v23  ;;  %v7631_v29 = vld [vmem:[#allocation5 + $0x280] sm:$0xff] }
 0x6aa   : > { %14706 = vmatprep.subr.mxu1 %v7645_v2  ;;  %v18642_v46 = vpop.f32.mrf.mxu0  ;;  %7851 = vmatmul.mubr.f32.vlgmr.msra.gmra.mxu0 %v18633_v15  ;;  %v18647_v52 = vpop.f32.mrf.mxu1  ;;  %v7665_v2 = vld [vmem:[#allocation5 + $0x390] sm:$0xff] }
 0x6ab   : > { %14707 = vmatpush3.msra.mxu1 %v7629_v63  ;;  %7780 = vmatprep.mubr.f32.mxu1 %v18642_v46 }
 0x6ac   : > { %14708 = vmatprep.subr.mxu1 %v7644_v33  ;;  %7781 = vmatmul.mubr.f32.gmra.mxu1 %v18637_v1  ;;  %v7615_v33 = vld [vmem:[#allocation5 + $0x200] sm:$0xff] }
 0x6ad   : > { %14709 = vmatpush3.msra.mxu1 %v7628_v38  ;;  %14743 = vmatpush3.msra.mxu0 %v7662_v44  ;;  %v7710_v38 = vld [vmem:[#allocation5 + $0x4f8] sm:$0xff]  ;;  %v18651_v44 = vpop.f32.mrf.mxu1 }
 0x6ae   : > { %14710 = vmatprep.subr.mxu1 %v7643_v4  ;;  %14744 = vmatprep.subr.mxu0 %v7677_v54  ;;  %v7694_v54 = vld [vmem:[#allocation5 + $0x478] sm:$0xff] }
 0x6af   : > { %14711 = vmatpush3.msra.mxu1 %v7627_v25  ;;  %14745 = vmatpush3.msra.mxu0 %v7661_v57  ;;  %v7709_v25 = vld [vmem:[#allocation5 + $0x4f0] sm:$0xff] }
 0x6b0   : > { %14712 = vmatprep.subr.mxu1 %v7642_v53  ;;  %14746 = vmatprep.subr.mxu0 %v7676_v35  ;;  %v7649_v57 = vld [vmem:[#allocation5 + $0x310] sm:$0xff] }
 0x6b1   : > { %14713 = vmatpush3.msra.mxu1 %v7626_v12  ;;  %14747 = vmatpush3.msra.mxu0 %v7660_v39  ;;  %v7693_v35 = vld [vmem:[#allocation5 + $0x470] sm:$0xff]  ;;  %v7708_v39 = vld [vmem:[#allocation5 + $0x4e8] sm:$0xff] }
 0x6b2   : > { %14714 = vmatprep.subr.mxu1 %v7641_v59  ;;  %14748 = vmatprep.subr.mxu0 %v7675_v61  ;;  %v7664_v59 = vld [vmem:[#allocation5 + $0x388] sm:$0xff] }
 0x6b3   : > { %14715 = vmatpush3.msra.mxu1 %v7625_v20  ;;  %14749 = vmatpush3.msra.mxu0 %v7659_v40  ;;  %v7692_v61 = vld [vmem:[#allocation5 + $0x468] sm:$0xff]  ;;  %v7707_v40 = vld [vmem:[#allocation5 + $0x4e0] sm:$0xff] }
 0x6b4   : > { %14716 = vmatprep.subr.mxu1 %v7640_v43  ;;  %14750 = vmatprep.subr.mxu0 %v7674_v30  ;;  %v7648_v43 = vld [vmem:[#allocation5 + $0x308] sm:$0xff] }
 0x6b5   : > { %14717 = vmatpush3.msra.mxu1 %v7624_v10  ;;  %14751 = vmatpush3.msra.mxu0 %v7658_v9  ;;  %v7691_v10 = vld [vmem:[#allocation5 + $0x460] sm:$0xff] }
 0x6b6   : > { %14718 = vmatprep.subr.mxu1 %v7639_v42  ;;  %14752 = vmatprep.subr.mxu0 %v7673_v60  ;;  %v7663_v9 = vld [vmem:[#allocation5 + $0x380] sm:$0xff]  ;;  %v7706_v42 = vld [vmem:[#allocation5 + $0x4d8] sm:$0xff] }
 0x6b7   : > { %14719 = vmatpush3.msra.mxu1 %v7623_v34  ;;  %14753 = vmatpush3.msra.mxu0 %v7657_v51  ;;  %v7690_v34 = vld [vmem:[#allocation5 + $0x458] sm:$0xff]  ;;  %v7647_v51 = vld [vmem:[#allocation5 + $0x300] sm:$0xff] }
 0x6b8   : > { %14720 = vmatprep.subr.mxu1 %v7638_v11  ;;  %14754 = vmatprep.subr.mxu0 %v7672_v45  ;;  %v7705_v11 = vld [vmem:[#allocation5 + $0x4d0] sm:$0xff] }
 0x6b9   : > { %14721 = vmatpush3.msra.mxu1 %v7622_v41  ;;  %14755 = vmatpush3.msra.mxu0 %v7656_v13  ;;  %v7689_v45 = vld [vmem:[#allocation5 + $0x450] sm:$0xff]  ;;  %v7704_v41 = vld [vmem:[#allocation5 + $0x4c8] sm:$0xff] }
 0x6ba   : > { %14722 = vmatprep.subr.mxu1 %v7637_v27  ;;  %14756 = vmatprep.subr.mxu0 %v7671_v3  ;;  %v7688_v27 = vld [vmem:[#allocation5 + $0x448] sm:$0xff]  ;;  %v7703_v3 = vld [vmem:[#allocation5 + $0x4c0] sm:$0xff] }
 0x6bb   : > { %14723 = vmatpush3.msra.mxu1 %v7621_v5  ;;  %14757 = vmatpush3.msra.mxu0 %v7655_v62  ;;  %v7687_v5 = vld [vmem:[#allocation5 + $0x440] sm:$0xff]  ;;  %v7702_v62 = vld [vmem:[#allocation5 + $0x4b8] sm:$0xff] }
 0x6bc   : > { %14724 = vmatprep.subr.mxu1 %v7636_v31  ;;  %14758 = vmatprep.subr.mxu0 %v7670_v48  ;;  %v7686_v31 = vld [vmem:[#allocation5 + $0x438] sm:$0xff]  ;;  %v7701_v48 = vld [vmem:[#allocation5 + $0x4b0] sm:$0xff] }
 0x6bd   : > { %14725 = vmatpush3.msra.mxu1 %v7620_v19  ;;  %14759 = vmatpush3.msra.mxu0 %v7654_v14  ;;  %v7685_v19 = vld [vmem:[#allocation5 + $0x430] sm:$0xff]  ;;  %v7700_v14 = vld [vmem:[#allocation5 + $0x4a8] sm:$0xff] }
 0x6be   : > { %14726 = vmatprep.subr.mxu1 %v7635_v0  ;;  %14760 = vmatprep.subr.mxu0 %v7669_v28  ;;  %v7684_v0 = vld [vmem:[#allocation5 + $0x428] sm:$0xff]  ;;  %v7699_v28 = vld [vmem:[#allocation5 + $0x4a0] sm:$0xff] }
 0x6bf   : > { %14727 = vmatpush3.msra.mxu1 %v7619_v47  ;;  %14761 = vmatpush3.msra.mxu0 %v7653_v36  ;;  %v7698_v47 = vld [vmem:[#allocation5 + $0x498] sm:$0xff] }
 0x6c0   : > { %14728 = vmatprep.subr.mxu1 %v7634_v22  ;;  %14762 = vmatprep.subr.mxu0 %v7668_v16  ;;  %v7682_v36 = vld [vmem:[#allocation5 + $0x418] sm:$0xff]  ;;  %v7697_v22 = vld [vmem:[#allocation5 + $0x490] sm:$0xff] }
 0x6c1   : > { %14729 = vmatpush3.msra.mxu1 %v7618_v18  ;;  %14763 = vmatpush3.msra.mxu0 %v7652_v58  ;;  %v7681_v16 = vld [vmem:[#allocation5 + $0x410] sm:$0xff]  ;;  %v7696_v18 = vld [vmem:[#allocation5 + $0x488] sm:$0xff]  ;;  %v7695_v58 = vld [vmem:[#allocation5 + $0x480] sm:$0xff] }
 0x6c2   : > { %14730 = vmatprep.subr.mxu1 %v7633_v32  ;;  %14764 = vmatprep.subr.mxu0 %v7667_v26  ;;  %v7679_v26 = vld [vmem:[#allocation5 + $0x400] sm:$0xff] }
 0x6c3   : > { %14731 = vmatpush3.msra.mxu1 %v7617_v50  ;;  %14765 = vmatpush3.msra.mxu0 %v7651_v8 }
 0x6c4   : > { %14732 = vmatprep.subr.mxu1 %v7632_v49  ;;  %v18649_v63 = vpop.f32.mrf.mxu0  ;;  %14766 = vmatprep.subr.mxu0 %v7666_v6 }
 0x6c5   : > { %14733 = vmatpush3.msra.mxu1 %v7616_v24  ;;  %14767 = vmatpush3.msra.mxu0 %v7650_v17 }
 0x6c6   : > { %14734 = vmatprep.subr.mxu1 %v7631_v29  ;;  %v18653_v4 = vpop.f32.mrf.mxu0  ;;  %14768 = vmatprep.subr.mxu0 %v7665_v2  ;;  %v18656_v53 = vpop.f32.mrf.mxu1 }
 0x6c7   : > { %14735 = vmatpush3.msra.mxu1 %v7615_v33  ;;  %7925 = vmatprep.mubr.f32.mxu1 %v18653_v4 }
 0x6c8   : > { %14780 = vmatprep.subr.mxu1 %v7710_v38  ;;  %7926 = vmatmul.mubr.f32.vlgmr.msra.gmra.mxu1 %v18649_v63  ;;  %v18659_v12 = vpop.f32.mrf.mxu0  ;;  %v18665_v30 = vpop.f32.mrf.mxu1 }
 0x6c9   : > { %14781 = vmatpush3.msra.mxu1 %v7694_v54  ;;  %7855 = vmatprep.mubr.f32.mxu0 %v18651_v44 }
 0x6ca   : > { %14782 = vmatprep.subr.mxu1 %v7709_v25  ;;  %14769 = vmatpush3.msra.mxu0 %v7649_v57  ;;  %v18662_v20 = vpop.f32.mrf.mxu0  ;;  %v18668_v60 = vpop.f32.mrf.mxu1 }
 0x6cb   : > { %14783 = vmatpush3.msra.mxu1 %v7693_v35  ;;  %7856 = vmatmul.mubr.f32.gmra.mxu0 %v18647_v52 }
 0x6cc   : > { %14784 = vmatprep.subr.mxu1 %v7708_v39  ;;  %14770 = vmatprep.subr.mxu0 %v7664_v59  ;;  %v7505_v13 = vpop.f32.mrf.mxu1 }
 0x6cd   : > { %14785 = vmatpush3.msra.mxu1 %v7692_v61  ;;  %7930 = vmatprep.mubr.f32.mxu1 %v18662_v20 }
 0x6ce   : > { %14786 = vmatprep.subr.mxu1 %v7707_v40  ;;  %14771 = vmatpush3.msra.mxu0 %v7648_v43 }
 0x6cf   : > { %14787 = vmatpush3.msra.mxu1 %v7691_v10  ;;  %14772 = vmatprep.subr.mxu0 %v7663_v9 }
 0x6d0   : > { %14788 = vmatprep.subr.mxu1 %v7706_v42  ;;  %7931 = vmatmul.mubr.f32.gmra.mxu1 %v18659_v12 }
 0x6d1   : > { %14789 = vmatpush3.msra.mxu1 %v7690_v34  ;;  %14773 = vmatpush3.msra.mxu0 %v7647_v51 }
 0x6d2   : > { %14790 = vmatprep.subr.mxu1 %v7705_v11  ;;  %8000 = vmatprep.mubr.f32.mxu0 %v18665_v30 }
 0x6d3   : > { %14791 = vmatpush3.msra.mxu1 %v7689_v45  ;;  %8001 = vmatmul.mubr.f32.vlgmr.msra.gmra.mxu0 %v18656_v53 }
 0x6d4   : > { %14792 = vmatprep.subr.mxu1 %v7704_v41  ;;  %8005 = vmatprep.mubr.f32.mxu0 %v7505_v13 }
 0x6d5   : > { %14793 = vmatpush3.msra.mxu1 %v7688_v27  ;;  %15174 = vmatprep.subr.mxu0 %v18637_v1 }
 0x6d6   : > { %14794 = vmatprep.subr.mxu1 %v7703_v3  ;;  %15175 = vmatpush3.msra.mxu0 %v18637_v1  ;;  %v7683_v1 = vld [vmem:[#allocation5 + $0x420] sm:$0xff] }
 0x6d7   : > { %14795 = vmatpush3.msra.mxu1 %v7687_v5  ;;  %8006 = vmatmul.mubr.f32.gmra.mxu0 %v18668_v60 }
 0x6d8   : > { %14796 = vmatprep.subr.mxu1 %v7702_v62  ;;  %15176 = vmatprep.subr.mxu0 %v18629_v56 }
 0x6d9   : > { %14797 = vmatpush3.msra.mxu1 %v7686_v31  ;;  %15177 = vmatpush3.msra.mxu0 %v18629_v56  ;;  %v7680_v56 = vld [vmem:[#allocation5 + $0x408] sm:$0xff] }
 0x6da   : > { %14798 = vmatprep.subr.mxu1 %v7701_v48  ;;  %15181 = vmatprep.subr.mxu0 %v18642_v46 }
 0x6db   : > { %14799 = vmatpush3.msra.mxu1 %v7685_v19 }
 0x6dc   : > { %14800 = vmatprep.subr.mxu1 %v7700_v14 }
 0x6dd   : > { %14801 = vmatpush3.msra.mxu1 %v7684_v0 }
 0x6de   : > { %14802 = vmatprep.subr.mxu1 %v7699_v28 }
 0x6df   : > { %14803 = vmatpush3.msra.mxu1 %v7683_v1 }
 0x6e0   : > { %14804 = vmatprep.subr.mxu1 %v7698_v47 }
 0x6e1   : > { %14805 = vmatpush3.msra.mxu1 %v7682_v36  ;;  %v16204_v36 = vmov 1  }
 0x6e2   : > { %14806 = vmatprep.subr.mxu1 %v7697_v22  ;;  %v16205_v22 = vmov 2  }
 0x6e3   : > { %14807 = vmatpush3.msra.mxu1 %v7681_v16  ;;  %v16206_v16 = vmov 3  }
 0x6e4   : > { %v18679_v32 = vpop.f32.mrf.mxu0  ;;  %14808 = vmatprep.subr.mxu1 %v7696_v18  ;;  %v16207_v18 = vmov 4  }
 0x6e5   : > { %14809 = vmatpush3.msra.mxu1 %v7680_v56  ;;  %v16208_v56 = vmov 5  }
 0x6e6   : > { %v18681_v50 = vpop.f32.mrf.mxu0  ;;  %14810 = vmatprep.subr.mxu1 %v7695_v58  ;;  %v16209_v58 = vmov 6  }
 0x6e7   : > { %14811 = vmatpush3.msra.mxu1 %v7679_v26  ;;  %8075 = vmatprep.mubr.f32.mxu1 %v18681_v50  ;;  %v16210_v26 = vmov 9  }
 0x6e8   : > { %v18684_v8 = vpop.f32.mrf.mxu0  ;;  %8076 = vmatmul.mubr.f32.vlgmr.msra.gmra.mxu1 %v18679_v32  ;;  %15223 = vmatprep.subr.mxu1 %v7505_v13 }
 0x6e9   : > { %15224 = vmatpush3.msra.mxu1 %v7505_v13 }
 0x6ea   : > { %v18687_v49 = vpop.f32.mrf.mxu0  ;;  %15225 = vmatprep.subr.mxu1 %v18665_v30 }
 0x6eb   : > { %8080 = vmatprep.mubr.f32.mxu1 %v18687_v49  ;;  %15226 = vmatpush3.msra.mxu1 %v18665_v30 }
 0x6ec   : > { %8081 = vmatmul.mubr.f32.gmra.mxu1 %v18684_v8  ;;  %15237 = vmatprep.subr.mxu1 %v18687_v49 }
 0x768   : > { %v14660_v6 = vpop.f32.mrf.mxu1 }
 0x76a   : > { %v14661_v24 = vpop.f32.mrf.mxu1  ;;  %v14698_v17 = vpop.f32.mrf.mxu0 }
 0x76b   : > { %v14662_v61 = vadd.f32 %v14661_v24, %v14660_v6  ;;  %v16211_v6 = vmov 8   ;;  %v16212_v24 = vmov 7  }
 0x76c   : > { %v14663_v29 = vpop.f32.mrf.mxu1  ;;  %v14699_v2 = vpop.f32.mrf.mxu0 }
 0x76d   : > { %v14700_v40 = vadd.f32 %v14699_v2, %v14698_v17 }
 0x76e   : > { %v14664_v33 = vpop.f32.mrf.mxu1 }
 0x76f   : > { %v14665_v9 = vadd.f32 %v14664_v33, %v14663_v29  ;;  %v7853_v42 = vadd.f32 %v14700_v40, %v14662_v61 }
 0x788   : > { %v14736_v54 = vpop.f32.mrf.mxu1 }
 0x78a   : > { %v14737_v57 = vpop.f32.mrf.mxu1 }
 0x78b   : > { %v14701_v38 = vpop.f32.mrf.mxu0  ;;  %v14738_v43 = vadd.f32 %v14737_v57, %v14736_v54 }
 0x78d   : > { %v14702_v25 = vpop.f32.mrf.mxu0  ;;  %v7928_v51 = vadd.f32 %v14738_v43, %v7853_v42 }
 0x78e   : > { %v14703_v34 = vadd.f32 %v14702_v25, %v14701_v38 }
 0x790   : > { %v14739_v39 = vpop.f32.mrf.mxu1  ;;  %v7858_v27 = vadd.f32 %v14703_v34, %v14665_v9 }
 0x792   : > { %v14740_v30 = vpop.f32.mrf.mxu1 }
 0x793   : > { %v14774_v35 = vpop.f32.mrf.mxu0  ;;  %v14741_v11 = vadd.f32 %v14740_v30, %v14739_v39 }
 0x795   : > { %v14775_v59 = vpop.f32.mrf.mxu0  ;;  %v7933_v5 = vadd.f32 %v14741_v11, %v7858_v27  ;;  %v18710_v11 = vsub.s32 0, %v18414_v7  ;;  %v18722_v27 = vsub.s32 3, %v18414_v7 }
 0x796   : > { %v14776_v45 = vadd.f32 %v14775_v59, %v14774_v35 }
 0x797   : > { %v14777_v10 = vpop.f32.mrf.mxu0 }
 0x798   : > { %v8003_v62 = vadd.f32 %v14776_v45, %v7928_v51  ;;  %v18713_v45 = vsub.s32 1, %v18414_v7 }
 0x799   : > { %v14778_v13 = vpop.f32.mrf.mxu0 }
 0x79a   : > { %v14779_v48 = vadd.f32 %v14778_v13, %v14777_v10  ;;  %v18719_v13 = vld [vmem:[%s18707_s3 + $0x8] sm:$0xff] }
 0x79b   : > { %vm8141_vm4 = vcmp.gt.f32.partialorder %v18719_v13, 0.0 }
 0x79c   : > { %v8008_v28 = vadd.f32 %v14779_v48, %v7933_v5  ;;  %v18727_v5 = vld [vmem:[%s18707_s3] sm:$0xff] }
 0x79d   : > { %vm8140_vm10 = vcmp.gt.f32.partialorder %v18727_v5, 0.0 }
 0x7a8   : > { %v14812_v41 = vpop.f32.mrf.mxu1 }
 0x7aa   : > { %v14813_v3 = vpop.f32.mrf.mxu1 }
 0x7ab   : > { %v14814_v31 = vadd.f32 %v14813_v3, %v14812_v41  ;;  %v18716_v41 = vsub.s32 2, %v18414_v7 }
 0x7ac   : > { %v14815_v19 = vpop.f32.mrf.mxu1 }
 0x7ad   : > { %v8078_v14 = vadd.f32 %v14814_v31, %v8003_v62 }
 0x7ae   : > { %v14816_v0 = vpop.f32.mrf.mxu1 }
 0x7af   : > { %v14817_v1 = vadd.f32 %v14816_v0, %v14815_v19  ;;  %8120 = vperm.xlu0 %15428, %v8078_v14   ;;  %v18736_v19 = vsub.s32 4, %v18414_v7 }
 0x7b1   : > { %v8083_v47 = vadd.f32 %v14817_v1, %v8008_v28 }
 0x7b3   : > { %8125 = vperm.xlu1 %15429, %v8083_v47   ;;  %15430 = vset.pattern.permute.xlu0 %v16204_v36 }
 0x7b4   : > { %8253 = vperm.xlu0 %15430, %v8078_v14  }
 0x7b7   : > { %15435 = vset.pattern.permute.xlu1 %v16204_v36 }
 0x7b8   : > { %8257 = vperm.xlu1 %15435, %v8083_v47   ;;  %15431 = vset.pattern.permute.xlu0 %v16205_v22 }
 0x7b9   : > { %8382 = vperm.xlu0 %15431, %v8078_v14  }
 0x7bd   : > { %15432 = vset.pattern.permute.xlu0 %v16206_v16 }
 0x7be   : > { %8511 = vperm.xlu0 %15432, %v8078_v14  }
 0x7c2   : > { %15433 = vset.pattern.permute.xlu0 %v16207_v18 }
 0x7c3   : > { %8640 = vperm.xlu0 %15433, %v8078_v14  }
 0x7c7   : > { %15434 = vset.pattern.permute.xlu0 %v16208_v56 }
 0x7c8   : > { %8769 = vperm.xlu0 %15434, %v8078_v14  }
 0x7cc   : > { %15436 = vset.pattern.permute.xlu0 %v16205_v22  ;;  %v18745_v22 = vsub.s32 5, %v18414_v7 }
 0x7cd   : > { %8386 = vperm.xlu0 %15436, %v8083_v47  }
 0x7d1   : > { %15437 = vset.pattern.permute.xlu0 %v16206_v16 }
 0x7d2   : > { %8515 = vperm.xlu0 %15437, %v8083_v47  }
 0x7d6   : > { %15438 = vset.pattern.permute.xlu0 %v16207_v18 }
 0x7d7   : > { %8644 = vperm.xlu0 %15438, %v8083_v47  }
 0x7db   : > { %15440 = vset.pattern.permute.xlu0 %v16209_v58 }
 0x7dc   : > { %8898 = vperm.xlu0 %15440, %v8078_v14  }
 0x7e0   : > { %15441 = vset.pattern.permute.xlu0 %v16210_v26 }
 0x7e1   : > { %8086 = vxpose.xlu1.b32.start [1/2] (short) (narrow) %v8078_v14, 80  ;;  %9285 = vperm.xlu0 %15441, %v8078_v14  }
 0x7e5   : > { %8087 = vxpose.xlu1.b32.end [2/2] (short) (narrow) %v8083_v47, 80  ;;  %15442 = vset.pattern.permute.xlu0 %v16211_v6 }
 0x7e6   : > { %9156 = vperm.xlu0 %15442, %v8078_v14  }
 0x7ea   : > { %15443 = vset.pattern.permute.xlu0 %v16212_v24 }
 0x7eb   : > { %9027 = vperm.xlu0 %15443, %v8078_v14  }
 0x7ef   : > { %9031 = vperm.xlu0 %15443, %v8083_v47  }
 0x7f3   : > { %15444 = vset.pattern.permute.xlu0 %v16209_v58 }
 0x7f4   : > { %8902 = vperm.xlu0 %15444, %v8083_v47  }
 0x7f8   : > { %15445 = vset.pattern.permute.xlu0 %v16210_v26 }
 0x7f9   : > { %9289 = vperm.xlu0 %15445, %v8083_v47  }
 0x7fd   : > { %15446 = vset.pattern.permute.xlu0 %v16211_v6 }
 0x7fe   : > { %9160 = vperm.xlu0 %15446, %v8083_v47  }
 0x802   : > { %15447 = vset.pattern.permute.xlu0 %v19608_v55 }
 0x803   : > { %15439 = vset.pattern.permute.xlu1 %v16208_v56  ;;  %v18750_v56 = vsub.s32 7, %v18414_v7 }
 0x823   : > { %8773 = vperm.xlu1 %15439, %v8083_v47  }
 0x827   : > { %15448 = vset.pattern.permute.xlu1 %v19608_v55 }
 0x82a   : > { %v8121_v17 = vpop.permute.xlu0 %8120 }
 0x82e   : > { %v8126_v33 = vpop.permute.xlu1 %8125 }
 0x82f   : > { %v8254_v29 = vpop.permute.xlu0 %8253 }
 0x833   : > { %v8258_v54 = vpop.permute.xlu1 %8257 }
 0x834   : > { %v8383_v2 = vpop.permute.xlu0 %8382 }
 0x839   : > { %v8512_v38 = vpop.permute.xlu0 %8511 }
 0x83e   : > { %v8641_v25 = vpop.permute.xlu0 %8640 }
 0x843   : > { %v18696_v35 = vpop.permute.xlu0 %8769 }
 0x848   : > { %v8387_v61 = vpop.permute.xlu0 %8386 }
 0x84d   : > { %v8516_v43 = vpop.permute.xlu0 %8515 }
 0x852   : > { %v18698_v9 = vpop.permute.xlu0 %8644 }
 0x857   : > { %v18700_v34 = vpop.permute.xlu0 %8898 }
 0x85c   : > { %v18729_v62 = vpop.permute.xlu0 %9285 }
 0x85d   : > { %v8102_v57 = vpop.trf.xlu1 }
 0x861   : > { %v8103_v39 = vpop.trf.xlu1  ;;  %v18752_v6 = vpop.permute.xlu0 %9156 }
 0x865   : > { %v8104_v59 = vpop.trf.xlu1 }
 0x869   : > { %v8105_v40 = vpop.trf.xlu1 }
 0x86d   : > { %v8106_v30 = vpop.trf.xlu1 }
 0x871   : > { %v8107_v10 = vpop.trf.xlu1 }
 0x875   : > { %v8108_v42 = vpop.trf.xlu1 }
 0x879   : > { %v8109_v51 = vpop.trf.xlu1 }
 0x87d   : > { %v18724_v3 = vpop.trf.xlu1 }
 0x87e   : > { %v8131_v31 = vrot.slane %v18724_v3, %v18710_v11  ;;  %v8263_v48 = vrot.slane %v18724_v3, %v18713_v45  ;;  %v8392_v14 = vrot.slane %v18724_v3, %v18716_v41  ;;  %v8521_v47 = vrot.slane %v18724_v3, %v18722_v27 }
 0x87f   : > { %v8650_v18 = vrot.slane %v18724_v3, %v18736_v19 }
 0x880   : > { %v8133_v0 = vadd.f32 %v8131_v31, %v8126_v33  ;;  %v8132_v28 = vadd.f32 %v8131_v31, %v8121_v17  ;;  %v8265_v1 = vadd.f32 %v8263_v48, %v8258_v54  ;;  %v8264_v36 = vadd.f32 %v8263_v48, %v8254_v29 }
 0x881   : > { %v8393_v24 = vadd.f32 %v8392_v14, %v8383_v2  ;;  %v8394_v17 = vadd.f32 %v8392_v14, %v8387_v61  ;;  %v8522_v29 = vadd.f32 %v8521_v47, %v8512_v38  ;;  %v8523_v33 = vadd.f32 %v8521_v47, %v8516_v43  ;;  %v9028_v14 = vpop.permute.xlu0 %9027 }
 0x882   : > { %vm8135_vm11 = vcmp.ge.f32.partialorder %v8133_v0, 0.0  ;;  %v8137_v16 = vmul.f32 0.2, %v8133_v0  ;;  %vm8134_vm12 = vcmp.ge.f32.partialorder %v8132_v28, 0.0  ;;  %v8136_v58 = vmul.f32 0.2, %v8132_v28 }
 0x883   : > { %vm8267_vm13 = vcmp.ge.f32.partialorder %v8265_v1, 0.0  ;;  %v8269_v26 = vmul.f32 0.2, %v8265_v1  ;;  %vm8266_vm14 = vcmp.ge.f32.partialorder %v8264_v36, 0.0  ;;  %v18768_v2 = vrot.slane %v18724_v3, %v18745_v22 }
 0x884   : > { %v8139_v54 = vsel %vm8135_vm11, %v8133_v0, %v8137_v16  ;;  %v8138_v57 = vsel %vm8134_vm12, %v8132_v28, %v8136_v58  ;;  %v8268_v43 = vmul.f32 0.2, %v8264_v36  ;;  %v8651_v10 = vadd.f32 %v8650_v18, %v8641_v25 }
 0x885   : > { %v8271_v39 = vsel %vm8267_vm13, %v8265_v1, %v8269_v26  ;;  %v18756_v59 = vsel %vm8141_vm4, %v8139_v54, -1e+30  ;;  %v18760_v40 = vsel %vm8140_vm10, %v8138_v57, -1e+30  ;;  %vm8395_vm15 = vcmp.ge.f32.partialorder %v8393_v24, 0.0 }
 0x886   : > { %v18764_v30 = vsel %vm8141_vm4, %v8271_v39, -1e+30  ;;  %v8148_v38 = vsel %vm8144_vm9, %v18756_v59, -inf  ;;  %v8145_v61 = vsel %vm8144_vm9, %v18760_v40, -inf  ;;  %v8397_v42 = vmul.f32 0.2, %v8393_v24 }
 0x887   : > { %8149 = vmax.xlane.f32.xlu0 %v8148_v38  ;;  %8146 = vmax.xlane.f32.xlu1 %v8145_v61  ;;  %vm8396_vm0 = vcmp.ge.f32.partialorder %v8394_v17, 0.0  ;;  %v8398_v51 = vmul.f32 0.2, %v8394_v17  ;;  %v8270_v31 = vsel %vm8266_vm14, %v8264_v36, %v8268_v43  ;;  %vm8524_vm1 = vcmp.ge.f32.partialorder %v8522_v29, 0.0 }
 0x888   : > { %v8526_v48 = vmul.f32 0.2, %v8522_v29  ;;  %vm8525_vm2 = vcmp.ge.f32.partialorder %v8523_v33, 0.0  ;;  %v18776_v0 = vsel %vm8140_vm10, %v8270_v31, -1e+30  ;;  %v8399_v28 = vsel %vm8395_vm15, %v8393_v24, %v8397_v42  ;;  %v8111_v24 = vpop.trf.xlu1 }
 0x889   : > { %v8400_v1 = vsel %vm8396_vm0, %v8394_v17, %v8398_v51  ;;  %v8527_v47 = vmul.f32 0.2, %v8523_v33  ;;  %v8277_v25 = vsel %vm8144_vm9, %v18764_v30, -inf  ;;  %v8274_v16 = vsel %vm8144_vm9, %v18776_v0, -inf }
 0x88a   : > { %v18784_v36 = vsel %vm8140_vm10, %v8399_v28, -1e+30  ;;  %v18788_v58 = vsel %vm8141_vm4, %v8400_v1, -1e+30  ;;  %v8528_v26 = vsel %vm8524_vm1, %v8522_v29, %v8526_v48  ;;  %v8655_v54 = vmul.f32 0.2, %v8651_v10 }
 0x88b   : > { %8278 = vmax.xlane.f32.xlu1 %v8277_v25  ;;  %8275 = vmax.xlane.f32.xlu0 %v8274_v16  ;;  %v8529_v17 = vsel %vm8525_vm2, %v8523_v33, %v8527_v47  ;;  %v9037_v57 = vrot.slane %v18724_v3, %v18750_v56  ;;  %vm8653_vm3 = vcmp.ge.f32.partialorder %v8651_v10, 0.0  ;;  %v8652_v39 = vadd.f32 %v8650_v18, %v18698_v9  ;;  %v9032_v33 = vpop.permute.xlu0 %9031 }
 0x88c   : > { %v8780_v38 = vadd.f32 %v18768_v2, %v18696_v35  ;;  %v8403_v61 = vsel %vm8144_vm9, %v18784_v36, -inf  ;;  %v8406_v43 = vsel %vm8144_vm9, %v18788_v58, -inf  ;;  %v18801_v29 = vsel %vm8140_vm10, %v8528_v26, -1e+30 }
 0x88d   : > { %v9295_v42 = vrot.slane %v8111_v24, %v18713_v45  ;;  %v18806_v9 = vsel %vm8141_vm4, %v8529_v17, -1e+30  ;;  %vm8654_vm5 = vcmp.ge.f32.partialorder %v8652_v39, 0.0  ;;  %v8656_v35 = vmul.f32 0.2, %v8652_v39 }
 0x88e   : > { %v8657_v18 = vsel %vm8653_vm3, %v8651_v10, %v8655_v54  ;;  %v8784_v51 = vmul.f32 0.2, %v8780_v38  ;;  %v9038_v31 = vadd.f32 %v9037_v57, %v9028_v14  ;;  %vm8782_vm6 = vcmp.ge.f32.partialorder %v8780_v38, 0.0 }
 0x88f   : > { %8404 = vmax.xlane.f32.xlu0 %v8403_v61  ;;  %8407 = vmax.xlane.f32.xlu1 %v8406_v43  ;;  %v8658_v48 = vsel %vm8654_vm5, %v8652_v39, %v8656_v35  ;;  %v8532_v28 = vsel %vm8144_vm9, %v18801_v29, -inf  ;;  %v8535_v1 = vsel %vm8144_vm9, %v18806_v9, -inf  ;;  %v18813_v47 = vsub.s32 6, %v18414_v7  ;;  %v8903_v17 = vpop.permute.xlu0 %8902 }
 0x890   : > { %v9296_v25 = vadd.f32 %v9295_v42, %v18729_v62  ;;  %v18818_v10 = vsel %vm8140_vm10, %v8657_v18, -1e+30  ;;  %v18822_v14 = vsel %vm8141_vm4, %v8658_v48, -1e+30  ;;  %v8786_v16 = vsel %vm8782_vm6, %v8780_v38, %v8784_v51 }
 0x891   : > { %v9042_v26 = vmul.f32 0.2, %v9038_v31  ;;  %vm9040_vm7 = vcmp.ge.f32.partialorder %v9038_v31, 0.0  ;;  %v8661_v7 = vsel %vm8144_vm9, %v18818_v10, -inf  ;;  %v8664_v62 = vsel %vm8144_vm9, %v18822_v14, -inf }
 0x892   : > { %v8908_v54 = vrot.slane %v18724_v3, %v18813_v47  ;;  %v18832_v39 = vsel %vm8140_vm10, %v8786_v16, -1e+30  ;;  %v9300_v61 = vmul.f32 0.2, %v9296_v25  ;;  %vm9298_vm8 = vcmp.ge.f32.partialorder %v9296_v25, 0.0 }
 0x893   : > { %8533 = vmax.xlane.f32.xlu0 %v8532_v28  ;;  %8536 = vmax.xlane.f32.xlu1 %v8535_v1  ;;  %v9044_v38 = vsel %vm9040_vm7, %v9038_v31, %v9042_v26  ;;  %v9039_v43 = vadd.f32 %v9037_v57, %v9032_v33  ;;  %v9166_v35 = vrot.slane %v8111_v24, %v18710_v11  ;;  %v8790_v18 = vsel %vm8144_vm9, %v18832_v39, -inf  ;;  %v9290_v48 = vpop.permute.xlu0 %9289 }
 0x894   : > { %v8909_v51 = vadd.f32 %v8908_v54, %v18700_v34  ;;  %v18840_v3 = vsel %vm8140_vm10, %v9044_v38, -1e+30  ;;  %v9302_v28 = vsel %vm9298_vm8, %v9296_v25, %v9300_v61  ;;  %v9297_v1 = vadd.f32 %v9295_v42, %v9290_v48 }
 0x895   : > { %v9043_v16 = vmul.f32 0.2, %v9039_v43  ;;  %v9167_v31 = vadd.f32 %v9166_v35, %v18752_v6  ;;  %vm9041_vm11 = vcmp.ge.f32.partialorder %v9039_v43, 0.0  ;;  %v9048_v57 = vsel %vm8144_vm9, %v18840_v3, -inf }
 0x896   : > { %v18848_v34 = vsel %vm8140_vm10, %v9302_v28, -1e+30  ;;  %v8913_v33 = vmul.f32 0.2, %v8909_v51  ;;  %vm8911_vm12 = vcmp.ge.f32.partialorder %v8909_v51, 0.0  ;;  %vm9299_vm14 = vcmp.ge.f32.partialorder %v9297_v1, 0.0 }
 0x897   : > { %8662 = vmax.xlane.f32.xlu0 %v8661_v7  ;;  %8665 = vmax.xlane.f32.xlu1 %v8664_v62  ;;  %v9045_v42 = vsel %vm9041_vm11, %v9039_v43, %v9043_v16  ;;  %v9301_v7 = vmul.f32 0.2, %v9297_v1  ;;  %v9306_v6 = vsel %vm8144_vm9, %v18848_v34, -inf  ;;  %v9171_v61 = vmul.f32 0.2, %v9167_v31  ;;  %v9161_v16 = vpop.permute.xlu0 %9160 }
 0x898   : > { %v8910_v38 = vadd.f32 %v8908_v54, %v8903_v17  ;;  %v18858_v48 = vsel %vm8141_vm4, %v9045_v42, -1e+30  ;;  %vm9169_vm15 = vcmp.ge.f32.partialorder %v9167_v31, 0.0  ;;  %v9168_v17 = vadd.f32 %v9166_v35, %v9161_v16 }
 0x899   : > { %v9303_v28 = vsel %vm9299_vm14, %v9297_v1, %v9301_v7  ;;  %v9051_v54 = vsel %vm8144_vm9, %v18858_v48, -inf }
 0x89a   : > { %vm8912_vm0 = vcmp.ge.f32.partialorder %v8910_v38, 0.0  ;;  %vm9170_vm1 = vcmp.ge.f32.partialorder %v9168_v17, 0.0 }
 0x89b   : > { %8791 = vmax.xlane.f32.xlu0 %v8790_v18 }
 0x89e   : > { %v8774_v26 = vpop.permute.xlu1 %8773 }
 0x89f   : > { %v8781_v24 = vadd.f32 %v18768_v2, %v8774_v26  ;;  %9049 = vmax.xlane.f32.xlu0 %v9048_v57  ;;  %v8915_v2 = vsel %vm8911_vm12, %v8909_v51, %v8913_v33  ;;  %v9173_v26 = vsel %vm9169_vm15, %v9167_v31, %v9171_v61  ;;  %v18870_v57 = vsel %vm8141_vm4, %v9303_v28, -1e+30 }
 0x8a0   : > { %v18864_v51 = vsel %vm8140_vm10, %v8915_v2, -1e+30  ;;  %v18876_v33 = vsel %vm8140_vm10, %v9173_v26, -1e+30  ;;  %v9309_v35 = vsel %vm8144_vm9, %v18870_v57, -inf }
 0x8a1   : > { %vm8783_vm13 = vcmp.ge.f32.partialorder %v8781_v24, 0.0  ;;  %v8785_v25 = vmul.f32 0.2, %v8781_v24  ;;  %v8919_v1 = vsel %vm8144_vm9, %v18864_v51, -inf  ;;  %v9172_v31 = vmul.f32 0.2, %v9168_v17 }
 0x8a2   : > { %v9177_v42 = vsel %vm8144_vm9, %v18876_v33, -inf }
 0x8a3   : > { %v8787_v62 = vsel %vm8783_vm13, %v8781_v24, %v8785_v25  ;;  %9307 = vmax.xlane.f32.xlu0 %v9306_v6  ;;  %v8914_v24 = vmul.f32 0.2, %v8910_v38  ;;  %v9174_v6 = vsel %vm9170_vm1, %v9168_v17, %v9172_v31 }
 0x8a4   : > { %v18854_v18 = vsel %vm8141_vm4, %v8787_v62, -1e+30  ;;  %v18890_v2 = vsel %vm8141_vm4, %v9174_v6, -1e+30 }
 0x8a5   : > { %v8793_v43 = vsel %vm8144_vm9, %v18854_v18, -inf  ;;  %v8916_v25 = vsel %vm8912_vm0, %v8910_v38, %v8914_v24  ;;  %v9180_v61 = vsel %vm8144_vm9, %v18890_v2, -inf }
 0x8a6   : > { %8794 = vmax.xlane.f32.xlu1 %v8793_v43  ;;  %v18884_v7 = vsel %vm8141_vm4, %v8916_v25, -1e+30 }
 0x8a7   : > { %9052 = vmax.xlane.f32.xlu0 %v9051_v54  ;;  %v8922_v62 = vsel %vm8144_vm9, %v18884_v7, -inf }
 0x8aa   : > { %8920 = vmax.xlane.f32.xlu1 %v8919_v1 }
 0x8ab   : > { %9310 = vmax.xlane.f32.xlu0 %v9309_v35 }
 0x8ae   : > { %9178 = vmax.xlane.f32.xlu1 %v9177_v42 }
 0x8b2   : > { %8923 = vmax.xlane.f32.xlu1 %v8922_v62 }
 0x8b6   : > { %9181 = vmax.xlane.f32.xlu1 %v9180_v61 }
 0x910   : > { %v8147_v38 = vpop.xlane.xlu1 %8146  ;;  %v8150_v43 = vpop.xlane.xlu0 %8149 }
 0x911   : > { %v8151_v28 = vsub.f32 %v18760_v40, %v8147_v38  ;;  %v8152_v16 = vsub.f32 %v18756_v59, %v8150_v43 }
 0x913   : > { %v8153_v54 = vmul.f32 1.442695, %v8151_v28  ;;  %v8155_v17 = vmul.f32 1.442695, %v8152_v16 }
 0x914   : > { %v8279_v26 = vpop.xlane.xlu1 %8278  ;;  %v8276_v24 = vpop.xlane.xlu0 %8275 }
 0x915   : > { %15843 = vpow2.f32 %v8153_v54  ;;  %v8281_v1 = vsub.f32 %v18764_v30, %v8279_v26  ;;  %v8280_v35 = vsub.f32 %v18776_v0, %v8276_v24 }
 0x916   : > { %15845 = vpow2.f32 %v8155_v17 }
 0x917   : > { %v8284_v25 = vmul.f32 1.442695, %v8281_v1  ;;  %v8282_v31 = vmul.f32 1.442695, %v8280_v35 }
 0x918   : > { %v8408_v42 = vpop.xlane.xlu1 %8407  ;;  %v8405_v6 = vpop.xlane.xlu0 %8404 }
 0x919   : > { %15847 = vpow2.f32 %v8284_v25  ;;  %v8410_v62 = vsub.f32 %v18788_v58, %v8408_v42  ;;  %v8409_v40 = vsub.f32 %v18784_v36, %v8405_v6 }
 0x91a   : > { %15849 = vpow2.f32 %v8282_v31 }
 0x91b   : > { %v8413_v59 = vmul.f32 1.442695, %v8410_v62  ;;  %v8411_v61 = vmul.f32 1.442695, %v8409_v40 }
 0x91c   : > { %v8537_v38 = vpop.xlane.xlu1 %8536  ;;  %v8534_v43 = vpop.xlane.xlu0 %8533 }
 0x91d   : > { %15851 = vpow2.f32 %v8413_v59  ;;  %v8539_v30 = vsub.f32 %v18806_v9, %v8537_v38  ;;  %v8538_v0 = vsub.f32 %v18801_v29, %v8534_v43 }
 0x91e   : > { %15853 = vpow2.f32 %v8411_v61 }
 0x91f   : > { %v8542_v28 = vmul.f32 1.442695, %v8539_v30  ;;  %v8540_v16 = vmul.f32 1.442695, %v8538_v0 }
 0x920   : > { %v8666_v54 = vpop.xlane.xlu1 %8665  ;;  %v8663_v17 = vpop.xlane.xlu0 %8662 }
 0x921   : > { %15855 = vpow2.f32 %v8542_v28  ;;  %v8668_v58 = vsub.f32 %v18822_v14, %v8666_v54  ;;  %v8667_v36 = vsub.f32 %v18818_v10, %v8663_v17 }
 0x922   : > { %v15844_v26 = vpop.eup %15843  ;;  %15857 = vpow2.f32 %v8540_v16 }
 0x923   : > { %v15846_v24 = vpop.eup %15845  ;;  %v8671_v1 = vmul.f32 1.442695, %v8668_v58  ;;  %v8669_v35 = vmul.f32 1.442695, %v8667_v36  ;;  %v18905_v25 = vmul.f32 %v15844_v26, %v18727_v5 }
 0x924   : > { %v8792_v9 = vpop.xlane.xlu0 %8791  ;;  %v18908_v29 = vmul.f32 %v15846_v24, %v18719_v13 }
 0x925   : > { %15859 = vpow2.f32 %v8671_v1  ;;  %v8796_v31 = vsub.f32 %v18832_v39, %v8792_v9  ;;  %v8159_v14 = vsel %vm8144_vm9, %v18905_v25, 0.0 }
 0x926   : > { %v15848_v42 = vpop.eup %15847  ;;  %15861 = vpow2.f32 %v8669_v35  ;;  %8160 = vadd.xlane.f32.xlu0 %v8159_v14  ;;  %v8162_v10 = vsel %vm8144_vm9, %v18908_v29, 0.0 }
 0x927   : > { %v15850_v6 = vpop.eup %15849  ;;  %v8798_v62 = vmul.f32 1.442695, %v8796_v31  ;;  %8163 = vadd.xlane.f32.xlu1 %v8162_v10  ;;  %v18916_v40 = vmul.f32 %v15848_v42, %v18719_v13 }
 0x928   : > { %v9050_v59 = vpop.xlane.xlu0 %9049  ;;  %v18919_v61 = vmul.f32 %v15850_v6, %v18727_v5 }
 0x929   : > { %15863 = vpow2.f32 %v8798_v62  ;;  %v9054_v39 = vsub.f32 %v18840_v3, %v9050_v59  ;;  %v8291_v38 = vsel %vm8144_vm9, %v18916_v40, 0.0 }
 0x92a   : > { %v15852_v43 = vpop.eup %15851  ;;  %v8288_v30 = vsel %vm8144_vm9, %v18919_v61, 0.0 }
 0x92b   : > { %v15854_v0 = vpop.eup %15853  ;;  %v9056_v28 = vmul.f32 1.442695, %v9054_v39  ;;  %8292 = vadd.xlane.f32.xlu1 %v8291_v38  ;;  %8289 = vadd.xlane.f32.xlu0 %v8288_v30  ;;  %v18927_v16 = vmul.f32 %v15852_v43, %v18719_v13 }
 0x92c   : > { %v9308_v54 = vpop.xlane.xlu0 %9307  ;;  %v18930_v17 = vmul.f32 %v15854_v0, %v18727_v5 }
 0x92d   : > { %15865 = vpow2.f32 %v9056_v28  ;;  %v9312_v3 = vsub.f32 %v18848_v34, %v9308_v54  ;;  %v8420_v58 = vsel %vm8144_vm9, %v18927_v16, 0.0 }
 0x92e   : > { %v15856_v36 = vpop.eup %15855  ;;  %v8417_v26 = vsel %vm8144_vm9, %v18930_v17, 0.0 }
 0x92f   : > { %v8795_v24 = vpop.xlane.xlu1 %8794  ;;  %v15858_v1 = vpop.eup %15857  ;;  %v9314_v35 = vmul.f32 1.442695, %v9312_v3  ;;  %8421 = vadd.xlane.f32.xlu1 %v8420_v58  ;;  %8418 = vadd.xlane.f32.xlu0 %v8417_v26  ;;  %v18939_v31 = vmul.f32 %v15856_v36, %v18719_v13 }
 0x930   : > { %v8797_v9 = vsub.f32 %v18854_v18, %v8795_v24  ;;  %v9053_v14 = vpop.xlane.xlu0 %9052  ;;  %v18942_v34 = vmul.f32 %v15858_v1, %v18727_v5 }
 0x931   : > { %15867 = vpow2.f32 %v9314_v35  ;;  %v9055_v10 = vsub.f32 %v18858_v48, %v9053_v14  ;;  %v8549_v6 = vsel %vm8144_vm9, %v18939_v31, 0.0 }
 0x932   : > { %v8800_v42 = vmul.f32 1.442695, %v8797_v9  ;;  %v15860_v62 = vpop.eup %15859  ;;  %v8546_v59 = vsel %vm8144_vm9, %v18942_v34, 0.0 }
 0x933   : > { %v8921_v39 = vpop.xlane.xlu1 %8920  ;;  %v15862_v18 = vpop.eup %15861  ;;  %v9058_v38 = vmul.f32 1.442695, %v9055_v10  ;;  %8550 = vadd.xlane.f32.xlu1 %v8549_v6  ;;  %8547 = vadd.xlane.f32.xlu0 %v8546_v59  ;;  %v18951_v30 = vmul.f32 %v15860_v62, %v18719_v13 }
 0x934   : > { %15869 = vpow2.f32 %v8800_v42  ;;  %v8925_v43 = vsub.f32 %v18864_v51, %v8921_v39  ;;  %v9311_v0 = vpop.xlane.xlu0 %9310  ;;  %v18954_v48 = vmul.f32 %v15862_v18, %v18727_v5 }
 0x935   : > { %15871 = vpow2.f32 %v9058_v38  ;;  %v9313_v54 = vsub.f32 %v18870_v57, %v9311_v0  ;;  %v8678_v3 = vsel %vm8144_vm9, %v18951_v30, 0.0 }
 0x936   : > { %v8927_v28 = vmul.f32 1.442695, %v8925_v43  ;;  %v15864_v58 = vpop.eup %15863  ;;  %v8675_v36 = vsel %vm8144_vm9, %v18954_v48, 0.0 }
 0x937   : > { %v9179_v26 = vpop.xlane.xlu1 %9178  ;;  %v9316_v51 = vmul.f32 1.442695, %v9313_v54  ;;  %8679 = vadd.xlane.f32.xlu1 %v8678_v3  ;;  %8676 = vadd.xlane.f32.xlu0 %v8675_v36  ;;  %v18963_v1 = vmul.f32 %v15864_v58, %v18727_v5 }
 0x938   : > { %15873 = vpow2.f32 %v8927_v28  ;;  %v9183_v24 = vsub.f32 %v18876_v33, %v9179_v26 }
 0x939   : > { %15875 = vpow2.f32 %v9316_v51  ;;  %v8804_v57 = vsel %vm8144_vm9, %v18963_v1, 0.0 }
 0x93a   : > { %v9185_v35 = vmul.f32 1.442695, %v9183_v24  ;;  %v15866_v9 = vpop.eup %15865 }
 0x93b   : > { %v8924_v14 = vpop.xlane.xlu1 %8923  ;;  %8805 = vadd.xlane.f32.xlu0 %v8804_v57  ;;  %v18969_v10 = vmul.f32 %v15866_v9, %v18727_v5 }
 0x93c   : > { %15877 = vpow2.f32 %v9185_v35  ;;  %v8926_v42 = vsub.f32 %v18884_v7, %v8924_v14 }
 0x93d   : > { %v9062_v33 = vsel %vm8144_vm9, %v18969_v10, 0.0 }
 0x93e   : > { %v8929_v6 = vmul.f32 1.442695, %v8926_v42  ;;  %v15868_v62 = vpop.eup %15867 }
 0x93f   : > { %v9182_v59 = vpop.xlane.xlu1 %9181  ;;  %9063 = vadd.xlane.f32.xlu0 %v9062_v33  ;;  %v18975_v18 = vmul.f32 %v15868_v62, %v18727_v5 }
 0x940   : > { %15879 = vpow2.f32 %v8929_v6  ;;  %v9184_v39 = vsub.f32 %v18890_v2, %v9182_v59 }
 0x941   : > { %v15870_v38 = vpop.eup %15869  ;;  %v9320_v7 = vsel %vm8144_vm9, %v18975_v18, 0.0 }
 0x942   : > { %v9187_v43 = vmul.f32 1.442695, %v9184_v39  ;;  %v18980_v0 = vmul.f32 %v15870_v38, %v18719_v13  ;;  %v15872_v28 = vpop.eup %15871 }
 0x943   : > { %9321 = vadd.xlane.f32.xlu0 %v9320_v7  ;;  %v18985_v3 = vmul.f32 %v15872_v28, %v18719_v13 }
 0x944   : > { %15881 = vpow2.f32 %v9187_v43  ;;  %v8807_v54 = vsel %vm8144_vm9, %v18980_v0, 0.0 }
 0x945   : > { %v15874_v2 = vpop.eup %15873  ;;  %8808 = vadd.xlane.f32.xlu1 %v8807_v54  ;;  %v9065_v58 = vsel %vm8144_vm9, %v18985_v3, 0.0 }
 0x946   : > { %v18990_v36 = vmul.f32 %v15874_v2, %v18727_v5  ;;  %v15876_v26 = vpop.eup %15875 }
 0x947   : > { %9066 = vadd.xlane.f32.xlu0 %v9065_v58  ;;  %v18995_v24 = vmul.f32 %v15876_v26, %v18719_v13 }
 0x948   : > { %v8933_v51 = vsel %vm8144_vm9, %v18990_v36, 0.0 }
 0x949   : > { %v15878_v35 = vpop.eup %15877  ;;  %8934 = vadd.xlane.f32.xlu1 %v8933_v51  ;;  %v9323_v57 = vsel %vm8144_vm9, %v18995_v24, 0.0 }
 0x94a   : > { %v19000_v9 = vmul.f32 %v15878_v35, %v18727_v5  ;;  %v15971_v5 = vld [vmem:[%s18707_s3] sm:$0xff] }
 0x94b   : > { %9324 = vadd.xlane.f32.xlu0 %v9323_v57 }
 0x94c   : > { %v9191_v14 = vsel %vm8144_vm9, %v19000_v9, 0.0 }
 0x94d   : > { %v15880_v42 = vpop.eup %15879  ;;  %9192 = vadd.xlane.f32.xlu1 %v9191_v14 }
 0x94e   : > { %v19005_v6 = vmul.f32 %v15880_v42, %v18719_v13 }
 0x950   : > { %v8936_v33 = vsel %vm8144_vm9, %v19005_v6, 0.0 }
 0x951   : > { %v15882_v62 = vpop.eup %15881  ;;  %8937 = vadd.xlane.f32.xlu1 %v8936_v33 }
 0x952   : > { %v19010_v59 = vmul.f32 %v15882_v62, %v18719_v13 }
 0x954   : > { %v9194_v39 = vsel %vm8144_vm9, %v19010_v59, 0.0 }
 0x955   : > { %9195 = vadd.xlane.f32.xlu1 %v9194_v39 }
 0x9af   : > { %v8161_v38 = vpop.xlane.xlu0 %8160 }
 0x9b0   : > { %v8164_v43 = vpop.xlane.xlu1 %8163  ;;  %v8165_v7 = vmax.f32 %v8161_v38, 1e-20 }
 0x9b1   : > { %v8166_v28 = vmax.f32 %v8164_v43, 1e-20 }
 0x9b2   : > { %15883 = vrcp.f32 %v8165_v7 }
 0x9b3   : > { %15885 = vrcp.f32 %v8166_v28 }
 0x9b4   : > { %v8293_v54 = vpop.xlane.xlu1 %8292  ;;  %v8290_v2 = vpop.xlane.xlu0 %8289 }
 0x9b5   : > { %v8295_v58 = vmax.f32 %v8293_v54, 1e-20  ;;  %v8294_v26 = vmax.f32 %v8290_v2, 1e-20 }
 0x9b7   : > { %15887 = vrcp.f32 %v8295_v58 }
 0x9b8   : > { %15889 = vrcp.f32 %v8294_v26  ;;  %v8422_v51 = vpop.xlane.xlu1 %8421  ;;  %v8419_v35 = vpop.xlane.xlu0 %8418 }
 0x9b9   : > { %v8424_v57 = vmax.f32 %v8422_v51, 1e-20  ;;  %v8423_v14 = vmax.f32 %v8419_v35, 1e-20 }
 0x9bb   : > { %15891 = vrcp.f32 %v8424_v57 }
 0x9bc   : > { %15893 = vrcp.f32 %v8423_v14  ;;  %v8551_v42 = vpop.xlane.xlu1 %8550  ;;  %v8548_v33 = vpop.xlane.xlu0 %8547 }
 0x9bd   : > { %v8553_v62 = vmax.f32 %v8551_v42, 1e-20  ;;  %v8552_v39 = vmax.f32 %v8548_v33, 1e-20 }
 0x9bf   : > { %v15884_v38 = vpop.eup %15883  ;;  %15895 = vrcp.f32 %v8553_v62 }
 0x9c0   : > { %v15886_v43 = vpop.eup %15885  ;;  %15897 = vrcp.f32 %v8552_v39  ;;  %v8680_v7 = vpop.xlane.xlu1 %8679  ;;  %v8169_v54 = vmul.f32 %v15884_v38, %v18905_v25 }
 0x9c1   : > { %v8677_v28 = vpop.xlane.xlu0 %8676  ;;  %v8170_v2 = vmul.f32 %v15886_v43, %v18908_v29  ;;  %v8682_v58 = vmax.f32 %v8680_v7, 1e-20 }
 0x9c2   : > { %v8681_v26 = vmax.f32 %v8677_v28, 1e-20  ;;  %15178 = vmatprep.mubr.msk.f32.mxu0 %vm8144_vm9, %v8169_v54 }
 0x9c3   : > { %15899 = vrcp.f32 %v8682_v58  ;;  %15179 = vmatmul.mubr.msk.f32.vlgmr.msra.gmra.mxu0 %vm8144_vm9, %v8170_v2 }
 0x9c4   : > { %v15888_v51 = vpop.eup %15887  ;;  %15901 = vrcp.f32 %v8681_v26  ;;  %15182 = vmatpush3.msra.mxu0 %v18642_v46 }
 0x9c5   : > { %v8806_v35 = vpop.xlane.xlu0 %8805  ;;  %v15890_v57 = vpop.eup %15889  ;;  %v8299_v14 = vmul.f32 %v15888_v51, %v18916_v40  ;;  %15183 = vmatprep.subr.mxu0 %v18631_v37 }
 0x9c6   : > { %v8810_v42 = vmax.f32 %v8806_v35, 1e-20  ;;  %15184 = vmatpush3.msra.mxu0 %v18631_v37  ;;  %v8298_v25 = vmul.f32 %v15890_v57, %v18919_v61 }
 0x9c7   : > { %15188 = vmatprep.subr.mxu0 %v18647_v52 }
 0x9c8   : > { %15903 = vrcp.f32 %v8810_v42  ;;  %v15892_v29 = vpop.eup %15891  ;;  %15185 = vmatprep.mubr.msk.f32.mxu0 %vm8144_vm9, %v8298_v25 }
 0x9c9   : > { %v9064_v33 = vpop.xlane.xlu0 %9063  ;;  %v15894_v62 = vpop.eup %15893  ;;  %v8428_v46 = vmul.f32 %v15892_v29, %v18927_v16  ;;  %15186 = vmatmul.mubr.msk.f32.vlgmr.msra.gmra.mxu0 %vm8144_vm9, %v8299_v14 }
 0x9ca   : > { %v9068_v40 = vmax.f32 %v9064_v33, 1e-20  ;;  %15189 = vmatpush3.msra.mxu0 %v18647_v52  ;;  %v8427_v39 = vmul.f32 %v15894_v62, %v18930_v17 }
 0x9cb   : > { %15190 = vmatprep.subr.mxu0 %v18633_v15 }
 0x9cc   : > { %15905 = vrcp.f32 %v9068_v40  ;;  %v15896_v37 = vpop.eup %15895  ;;  %15191 = vmatpush3.msra.mxu0 %v18633_v15  ;;  %15192 = vmatprep.mubr.msk.f32.mxu0 %vm8144_vm9, %v8427_v39  ;;  %v15575_v39 = vld [vmem:[#allocation7 + $0x68] sm:$0xff]  }
 0x9cd   : > { %v9322_v61 = vpop.xlane.xlu0 %9321  ;;  %v15898_v38 = vpop.eup %15897  ;;  %v8557_v43 = vmul.f32 %v15896_v37, %v18939_v31  ;;  %15195 = vmatprep.subr.mxu0 %v18651_v44  ;;  %15193 = vmatmul.mubr.msk.f32.vlgmr.msra.gmra.mxu0 %vm8144_vm9, %v8428_v46  ;;  %v15577_v37 = vld [vmem:[#allocation7 + $0x28] sm:$0xff]  }
 0x9ce   : > { %v8809_v16 = vpop.xlane.xlu1 %8808  ;;  %15196 = vmatpush3.msra.mxu0 %v18651_v44  ;;  %v9326_v52 = vmax.f32 %v9322_v61, 1e-20  ;;  %v8556_v7 = vmul.f32 %v15898_v38, %v18942_v34  ;;  %v15578_v61 = vld [vmem:[#allocation7 + $0xb8] sm:$0xff]   ;;  %v15581_v38 = vld [vmem:[#allocation7 + $0x20] sm:$0xff]  }
 0x9cf   : > { %v8811_v17 = vmax.f32 %v8809_v16, 1e-20  ;;  %15197 = vmatprep.subr.mxu0 %v18639_v23  ;;  %v15583_v16 = vld [vmem:[#allocation7 + $0x58] sm:$0xff]  }
 0x9d0   : > { %v15900_v15 = vpop.eup %15899  ;;  %15198 = vmatpush3.msra.mxu0 %v18639_v23  ;;  %15199 = vmatprep.mubr.msk.f32.mxu0 %vm8144_vm9, %v8556_v7  ;;  %v15586_v7 = vld [vmem:[#allocation7 + $0xa8] sm:$0xff]  }
 0x9d1   : > { %15907 = vrcp.f32 %v8811_v17  ;;  %v9067_v31 = vpop.xlane.xlu0 %9066  ;;  %v15902_v28 = vpop.eup %15901  ;;  %v8686_v54 = vmul.f32 %v15900_v15, %v18951_v30  ;;  %15202 = vmatprep.subr.mxu0 %v18659_v12  ;;  %15200 = vmatmul.mubr.msk.f32.vlgmr.msra.gmra.mxu0 %vm8144_vm9, %v8557_v43  ;;  %v15582_v43 = vld [vmem:[#allocation7 + $0xb0] sm:$0xff]   ;;  %v15585_v17 = vld [vmem:[#allocation7 + $0x18] sm:$0xff]  }
 0x9d2   : > { %v9069_v44 = vmax.f32 %v9067_v31, 1e-20  ;;  %v8935_v2 = vpop.xlane.xlu1 %8934  ;;  %15909 = vrcp.f32 %v9326_v52  ;;  %15203 = vmatpush3.msra.mxu0 %v18659_v12  ;;  %v8685_v58 = vmul.f32 %v15902_v28, %v18954_v48  ;;  %v15584_v52 = vld [vmem:[#allocation7 + $0xe8] sm:$0xff]   ;;  %v15587_v15 = vld [vmem:[#allocation7 + $0x50] sm:$0xff]   ;;  %v15588_v31 = vld [vmem:[#allocation7 + $0xe0] sm:$0xff]  }
 0x9d3   : > { %v8939_v34 = vmax.f32 %v8935_v2, 1e-20  ;;  %15204 = vmatprep.subr.mxu0 %v18649_v63  ;;  %v15589_v28 = vld [vmem:[#allocation7 + $0x10] sm:$0xff]   ;;  %v15592_v2 = vld [vmem:[#allocation7 + $0xd8] sm:$0xff]  }
 0x9d4   : > { %15911 = vrcp.f32 %v9069_v44  ;;  %15205 = vmatpush3.msra.mxu0 %v18649_v63  ;;  %15206 = vmatprep.mubr.msk.f32.mxu0 %vm8144_vm9, %v8685_v58  ;;  %v15591_v44 = vld [vmem:[#allocation7 + $0x48] sm:$0xff]   ;;  %v15594_v58 = vld [vmem:[#allocation7 + $0x98] sm:$0xff]  }
 0x9d5   : > { %v15904_v23 = vpop.eup %15903  ;;  %15913 = vrcp.f32 %v8939_v34  ;;  %v9325_v30 = vpop.xlane.xlu0 %9324  ;;  %15209 = vmatprep.subr.mxu0 %v18662_v20  ;;  %15207 = vmatmul.mubr.msk.f32.vlgmr.msra.gmra.mxu0 %vm8144_vm9, %v8686_v54  ;;  %v15590_v54 = vld [vmem:[#allocation7 + $0xa0] sm:$0xff]   ;;  %v15593_v34 = vld [vmem:[#allocation7 + $0x8] sm:$0xff]  }
 0x9d6   : > { %v9327_v26 = vmax.f32 %v9325_v30, 1e-20  ;;  %v9193_v51 = vpop.xlane.xlu1 %9192  ;;  %v8814_v12 = vmul.f32 %v15904_v23, %v18963_v1  ;;  %15210 = vmatpush3.msra.mxu0 %v18662_v20  ;;  %v15595_v23 = vld [vmem:[#allocation7 + $0x40] sm:$0xff]   ;;  %v15596_v30 = vld [vmem:[#allocation7 + $0xd0] sm:$0xff]  }
 0x9d7   : > { %15211 = vmatprep.subr.mxu0 %v18653_v4  ;;  %v9197_v48 = vmax.f32 %v9193_v51, 1e-20  ;;  %v15598_v51 = vld [vmem:[#allocation7 + $0x90] sm:$0xff]  }
 0x9d8   : > { %15915 = vrcp.f32 %v9327_v26  ;;  %15213 = vmatprep.mubr.msk.f32.mxu0 %vm8144_vm9, %v8814_v12  ;;  %15212 = vmatpush3.msra.mxu0 %v18653_v4  ;;  %v15597_v26 = vld [vmem:[#allocation7] sm:$0xff]   ;;  %v15599_v12 = vld [vmem:[#allocation7 + $0xc8] sm:$0xff]  }
 0x9d9   : > { %v15906_v63 = vpop.eup %15905  ;;  %15216 = vmatprep.subr.mxu0 %v18668_v60  ;;  %15917 = vrcp.f32 %v9197_v48  ;;  %v15600_v48 = vld [vmem:[#allocation7 + $0x178] sm:$0xff]  }
 0x9da   : > { %v8938_v35 = vpop.xlane.xlu1 %8937  ;;  %v9072_v57 = vmul.f32 %v15906_v63, %v18969_v10  ;;  %v15601_v63 = vld [vmem:[#allocation7 + $0x88] sm:$0xff]  }
 0x9db   : > { %v8940_v14 = vmax.f32 %v8938_v35, 1e-20  ;;  %v15603_v35 = vld [vmem:[#allocation7 + $0xc0] sm:$0xff]  }
 0x9dc   : > { %15227 = vmatprep.mubr.msk.f32.mxu1 %vm8144_vm9, %v9072_v57  ;;  %v15605_v57 = vld [vmem:[#allocation7 + $0x80] sm:$0xff]  }
 0x9dd   : > { %15919 = vrcp.f32 %v8940_v14  ;;  %v15608_v14 = vld [vmem:[#allocation7 + $0x1f8] sm:$0xff]  }
 0x9de   : > { %v15908_v20 = vpop.eup %15907  ;;  %v9196_v1 = vpop.xlane.xlu1 %9195 }
 0x9df   : > { %v8815_v42 = vmul.f32 %v15908_v20, %v18980_v0  ;;  %v9198_v25 = vmax.f32 %v9196_v1, 1e-20  ;;  %v15910_v29 = vpop.eup %15909  ;;  %v19087_v20 = vld [vmem:[%s19613_s10] sm:$0xff] }
 0x9e0   : > { %v9330_v10 = vmul.f32 %v15910_v29, %v18975_v18  ;;  %v9420_v1 = vrot.slane %v19087_v20, %v18710_v11 }
 0x9e1   : > { %v15912_v33 = vpop.eup %15911  ;;  %15921 = vrcp.f32 %v9198_v25  ;;  %15214 = vmatmul.mubr.msk.f32.vlgmr.msra.gmra.mxu0 %vm8144_vm9, %v8815_v42 }
 0x9e2   : > { %v15914_v4 = vpop.eup %15913  ;;  %v9073_v62 = vmul.f32 %v15912_v33, %v18985_v3  ;;  %15217 = vmatpush3.msra.mxu0 %v18668_v60 }
 0x9e3   : > { %15218 = vmatprep.subr.mxu0 %v18656_v53  ;;  %v8943_v46 = vmul.f32 %v15914_v4, %v18990_v36  ;;  %v9424_v4 = vrot.slane %v19087_v20, %v18713_v45 }
 0x9e4   : > { %15228 = vmatmul.mubr.msk.f32.vlgmr.msra.gmra.mxu1 %vm8144_vm9, %v9073_v62  ;;  %15219 = vmatpush3.msra.mxu0 %v18656_v53 }
 0x9e5   : > { %v15916_v0 = vpop.eup %15915  ;;  %15238 = vmatpush3.msra.mxu1 %v18687_v49  ;;  %15241 = vmatprep.mubr.msk.f32.mxu1 %vm8144_vm9, %v9330_v10 }
 0x9e6   : > { %v9331_v40 = vmul.f32 %v15916_v0, %v18995_v24  ;;  %15239 = vmatprep.subr.mxu1 %v18681_v50  ;;  %15230 = vmatprep.subr.mxu0 %v18684_v8  ;;  %v15918_v60 = vpop.eup %15917  ;;  %v15572_v24 = vld [vmem:[#allocation7 + $0x38] sm:$0xff]  }
 0x9e7   : > { %15240 = vmatpush3.msra.mxu1 %v18681_v50  ;;  %15220 = vmatprep.mubr.msk.f32.mxu0 %vm8144_vm9, %v8943_v46  ;;  %v9201_v49 = vmul.f32 %v15918_v60, %v19000_v9  ;;  %v15571_v50 = vld [vmem:[#allocation7 + $0x78] sm:$0xff]   ;;  %v15573_v9 = vld [vmem:[#allocation7 + $0x70] sm:$0xff]   ;;  %v9428_v60 = vrot.slane %v19087_v20, %v18716_v41 }
 0x9e8   : > { %15242 = vmatmul.mubr.msk.f32.vlgmr.msra.gmra.mxu1 %vm8144_vm9, %v9331_v40 }
 0x9ea   : > { %v15920_v18 = vpop.eup %15919 }
 0x9eb   : > { %v8944_v53 = vmul.f32 %v15920_v18, %v19005_v6  ;;  %v15574_v6 = vld [vmem:[#allocation7 + $0x30] sm:$0xff]  }
 0x9ed   : > { %15221 = vmatmul.mubr.msk.f32.vlgmr.msra.gmra.mxu0 %vm8144_vm9, %v8944_v53 }
 0x9ee   : > { %v15922_v3 = vpop.eup %15921  ;;  %15231 = vmatpush3.msra.mxu0 %v18684_v8  ;;  %15234 = vmatprep.mubr.msk.f32.mxu0 %vm8144_vm9, %v9201_v49  ;;  %v15576_v8 = vld [vmem:[#allocation7 + $0xf8] sm:$0xff]  }
 0x9ef   : > { %v9202_v36 = vmul.f32 %v15922_v3, %v19010_v59  ;;  %15232 = vmatprep.subr.mxu0 %v18679_v32  ;;  %14880 = vmatprep.subr.bf16.mxu1 %v15576_v8  ;;  %v15579_v59 = vld [vmem:[#allocation7 + $0x60] sm:$0xff]  }
 0x9f0   : > { %15233 = vmatpush3.msra.mxu0 %v18679_v32  ;;  %14881 = vmatpush3.bf16.msra.mxu1 %v15578_v61  ;;  %v15580_v32 = vld [vmem:[#allocation7 + $0xf0] sm:$0xff]  }
 0x9f1   : > { %15235 = vmatmul.mubr.msk.f32.vlgmr.msra.gmra.mxu0 %vm8144_vm9, %v9202_v36  ;;  %14858 = vmatprep.subr.bf16.mxu0 %v15571_v50 }
 0x9f2   : > { %14859 = vmatpush3.bf16.msra.mxu0 %v15572_v24  ;;  %14882 = vmatprep.subr.bf16.mxu1 %v15580_v32 }
 0x9f3   : > { %14860 = vmatprep.subr.bf16.mxu0 %v15573_v9 }
 0x9f4   : > { %14883 = vmatpush3.bf16.msra.mxu1 %v15582_v43 }
 0x9f5   : > { %14884 = vmatprep.subr.bf16.mxu1 %v15584_v52 }
 0x9f6   : > { %14861 = vmatpush3.bf16.msra.mxu0 %v15574_v6  ;;  %v9432_v6 = vrot.slane %v19087_v20, %v18722_v27 }
 0x9f7   : > { %14862 = vmatprep.subr.bf16.mxu0 %v15575_v39 }
 0x9f8   : > { %14885 = vmatpush3.bf16.msra.mxu1 %v15586_v7 }
 0x9f9   : > { %14886 = vmatprep.subr.bf16.mxu1 %v15588_v31 }
 0x9fa   : > { %14863 = vmatpush3.bf16.msra.mxu0 %v15577_v37 }
 0x9fb   : > { %14864 = vmatprep.subr.bf16.mxu0 %v15579_v59 }
 0x9fc   : > { %14887 = vmatpush3.bf16.msra.mxu1 %v15590_v54 }
 0x9fd   : > { %14888 = vmatprep.subr.bf16.mxu1 %v15592_v2 }
 0x9fe   : > { %14865 = vmatpush3.bf16.msra.mxu0 %v15581_v38 }
 0x9ff   : > { %14866 = vmatprep.subr.bf16.mxu0 %v15583_v16 }
 0xa00   : > { %14889 = vmatpush3.bf16.msra.mxu1 %v15594_v58 }
 0xa01   : > { %14890 = vmatprep.subr.bf16.mxu1 %v15596_v30  ;;  %v9440_v30 = vrot.slane %v19087_v20, %v18745_v22 }
 0xa02   : > { %14867 = vmatpush3.bf16.msra.mxu0 %v15585_v17 }
 0xa03   : > { %14868 = vmatprep.subr.bf16.mxu0 %v15587_v15 }
 0xa04   : > { %14891 = vmatpush3.bf16.msra.mxu1 %v15598_v51 }
 0xa05   : > { %14892 = vmatprep.subr.bf16.mxu1 %v15599_v12 }
 0xa06   : > { %14869 = vmatpush3.bf16.msra.mxu0 %v15589_v28 }
 0xa07   : > { %14870 = vmatprep.subr.bf16.mxu0 %v15591_v44 }
 0xa08   : > { %14893 = vmatpush3.bf16.msra.mxu1 %v15601_v63  ;;  %v9448_v63 = vrot.slane %v19087_v20, %v18750_v56 }
 0xa09   : > { %14894 = vmatprep.subr.bf16.mxu1 %v15603_v35 }
 0xa0a   : > { %14871 = vmatpush3.bf16.msra.mxu0 %v15593_v34  ;;  %v9436_v34 = vrot.slane %v19087_v20, %v18736_v19 }
 0xa0b   : > { %14872 = vmatprep.subr.bf16.mxu0 %v15595_v23 }
 0xa0c   : > { %14895 = vmatpush3.bf16.msra.mxu1 %v15605_v57 }
 0xa0d   : > { %14924 = vmatprep.subr.bf16.mxu1 %v15608_v14 }
 0xa0e   : > { %14873 = vmatpush3.bf16.msra.mxu0 %v15597_v26 }
 0xa0f   : > { %14902 = vmatprep.subr.bf16.mxu0 %v15600_v48 }
 0xa83   : > { %v15180_v42 = vpop.f32.mrf.mxu0 }
 0xa84   : > { %v19091_v25 = vadd.f32 %v15180_v42, %v9420_v1 }
 0xa85   : > { %v8243_v29 = vpop.f32.mrf.mxu0 }
 0xa86   : > { %v9467_v33 = vadd.f32 %v9420_v1, %v8243_v29  ;;  %v9517_v62 = vmin.f32 %v19091_v25, 0.0  ;;  %vm9497_vm6 = vcmp.gt.f32.partialorder %v19091_v25, 0.0 }
 0xa88   : > { %v9507_v10 = vmin.f32 %v9467_v33, 0.0  ;;  %v9547_v18 = vmul.f32 1.442695, %v9517_v62  ;;  %vm9487_vm2 = vcmp.gt.f32.partialorder %v9467_v33, 0.0 }
 0xa89   : > { %v15187_v46 = vpop.f32.mrf.mxu0 }
 0xa8a   : > { %v9527_v0 = vmul.f32 1.442695, %v9507_v10  ;;  %v9478_v40 = vadd.f32 %v15187_v46, %v9424_v4 }
 0xa8b   : > { %v8372_v53 = vpop.f32.mrf.mxu0 }
 0xa8c   : > { %v9518_v49 = vmin.f32 %v9478_v40, 0.0  ;;  %v9468_v3 = vadd.f32 %v9424_v4, %v8372_v53  ;;  %15923 = vpow2.f32 %v9527_v0  ;;  %vm9498_vm3 = vcmp.gt.f32.partialorder %v9478_v40, 0.0  ;;  %v19127_v4 = vld [vmem:[%s19613_s10 + $0x8] sm:$0x3] }
 0xa8d   : > { %v15194_v36 = vpop.f32.mrf.mxu0  ;;  %15925 = vpow2.f32 %v9547_v18  ;;  %v19132_v0 = vrot.slane %v19087_v20, %v18813_v47  ;;  %v9456_v20 = vrot.slane %v19127_v4, %v18713_v45 }
 0xa8e   : > { %v9549_v50 = vmul.f32 1.442695, %v9518_v49  ;;  %v9508_v24 = vmin.f32 %v9468_v3, 0.0  ;;  %v19098_v9 = vadd.f32 %v15194_v36, %v9428_v60  ;;  %vm9488_vm5 = vcmp.gt.f32.partialorder %v9468_v3, 0.0 }
 0xa8f   : > { %v8501_v39 = vpop.f32.mrf.mxu0 }
 0xa90   : > { %15927 = vpow2.f32 %v9549_v50  ;;  %v9529_v8 = vmul.f32 1.442695, %v9508_v24  ;;  %v9519_v37 = vmin.f32 %v19098_v9, 0.0  ;;  %v19103_v61 = vadd.f32 %v9428_v60, %v8501_v39  ;;  %v15602_v50 = vld [vmem:[#allocation7 + $0x138] sm:$0xff]  }
 0xa91   : > { %v15201_v59 = vpop.f32.mrf.mxu0  ;;  %vm9499_vm12 = vcmp.gt.f32.partialorder %v19098_v9, 0.0 }
 0xa92   : > { %15929 = vpow2.f32 %v9529_v8  ;;  %v9551_v32 = vmul.f32 1.442695, %v9519_v37  ;;  %v19105_v38 = vadd.f32 %v15201_v59, %v9432_v6  ;;  %v9509_v43 = vmin.f32 %v19103_v61, 0.0 }
 0xa93   : > { %v8630_v16 = vpop.f32.mrf.mxu0  ;;  %vm9489_vm7 = vcmp.gt.f32.partialorder %v19103_v61, 0.0 }
 0xa94   : > { %v9520_v52 = vmin.f32 %v19105_v38, 0.0  ;;  %v19109_v17 = vadd.f32 %v9432_v6, %v8630_v16  ;;  %v9531_v7 = vmul.f32 1.442695, %v9509_v43  ;;  %15931 = vpow2.f32 %v9551_v32 }
 0xa95   : > { %v15208_v44 = vpop.f32.mrf.mxu0  ;;  %vm9500_vm8 = vcmp.gt.f32.partialorder %v19105_v38, 0.0 }
 0xa96   : > { %v9553_v15 = vmul.f32 1.442695, %v9520_v52  ;;  %v9510_v31 = vmin.f32 %v19109_v17, 0.0  ;;  %15933 = vpow2.f32 %v9531_v7  ;;  %v19118_v35 = vadd.f32 %v15208_v44, %v9436_v34  ;;  %v15607_v44 = vld [vmem:[#allocation7 + $0x168] sm:$0xff]  }
 0xa97   : > { %v8759_v26 = vpop.f32.mrf.mxu0  ;;  %vm9490_vm11 = vcmp.gt.f32.partialorder %v19109_v17, 0.0 }
 0xa98   : > { %15935 = vpow2.f32 %v9553_v15  ;;  %v9533_v28 = vmul.f32 1.442695, %v9510_v31  ;;  %v19120_v42 = vadd.f32 %v9436_v34, %v8759_v26  ;;  %v9521_v39 = vmin.f32 %v19118_v35, 0.0 }
 0xa99   : > { %v15924_v54 = vpop.eup %15923 }
 0xa9a   : > { %15937 = vpow2.f32 %v9533_v28  ;;  %v15926_v2 = vpop.eup %15925  ;;  %v13750_v23 = vadd.f32 -1.0, %v15924_v54  ;;  %v15606_v28 = vld [vmem:[#allocation7 + $0x130] sm:$0xff]   ;;  %v9555_v34 = vmul.f32 1.442695, %v9521_v39  ;;  %vm9491_vm1 = vcmp.gt.f32.partialorder %v19120_v42, 0.0 }
 0xa9b   : > { %v13760_v48 = vadd.f32 -1.0, %v15926_v2 }
 0xa9c   : > { %v9587_v1 = vsel %vm9487_vm2, %v9467_v33, %v13750_v23 }
 0xa9d   : > { %v15928_v58 = vpop.eup %15927  ;;  %v9597_v60 = vsel %vm9497_vm6, %v19091_v25, %v13760_v48  ;;  %v9511_v25 = vmin.f32 %v19120_v42, 0.0 }
 0xa9e   : > { %v13761_v51 = vadd.f32 -1.0, %v15928_v58  ;;  %v9607_v6 = vpack.c.bf16 %v9597_v60, %v9587_v1  ;;  %v15610_v60 = vld [vmem:[#allocation7 + $0x1b8] sm:$0xff]  }
 0xa9f   : > { %v15930_v12 = vpop.eup %15929 }
 0xaa0   : > { %v13751_v14 = vadd.f32 -1.0, %v15930_v12  ;;  %v9598_v46 = vsel %vm9498_vm3, %v9478_v40, %v13761_v51  ;;  %v15604_v40 = vld [vmem:[#allocation7 + $0x170] sm:$0xff]   ;;  %vm9501_vm3 = vcmp.gt.f32.partialorder %v19118_v35, 0.0 }
 0xaa1   : > { %v15215_v57 = vpop.f32.mrf.mxu0  ;;  %v15932_v33 = vpop.eup %15931 }
 0xaa2   : > { %v19122_v29 = vadd.f32 %v15215_v57, %v9440_v30  ;;  %v9588_v10 = vsel %vm9488_vm5, %v9468_v3, %v13751_v14  ;;  %v13762_v2 = vadd.f32 -1.0, %v15932_v33 }
 0xaa3   : > { %v8888_v62 = vpop.f32.mrf.mxu0  ;;  %v9608_v36 = vpack.c.bf16 %v9598_v46, %v9588_v10  ;;  %v15934_v24 = vpop.eup %15933  ;;  %v15609_v10 = vld [vmem:[#allocation7 + $0x128] sm:$0xff]  }
 0xaa4   : > { %v9522_v18 = vmin.f32 %v19122_v29, 0.0  ;;  %v15229_v53 = vpop.f32.mrf.mxu1  ;;  %v19136_v49 = vadd.f32 %v9440_v30, %v8888_v62  ;;  %v13752_v43 = vadd.f32 -1.0, %v15934_v24  ;;  %v9535_v30 = vmul.f32 1.442695, %v9511_v25  ;;  %v15612_v24 = vld [vmem:[#allocation7 + $0x1f0] sm:$0xff]   ;;  %v15616_v25 = vld [vmem:[#allocation7 + $0x1e8] sm:$0xff]  }
 0xaa5   : > { %v19139_v3 = vadd.f32 %v15229_v53, %v9448_v63  ;;  %v15936_v8 = vpop.eup %15935  ;;  %10289 = vmatprep.mubr.bf16.mxu0 %v9608_v36  ;;  %v15611_v53 = vld [vmem:[#allocation7 + $0x160] sm:$0xff]   ;;  %vm9502_vm13 = vcmp.gt.f32.partialorder %v19122_v29, 0.0 }
 0xaa6   : > { %v9557_v37 = vmul.f32 1.442695, %v9522_v18  ;;  %v9512_v59 = vmin.f32 %v19136_v49, 0.0  ;;  %v9146_v32 = vpop.f32.mrf.mxu1  ;;  %10290 = vmatmul.mubr.bf16.vlgmr.msra.gmra.mxu0 %v9607_v6  ;;  %v13763_v54 = vadd.f32 -1.0, %v15936_v8  ;;  %v9589_v48 = vsel %vm9489_vm7, %v19103_v61, %v13752_v43  ;;  %v15615_v8 = vld [vmem:[#allocation7 + $0x158] sm:$0xff]  }
 0xaa7   : > { %v9524_v16 = vmin.f32 %v19139_v3, 0.0  ;;  %v19148_v52 = vadd.f32 %v9448_v63, %v9146_v32  ;;  %v15938_v7 = vpop.eup %15937  ;;  %14903 = vmatpush3.bf16.msra.mxu0 %v15602_v50  ;;  %v9599_v61 = vsel %vm9499_vm12, %v19098_v9, %v13762_v2  ;;  %v15613_v9 = vld [vmem:[#allocation7 + $0x120] sm:$0xff]   ;;  %vm9492_vm14 = vcmp.gt.f32.partialorder %v19136_v49, 0.0 }
 0xaa8   : > { %15939 = vpow2.f32 %v9557_v37  ;;  %v9537_v15 = vmul.f32 1.442695, %v9512_v59  ;;  %v15243_v31 = vpop.f32.mrf.mxu1  ;;  %14904 = vmatprep.subr.bf16.mxu0 %v15604_v40  ;;  %v13753_v12 = vadd.f32 -1.0, %v15938_v7  ;;  %v9600_v62 = vsel %vm9500_vm8, %v19105_v38, %v13763_v54  ;;  %v15614_v40 = vld [vmem:[#allocation7 + $0x1b0] sm:$0xff]   ;;  %v15617_v59 = vld [vmem:[#allocation7 + $0x118] sm:$0xff]   ;;  %v15618_v7 = vld [vmem:[#allocation7 + $0x1a8] sm:$0xff]  }
 0xaa9   : > { %v9561_v58 = vmul.f32 1.442695, %v9524_v16  ;;  %v9514_v23 = vmin.f32 %v19148_v52, 0.0  ;;  %v19152_v26 = vadd.f32 %v15243_v31, %v9456_v20  ;;  %v9609_v36 = vpack.c.bf16 %v9599_v61, %v9589_v48  ;;  %v15620_v31 = vld [vmem:[#allocation7 + $0x1e0] sm:$0xff]   ;;  %v15625_v61 = vld [vmem:[#allocation7 + $0x108] sm:$0xff]  }
 0xaaa   : > { %15941 = vpow2.f32 %v9537_v15  ;;  %v9404_v51 = vpop.f32.mrf.mxu1  ;;  %v9590_v1 = vsel %vm9490_vm11, %v19109_v17, %v13753_v12  ;;  %v15619_v15 = vld [vmem:[#allocation7 + $0x150] sm:$0xff]   ;;  %vm9504_vm15 = vcmp.gt.f32.partialorder %v19139_v3, 0.0  ;;  %vm9494_vm0 = vcmp.gt.f32.partialorder %v19148_v52, 0.0 }
 0xaab   : > { %15943 = vpow2.f32 %v9561_v58  ;;  %v9541_v63 = vmul.f32 1.442695, %v9514_v23  ;;  %v19157_v57 = vadd.f32 %v9456_v20, %v9404_v51  ;;  %v9526_v14 = vmin.f32 %v19152_v26, 0.0  ;;  %14905 = vmatpush3.bf16.msra.mxu0 %v15606_v28  ;;  %v15623_v58 = vld [vmem:[#allocation7 + $0x148] sm:$0xff]   ;;  %v15624_v51 = vld [vmem:[#allocation7 + $0x1d8] sm:$0xff]  }
 0xaac   : > { %v9610_v33 = vpack.c.bf16 %v9600_v62, %v9590_v1  ;;  %14906 = vmatprep.subr.bf16.mxu0 %v15607_v44  ;;  %v15621_v44 = vld [vmem:[#allocation7 + $0x110] sm:$0xff]   ;;  %vm9506_vm5 = vcmp.gt.f32.partialorder %v19152_v26, 0.0 }
 0xaad   : > { %15945 = vpow2.f32 %v9541_v63  ;;  %v9516_v46 = vmin.f32 %v19157_v57, 0.0  ;;  %v15222_v18 = vpop.f32.mrf.mxu0  ;;  %v9565_v50 = vmul.f32 1.442695, %v9526_v14  ;;  %vm9496_vm2 = vcmp.gt.f32.partialorder %v19157_v57, 0.0 }
 0xaae   : > { %15947 = vpow2.f32 %v9535_v30  ;;  %v19170_v17 = vadd.f32 %v15222_v18, %v19132_v0  ;;  %10330 = vmatprep.mubr.bf16.mxu1 %v9610_v33  ;;  %v15626_v33 = vld [vmem:[#allocation7 + $0x198] sm:$0xff]  }
 0xaaf   : > { %15949 = vpow2.f32 %v9555_v34  ;;  %v9545_v38 = vmul.f32 1.442695, %v9516_v46  ;;  %v9017_v6 = vpop.f32.mrf.mxu0  ;;  %10331 = vmatmul.mubr.bf16.vlgmr.msra.gmra.mxu1 %v9609_v36  ;;  %14907 = vmatpush3.bf16.msra.mxu0 %v15609_v10  ;;  %v15622_v34 = vld [vmem:[#allocation7 + $0x1a0] sm:$0xff]  }
 0xab0   : > { %15951 = vpow2.f32 %v9565_v50  ;;  %14925 = vmatpush3.bf16.msra.mxu1 %v15610_v60  ;;  %v9523_v39 = vmin.f32 %v19170_v17, 0.0  ;;  %v19174_v20 = vadd.f32 %v19132_v0, %v9017_v6  ;;  %14908 = vmatprep.subr.bf16.mxu0 %v15611_v53  ;;  %v15628_v50 = vld [vmem:[#allocation7 + $0x1d0] sm:$0xff]   ;;  %vm9503_vm7 = vcmp.gt.f32.partialorder %v19170_v17, 0.0 }
 0xab1   : > { %15953 = vpow2.f32 %v9545_v38  ;;  %14926 = vmatprep.subr.bf16.mxu1 %v15612_v24  ;;  %v15236_v14 = vpop.f32.mrf.mxu0 }
 0xab2   : > { %v9513_v37 = vmin.f32 %v19174_v20, 0.0  ;;  %v9559_v43 = vmul.f32 1.442695, %v9523_v39  ;;  %v15629_v39 = vld [vmem:[#allocation7 + $0x100] sm:$0xff]   ;;  %vm9493_vm6 = vcmp.gt.f32.partialorder %v19174_v20, 0.0 }
 0xab3   : > { %14909 = vmatpush3.bf16.msra.mxu0 %v15613_v9  ;;  %v9275_v24 = vpop.f32.mrf.mxu0  ;;  %v9452_v9 = vrot.slane %v19127_v4, %v18710_v11 }
 0xab4   : > { %v9539_v16 = vmul.f32 1.442695, %v9513_v37  ;;  %14927 = vmatpush3.bf16.msra.mxu1 %v15614_v40  ;;  %14910 = vmatprep.subr.bf16.mxu0 %v15615_v8  ;;  %v15631_v37 = vld [vmem:[#allocation7 + $0x1c8] sm:$0xff]  }
 0xab5   : > { %v15940_v32 = vpop.eup %15939  ;;  %14928 = vmatprep.subr.bf16.mxu1 %v15616_v25  ;;  %v19190_v25 = vadd.f32 %v9452_v9, %v9275_v24 }
 0xab6   : > { %v13765_v0 = vadd.f32 -1.0, %v15940_v32  ;;  %15955 = vpow2.f32 %v9539_v16  ;;  %v15634_v16 = vld [vmem:[#allocation7 + $0x238] sm:$0xff]  }
 0xab7   : > { %v15942_v28 = vpop.eup %15941  ;;  %14911 = vmatpush3.bf16.msra.mxu0 %v15617_v59  ;;  %15957 = vpow2.f32 %v9559_v43  ;;  %v19196_v43 = vadd.f32 %v15236_v14, %v9452_v9  ;;  %vm9495_vm8 = vcmp.gt.f32.partialorder %v19190_v25, 0.0  ;;  %v10476_v9 = vld [vmem:[%s19615_s5 + $0x70] sm:$0xff] }
 0xab8   : > { %v15944_v54 = vpop.eup %15943  ;;  %v13755_v2 = vadd.f32 -1.0, %v15942_v28  ;;  %14929 = vmatpush3.bf16.msra.mxu1 %v15618_v7  ;;  %14912 = vmatprep.subr.bf16.mxu0 %v15619_v15  ;;  %v9602_v48 = vsel %vm9502_vm13, %v19122_v29, %v13765_v0  ;;  %v15627_v29 = vld [vmem:[#allocation7 + $0x140] sm:$0xff]   ;;  %v15633_v7 = vld [vmem:[#allocation7 + $0x188] sm:$0xff]   ;;  %v9515_v28 = vmin.f32 %v19190_v25, 0.0 }
 0xab9   : > { %v13767_v23 = vadd.f32 -1.0, %v15944_v54  ;;  %14930 = vmatprep.subr.bf16.mxu1 %v15620_v31  ;;  %v15636_v31 = vld [vmem:[#allocation7 + $0x270] sm:$0xff]   ;;  %v15635_v54 = vld [vmem:[#allocation7 + $0x1c0] sm:$0xff]   ;;  %vm9505_vm11 = vcmp.gt.f32.partialorder %v19196_v43, 0.0 }
 0xaba   : > { %v15946_v30 = vpop.eup %15945  ;;  %v9592_v12 = vsel %vm9492_vm14, %v19136_v49, %v13755_v2  ;;  %v15638_v2 = vld [vmem:[#allocation7 + $0x230] sm:$0xff]  }
 0xabb   : > { %v15948_v63 = vpop.eup %15947  ;;  %v9612_v1 = vpack.c.bf16 %v9602_v48, %v9592_v12  ;;  %v13757_v62 = vadd.f32 -1.0, %v15946_v30  ;;  %14913 = vmatpush3.bf16.msra.mxu0 %v15621_v44  ;;  %v9604_v49 = vsel %vm9504_vm15, %v19139_v3, %v13767_v23  ;;  %v15630_v3 = vld [vmem:[#allocation7 + $0x190] sm:$0xff]   ;;  %v9525_v44 = vmin.f32 %v19196_v43, 0.0  ;;  %v15639_v23 = vld [vmem:[#allocation7 + $0x268] sm:$0xff]  }
 0xabc   : > { %v15950_v10 = vpop.eup %15949  ;;  %14931 = vmatpush3.bf16.msra.mxu1 %v15622_v34  ;;  %14914 = vmatprep.subr.bf16.mxu0 %v15623_v58  ;;  %v13754_v53 = vadd.f32 -1.0, %v15948_v63  ;;  %v15637_v58 = vld [vmem:[#allocation7 + $0x180] sm:$0xff]   ;;  %v15640_v12 = vld [vmem:[#allocation7 + $0x228] sm:$0xff]  }
 0xabd   : > { %v15952_v46 = vpop.eup %15951  ;;  %v9594_v60 = vsel %vm9494_vm0, %v19148_v52, %v13757_v62  ;;  %14932 = vmatprep.subr.bf16.mxu1 %v15624_v51  ;;  %10371 = vmatprep.mubr.bf16.mxu0 %v9612_v1  ;;  %v13764_v6 = vadd.f32 -1.0, %v15950_v10  ;;  %v15632_v52 = vld [vmem:[#allocation7 + $0x278] sm:$0xff]   ;;  %v9563_v51 = vmul.f32 1.442695, %v9525_v44  ;;  %v15641_v63 = vld [vmem:[#allocation7 + $0x260] sm:$0xff]   ;;  %v15645_v10 = vld [vmem:[#allocation7 + $0x250] sm:$0xff]  }
 0xabe   : > { %v15954_v18 = vpop.eup %15953  ;;  %v9614_v36 = vpack.c.bf16 %v9604_v49, %v9594_v60  ;;  %v13769_v40 = vadd.f32 -1.0, %v15952_v46  ;;  %v9591_v8 = vsel %vm9491_vm1, %v19120_v42, %v13754_v53  ;;  %v15642_v1 = vld [vmem:[#allocation7 + $0x220] sm:$0xff]   ;;  %v15643_v62 = vld [vmem:[#allocation7 + $0x258] sm:$0xff]   ;;  %v15647_v46 = vld [vmem:[#allocation7 + $0x248] sm:$0xff]  }
 0xabf   : > { %v13759_v38 = vadd.f32 -1.0, %v15954_v18  ;;  %14915 = vmatpush3.bf16.msra.mxu0 %v15625_v61  ;;  %v9601_v32 = vsel %vm9501_vm3, %v19118_v35, %v13764_v6  ;;  %v15646_v61 = vld [vmem:[#allocation7 + $0x210] sm:$0xff]   ;;  %v15649_v49 = vld [vmem:[#allocation7 + $0x240] sm:$0xff]  }
 0xac0   : > { %10412 = vmatprep.mubr.bf16.mxu1 %v9614_v36  ;;  %14933 = vmatpush3.bf16.msra.mxu1 %v15626_v33  ;;  %v9611_v42 = vpack.c.bf16 %v9601_v32, %v9591_v8  ;;  %v9606_v15 = vsel %vm9506_vm5, %v19152_v26, %v13769_v40  ;;  %v9543_v26 = vmul.f32 1.442695, %v9515_v28  ;;  %v15648_v33 = vld [vmem:[#allocation7 + $0x208] sm:$0xff]   ;;  %v15650_v53 = vld [vmem:[#allocation7 + $0x200] sm:$0xff]   ;;  %v10477_v6 = vld [vmem:[%s19615_s5 + $0x78] sm:$0xff] }
 0xac1   : > { %14916 = vmatprep.subr.bf16.mxu0 %v15627_v29  ;;  %14934 = vmatprep.subr.bf16.mxu1 %v15628_v50  ;;  %v9596_v4 = vsel %vm9496_vm2, %v19157_v57, %v13759_v38  ;;  %v19614_v38 = vmov 0.0   ;;  %v10472_v40 = vld [vmem:[%s19615_s5 + $0x50] sm:$0xff]  ;;  %v10471_v8 = vld [vmem:[%s19615_s5 + $0x48] sm:$0xff]  ;;  %v10466_v32 = vld [vmem:[%s19615_s5 + $0x20] sm:$0xff] }
 0xac2   : > { %v9616_v57 = vpack.c.bf16 %v9606_v15, %v9596_v4  ;;  %15959 = vpow2.f32 %v9543_v26  ;;  %v10468_v4 = vld [vmem:[%s19615_s5 + $0x30] sm:$0xff] }
 0xac3   : > { %v15956_v59 = vpop.eup %15955  ;;  %14917 = vmatpush3.bf16.msra.mxu0 %v15629_v39  ;;  %15961 = vpow2.f32 %v9563_v51  ;;  %v10475_v39 = vld [vmem:[%s19615_s5 + $0x68] sm:$0xff] }
 0xac4   : > { %14935 = vmatpush3.bf16.msra.mxu1 %v15630_v3  ;;  %14946 = vmatprep.subr.bf16.mxu0 %v15632_v52  ;;  %v15958_v0 = vpop.eup %15957  ;;  %v13756_v35 = vadd.f32 -1.0, %v15956_v59  ;;  %v10474_v3 = vld [vmem:[%s19615_s5 + $0x60] sm:$0xff]  ;;  %v10473_v52 = vld [vmem:[%s19615_s5 + $0x58] sm:$0xff]  ;;  %v10467_v59 = vld [vmem:[%s19615_s5 + $0x28] sm:$0xff] }
 0xac5   : > { %14936 = vmatprep.subr.bf16.mxu1 %v15631_v37  ;;  %v13766_v34 = vadd.f32 -1.0, %v15958_v0  ;;  %v10469_v37 = vld [vmem:[%s19615_s5 + $0x38] sm:$0xff] }
 0xac6   : > { %10372 = vmatmul.mubr.bf16.vlgmr.msra.gmra.mxu0 %v9611_v42  ;;  %v9593_v30 = vsel %vm9493_vm6, %v19174_v20, %v13756_v35  ;;  %v15644_v20 = vld [vmem:[#allocation7 + $0x218] sm:$0xff]   ;;  %v10463_v42 = vld [vmem:[%s19615_s5 + $0x8] sm:$0xff] }
 0xac7   : > { %14947 = vmatpush3.bf16.msra.mxu0 %v15634_v16  ;;  %10453 = vmatprep.mubr.bf16.mxu0 %v9616_v57  ;;  %v9603_v48 = vsel %vm9503_vm7, %v19170_v17, %v13766_v34  ;;  %v10464_v16 = vld [vmem:[%s19615_s5 + $0x10] sm:$0xff] }
 0xac8   : > { %14937 = vmatpush3.bf16.msra.mxu1 %v15633_v7  ;;  %14948 = vmatprep.subr.bf16.mxu0 %v15636_v31  ;;  %v9613_v14 = vpack.c.bf16 %v9603_v48, %v9593_v30  ;;  %v10462_v7 = vld [vmem:[%s19615_s5] sm:$0xff] }
 0xac9   : > { %14938 = vmatprep.subr.bf16.mxu1 %v15635_v54 }
 0xacb   : > { %14949 = vmatpush3.bf16.msra.mxu0 %v15638_v2 }
 0xacc   : > { %14939 = vmatpush3.bf16.msra.mxu1 %v15637_v58  ;;  %14950 = vmatprep.subr.bf16.mxu0 %v15639_v23 }
 0xacd   : > { %15244 = vmatprep.subr.mxu1 %v10477_v6 }
 0xacf   : > { %10413 = vmatmul.mubr.bf16.vlgmr.msra.gmra.mxu1 %v9613_v14  ;;  %14951 = vmatpush3.bf16.msra.mxu0 %v15640_v12  ;;  %v15960_v17 = vpop.eup %15959 }
 0xad0   : > { %14952 = vmatprep.subr.bf16.mxu0 %v15641_v63  ;;  %v15962_v60 = vpop.eup %15961  ;;  %v13758_v29 = vadd.f32 -1.0, %v15960_v17  ;;  %15245 = vmatpush3.msra.mxu1 %v10477_v6 }
 0xad1   : > { %v13768_v18 = vadd.f32 -1.0, %v15962_v60  ;;  %15246 = vmatprep.subr.mxu1 %v10476_v9 }
 0xad2   : > { %v9595_v36 = vsel %vm9495_vm8, %v19190_v25, %v13758_v29  ;;  %15247 = vmatpush3.msra.mxu1 %v10476_v9  ;;  %v10470_v25 = vld [vmem:[%s19615_s5 + $0x40] sm:$0xff] }
 0xad3   : > { %14953 = vmatpush3.bf16.msra.mxu0 %v15642_v1  ;;  %v9605_v50 = vsel %vm9505_vm11, %v19196_v43, %v13768_v18  ;;  %15248 = vmatprep.subr.mxu1 %v10475_v39  ;;  %v10465_v43 = vld [vmem:[%s19615_s5 + $0x18] sm:$0xff] }
 0xad4   : > { %14954 = vmatprep.subr.bf16.mxu0 %v15643_v62  ;;  %v9615_v24 = vpack.c.bf16 %v9605_v50, %v9595_v36  ;;  %15249 = vmatpush3.msra.mxu1 %v10475_v39 }
 0xad5   : > { %15250 = vmatprep.subr.mxu1 %v10474_v3 }
 0xad6   : > { %15251 = vmatpush3.msra.mxu1 %v10474_v3 }
 0xad7   : > { %14955 = vmatpush3.bf16.msra.mxu0 %v15644_v20  ;;  %15252 = vmatprep.subr.mxu1 %v10473_v52 }
 0xad8   : > { %14956 = vmatprep.subr.bf16.mxu0 %v15645_v10  ;;  %15253 = vmatpush3.msra.mxu1 %v10473_v52 }
 0xad9   : > { %15254 = vmatprep.subr.mxu1 %v10472_v40 }
 0xada   : > { %15255 = vmatpush3.msra.mxu1 %v10472_v40 }
 0xadb   : > { %14957 = vmatpush3.bf16.msra.mxu0 %v15646_v61  ;;  %15256 = vmatprep.subr.mxu1 %v10471_v8 }
 0xadc   : > { %14958 = vmatprep.subr.bf16.mxu0 %v15647_v46  ;;  %15257 = vmatpush3.msra.mxu1 %v10471_v8 }
 0xadd   : > { %15258 = vmatprep.subr.mxu1 %v10470_v25 }
 0xade   : > { %15259 = vmatpush3.msra.mxu1 %v10470_v25 }
 0xadf   : > { %14959 = vmatpush3.bf16.msra.mxu0 %v15648_v33  ;;  %15260 = vmatprep.subr.mxu1 %v10469_v37 }
 0xae0   : > { %14960 = vmatprep.subr.bf16.mxu0 %v15649_v49  ;;  %15261 = vmatpush3.msra.mxu1 %v10469_v37 }
 0xae1   : > { %15262 = vmatprep.subr.mxu1 %v10468_v4 }
 0xae2   : > { %15263 = vmatpush3.msra.mxu1 %v10468_v4 }
 0xae3   : > { %14961 = vmatpush3.bf16.msra.mxu0 %v15650_v53  ;;  %15264 = vmatprep.subr.mxu1 %v10467_v59 }
 0xae4   : > { %15286 = vmatprep.subr.mxu0 %v19614_v38  ;;  %15265 = vmatpush3.msra.mxu1 %v10467_v59 }
 0xae5   : > { %15266 = vmatprep.subr.mxu1 %v10466_v32 }
 0xae6   : > { %10454 = vmatmul.mubr.bf16.vlgmr.msra.gmra.mxu0 %v9615_v24  ;;  %15267 = vmatpush3.msra.mxu1 %v10466_v32 }
 0xae7   : > { %15268 = vmatprep.subr.mxu1 %v10465_v43 }
 0xae8   : > { %15269 = vmatpush3.msra.mxu1 %v10465_v43 }
 0xae9   : > { %15270 = vmatprep.subr.mxu1 %v10464_v16 }
 0xaea   : > { %15271 = vmatpush3.msra.mxu1 %v10464_v16 }
 0xaeb   : > { %15272 = vmatprep.subr.mxu1 %v10463_v42 }
 0xaec   : > { %15273 = vmatpush3.msra.mxu1 %v10463_v42 }
 0xaed   : > { %15274 = vmatprep.subr.mxu1 %v10462_v7 }
 0xaee   : > { %15275 = vmatpush3.msra.mxu1 %v10462_v7 }
 0xb66   : > { %v14874_v15 = vpop.f32.mrf.mxu0 }
 0xb68   : > { %v14875_v0 = vpop.f32.mrf.mxu0 }
 0xb69   : > { %v14876_v12 = vadd.f32 %v14875_v0, %v14874_v15 }
 0xb6a   : > { %v14877_v57 = vpop.f32.mrf.mxu0 }
 0xb6c   : > { %v14878_v35 = vpop.f32.mrf.mxu0 }
 0xb6d   : > { %v14879_v61 = vadd.f32 %v14878_v35, %v14877_v57 }
 0xb6f   : > { %v14896_v31 = vpop.f32.mrf.mxu1 }
 0xb71   : > { %v14897_v28 = vpop.f32.mrf.mxu1 }
 0xb72   : > { %v14898_v30 = vadd.f32 %v14897_v28, %v14896_v31 }
 0xb73   : > { %v14899_v54 = vpop.f32.mrf.mxu1 }
 0xb74   : > { %v10333_v14 = vadd.f32 %v14898_v30, %v14876_v12 }
 0xb75   : > { %v14900_v44 = vpop.f32.mrf.mxu1 }
 0xb76   : > { %v14901_v1 = vadd.f32 %v14900_v44, %v14899_v54 }
 0xb78   : > { %v10336_v60 = vadd.f32 %v14901_v1, %v14879_v61  ;;  %v10942_v61 = vld [vmem:[#allocation11 + $0x1c0] sm:$0xff] }
 0xb86   : > { %v14918_v2 = vpop.f32.mrf.mxu0 }
 0xb88   : > { %v14919_v58 = vpop.f32.mrf.mxu0 }
 0xb89   : > { %v14920_v48 = vadd.f32 %v14919_v58, %v14918_v2 }
 0xb8a   : > { %v14921_v26 = vpop.f32.mrf.mxu0 }
 0xb8b   : > { %v10374_v46 = vadd.f32 %v14920_v48, %v10333_v14 }
 0xb8c   : > { %v14922_v63 = vpop.f32.mrf.mxu0 }
 0xb8d   : > { %v14923_v17 = vadd.f32 %v14922_v63, %v14921_v26 }
 0xb8f   : > { %v14940_v34 = vpop.f32.mrf.mxu1  ;;  %v10377_v36 = vadd.f32 %v14923_v17, %v10336_v60  ;;  %v10747_v60 = vld [vmem:[%s19547_s14 + $0x78] sm:$0xff] }
 0xb90   : > { %15287 = vmatpush3.msra.mxu0 %v10747_v60 }
 0xb91   : > { %v14941_v23 = vpop.f32.mrf.mxu1  ;;  %15288 = vmatprep.subr.mxu0 %v19614_v38 }
 0xb92   : > { %v14942_v62 = vadd.f32 %v14941_v23, %v14940_v34 }
 0xb93   : > { %v14943_v51 = vpop.f32.mrf.mxu1 }
 0xb94   : > { %v10415_v49 = vadd.f32 %v14942_v62, %v10374_v46  ;;  %v15972_v62 = vld [vmem:[%s18707_s3 + $0x8] sm:$0xff] }
 0xb95   : > { %v14944_v20 = vpop.f32.mrf.mxu1  ;;  %v10946_v46 = vld [vmem:[#allocation11 + $0x1e0] sm:$0xff] }
 0xb96   : > { %v14945_v29 = vadd.f32 %v14944_v20, %v14943_v51  ;;  %v13909_v17 = vcombine.low %v10942_v61, %v10946_v46 }
 0xb98   : > { %v10418_v6 = vadd.f32 %v14945_v29, %v10377_v36  ;;  %v10745_v29 = vld [vmem:[%s19547_s14 + $0x68] sm:$0xff]  ;;  %v10742_v36 = vld [vmem:[%s19547_s14 + $0x50] sm:$0xff] }
 0xba6   : > { %v14962_v10 = vpop.f32.mrf.mxu0 }
 0xba8   : > { %v14963_v33 = vpop.f32.mrf.mxu0 }
 0xba9   : > { %v14964_v18 = vadd.f32 %v14963_v33, %v14962_v10  ;;  %v13910_v33 = vcombine.high %v10942_v61, %v10946_v46  ;;  %v10928_v46 = vld [vmem:[#allocation11 + $0x150] sm:$0xff] }
 0xbaa   : > { %v14965_v53 = vpop.f32.mrf.mxu0 }
 0xbab   : > { %v10456_v50 = vadd.f32 %v14964_v18, %v10415_v49  ;;  %v10746_v49 = vld [vmem:[%s19547_s14 + $0x70] sm:$0xff]  ;;  %v10744_v18 = vld [vmem:[%s19547_s14 + $0x60] sm:$0xff] }
 0xbac   : > { %v14966_v24 = vpop.f32.mrf.mxu0  ;;  %15289 = vmatpush3.msra.mxu0 %v10746_v49  ;;  %v10920_v49 = vld [vmem:[#allocation11 + $0x110] sm:$0xff] }
 0xbad   : > { %v14967_v9 = vadd.f32 %v14966_v24, %v14965_v53  ;;  %15276 = vmatprep.mubr.f32.mxu1 %v10456_v50  ;;  %15290 = vmatprep.subr.mxu0 %v19614_v38  ;;  %v10743_v53 = vld [vmem:[%s19547_s14 + $0x58] sm:$0xff] }
 0xbae   : > { %15291 = vmatpush3.msra.mxu0 %v10745_v29  ;;  %v10924_v29 = vld [vmem:[#allocation11 + $0x130] sm:$0xff] }
 0xbaf   : > { %v10459_v39 = vadd.f32 %v14967_v9, %v10418_v6  ;;  %15292 = vmatprep.subr.mxu0 %v19614_v38 }
 0xbb0   : > { %15293 = vmatpush3.msra.mxu0 %v10744_v18 }
 0xbb1   : > { %15277 = vmatmul.mubr.f32.vlgmr.msra.gmra.mxu1 %v10459_v39  ;;  %15279 = vmatprep.subr.mxu1 %v10459_v39 }
 0xbb2   : > { %15280 = vmatpush3.msra.mxu1 %v10459_v39  ;;  %15294 = vmatprep.subr.mxu0 %v19614_v38 }
 0xbb3   : > { %15281 = vmatprep.subr.mxu1 %v10456_v50  ;;  %15295 = vmatpush3.msra.mxu0 %v10743_v53  ;;  %v13890_v53 = vcombine.high %v10920_v49, %v10924_v29 }
 0xbb4   : > { %15282 = vmatpush3.msra.mxu1 %v10456_v50  ;;  %15296 = vmatprep.subr.mxu0 %v19614_v38 }
 0xbb5   : > { %11270 = vmatprep.subr.bf16.mxu1 %v13910_v33  ;;  %15297 = vmatpush3.msra.mxu0 %v10742_v36  ;;  %v10916_v36 = vld [vmem:[#allocation11 + $0xf0] sm:$0xff] }
 0xbb6   : > { %15298 = vmatprep.subr.mxu0 %v19614_v38 }
 0xc71   : > { %v15278_v3 = vpop.f32.mrf.mxu1 }
 0xc72   : > { %10592 = vperm.xlu1 %15448, %v15278_v3  }
 0xc73   : > { %v10544_v52 = vpop.f32.mrf.mxu1 }
 0xc74   : > { %10587 = vperm.xlu0 %15447, %v10544_v52  }
 0xc9b   : > { %10553 = vxpose.xlu1.b32.start [1/2] (short) (narrow) %v10544_v52, 72  ;;  %v10934_v52 = vld [vmem:[#allocation11 + $0x180] sm:$0xff] }
 0xc9f   : > { %10554 = vxpose.xlu1.b32.end [2/2] (short) (narrow) %v15278_v3, 72 }
 0xced   : > { %v10593_v40 = vpop.permute.xlu1 %10592 }
 0xcef   : > { %v10588_v15 = vpop.permute.xlu0 %10587 }
 0xd17   : > { %v10569_v8 = vpop.trf.xlu1 }
 0xd1b   : > { %v10570_v25 = vpop.trf.xlu1 }
 0xd1f   : > { %v10571_v37 = vpop.trf.xlu1 }
 0xd23   : > { %v10572_v4 = vpop.trf.xlu1 }
 0xd24   : > { %v10926_v4 = vld [vmem:[#allocation11 + $0x140] sm:$0xff] }
 0xd27   : > { %v10573_v59 = vpop.trf.xlu1 }
 0xd28   : > { %v10930_v59 = vld [vmem:[#allocation11 + $0x160] sm:$0xff] }
 0xd2b   : > { %v10574_v32 = vpop.trf.xlu1 }
 0xd2f   : > { %v10575_v43 = vpop.trf.xlu1 }
 0xd30   : > { %v13894_v43 = vcombine.high %v10926_v4, %v10930_v59 }
 0xd33   : > { %v10576_v16 = vpop.trf.xlu1 }
 0xd34   : > { %v10918_v16 = vld [vmem:[#allocation11 + $0x100] sm:$0xff] }
 0xd37   : > { %v10577_v42 = vpop.trf.xlu1 }
 0xd38   : > { %v10598_v7 = vrot.slane %v10577_v42, %v18710_v11  ;;  %v10922_v42 = vld [vmem:[#allocation11 + $0x120] sm:$0xff] }
 0xd3a   : > { %v10599_v31 = vadd.f32 %v10598_v7, %v10588_v15  ;;  %v10600_v0 = vadd.f32 %v10598_v7, %v10593_v40  ;;  %v10938_v40 = vld [vmem:[#allocation11 + $0x1a0] sm:$0xff]  ;;  %v13893_v7 = vcombine.low %v10926_v4, %v10930_v59  ;;  %v13886_v15 = vcombine.high %v10918_v16, %v10922_v42  ;;  %v10892_v4 = vld [vmem:[#allocation11 + $0x30] sm:$0xff] }
 0xd3b   : > { %v13902_v37 = vcombine.high %v10934_v52, %v10938_v40  ;;  %v13901_v32 = vcombine.low %v10934_v52, %v10938_v40  ;;  %v10896_v52 = vld [vmem:[#allocation11 + $0x50] sm:$0xff] }
 0xd3c   : > { %v10603_v28 = vmul.f32 0.2, %v10599_v31  ;;  %v10604_v57 = vmul.f32 0.2, %v10600_v0  ;;  %vm10602_vm12 = vcmp.ge.f32.partialorder %v10600_v0, 0.0  ;;  %vm10601_vm13 = vcmp.ge.f32.partialorder %v10599_v31, 0.0 }
 0xd3d   : > { %v10900_v40 = vld [vmem:[#allocation11 + $0x70] sm:$0xff] }
 0xd3e   : > { %v10606_v54 = vsel %vm10602_vm12, %v10600_v0, %v10604_v57  ;;  %v10605_v35 = vsel %vm10601_vm13, %v10599_v31, %v10603_v28  ;;  %v10910_v31 = vld [vmem:[#allocation11 + $0xc0] sm:$0xff]  ;;  %v13885_v28 = vcombine.low %v10918_v16, %v10922_v42  ;;  %v13865_v59 = vcombine.low %v10896_v52, %v10900_v40 }
 0xd3f   : > { %v10608_v44 = vsel %vm8141_vm4, %v10606_v54, -1e+30  ;;  %v10607_v2 = vsel %vm8140_vm10, %v10605_v35, -1e+30  ;;  %v10914_v0 = vld [vmem:[#allocation11 + $0xe0] sm:$0xff]  ;;  %vm16213_vm4 = vmmov 0  }
 0xd40   : > { %v10612_v34 = vsel %vm8144_vm9, %v10608_v44, -inf  ;;  %v10609_v58 = vsel %vm8144_vm9, %v10607_v2, -inf  ;;  %v13878_v57 = vcombine.high %v10910_v31, %v10914_v0  ;;  %v10902_v54 = vld [vmem:[#allocation11 + $0x80] sm:$0xff]  ;;  %15318 = vmatprep.mubr.msk.f32.mxu0 %vm16213_vm4, %v19614_v38 }
 0xd41   : > { %10613 = vmax.xlane.f32.xlu1 %v10612_v34  ;;  %10610 = vmax.xlane.f32.xlu0 %v10609_v58  ;;  %v10906_v35 = vld [vmem:[#allocation11 + $0xa0] sm:$0xff] }
 0xd42   : > { %v10894_v34 = vld [vmem:[#allocation11 + $0x40] sm:$0xff] }
 0xd43   : > { %v10898_v58 = vld [vmem:[#allocation11 + $0x60] sm:$0xff] }
 0xd44   : > { %v10741_v16 = vld [vmem:[%s19547_s14 + $0x48] sm:$0xff]  ;;  %v10740_v42 = vld [vmem:[%s19547_s14 + $0x40] sm:$0xff] }
 0xd45   : > { %15299 = vmatpush3.msra.mxu0 %v10741_v16  ;;  %v10935_v16 = vld [vmem:[#allocation11 + $0x188] sm:$0xff] }
 0xd46   : > { %15300 = vmatprep.subr.mxu0 %v19614_v38 }
 0xd47   : > { %15301 = vmatpush3.msra.mxu0 %v10740_v42  ;;  %v10939_v42 = vld [vmem:[#allocation11 + $0x1a8] sm:$0xff] }
 0xd48   : > { %15302 = vmatprep.subr.mxu0 %v19614_v38 }
 0xdca   : > { %v10614_v23 = vpop.xlane.xlu1 %10613  ;;  %v10611_v26 = vpop.xlane.xlu0 %10610 }
 0xdcb   : > { %v10616_v30 = vsub.f32 %v10608_v44, %v10614_v23  ;;  %v10615_v51 = vsub.f32 %v10607_v2, %v10611_v26  ;;  %v13877_v44 = vcombine.low %v10910_v31, %v10914_v0  ;;  %v13870_v2 = vcombine.high %v10902_v54, %v10906_v35  ;;  %v19319_v31 = vld [vmem:[#allocation11 + $0x1c8] sm:$0xff] }
 0xdcc   : > { %v13869_v23 = vcombine.low %v10902_v54, %v10906_v35  ;;  %v13862_v26 = vcombine.high %v10894_v34, %v10898_v58  ;;  %v19321_v0 = vld [vmem:[#allocation11 + $0x1e8] sm:$0xff]  ;;  %v10736_v54 = vld [vmem:[%s19547_s14 + $0x20] sm:$0xff]  ;;  %v10735_v35 = vld [vmem:[%s19547_s14 + $0x18] sm:$0xff] }
 0xdcd   : > { %v10619_v12 = vmul.f32 1.442695, %v10616_v30  ;;  %v10617_v48 = vmul.f32 1.442695, %v10615_v51  ;;  %v10886_v30 = vld [vmem:[#allocation11] sm:$0xff] }
 0xdce   : > { %v10890_v51 = vld [vmem:[#allocation11 + $0x20] sm:$0xff] }
 0xdcf   : > { %15963 = vpow2.f32 %v10619_v12  ;;  %v13861_v12 = vcombine.low %v10894_v34, %v10898_v58  ;;  %v10732_v34 = vld [vmem:[%s19547_s14] sm:$0xff]  ;;  %v13912_v58 = vcombine.high %v19319_v31, %v19321_v0 }
 0xdd0   : > { %15965 = vpow2.f32 %v10617_v48  ;;  %v13854_v48 = vcombine.high %v10886_v30, %v10890_v51 }
 0xddc   : > { %v15964_v13 = vpop.eup %15963 }
 0xddd   : > { %v15966_v63 = vpop.eup %15965  ;;  %v10622_v20 = vmul.f32 %v15972_v62, %v15964_v13  ;;  %v10944_v13 = vld [vmem:[#allocation11 + $0x1d0] sm:$0xff] }
 0xdde   : > { %v10621_v14 = vmul.f32 %v15971_v5, %v15966_v63  ;;  %v10948_v63 = vld [vmem:[#allocation11 + $0x1f0] sm:$0xff]  ;;  %v13853_v5 = vcombine.low %v10886_v30, %v10890_v51 }
 0xddf   : > { %v10626_v10 = vsel %vm8144_vm9, %v10622_v20, 0.0  ;;  %v10940_v62 = vld [vmem:[#allocation11 + $0x1b0] sm:$0xff] }
 0xde0   : > { %v10623_v1 = vsel %vm8144_vm9, %v10621_v14, 0.0 }
 0xde1   : > { %10624 = vadd.xlane.f32.xlu0 %v10623_v1  ;;  %v10936_v1 = vld [vmem:[#allocation11 + $0x190] sm:$0xff] }
 0xde2   : > { %v13906_v61 = vcombine.high %v10936_v1, %v10940_v62  ;;  %v13905_v33 = vcombine.low %v10936_v1, %v10940_v62 }
 0xde5   : > { %10627 = vadd.xlane.f32.xlu0 %v10626_v10  ;;  %v19298_v10 = vpack.c.bf16 %v18627_v21, %v18627_v21  ;;  %v10912_v21 = vld [vmem:[#allocation11 + $0xd0] sm:$0xff] }
 0xe6a   : > { %v10625_v50 = vpop.xlane.xlu0 %10624 }
 0xe6b   : > { %v10629_v24 = vmax.f32 %v10625_v50, 1e-20  ;;  %v13889_v50 = vcombine.low %v10920_v49, %v10924_v29  ;;  %v10837_v29 = vld [vmem:[#allocation10 + $0x80] sm:$0xff] }
 0xe6d   : > { %15967 = vrcp.f32 %v10629_v24  ;;  %v13882_v24 = vcombine.high %v10912_v21, %v10916_v36 }
 0xe6e   : > { %v10628_v6 = vpop.xlane.xlu0 %10627 }
 0xe6f   : > { %v10630_v9 = vmax.f32 %v10628_v6, 1e-20  ;;  %v10904_v6 = vld [vmem:[#allocation11 + $0x90] sm:$0xff] }
 0xe71   : > { %15969 = vrcp.f32 %v10630_v9  ;;  %v10908_v9 = vld [vmem:[#allocation11 + $0xb0] sm:$0xff] }
 0xe7a   : > { %v15968_v39 = vpop.eup %15967 }
 0xe7b   : > { %v10633_v3 = vmul.f32 %v15968_v39, %v10621_v14  ;;  %v13914_v14 = vcombine.high %v10944_v13, %v10948_v63  ;;  %v13881_v39 = vcombine.low %v10912_v21, %v10916_v36  ;;  %v10829_v36 = vld [vmem:[#allocation10 + $0x40] sm:$0xff] }
 0xe7d   : > { %15283 = vmatprep.mubr.msk.f32.mxu1 %vm8144_vm9, %v10633_v3  ;;  %v13874_v3 = vcombine.high %v10904_v6, %v10908_v9 }
 0xe7e   : > { %v15970_v8 = vpop.eup %15969 }
 0xe7f   : > { %v10634_v25 = vmul.f32 %v15970_v8, %v10622_v20  ;;  %v13913_v20 = vcombine.low %v10944_v13, %v10948_v63  ;;  %v13873_v8 = vcombine.low %v10904_v6, %v10908_v9  ;;  %v13850_v9 = vld [vmem:[%s19541_s8] ss:$0 sm:$0xff] }
 0xe81   : > { %15284 = vmatmul.mubr.msk.f32.vlgmr.msra.gmra.mxu1 %vm8144_vm9, %v10634_v25  ;;  %v13866_v25 = vcombine.high %v10896_v52, %v10900_v40  ;;  %vm13033_vm9 = vcmask 0  }
 0xe82   : > { %11271 = vmatpush1.bf16.msra.mxu1 %v13909_v17  ;;  %11302 = vmatprep.mubr.bf16.mxu1 %v19608_v55  ;;  %v10932_v17 = vld [vmem:[#allocation11 + $0x170] sm:$0xff] }
 0xe83   : > { %11272 = vmatprep.subr.bf16.mxu1 %v13902_v37  ;;  %v13898_v60 = vcombine.high %v10928_v46, %v10932_v17  ;;  %v13897_v18 = vcombine.low %v10928_v46, %v10932_v17  ;;  %v10888_v37 = vld [vmem:[#allocation11 + $0x10] sm:$0xff]  ;;  %v10845_v17 = vld [vmem:[#allocation10 + $0xc0] sm:$0xff] }
 0xe86   : > { %11273 = vmatpush1.bf16.msra.mxu1 %v13901_v32  ;;  %v13858_v32 = vcombine.high %v10888_v37, %v10892_v4 }
 0xe87   : > { %11274 = vmatprep.subr.bf16.mxu1 %v13894_v43  ;;  %v13857_v43 = vcombine.low %v10888_v37, %v10892_v4 }
 0xe8a   : > { %11275 = vmatpush1.bf16.msra.mxu1 %v13893_v7  ;;  %v10739_v7 = vld [vmem:[%s19547_s14 + $0x38] sm:$0xff] }
 0xe8b   : > { %11276 = vmatprep.subr.bf16.mxu1 %v13886_v15  ;;  %v10738_v15 = vld [vmem:[%s19547_s14 + $0x30] sm:$0xff]  ;;  %15303 = vmatpush3.msra.mxu0 %v10739_v7 }
 0xe8c   : > { %15304 = vmatprep.subr.mxu0 %v19614_v38 }
 0xe8d   : > { %15305 = vmatpush3.msra.mxu0 %v10738_v15 }
 0xe8e   : > { %11277 = vmatpush1.bf16.msra.mxu1 %v13885_v28  ;;  %v10737_v28 = vld [vmem:[%s19547_s14 + $0x28] sm:$0xff]  ;;  %15306 = vmatprep.subr.mxu0 %v19614_v38 }
 0xe8f   : > { %11278 = vmatprep.subr.bf16.mxu1 %v13878_v57  ;;  %v13911_v57 = vcombine.low %v19319_v31, %v19321_v0  ;;  %15307 = vmatpush3.msra.mxu0 %v10737_v28  ;;  %v13904_v28 = vcombine.high %v10935_v16, %v10939_v42  ;;  %v10903_v31 = vld [vmem:[#allocation11 + $0x88] sm:$0xff] }
 0xe90   : > { %15308 = vmatprep.subr.mxu0 %v19614_v38  ;;  %v10907_v0 = vld [vmem:[#allocation11 + $0xa8] sm:$0xff] }
 0xe91   : > { %15309 = vmatpush3.msra.mxu0 %v10736_v54  ;;  %v10927_v54 = vld [vmem:[#allocation11 + $0x148] sm:$0xff] }
 0xe92   : > { %11279 = vmatpush1.bf16.msra.mxu1 %v13877_v44  ;;  %15310 = vmatprep.subr.mxu0 %v19614_v38  ;;  %v10734_v44 = vld [vmem:[%s19547_s14 + $0x10] sm:$0xff] }
 0xe93   : > { %11280 = vmatprep.subr.bf16.mxu1 %v13870_v2  ;;  %15311 = vmatpush3.msra.mxu0 %v10735_v35  ;;  %v10733_v2 = vld [vmem:[%s19547_s14 + $0x8] sm:$0xff] }
 0xe94   : > { %15312 = vmatprep.subr.mxu0 %v19614_v38  ;;  %v10931_v35 = vld [vmem:[#allocation11 + $0x168] sm:$0xff] }
 0xe95   : > { %15313 = vmatpush3.msra.mxu0 %v10734_v44  ;;  %v13903_v44 = vcombine.low %v10935_v16, %v10939_v42  ;;  %v10905_v16 = vld [vmem:[#allocation11 + $0x98] sm:$0xff] }
 0xe96   : > { %11281 = vmatpush1.bf16.msra.mxu1 %v13869_v23  ;;  %15314 = vmatprep.subr.mxu0 %v19614_v38  ;;  %v10877_v23 = vld [vmem:[#allocation10 + $0x1c0] sm:$0xff]  ;;  %v10909_v42 = vld [vmem:[#allocation11 + $0xb8] sm:$0xff] }
 0xe97   : > { %11282 = vmatprep.subr.bf16.mxu1 %v13862_v26  ;;  %15315 = vmatpush3.msra.mxu0 %v10733_v2  ;;  %v10881_v26 = vld [vmem:[#allocation10 + $0x1e0] sm:$0xff]  ;;  %v13896_v2 = vcombine.high %v10927_v54, %v10931_v35 }
 0xe98   : > { %15316 = vmatprep.subr.mxu0 %v19614_v38  ;;  %v13973_v30 = vcombine.low %v10877_v23, %v10881_v26  ;;  %v13974_v51 = vcombine.high %v10877_v23, %v10881_v26  ;;  %v10853_v38 = vld [vmem:[#allocation10 + $0x100] sm:$0xff]  ;;  %v13895_v23 = vcombine.low %v10927_v54, %v10931_v35  ;;  %v10897_v35 = vld [vmem:[#allocation11 + $0x58] sm:$0xff] }
 0xe99   : > { %15317 = vmatpush3.msra.mxu0 %v10732_v34  ;;  %v10919_v34 = vld [vmem:[#allocation11 + $0x108] sm:$0xff] }
 0xe9a   : > { %11283 = vmatpush1.bf16.msra.mxu1 %v13861_v12  ;;  %11311 = vmatprep.subr.bf16.mxu0 %v13912_v58  ;;  %v10869_v12 = vld [vmem:[#allocation10 + $0x180] sm:$0xff]  ;;  %v10923_v58 = vld [vmem:[#allocation11 + $0x128] sm:$0xff] }
 0xe9b   : > { %11284 = vmatprep.subr.bf16.mxu1 %v13854_v48  ;;  %v10873_v48 = vld [vmem:[#allocation10 + $0x1a0] sm:$0xff]  ;;  %v13888_v26 = vcombine.high %v10919_v34, %v10923_v58 }
 0xe9c   : > { %v13966_v13 = vcombine.high %v10869_v12, %v10873_v48  ;;  %v13965_v63 = vcombine.low %v10869_v12, %v10873_v48  ;;  %v13887_v12 = vcombine.low %v10919_v34, %v10923_v58  ;;  %v13875_v34 = vcombine.low %v10905_v16, %v10909_v42 }
 0xe9e   : > { %11285 = vmatpush1.bf16.msra.mxu1 %v13853_v5  ;;  %v10861_v5 = vld [vmem:[#allocation10 + $0x140] sm:$0xff] }
 0xe9f   : > { %11352 = vmatprep.subr.bf16.mxu1 %v13914_v14  ;;  %v10865_v14 = vld [vmem:[#allocation10 + $0x160] sm:$0xff] }
 0xea0   : > { %v13958_v1 = vcombine.high %v10861_v5, %v10865_v14  ;;  %v13957_v62 = vcombine.low %v10861_v5, %v10865_v14  ;;  %v13872_v5 = vcombine.high %v10903_v31, %v10907_v0 }
 0xea1   : > { %11303 = vmatmul.mubr.bf16.vlgmr.msra.gmra.mxu1 %v19298_v10 }
 0xea2   : > { %11353 = vmatpush1.bf16.msra.mxu1 %v13913_v20  ;;  %11384 = vmatprep.mubr.bf16.mxu1 %v19608_v55  ;;  %v10857_v20 = vld [vmem:[#allocation10 + $0x120] sm:$0xff] }
 0xea3   : > { %11354 = vmatprep.subr.bf16.mxu1 %v13906_v61  ;;  %v13950_v61 = vcombine.high %v10853_v38, %v10857_v20  ;;  %v13949_v46 = vcombine.low %v10853_v38, %v10857_v20  ;;  %v13871_v20 = vcombine.low %v10903_v31, %v10907_v0 }
 0xea6   : > { %11355 = vmatpush1.bf16.msra.mxu1 %v13905_v33  ;;  %v10849_v33 = vld [vmem:[#allocation10 + $0xe0] sm:$0xff] }
 0xea7   : > { %11356 = vmatprep.subr.bf16.mxu1 %v13898_v60  ;;  %v13942_v60 = vcombine.high %v10845_v17, %v10849_v33  ;;  %v13941_v49 = vcombine.low %v10845_v17, %v10849_v33  ;;  %v10891_v17 = vld [vmem:[#allocation11 + $0x28] sm:$0xff] }
 0xeaa   : > { %11357 = vmatpush1.bf16.msra.mxu1 %v13897_v18  ;;  %v10841_v18 = vld [vmem:[#allocation10 + $0xa0] sm:$0xff] }
 0xeab   : > { %11358 = vmatprep.subr.bf16.mxu1 %v13890_v53  ;;  %v13934_v53 = vcombine.high %v10837_v29, %v10841_v18  ;;  %v13933_v21 = vcombine.low %v10837_v29, %v10841_v18  ;;  %v10949_v29 = vld [vmem:[#allocation11 + $0x1f8] sm:$0xff] }
 0xeae   : > { %11359 = vmatpush1.bf16.msra.mxu1 %v13889_v50  ;;  %v10833_v50 = vld [vmem:[#allocation10 + $0x60] sm:$0xff] }
 0xeaf   : > { %11360 = vmatprep.subr.bf16.mxu1 %v13882_v24  ;;  %v13926_v24 = vcombine.high %v10829_v36, %v10833_v50  ;;  %v13925_v6 = vcombine.low %v10829_v36, %v10833_v50  ;;  %v10941_v36 = vld [vmem:[#allocation11 + $0x1b8] sm:$0xff] }
 0xeb2   : > { %11361 = vmatpush1.bf16.msra.mxu1 %v13881_v39 }
 0xeb3   : > { %11362 = vmatprep.subr.bf16.mxu1 %v13874_v3 }
 0xeb6   : > { %11363 = vmatpush1.bf16.msra.mxu1 %v13873_v8 }
 0xeb7   : > { %11364 = vmatprep.subr.bf16.mxu1 %v13866_v25 }
 0xeba   : > { %11365 = vmatpush1.bf16.msra.mxu1 %v13865_v59 }
 0xebb   : > { %11366 = vmatprep.subr.bf16.mxu1 %v13858_v32 }
 0xebe   : > { %11367 = vmatpush1.bf16.msra.mxu1 %v13857_v43 }
 0xebf   : > { %11754 = vmatprep.subr.bf16.mxu1 %v13974_v51  ;;  %v10915_v51 = vld [vmem:[#allocation11 + $0xe8] sm:$0xff] }
 0xec1   : > { %11385 = vmatmul.mubr.bf16.vlgmr.msra.gmra.mxu1 %v19298_v10 }
 0xec2   : > { %11786 = vmatprep.mubr.bf16.mxu1 %v19608_v55  ;;  %11755 = vmatpush1.bf16.msra.mxu1 %v13973_v30  ;;  %v10911_v30 = vld [vmem:[#allocation11 + $0xc8] sm:$0xff] }
 0xec3   : > { %11756 = vmatprep.subr.bf16.mxu1 %v13966_v13  ;;  %v13880_v48 = vcombine.high %v10911_v30, %v10915_v51 }
 0xec6   : > { %11757 = vmatpush1.bf16.msra.mxu1 %v13965_v63  ;;  %v13879_v63 = vcombine.low %v10911_v30, %v10915_v51 }
 0xec7   : > { %11758 = vmatprep.subr.bf16.mxu1 %v13958_v1  ;;  %v10895_v1 = vld [vmem:[#allocation11 + $0x48] sm:$0xff] }
 0xeca   : > { %11759 = vmatpush1.bf16.msra.mxu1 %v13957_v62  ;;  %v10899_v62 = vld [vmem:[#allocation11 + $0x68] sm:$0xff] }
 0xecb   : > { %11760 = vmatprep.subr.bf16.mxu1 %v13950_v61  ;;  %v13864_v61 = vcombine.high %v10895_v1, %v10899_v62  ;;  %v13863_v33 = vcombine.low %v10895_v1, %v10899_v62  ;;  %v10862_v62 = vld [vmem:[#allocation10 + $0x148] sm:$0xff] }
 0xece   : > { %11761 = vmatpush1.bf16.msra.mxu1 %v13949_v46  ;;  %v10887_v46 = vld [vmem:[#allocation11 + $0x8] sm:$0xff] }
 0xecf   : > { %11762 = vmatprep.subr.bf16.mxu1 %v13942_v60  ;;  %v13856_v60 = vcombine.high %v10887_v46, %v10891_v17  ;;  %v13855_v18 = vcombine.low %v10887_v46, %v10891_v17  ;;  %v10854_v46 = vld [vmem:[#allocation10 + $0x108] sm:$0xff] }
 0xed0   : > { %v10858_v17 = vld [vmem:[#allocation10 + $0x128] sm:$0xff] }
 0xed2   : > { %11763 = vmatpush1.bf16.msra.mxu1 %v13941_v49  ;;  %v10945_v49 = vld [vmem:[#allocation11 + $0x1d8] sm:$0xff] }
 0xed3   : > { %11764 = vmatprep.subr.bf16.mxu1 %v13934_v53  ;;  %v13916_v53 = vcombine.high %v10945_v49, %v10949_v29  ;;  %v13915_v50 = vcombine.low %v10945_v49, %v10949_v29  ;;  %v10825_v49 = vld [vmem:[#allocation10 + $0x20] sm:$0xff]  ;;  %v13952_v29 = vcombine.high %v10854_v46, %v10858_v17 }
 0xed6   : > { %11765 = vmatpush1.bf16.msra.mxu1 %v13933_v21  ;;  %v10937_v21 = vld [vmem:[#allocation11 + $0x198] sm:$0xff] }
 0xed7   : > { %11766 = vmatprep.subr.bf16.mxu1 %v13926_v24  ;;  %v13908_v24 = vcombine.high %v10937_v21, %v10941_v36 }
 0xeda   : > { %11767 = vmatpush1.bf16.msra.mxu1 %v13925_v6  ;;  %v10929_v6 = vld [vmem:[#allocation11 + $0x158] sm:$0xff] }
 0xf41   : > { %v15285_v39 = vpop.f32.mrf.mxu1 }
 0xf42   : > { %v10720_v3 = vadd.f32 %v15285_v39, %v13850_v9  ;;  %v13907_v39 = vcombine.low %v10937_v21, %v10941_v36  ;;  %v10879_v36 = vld [vmem:[#allocation10 + $0x1d0] sm:$0xff] }
 0xf43   : > { %v10714_v52 = vpop.f32.mrf.mxu1 }
 0xf44   : > { %v10715_v40 = vadd.f32 %v13850_v9, %v10714_v52  ;;  %v10724_v8 = vmax.f32 %v10720_v3, 0.0  ;;  %v10933_v9 = vld [vmem:[#allocation11 + $0x178] sm:$0xff] }
 0xf45   : > { %v13900_v3 = vcombine.high %v10929_v6, %v10933_v9  ;;  %v10921_v52 = vld [vmem:[#allocation11 + $0x118] sm:$0xff] }
 0xf46   : > { %v10723_v25 = vmax.f32 %v10715_v40, 0.0  ;;  %v10925_v40 = vld [vmem:[#allocation11 + $0x138] sm:$0xff] }
 0xf48   : > { %v10725_v37 = vmax.f32 %v10723_v25, %v10724_v8  ;;  %v13899_v8 = vcombine.low %v10929_v6, %v10933_v9  ;;  %v13892_v25 = vcombine.high %v10921_v52, %v10925_v40  ;;  %v10880_v9 = vld [vmem:[#allocation10 + $0x1d8] sm:$0xff] }
 0xf4a   : > { %v10726_v4 = vrot.slane %v10725_v37, 4 }
 0xf4c   : > { %v10727_v59 = vmax.f32 %v10725_v37, %v10726_v4  ;;  %v10913_v37 = vld [vmem:[#allocation11 + $0xd8] sm:$0xff] }
 0xf4d   : > { %v10917_v4 = vld [vmem:[#allocation11 + $0xf8] sm:$0xff] }
 0xf4e   : > { %v10728_v32 = vrot.slane %v10727_v59, 2 }
 0xf50   : > { %v10729_v43 = vmax.f32 %v10727_v59, %v10728_v32  ;;  %v13891_v59 = vcombine.low %v10921_v52, %v10925_v40  ;;  %v13884_v32 = vcombine.high %v10913_v37, %v10917_v4  ;;  %v13951_v52 = vcombine.low %v10854_v46, %v10858_v17 }
 0xf52   : > { %v10730_v7 = vrot.slane %v10729_v43, 1 }
 0xf54   : > { %v10731_v15 = vmax.f32 %v10729_v43, %v10730_v7 }
 0xf56   : > { %15319 = vmatmul.mubr.f32.vlgmr.msra.gmra.mxu0 %v10731_v15  ;;  %v13883_v15 = vcombine.low %v10913_v37, %v10917_v4 }
 0xf57   : > { %11312 = vmatpush1.bf16.msra.mxu0 %v13911_v57  ;;  %11343 = vmatprep.mubr.bf16.mxu0 %v19608_v55 }
 0xf58   : > { %11313 = vmatprep.subr.bf16.mxu0 %v13904_v28  ;;  %v13876_v28 = vcombine.high %v10905_v16, %v10909_v42 }
 0xf5b   : > { %11314 = vmatpush1.bf16.msra.mxu0 %v13903_v44  ;;  %v10901_v44 = vld [vmem:[#allocation11 + $0x78] sm:$0xff] }
 0xf5c   : > { %11315 = vmatprep.subr.bf16.mxu0 %v13896_v2  ;;  %v13868_v58 = vcombine.high %v10897_v35, %v10901_v44  ;;  %v13867_v30 = vcombine.low %v10897_v35, %v10901_v44 }
 0xf5f   : > { %11316 = vmatpush1.bf16.msra.mxu0 %v13895_v23  ;;  %v10889_v23 = vld [vmem:[#allocation11 + $0x18] sm:$0xff] }
 0xf60   : > { %11317 = vmatprep.subr.bf16.mxu0 %v13888_v26  ;;  %v10893_v26 = vld [vmem:[#allocation11 + $0x38] sm:$0xff] }
 0xf61   : > { %v19359_v13 = vpop.f32.mrf.mxu1  ;;  %v13860_v51 = vcombine.high %v10889_v23, %v10893_v26  ;;  %v13859_v31 = vcombine.low %v10889_v23, %v10893_v26  ;;  %v10871_v26 = vld [vmem:[#allocation10 + $0x190] sm:$0xff] }
 0xf63   : > { %v19361_v57 = vpop.f32.mrf.mxu1  ;;  %11318 = vmatpush1.bf16.msra.mxu0 %v13887_v12  ;;  %v10878_v12 = vld [vmem:[#allocation10 + $0x1c8] sm:$0xff] }
 0xf64   : > { %11319 = vmatprep.subr.bf16.mxu0 %v13880_v48  ;;  %v10882_v48 = vld [vmem:[#allocation10 + $0x1e8] sm:$0xff] }
 0xf65   : > { %v11308_v14 = vpop.f32.mrf.mxu1  ;;  %v13976_v0 = vcombine.high %v10878_v12, %v10882_v48 }
 0xf66   : > { %v13975_v14 = vcombine.low %v10878_v12, %v10882_v48  ;;  %v10872_v12 = vld [vmem:[#allocation10 + $0x198] sm:$0xff] }
 0xf67   : > { %v11309_v38 = vpop.f32.mrf.mxu1  ;;  %11320 = vmatpush1.bf16.msra.mxu0 %v13879_v63  ;;  %v10870_v63 = vld [vmem:[#allocation10 + $0x188] sm:$0xff]  ;;  %v10876_v48 = vld [vmem:[#allocation10 + $0x1b8] sm:$0xff] }
 0xf68   : > { %11321 = vmatprep.subr.bf16.mxu0 %v13872_v5  ;;  %v10874_v5 = vld [vmem:[#allocation10 + $0x1a8] sm:$0xff] }
 0xf69   : > { %v13968_v1 = vcombine.high %v10870_v63, %v10874_v5  ;;  %v10866_v38 = vld [vmem:[#allocation10 + $0x168] sm:$0xff] }
 0xf6b   : > { %11322 = vmatpush1.bf16.msra.mxu0 %v13871_v20  ;;  %v13967_v20 = vcombine.low %v10870_v63, %v10874_v5  ;;  %v13972_v5 = vcombine.high %v10872_v12, %v10876_v48 }
 0xf6c   : > { %11323 = vmatprep.subr.bf16.mxu0 %v13864_v61  ;;  %v13960_v61 = vcombine.high %v10862_v62, %v10866_v38 }
 0xf6f   : > { %11324 = vmatpush1.bf16.msra.mxu0 %v13863_v33  ;;  %v13959_v33 = vcombine.low %v10862_v62, %v10866_v38  ;;  %v10864_v62 = vld [vmem:[#allocation10 + $0x158] sm:$0xff] }
 0xf70   : > { %11325 = vmatprep.subr.bf16.mxu0 %v13856_v60  ;;  %v10821_v60 = vld [vmem:[#allocation10] sm:$0xff]  ;;  %v10868_v38 = vld [vmem:[#allocation10 + $0x178] sm:$0xff] }
 0xf71   : > { %v13918_v21 = vcombine.high %v10821_v60, %v10825_v49  ;;  %v13964_v17 = vcombine.high %v10864_v62, %v10868_v38 }
 0xf73   : > { %11326 = vmatpush1.bf16.msra.mxu0 %v13855_v18  ;;  %v10846_v18 = vld [vmem:[#allocation10 + $0xc8] sm:$0xff]  ;;  %11768 = vmatprep.subr.bf16.mxu1 %v13918_v21 }
 0xf74   : > { %11393 = vmatprep.subr.bf16.mxu0 %v13916_v53  ;;  %v13917_v53 = vcombine.low %v10821_v60, %v10825_v49  ;;  %v10859_v60 = vld [vmem:[#allocation10 + $0x130] sm:$0xff]  ;;  %v10856_v49 = vld [vmem:[#allocation10 + $0x118] sm:$0xff] }
 0xf76   : > { %11344 = vmatmul.mubr.bf16.vlgmr.msra.gmra.mxu0 %v19298_v10  ;;  %11769 = vmatpush1.bf16.msra.mxu1 %v13917_v53  ;;  %v13963_v53 = vcombine.low %v10864_v62, %v10868_v38 }
 0xf77   : > { %11394 = vmatpush1.bf16.msra.mxu0 %v13915_v50  ;;  %11425 = vmatprep.mubr.bf16.mxu0 %v19608_v55  ;;  %v10883_v50 = vld [vmem:[#allocation10 + $0x1f0] sm:$0xff] }
 0xf78   : > { %11395 = vmatprep.subr.bf16.mxu0 %v13908_v24  ;;  %v13977_v24 = vcombine.low %v10879_v36, %v10883_v50  ;;  %v13978_v6 = vcombine.high %v10879_v36, %v10883_v50  ;;  %v10847_v50 = vld [vmem:[#allocation10 + $0xd0] sm:$0xff] }
 0xf7a   : > { %11836 = vmatprep.subr.bf16.mxu1 %v13978_v6  ;;  %v10852_v6 = vld [vmem:[#allocation10 + $0xf8] sm:$0xff] }
 0xf7b   : > { %11396 = vmatpush1.bf16.msra.mxu0 %v13907_v39  ;;  %v10884_v39 = vld [vmem:[#allocation10 + $0x1f8] sm:$0xff] }
 0xf7c   : > { %11397 = vmatprep.subr.bf16.mxu0 %v13900_v3  ;;  %v13979_v3 = vcombine.low %v10880_v9, %v10884_v39 }
 0xf7f   : > { %11398 = vmatpush1.bf16.msra.mxu0 %v13899_v8  ;;  %v10838_v8 = vld [vmem:[#allocation10 + $0x88] sm:$0xff] }
 0xf80   : > { %11399 = vmatprep.subr.bf16.mxu0 %v13892_v25  ;;  %v10842_v25 = vld [vmem:[#allocation10 + $0xa8] sm:$0xff] }
 0xf81   : > { %v19365_v43 = vpop.f32.mrf.mxu1  ;;  %v13936_v4 = vcombine.high %v10838_v8, %v10842_v25  ;;  %v13935_v16 = vcombine.low %v10838_v8, %v10842_v25  ;;  %v10840_v8 = vld [vmem:[#allocation10 + $0x98] sm:$0xff] }
 0xf82   : > { %v10844_v25 = vld [vmem:[#allocation10 + $0xb8] sm:$0xff] }
 0xf83   : > { %v19367_v7 = vpop.f32.mrf.mxu1  ;;  %11400 = vmatpush1.bf16.msra.mxu0 %v13891_v59  ;;  %v10830_v59 = vld [vmem:[#allocation10 + $0x48] sm:$0xff] }
 0xf84   : > { %11401 = vmatprep.subr.bf16.mxu0 %v13884_v32  ;;  %v10834_v32 = vld [vmem:[#allocation10 + $0x68] sm:$0xff] }
 0xf85   : > { %v11390_v54 = vpop.f32.mrf.mxu1  ;;  %v13928_v42 = vcombine.high %v10830_v59, %v10834_v32 }
 0xf86   : > { %v13927_v54 = vcombine.low %v10830_v59, %v10834_v32  ;;  %v13940_v32 = vcombine.high %v10840_v8, %v10844_v25 }
 0xf87   : > { %v11391_v2 = vpop.f32.mrf.mxu1  ;;  %11402 = vmatpush1.bf16.msra.mxu0 %v13883_v15  ;;  %v10822_v15 = vld [vmem:[#allocation10 + $0x8] sm:$0xff] }
 0xf88   : > { %11403 = vmatprep.subr.bf16.mxu0 %v13876_v28  ;;  %v10826_v28 = vld [vmem:[#allocation10 + $0x28] sm:$0xff]  ;;  %v13980_v2 = vcombine.high %v10880_v9, %v10884_v39 }
 0xf89   : > { %v13920_v35 = vcombine.high %v10822_v15, %v10826_v28  ;;  %v13919_v44 = vcombine.low %v10822_v15, %v10826_v28  ;;  %v10832_v15 = vld [vmem:[#allocation10 + $0x58] sm:$0xff] }
 0xf8a   : > { %v10836_v28 = vld [vmem:[#allocation10 + $0x78] sm:$0xff] }
 0xf8b   : > { %11404 = vmatpush1.bf16.msra.mxu0 %v13875_v34  ;;  %v10748_v34 = vld [vmem:[%s19548_s15] sm:$0x1] }
 0xf8c   : > { %11405 = vmatprep.subr.bf16.mxu0 %v13868_v58 }
 0xf8f   : > { %11406 = vmatpush1.bf16.msra.mxu0 %v13867_v30 }
 0xf90   : > { %11407 = vmatprep.subr.bf16.mxu0 %v13860_v51  ;;  %v10875_v51 = vld [vmem:[#allocation10 + $0x1b0] sm:$0xff] }
 0xf91   : > { %v13970_v63 = vcombine.high %v10871_v26, %v10875_v51 }
 0xf93   : > { %11408 = vmatpush1.bf16.msra.mxu0 %v13859_v31 }
 0xf94   : > { %11795 = vmatprep.subr.bf16.mxu0 %v13976_v0 }
 0xf96   : > { %11426 = vmatmul.mubr.bf16.vlgmr.msra.gmra.mxu0 %v19298_v10  ;;  %v10850_v10 = vld [vmem:[#allocation10 + $0xe8] sm:$0xff] }
 0xf97   : > { %11796 = vmatpush1.bf16.msra.mxu0 %v13975_v14  ;;  %11827 = vmatprep.mubr.bf16.mxu0 %v19608_v55  ;;  %v13944_v40 = vcombine.high %v10846_v18, %v10850_v10  ;;  %v13943_v37 = vcombine.low %v10846_v18, %v10850_v10  ;;  %v10863_v14 = vld [vmem:[#allocation10 + $0x150] sm:$0xff] }
 0xf98   : > { %11797 = vmatprep.subr.bf16.mxu0 %v13968_v1  ;;  %v10867_v1 = vld [vmem:[#allocation10 + $0x170] sm:$0xff] }
 0xf99   : > { %v13962_v46 = vcombine.high %v10863_v14, %v10867_v1  ;;  %v13961_v18 = vcombine.low %v10863_v14, %v10867_v1  ;;  %v10851_v10 = vld [vmem:[#allocation10 + $0xf0] sm:$0xff] }
 0xf9a   : > { %v15653_v14 = vld [vmem:[#allocation13 + $0x74] ss:$8 sps:$4 sm:$0xff]  }
 0xf9b   : > { %11798 = vmatpush1.bf16.msra.mxu0 %v13967_v20  ;;  %v13969_v20 = vcombine.low %v10871_v26, %v10875_v51  ;;  %v10828_v26 = vld [vmem:[#allocation10 + $0x38] sm:$0xff]  ;;  %v13931_v51 = vcombine.low %v10832_v15, %v10836_v28 }
 0xf9c   : > { %11799 = vmatprep.subr.bf16.mxu0 %v13960_v61  ;;  %v13971_v61 = vcombine.low %v10872_v12, %v10876_v48  ;;  %v15656_v1 = vld [vmem:[#allocation13 + $0x174] ss:$8 sps:$4 sm:$0xff]  }
 0xf9f   : > { %11800 = vmatpush1.bf16.msra.mxu0 %v13959_v33  ;;  %v10855_v33 = vld [vmem:[#allocation10 + $0x110] sm:$0xff] }
 0xfa0   : > { %11801 = vmatprep.subr.bf16.mxu0 %v13952_v29  ;;  %v10860_v29 = vld [vmem:[#allocation10 + $0x138] sm:$0xff]  ;;  %v13954_v21 = vcombine.high %v10855_v33, %v10859_v60  ;;  %v13953_v9 = vcombine.low %v10855_v33, %v10859_v60  ;;  %v15657_v60 = vld [vmem:[#allocation13 + $0x60] ss:$8 sps:$4 sm:$0xff]  }
 0xfa1   : > { %v13956_v36 = vcombine.high %v10856_v49, %v10860_v29  ;;  %v13955_v39 = vcombine.low %v10856_v49, %v10860_v29  ;;  %v15660_v49 = vld [vmem:[#allocation13 + $0x160] ss:$8 sps:$4 sm:$0xff]   ;;  %v15665_v29 = vld [vmem:[#allocation13 + $0x54] ss:$8 sps:$4 sm:$0xff]  }
 0xfa3   : > { %11802 = vmatpush1.bf16.msra.mxu0 %v13951_v52  ;;  %v10839_v52 = vld [vmem:[#allocation10 + $0x90] sm:$0xff] }
 0xfa4   : > { %11803 = vmatprep.subr.bf16.mxu0 %v13944_v40  ;;  %v10843_v40 = vld [vmem:[#allocation10 + $0xb0] sm:$0xff] }
 0xfa5   : > { %v13938_v59 = vcombine.high %v10839_v52, %v10843_v40 }
 0xfa7   : > { %11804 = vmatpush1.bf16.msra.mxu0 %v13943_v37  ;;  %v13945_v37 = vcombine.low %v10847_v50, %v10851_v10 }
 0xfa8   : > { %11805 = vmatprep.subr.bf16.mxu0 %v13936_v4 }
 0xfab   : > { %11806 = vmatpush1.bf16.msra.mxu0 %v13935_v16  ;;  %v10831_v16 = vld [vmem:[#allocation10 + $0x50] sm:$0xff] }
 0xfac   : > { %11807 = vmatprep.subr.bf16.mxu0 %v13928_v42  ;;  %v10835_v42 = vld [vmem:[#allocation10 + $0x70] sm:$0xff] }
 0xfaf   : > { %11808 = vmatpush1.bf16.msra.mxu0 %v13927_v54  ;;  %v13937_v54 = vcombine.low %v10839_v52, %v10843_v40  ;;  %v15681_v52 = vld [vmem:[#allocation13 + $0x20] ss:$8 sps:$4 sm:$0xff]  }
 0xfb0   : > { %11809 = vmatprep.subr.bf16.mxu0 %v13920_v35  ;;  %v13939_v35 = vcombine.low %v10840_v8, %v10844_v25  ;;  %v15684_v40 = vld [vmem:[#allocation13 + $0x120] ss:$8 sps:$4 sm:$0xff]   ;;  %v15689_v8 = vld [vmem:[#allocation13 + $0x14] ss:$8 sps:$4 sm:$0xff]  }
 0xfb1   : > { %v15692_v25 = vld [vmem:[#allocation13 + $0x114] ss:$8 sps:$4 sm:$0xff]  }
 0xfb3   : > { %11810 = vmatpush1.bf16.msra.mxu0 %v13919_v44  ;;  %v13930_v44 = vcombine.high %v10831_v16, %v10835_v42 }
 0xfb4   : > { %11877 = vmatprep.subr.bf16.mxu0 %v13980_v2  ;;  %v13932_v2 = vcombine.high %v10832_v15, %v10836_v28  ;;  %v15696_v15 = vld [vmem:[#allocation13 + $0x100] ss:$8 sps:$4 sm:$0xff]   ;;  %v15701_v28 = vld [vmem:[#allocation13 + $0xf4] ss:$8 sps:$4 sm:$0xff]  }
0x1016   : > { %v10815_v58 = vpop.f32.mrf.mxu0 }
0x1017   : > { %v10816_v23 = vadd.f32 %v10815_v58, %v10748_v34  ;;  %v10823_v34 = vld [vmem:[#allocation10 + $0x10] sm:$0xff] }
0x1018   : > { %v15320_v30 = vpop.f32.mrf.mxu0  ;;  %v10827_v58 = vld [vmem:[#allocation10 + $0x30] sm:$0xff] }
0x1019   : > { %v10819_v31 = vmax.f32 %v10816_v23, 0.0  ;;  %v10824_v23 = vld [vmem:[#allocation10 + $0x18] sm:$0xff]  ;;  %v13929_v30 = vcombine.low %v10831_v16, %v10835_v42  ;;  %v13922_v12 = vcombine.high %v10823_v34, %v10827_v58  ;;  %v15693_v42 = vld [vmem:[#allocation13] ss:$8 sps:$4 sm:$0xff]  }
0x101a   : > { %v13924_v48 = vcombine.high %v10824_v23, %v10828_v26 }
0x101b   : > { %v19374_v0 = vpack.c.bf16 %v10819_v31, %v10819_v31 }
0x101d   : > { %11787 = vmatmul.mubr.bf16.vlgmr.msra.gmra.mxu1 %v19374_v0  ;;  %11828 = vmatmul.mubr.bf16.vlgmr.msra.gmra.mxu0 %v19374_v0 }
0x101e   : > { %11837 = vmatpush1.bf16.msra.mxu1 %v13977_v24  ;;  %11878 = vmatpush1.bf16.msra.mxu0 %v13979_v3  ;;  %v10848_v24 = vld [vmem:[#allocation10 + $0xd8] sm:$0xff]  ;;  %v13946_v3 = vcombine.high %v10847_v50, %v10851_v10  ;;  %v15674_v50 = vld [vmem:[#allocation13 + $0x144] ss:$8 sps:$4 sm:$0xff]   ;;  %v15669_v10 = vld [vmem:[#allocation13 + $0x40] ss:$8 sps:$4 sm:$0xff]  }
0x101f   : > { %11838 = vmatprep.subr.bf16.mxu1 %v13970_v63  ;;  %11879 = vmatprep.subr.bf16.mxu0 %v13972_v5  ;;  %v13947_v4 = vcombine.low %v10848_v24, %v10852_v6  ;;  %v13921_v63 = vcombine.low %v10823_v34, %v10827_v58  ;;  %v13923_v5 = vcombine.low %v10824_v23, %v10828_v26  ;;  %v15702_v34 = vld [vmem:[#allocation13 + $0x1f0] ss:$8 sps:$4 sm:$0xff]   ;;  %v15707_v58 = vld [vmem:[#allocation13 + $0xe4] ss:$8 sps:$4 sm:$0xff]  }
0x1020   : > { %11868 = vmatprep.mubr.bf16.mxu1 %v19608_v55  ;;  %11909 = vmatprep.mubr.bf16.mxu0 %v19608_v55  ;;  %v13948_v55 = vcombine.high %v10848_v24, %v10852_v6  ;;  %v15677_v24 = vld [vmem:[#allocation13 + $0x34] ss:$8 sps:$4 sm:$0xff]   ;;  %v15710_v23 = vld [vmem:[#allocation13 + $0x1e4] ss:$8 sps:$4 sm:$0xff]  }
0x1021   : > { %v15680_v6 = vld [vmem:[#allocation13 + $0x134] ss:$8 sps:$4 sm:$0xff]  }
0x1022   : > { %11839 = vmatpush1.bf16.msra.mxu1 %v13969_v20  ;;  %11880 = vmatpush1.bf16.msra.mxu0 %v13971_v61  ;;  %v15651_v20 = vld [vmem:[#allocation13 + $0x70] ss:$8 sps:$4 sm:$0xff]  }
0x1023   : > { %11840 = vmatprep.subr.bf16.mxu1 %v13962_v46  ;;  %11881 = vmatprep.subr.bf16.mxu0 %v13964_v17  ;;  %v15654_v61 = vld [vmem:[#allocation13 + $0x170] ss:$8 sps:$4 sm:$0xff]   ;;  %v15659_v46 = vld [vmem:[#allocation13 + $0x64] ss:$8 sps:$4 sm:$0xff]  }
0x1024   : > { %v15662_v17 = vld [vmem:[#allocation13 + $0x164] ss:$8 sps:$4 sm:$0xff]  }
0x1026   : > { %11841 = vmatpush1.bf16.msra.mxu1 %v13961_v18  ;;  %11882 = vmatpush1.bf16.msra.mxu0 %v13963_v53  ;;  %v15668_v18 = vld [vmem:[#allocation13 + $0x154] ss:$8 sps:$4 sm:$0xff]   ;;  %v15663_v53 = vld [vmem:[#allocation13 + $0x50] ss:$8 sps:$4 sm:$0xff]  }
0x1027   : > { %11842 = vmatprep.subr.bf16.mxu1 %v13954_v21  ;;  %11883 = vmatprep.subr.bf16.mxu0 %v13956_v36  ;;  %v15666_v21 = vld [vmem:[#allocation13 + $0x150] ss:$8 sps:$4 sm:$0xff]   ;;  %v15671_v36 = vld [vmem:[#allocation13 + $0x44] ss:$8 sps:$4 sm:$0xff]  }
0x102a   : > { %11843 = vmatpush1.bf16.msra.mxu1 %v13953_v9  ;;  %11884 = vmatpush1.bf16.msra.mxu0 %v13955_v39  ;;  %v15675_v9 = vld [vmem:[#allocation13 + $0x30] ss:$8 sps:$4 sm:$0xff]  }
0x102b   : > { %11844 = vmatprep.subr.bf16.mxu1 %v13946_v3  ;;  %11885 = vmatprep.subr.bf16.mxu0 %v13948_v55  ;;  %v15678_v39 = vld [vmem:[#allocation13 + $0x130] ss:$8 sps:$4 sm:$0xff]   ;;  %v15683_v3 = vld [vmem:[#allocation13 + $0x24] ss:$8 sps:$4 sm:$0xff]  }
0x102c   : > { %v15686_v55 = vld [vmem:[#allocation13 + $0x124] ss:$8 sps:$4 sm:$0xff]  }
0x102e   : > { %11845 = vmatpush1.bf16.msra.mxu1 %v13945_v37  ;;  %11886 = vmatpush1.bf16.msra.mxu0 %v13947_v4  ;;  %v15687_v37 = vld [vmem:[#allocation13 + $0x10] ss:$8 sps:$4 sm:$0xff]  }
0x102f   : > { %11846 = vmatprep.subr.bf16.mxu1 %v13938_v59  ;;  %11887 = vmatprep.subr.bf16.mxu0 %v13940_v32  ;;  %v15690_v4 = vld [vmem:[#allocation13 + $0x110] ss:$8 sps:$4 sm:$0xff]   ;;  %v15695_v59 = vld [vmem:[#allocation13 + $0x4] ss:$8 sps:$4 sm:$0xff]  }
0x1030   : > { %v15698_v32 = vld [vmem:[#allocation13 + $0x104] ss:$8 sps:$4 sm:$0xff]  }
0x1032   : > { %11847 = vmatpush1.bf16.msra.mxu1 %v13937_v54  ;;  %11888 = vmatpush1.bf16.msra.mxu0 %v13939_v35  ;;  %v15704_v54 = vld [vmem:[#allocation13 + $0x1f4] ss:$8 sps:$4 sm:$0xff]  }
0x1033   : > { %11848 = vmatprep.subr.bf16.mxu1 %v13930_v44  ;;  %11889 = vmatprep.subr.bf16.mxu0 %v13932_v2  ;;  %v15699_v2 = vld [vmem:[#allocation13 + $0xf0] ss:$8 sps:$4 sm:$0xff]  }
0x1036   : > { %v19380_v31 = vpop.f32.mrf.mxu0  ;;  %11849 = vmatpush1.bf16.msra.mxu1 %v13929_v30  ;;  %11890 = vmatpush1.bf16.msra.mxu0 %v13931_v51  ;;  %v15705_v30 = vld [vmem:[#allocation13 + $0xe0] ss:$8 sps:$4 sm:$0xff]  }
0x1037   : > { %11850 = vmatprep.subr.bf16.mxu1 %v13922_v12  ;;  %11891 = vmatprep.subr.bf16.mxu0 %v13924_v48  ;;  %v15708_v51 = vld [vmem:[#allocation13 + $0x1e0] ss:$8 sps:$4 sm:$0xff]   ;;  %v15713_v12 = vld [vmem:[#allocation13 + $0xd4] ss:$8 sps:$4 sm:$0xff]  }
0x1038   : > { %v19382_v62 = vpop.f32.mrf.mxu0  ;;  %v15716_v48 = vld [vmem:[#allocation13 + $0x1d4] ss:$8 sps:$4 sm:$0xff]  }
0x103a   : > { %v11349_v38 = vpop.f32.mrf.mxu0  ;;  %11851 = vmatpush1.bf16.msra.mxu1 %v13921_v63  ;;  %11892 = vmatpush1.bf16.msra.mxu0 %v13923_v5  ;;  %v15711_v63 = vld [vmem:[#allocation13 + $0xd0] ss:$8 sps:$4 sm:$0xff]  }
0x103b   : > { %12764 = vmatprep.subr.bf16.mxu1 %v15653_v14  ;;  %12805 = vmatprep.subr.bf16.mxu0 %v15656_v1  ;;  %v15714_v5 = vld [vmem:[#allocation13 + $0x1d0] ss:$8 sps:$4 sm:$0xff]   ;;  %v15719_v14 = vld [vmem:[#allocation13 + $0xc4] ss:$8 sps:$4 sm:$0xff]   ;;  %v15717_v38 = vld [vmem:[#allocation13 + $0xc0] ss:$8 sps:$4 sm:$0xff]  }
0x103c   : > { %v11350_v33 = vpop.f32.mrf.mxu0  ;;  %v15722_v1 = vld [vmem:[#allocation13 + $0x1c4] ss:$8 sps:$4 sm:$0xff]  }
0x103d   : > { %11869 = vmatmul.mubr.bf16.vlgmr.msra.gmra.mxu1 %v19374_v0  ;;  %11910 = vmatmul.mubr.bf16.vlgmr.msra.gmra.mxu0 %v19374_v0  ;;  %v15672_v0 = vld [vmem:[#allocation13 + $0x140] ss:$8 sps:$4 sm:$0xff]   ;;  %v15726_v33 = vld [vmem:[#allocation13 + $0x1b0] ss:$8 sps:$4 sm:$0xff]  }
0x103e   : > { %12765 = vmatpush1.bf16.msra.mxu1 %v15651_v20  ;;  %12806 = vmatpush1.bf16.msra.mxu0 %v15654_v61  ;;  %v15720_v20 = vld [vmem:[#allocation13 + $0x1c0] ss:$8 sps:$4 sm:$0xff]   ;;  %v15725_v61 = vld [vmem:[#allocation13 + $0xb4] ss:$8 sps:$4 sm:$0xff]  }
0x103f   : > { %12766 = vmatprep.subr.bf16.mxu1 %v15659_v46  ;;  %12807 = vmatprep.subr.bf16.mxu0 %v15662_v17  ;;  %v15728_v46 = vld [vmem:[#allocation13 + $0x1b4] ss:$8 sps:$4 sm:$0xff]   ;;  %v15723_v17 = vld [vmem:[#allocation13 + $0xb0] ss:$8 sps:$4 sm:$0xff]  }
0x1042   : > { %12767 = vmatpush1.bf16.msra.mxu1 %v15657_v60  ;;  %12808 = vmatpush1.bf16.msra.mxu0 %v15660_v49  ;;  %v15731_v60 = vld [vmem:[#allocation13 + $0xa4] ss:$8 sps:$4 sm:$0xff]  }
0x1043   : > { %12768 = vmatprep.subr.bf16.mxu1 %v15665_v29  ;;  %12809 = vmatprep.subr.bf16.mxu0 %v15668_v18  ;;  %v15734_v49 = vld [vmem:[#allocation13 + $0x1a4] ss:$8 sps:$4 sm:$0xff]   ;;  %v15729_v29 = vld [vmem:[#allocation13 + $0xa0] ss:$8 sps:$4 sm:$0xff]  }
0x1044   : > { %v15732_v18 = vld [vmem:[#allocation13 + $0x1a0] ss:$8 sps:$4 sm:$0xff]  }
0x1046   : > { %12769 = vmatpush1.bf16.msra.mxu1 %v15663_v53  ;;  %12810 = vmatpush1.bf16.msra.mxu0 %v15666_v21  ;;  %v15737_v53 = vld [vmem:[#allocation13 + $0x94] ss:$8 sps:$4 sm:$0xff]  }
0x1047   : > { %12770 = vmatprep.subr.bf16.mxu1 %v15671_v36  ;;  %12811 = vmatprep.subr.bf16.mxu0 %v15674_v50  ;;  %v15740_v21 = vld [vmem:[#allocation13 + $0x194] ss:$8 sps:$4 sm:$0xff]   ;;  %v15735_v36 = vld [vmem:[#allocation13 + $0x90] ss:$8 sps:$4 sm:$0xff]  }
0x1048   : > { %v15738_v50 = vld [vmem:[#allocation13 + $0x190] ss:$8 sps:$4 sm:$0xff]  }
0x104a   : > { %12771 = vmatpush1.bf16.msra.mxu1 %v15669_v10  ;;  %12812 = vmatpush1.bf16.msra.mxu0 %v15672_v0  ;;  %v15743_v10 = vld [vmem:[#allocation13 + $0x84] ss:$8 sps:$4 sm:$0xff]  }
0x104b   : > { %12772 = vmatprep.subr.bf16.mxu1 %v15677_v24  ;;  %12813 = vmatprep.subr.bf16.mxu0 %v15680_v6  ;;  %v15746_v0 = vld [vmem:[#allocation13 + $0x184] ss:$8 sps:$4 sm:$0xff]   ;;  %v15741_v24 = vld [vmem:[#allocation13 + $0x80] ss:$8 sps:$4 sm:$0xff]  }
0x104c   : > { %v15744_v6 = vld [vmem:[#allocation13 + $0x180] ss:$8 sps:$4 sm:$0xff]  }
0x104e   : > { %12773 = vmatpush1.bf16.msra.mxu1 %v15675_v9  ;;  %12814 = vmatpush1.bf16.msra.mxu0 %v15678_v39  ;;  %v15749_v9 = vld [vmem:[#allocation13 + $0x274] ss:$8 sps:$4 sm:$0xff]  }
0x104f   : > { %12774 = vmatprep.subr.bf16.mxu1 %v15683_v3  ;;  %12815 = vmatprep.subr.bf16.mxu0 %v15686_v55  ;;  %v15752_v39 = vld [vmem:[#allocation13 + $0x374] ss:$8 sps:$4 sm:$0xff]  }
0x1050   : > { %v19393_v3 = vld [vmem:[%s19551_s18] sm:$0xff] }
0x1051   : > { %v11923_v55 = vrot.slane %v19393_v3, %v18710_v11 }
0x1052   : > { %12775 = vmatpush1.bf16.msra.mxu1 %v15681_v52  ;;  %12816 = vmatpush1.bf16.msra.mxu0 %v15684_v40  ;;  %v11931_v52 = vrot.slane %v19393_v3, %v18716_v41 }
0x1053   : > { %12776 = vmatprep.subr.bf16.mxu1 %v15689_v8  ;;  %12817 = vmatprep.subr.bf16.mxu0 %v15692_v25 }
0x1056   : > { %v19386_v16 = vpop.f32.mrf.mxu0  ;;  %12777 = vmatpush1.bf16.msra.mxu1 %v15687_v37  ;;  %12818 = vmatpush1.bf16.msra.mxu0 %v15690_v4  ;;  %v11927_v4 = vrot.slane %v19393_v3, %v18713_v45 }
0x1057   : > { %12778 = vmatprep.subr.bf16.mxu1 %v15695_v59  ;;  %12819 = vmatprep.subr.bf16.mxu0 %v15698_v32  ;;  %v11935_v59 = vrot.slane %v19393_v3, %v18722_v27 }
0x1058   : > { %v19388_v35 = vpop.f32.mrf.mxu0 }
0x105a   : > { %v11431_v44 = vpop.f32.mrf.mxu0  ;;  %12779 = vmatpush1.bf16.msra.mxu1 %v15693_v42  ;;  %12820 = vmatpush1.bf16.msra.mxu0 %v15696_v15 }
0x105b   : > { %12780 = vmatprep.subr.bf16.mxu1 %v15701_v28  ;;  %12821 = vmatprep.subr.bf16.mxu0 %v15704_v54 }
0x105c   : > { %v11432_v26 = vpop.f32.mrf.mxu0 }
0x105e   : > { %12781 = vmatpush2.bf16.msra.mxu1 %v15699_v2  ;;  %12822 = vmatpush2.bf16.msra.mxu0 %v15702_v34 }
0x105f   : > { %12782 = vmatprep.subr.bf16.mxu1 %v15707_v58  ;;  %12823 = vmatprep.subr.bf16.mxu0 %v15710_v23 }
0x1062   : > { %12783 = vmatpush2.bf16.msra.mxu1 %v15705_v30  ;;  %12824 = vmatpush2.bf16.msra.mxu0 %v15708_v51 }
0x1063   : > { %12784 = vmatprep.subr.bf16.mxu1 %v15713_v12  ;;  %12825 = vmatprep.subr.bf16.mxu0 %v15716_v48  ;;  %v15747_v48 = vld [vmem:[#allocation13 + $0x270] ss:$8 sps:$4 sm:$0xff]  }
0x1066   : > { %12785 = vmatpush2.bf16.msra.mxu1 %v15711_v63  ;;  %12826 = vmatpush2.bf16.msra.mxu0 %v15714_v5  ;;  %v15750_v63 = vld [vmem:[#allocation13 + $0x370] ss:$8 sps:$4 sm:$0xff]  }
0x1067   : > { %12786 = vmatprep.subr.bf16.mxu1 %v15719_v14  ;;  %12827 = vmatprep.subr.bf16.mxu0 %v15722_v1  ;;  %v15755_v1 = vld [vmem:[#allocation13 + $0x264] ss:$8 sps:$4 sm:$0xff]  }
0x106a   : > { %12787 = vmatpush2.bf16.msra.mxu1 %v15717_v38  ;;  %12828 = vmatpush2.bf16.msra.mxu0 %v15720_v20  ;;  %v15756_v38 = vld [vmem:[#allocation13 + $0x360] ss:$8 sps:$4 sm:$0xff]   ;;  %v15761_v20 = vld [vmem:[#allocation13 + $0x254] ss:$8 sps:$4 sm:$0xff]  }
0x106b   : > { %12788 = vmatprep.subr.bf16.mxu1 %v15725_v61  ;;  %12829 = vmatprep.subr.bf16.mxu0 %v15728_v46  ;;  %v15764_v61 = vld [vmem:[#allocation13 + $0x354] ss:$8 sps:$4 sm:$0xff]   ;;  %v15759_v46 = vld [vmem:[#allocation13 + $0x250] ss:$8 sps:$4 sm:$0xff]  }
0x106e   : > { %12789 = vmatpush2.bf16.msra.mxu1 %v15723_v17  ;;  %12830 = vmatpush2.bf16.msra.mxu0 %v15726_v33  ;;  %v15762_v17 = vld [vmem:[#allocation13 + $0x350] ss:$8 sps:$4 sm:$0xff]   ;;  %v15767_v33 = vld [vmem:[#allocation13 + $0x244] ss:$8 sps:$4 sm:$0xff]  }
0x106f   : > { %12790 = vmatprep.subr.bf16.mxu1 %v15731_v60  ;;  %12831 = vmatprep.subr.bf16.mxu0 %v15734_v49  ;;  %v15770_v60 = vld [vmem:[#allocation13 + $0x344] ss:$8 sps:$4 sm:$0xff]   ;;  %v15765_v49 = vld [vmem:[#allocation13 + $0x240] ss:$8 sps:$4 sm:$0xff]  }
0x1072   : > { %12791 = vmatpush2.bf16.msra.mxu1 %v15729_v29  ;;  %12832 = vmatpush2.bf16.msra.mxu0 %v15732_v18  ;;  %v15768_v29 = vld [vmem:[#allocation13 + $0x340] ss:$8 sps:$4 sm:$0xff]   ;;  %v15773_v18 = vld [vmem:[#allocation13 + $0x234] ss:$8 sps:$4 sm:$0xff]  }
0x1073   : > { %12792 = vmatprep.subr.bf16.mxu1 %v15737_v53  ;;  %12833 = vmatprep.subr.bf16.mxu0 %v15740_v21  ;;  %v15776_v53 = vld [vmem:[#allocation13 + $0x334] ss:$8 sps:$4 sm:$0xff]   ;;  %v15771_v21 = vld [vmem:[#allocation13 + $0x230] ss:$8 sps:$4 sm:$0xff]  }
0x1076   : > { %12793 = vmatpush2.bf16.msra.mxu1 %v15735_v36  ;;  %12834 = vmatpush2.bf16.msra.mxu0 %v15738_v50  ;;  %v15774_v36 = vld [vmem:[#allocation13 + $0x330] ss:$8 sps:$4 sm:$0xff]   ;;  %v15779_v50 = vld [vmem:[#allocation13 + $0x224] ss:$8 sps:$4 sm:$0xff]  }
0x1077   : > { %12794 = vmatprep.subr.bf16.mxu1 %v15743_v10  ;;  %12835 = vmatprep.subr.bf16.mxu0 %v15746_v0  ;;  %v15782_v10 = vld [vmem:[#allocation13 + $0x324] ss:$8 sps:$4 sm:$0xff]   ;;  %v15777_v0 = vld [vmem:[#allocation13 + $0x220] ss:$8 sps:$4 sm:$0xff]  }
0x107a   : > { %12795 = vmatpush2.bf16.msra.mxu1 %v15741_v24  ;;  %12836 = vmatpush2.bf16.msra.mxu0 %v15744_v6  ;;  %v15780_v24 = vld [vmem:[#allocation13 + $0x320] ss:$8 sps:$4 sm:$0xff]   ;;  %v15785_v6 = vld [vmem:[#allocation13 + $0x214] ss:$8 sps:$4 sm:$0xff]  }
0x107b   : > { %12846 = vmatprep.subr.bf16.mxu1 %v15749_v9  ;;  %12887 = vmatprep.subr.bf16.mxu0 %v15752_v39  ;;  %v15788_v9 = vld [vmem:[#allocation13 + $0x314] ss:$8 sps:$4 sm:$0xff]  }
0x10dd   : > { %v11788_v40 = vpop.f32.mrf.mxu1  ;;  %v11829_v8 = vpop.f32.mrf.mxu0 }
0x10de   : > { %v11789_v25 = vadd.f32 %v11788_v40, %v19359_v13  ;;  %v11830_v37 = vadd.f32 %v11829_v8, %v19380_v31  ;;  %v11951_v40 = vrot.slane %v19393_v3, %v18750_v56  ;;  %v15783_v8 = vld [vmem:[#allocation13 + $0x210] ss:$8 sps:$4 sm:$0xff]   ;;  %v15792_v56 = vld [vmem:[#allocation13 + $0x300] ss:$8 sps:$4 sm:$0xff]  }
0x10df   : > { %v11790_v32 = vpop.f32.mrf.mxu1  ;;  %v11831_v42 = vpop.f32.mrf.mxu0 }
0x10e0   : > { %v11960_v15 = vadd.f32 %v11923_v55, %v11789_v25  ;;  %v11962_v28 = vadd.f32 %v11931_v52, %v11830_v37  ;;  %v11791_v54 = vadd.f32 %v11790_v32, %v19361_v57  ;;  %v11832_v41 = vadd.f32 %v11831_v42, %v19382_v62  ;;  %v15758_v57 = vld [vmem:[#allocation13 + $0x364] ss:$8 sps:$4 sm:$0xff]   ;;  %v15753_v62 = vld [vmem:[#allocation13 + $0x260] ss:$8 sps:$4 sm:$0xff]   ;;  %v15786_v25 = vld [vmem:[#allocation13 + $0x310] ss:$8 sps:$4 sm:$0xff]  }
0x10e1   : > { %v11792_v44 = vpop.f32.mrf.mxu1  ;;  %v11833_v2 = vpop.f32.mrf.mxu0  ;;  %v11943_v52 = vrot.slane %v19393_v3, %v18745_v22  ;;  %v15794_v32 = vld [vmem:[#allocation13 + $0x304] ss:$8 sps:$4 sm:$0xff]   ;;  %v15789_v22 = vld [vmem:[#allocation13 + $0x200] ss:$8 sps:$4 sm:$0xff]  }
0x10e2   : > { %v11961_v34 = vadd.f32 %v11927_v4, %v11791_v54  ;;  %v11963_v13 = vadd.f32 %v11935_v59, %v11832_v41  ;;  %v11968_v58 = vmax.f32 %v11960_v15, 0.0  ;;  %v11970_v31 = vmax.f32 %v11962_v28, 0.0  ;;  %v15791_v59 = vld [vmem:[#allocation13 + $0x204] ss:$8 sps:$4 sm:$0xff]  }
0x10e3   : > { %v11793_v23 = vpop.f32.mrf.mxu1  ;;  %v11834_v26 = vpop.f32.mrf.mxu0 }
0x10e4   : > { %v11969_v30 = vmax.f32 %v11961_v34, 0.0  ;;  %v11971_v51 = vmax.f32 %v11963_v13, 0.0  ;;  %v11976_v5 = vpack.c.bf16 %v11968_v58, %v11968_v58  ;;  %v11978_v14 = vpack.c.bf16 %v11970_v31, %v11970_v31  ;;  %v15797_v13 = vld [vmem:[#allocation13 + $0x2f4] ss:$8 sps:$4 sm:$0xff]  }
0x10e5   : > { %v15800_v58 = vld [vmem:[#allocation13 + $0x3f4] ss:$8 sps:$4 sm:$0xff]  }
0x10e6   : > { %v11977_v12 = vpack.c.bf16 %v11969_v30, %v11969_v30  ;;  %v11979_v27 = vpack.c.bf16 %v11971_v51, %v11971_v51  ;;  %v15798_v30 = vld [vmem:[#allocation13 + $0x3f0] ss:$8 sps:$4 sm:$0xff]   ;;  %v15803_v51 = vld [vmem:[#allocation13 + $0x2e4] ss:$8 sps:$4 sm:$0xff]  }
0x10e8   : > { %12796 = vmatprep.mubr.bf16.mxu1 %v11977_v12  ;;  %12837 = vmatprep.mubr.bf16.mxu0 %v11979_v27  ;;  %v15806_v12 = vld [vmem:[#allocation13 + $0x3e4] ss:$8 sps:$4 sm:$0xff]   ;;  %v15801_v27 = vld [vmem:[#allocation13 + $0x2e0] ss:$8 sps:$4 sm:$0xff]  }
0x10e9   : > { %12797 = vmatmul.mubr.bf16.vlgmr.msra.gmra.mxu1 %v11976_v5  ;;  %12838 = vmatmul.mubr.bf16.vlgmr.msra.gmra.mxu0 %v11978_v14  ;;  %v15812_v5 = vld [vmem:[#allocation13 + $0x3d4] ss:$8 sps:$4 sm:$0xff]   ;;  %v15807_v14 = vld [vmem:[#allocation13 + $0x2d0] ss:$8 sps:$4 sm:$0xff]  }
0x10ea   : > { %12847 = vmatpush1.bf16.msra.mxu1 %v15747_v48  ;;  %12888 = vmatpush1.bf16.msra.mxu0 %v15750_v63  ;;  %v15804_v48 = vld [vmem:[#allocation13 + $0x3e0] ss:$8 sps:$4 sm:$0xff]   ;;  %v15809_v63 = vld [vmem:[#allocation13 + $0x2d4] ss:$8 sps:$4 sm:$0xff]  }
0x10eb   : > { %12848 = vmatprep.subr.bf16.mxu1 %v15755_v1  ;;  %12889 = vmatprep.subr.bf16.mxu0 %v15758_v57  ;;  %v15810_v1 = vld [vmem:[#allocation13 + $0x3d0] ss:$8 sps:$4 sm:$0xff]   ;;  %v15815_v57 = vld [vmem:[#allocation13 + $0x2c4] ss:$8 sps:$4 sm:$0xff]  }
0x10ee   : > { %12849 = vmatpush1.bf16.msra.mxu1 %v15753_v62  ;;  %12890 = vmatpush1.bf16.msra.mxu0 %v15756_v38  ;;  %v15818_v62 = vld [vmem:[#allocation13 + $0x3c4] ss:$8 sps:$4 sm:$0xff]   ;;  %v15813_v38 = vld [vmem:[#allocation13 + $0x2c0] ss:$8 sps:$4 sm:$0xff]  }
0x10ef   : > { %12850 = vmatprep.subr.bf16.mxu1 %v15761_v20  ;;  %12891 = vmatprep.subr.bf16.mxu0 %v15764_v61  ;;  %v15816_v20 = vld [vmem:[#allocation13 + $0x3c0] ss:$8 sps:$4 sm:$0xff]   ;;  %v15821_v61 = vld [vmem:[#allocation13 + $0x2b4] ss:$8 sps:$4 sm:$0xff]  }
0x10f2   : > { %12851 = vmatpush1.bf16.msra.mxu1 %v15759_v46  ;;  %12892 = vmatpush1.bf16.msra.mxu0 %v15762_v17  ;;  %v15824_v46 = vld [vmem:[#allocation13 + $0x3b4] ss:$8 sps:$4 sm:$0xff]   ;;  %v15819_v17 = vld [vmem:[#allocation13 + $0x2b0] ss:$8 sps:$4 sm:$0xff]  }
0x10f3   : > { %12852 = vmatprep.subr.bf16.mxu1 %v15767_v33  ;;  %12893 = vmatprep.subr.bf16.mxu0 %v15770_v60  ;;  %v15822_v33 = vld [vmem:[#allocation13 + $0x3b0] ss:$8 sps:$4 sm:$0xff]   ;;  %v15827_v60 = vld [vmem:[#allocation13 + $0x2a4] ss:$8 sps:$4 sm:$0xff]  }
0x10f6   : > { %12853 = vmatpush1.bf16.msra.mxu1 %v15765_v49  ;;  %12894 = vmatpush1.bf16.msra.mxu0 %v15768_v29  ;;  %v15830_v49 = vld [vmem:[#allocation13 + $0x3a4] ss:$8 sps:$4 sm:$0xff]   ;;  %v11939_v29 = vrot.slane %v19393_v3, %v18736_v19  ;;  %v15831_v19 = vld [vmem:[#allocation13 + $0x290] ss:$8 sps:$4 sm:$0xff]  }
0x10f7   : > { %12854 = vmatprep.subr.bf16.mxu1 %v15773_v18  ;;  %12895 = vmatprep.subr.bf16.mxu0 %v15776_v53  ;;  %v15825_v18 = vld [vmem:[#allocation13 + $0x2a0] ss:$8 sps:$4 sm:$0xff]  }
0x10f8   : > { %v15828_v53 = vld [vmem:[#allocation13 + $0x3a0] ss:$8 sps:$4 sm:$0xff]  }
0x10fa   : > { %12855 = vmatpush1.bf16.msra.mxu1 %v15771_v21  ;;  %12896 = vmatpush1.bf16.msra.mxu0 %v15774_v36 }
0x10fb   : > { %12856 = vmatprep.subr.bf16.mxu1 %v15779_v50  ;;  %12897 = vmatprep.subr.bf16.mxu0 %v15782_v10  ;;  %v11947_v50 = vrot.slane %v19393_v3, %v18813_v47  ;;  %v15833_v10 = vld [vmem:[#allocation13 + $0x294] ss:$8 sps:$4 sm:$0xff]  }
0x10fd   : > { %v19407_v39 = vpop.f32.mrf.mxu1  ;;  %v19409_v55 = vpop.f32.mrf.mxu0 }
0x10fe   : > { %12857 = vmatpush1.bf16.msra.mxu1 %v15777_v0  ;;  %12898 = vmatpush1.bf16.msra.mxu0 %v15780_v24  ;;  %v11871_v21 = vadd.f32 %v19407_v39, %v19365_v43  ;;  %v11912_v36 = vadd.f32 %v19409_v55, %v19386_v16  ;;  %v15836_v0 = vld [vmem:[#allocation13 + $0x394] ss:$8 sps:$4 sm:$0xff]   ;;  %v15834_v24 = vld [vmem:[#allocation13 + $0x390] ss:$8 sps:$4 sm:$0xff]   ;;  %v15842_v43 = vld [vmem:[#allocation13 + $0x384] ss:$8 sps:$4 sm:$0xff]  }
0x10ff   : > { %v11872_v37 = vpop.f32.mrf.mxu1  ;;  %v11913_v4 = vpop.f32.mrf.mxu0  ;;  %12858 = vmatprep.subr.bf16.mxu1 %v15785_v6  ;;  %12899 = vmatprep.subr.bf16.mxu0 %v15788_v9  ;;  %v15837_v16 = vld [vmem:[#allocation13 + $0x280] ss:$8 sps:$4 sm:$0xff]  }
0x1100   : > { %v11873_v42 = vadd.f32 %v11872_v37, %v19367_v7  ;;  %v11914_v15 = vadd.f32 %v11913_v4, %v19388_v35  ;;  %v15795_v35 = vld [vmem:[#allocation13 + $0x2f0] ss:$8 sps:$4 sm:$0xff]   ;;  %v11964_v6 = vadd.f32 %v11939_v29, %v11871_v21  ;;  %v11966_v9 = vadd.f32 %v11947_v50, %v11912_v36  ;;  %v15840_v39 = vld [vmem:[#allocation13 + $0x380] ss:$8 sps:$4 sm:$0xff]  }
0x1101   : > { %v11874_v28 = vpop.f32.mrf.mxu1  ;;  %v11915_v54 = vpop.f32.mrf.mxu0  ;;  %v12960_v37 = vld [vmem:[%s19554_s21 + $0xf0] sm:$0xff] }
0x1102   : > { %v11965_v41 = vadd.f32 %v11943_v52, %v11873_v42  ;;  %v11967_v44 = vadd.f32 %v11951_v40, %v11914_v15  ;;  %12859 = vmatpush1.bf16.msra.mxu1 %v15783_v8  ;;  %12900 = vmatpush1.bf16.msra.mxu0 %v15786_v25  ;;  %v15839_v52 = vld [vmem:[#allocation13 + $0x284] ss:$8 sps:$4 sm:$0xff]   ;;  %v11972_v55 = vmax.f32 %v11964_v6, 0.0  ;;  %v11974_v47 = vmax.f32 %v11966_v9, 0.0  ;;  %v12961_v8 = vld [vmem:[%s19554_s21 + $0xf8] sm:$0xff] }
0x1103   : > { %v11875_v2 = vpop.f32.mrf.mxu1  ;;  %v11916_v34 = vpop.f32.mrf.mxu0  ;;  %12860 = vmatprep.subr.bf16.mxu1 %v15791_v59  ;;  %12901 = vmatprep.subr.bf16.mxu0 %v15794_v32  ;;  %v12945_v25 = vld [vmem:[%s19554_s21 + $0x78] sm:$0xff]  ;;  %v12944_v4 = vld [vmem:[%s19554_s21 + $0x70] sm:$0xff]  ;;  %v12959_v59 = vld [vmem:[%s19554_s21 + $0xe8] sm:$0xff] }
0x1104   : > { %v11973_v31 = vmax.f32 %v11965_v41, 0.0  ;;  %v11975_v23 = vmax.f32 %v11967_v44, 0.0  ;;  %v11980_v3 = vpack.c.bf16 %v11972_v55, %v11972_v55  ;;  %v11982_v40 = vpack.c.bf16 %v11974_v47, %v11974_v47  ;;  %v12943_v32 = vld [vmem:[%s19554_s21 + $0x68] sm:$0xff]  ;;  %v12958_v42 = vld [vmem:[%s19554_s21 + $0xe0] sm:$0xff]  ;;  %v12957_v28 = vld [vmem:[%s19554_s21 + $0xd8] sm:$0xff] }
0x1105   : > { %v12942_v15 = vld [vmem:[%s19554_s21 + $0x60] sm:$0xff]  ;;  %v12941_v54 = vld [vmem:[%s19554_s21 + $0x58] sm:$0xff]  ;;  %v12956_v41 = vld [vmem:[%s19554_s21 + $0xd0] sm:$0xff] }
0x1106   : > { %v11981_v26 = vpack.c.bf16 %v11973_v31, %v11973_v31  ;;  %v11983_v7 = vpack.c.bf16 %v11975_v23, %v11975_v23  ;;  %12861 = vmatpush1.bf16.msra.mxu1 %v15789_v22  ;;  %12902 = vmatpush1.bf16.msra.mxu0 %v15792_v56  ;;  %v12940_v44 = vld [vmem:[%s19554_s21 + $0x50] sm:$0xff]  ;;  %v12955_v22 = vld [vmem:[%s19554_s21 + $0xc8] sm:$0xff]  ;;  %v12954_v2 = vld [vmem:[%s19554_s21 + $0xc0] sm:$0xff] }
0x1107   : > { %12862 = vmatprep.subr.bf16.mxu1 %v15797_v13  ;;  %12903 = vmatprep.subr.bf16.mxu0 %v15800_v58  ;;  %v12939_v56 = vld [vmem:[%s19554_s21 + $0x48] sm:$0xff]  ;;  %v12938_v34 = vld [vmem:[%s19554_s21 + $0x40] sm:$0xff]  ;;  %v12953_v13 = vld [vmem:[%s19554_s21 + $0xb8] sm:$0xff] }
0x1108   : > { %12878 = vmatprep.mubr.bf16.mxu1 %v11981_v26  ;;  %12919 = vmatprep.mubr.bf16.mxu0 %v11983_v7  ;;  %v12937_v58 = vld [vmem:[%s19554_s21 + $0x38] sm:$0xff]  ;;  %v12952_v31 = vld [vmem:[%s19554_s21 + $0xb0] sm:$0xff]  ;;  %v12951_v26 = vld [vmem:[%s19554_s21 + $0xa8] sm:$0xff] }
0x1109   : > { %v12936_v23 = vld [vmem:[%s19554_s21 + $0x30] sm:$0xff]  ;;  %v12935_v7 = vld [vmem:[%s19554_s21 + $0x28] sm:$0xff] }
0x110a   : > { %12863 = vmatpush2.bf16.msra.mxu1 %v15795_v35  ;;  %12904 = vmatpush2.bf16.msra.mxu0 %v15798_v30  ;;  %v12950_v35 = vld [vmem:[%s19554_s21 + $0xa0] sm:$0xff] }
0x110b   : > { %12864 = vmatprep.subr.bf16.mxu1 %v15803_v51  ;;  %12905 = vmatprep.subr.bf16.mxu0 %v15806_v12  ;;  %v12934_v30 = vld [vmem:[%s19554_s21 + $0x20] sm:$0xff]  ;;  %v12949_v51 = vld [vmem:[%s19554_s21 + $0x98] sm:$0xff] }
0x110c   : > { %v12933_v12 = vld [vmem:[%s19554_s21 + $0x18] sm:$0xff] }
0x110e   : > { %12865 = vmatpush2.bf16.msra.mxu1 %v15801_v27  ;;  %12906 = vmatpush2.bf16.msra.mxu0 %v15804_v48  ;;  %v12948_v27 = vld [vmem:[%s19554_s21 + $0x90] sm:$0xff] }
0x110f   : > { %12866 = vmatprep.subr.bf16.mxu1 %v15809_v63  ;;  %12907 = vmatprep.subr.bf16.mxu0 %v15812_v5  ;;  %v12932_v48 = vld [vmem:[%s19554_s21 + $0x10] sm:$0xff]  ;;  %v12947_v63 = vld [vmem:[%s19554_s21 + $0x88] sm:$0xff] }
0x1110   : > { %v12931_v5 = vld [vmem:[%s19554_s21 + $0x8] sm:$0xff] }
0x1112   : > { %12867 = vmatpush2.bf16.msra.mxu1 %v15807_v14  ;;  %12908 = vmatpush2.bf16.msra.mxu0 %v15810_v1  ;;  %v12946_v14 = vld [vmem:[%s19554_s21 + $0x80] sm:$0xff] }
0x1113   : > { %12868 = vmatprep.subr.bf16.mxu1 %v15815_v57  ;;  %12909 = vmatprep.subr.bf16.mxu0 %v15818_v62  ;;  %v12930_v1 = vld [vmem:[%s19554_s21] sm:$0xff] }
0x1116   : > { %12869 = vmatpush2.bf16.msra.mxu1 %v15813_v38  ;;  %12910 = vmatpush2.bf16.msra.mxu0 %v15816_v20 }
0x1117   : > { %12870 = vmatprep.subr.bf16.mxu1 %v15821_v61  ;;  %12911 = vmatprep.subr.bf16.mxu0 %v15824_v46 }
0x111a   : > { %12871 = vmatpush2.bf16.msra.mxu1 %v15819_v17  ;;  %12912 = vmatpush2.bf16.msra.mxu0 %v15822_v33 }
0x111b   : > { %12872 = vmatprep.subr.bf16.mxu1 %v15827_v60  ;;  %12913 = vmatprep.subr.bf16.mxu0 %v15830_v49  ;;  %v12112_v60 = vld [vmem:[%s19553_s20] sm:$0x3] }
0x111c   : > { %v12757_v49 = vrot.slane %v12112_v60, %v18710_v11  ;;  %v12761_v29 = vrot.slane %v12112_v60, %v18713_v45 }
0x111e   : > { %12873 = vmatpush2.bf16.msra.mxu1 %v15825_v18  ;;  %12914 = vmatpush2.bf16.msra.mxu0 %v15828_v53 }
0x111f   : > { %12874 = vmatprep.subr.bf16.mxu1 %v15833_v10  ;;  %12915 = vmatprep.subr.bf16.mxu0 %v15836_v0 }
0x1122   : > { %12875 = vmatpush2.bf16.msra.mxu1 %v15831_v19  ;;  %12916 = vmatpush2.bf16.msra.mxu0 %v15834_v24 }
0x1123   : > { %12876 = vmatprep.subr.bf16.mxu1 %v15839_v52  ;;  %12917 = vmatprep.subr.bf16.mxu0 %v15842_v43 }
0x1126   : > { %12877 = vmatpush2.bf16.msra.mxu1 %v15837_v16  ;;  %12918 = vmatpush2.bf16.msra.mxu0 %v15840_v39 }
0x1127   : > { %15007 = vmatprep.subr.mxu1 %v12961_v8 }
0x1129   : > { %12879 = vmatmul.mubr.bf16.vlgmr.msra.gmra.mxu1 %v11980_v3  ;;  %12920 = vmatmul.mubr.bf16.vlgmr.msra.gmra.mxu0 %v11982_v40  ;;  %v12962_v3 = vld [vmem:[#allocation2] sm:$0x1] }
0x112a   : > { %15008 = vmatpush3.msra.mxu1 %v12945_v25 }
0x112b   : > { %15009 = vmatprep.subr.mxu1 %v12960_v37 }
0x112c   : > { %15010 = vmatpush3.msra.mxu1 %v12944_v4 }
0x112d   : > { %15011 = vmatprep.subr.mxu1 %v12959_v59 }
0x112e   : > { %15012 = vmatpush3.msra.mxu1 %v12943_v32 }
0x112f   : > { %15013 = vmatprep.subr.mxu1 %v12958_v42 }
0x1130   : > { %15014 = vmatpush3.msra.mxu1 %v12942_v15 }
0x1131   : > { %15015 = vmatprep.subr.mxu1 %v12957_v28 }
0x1132   : > { %15016 = vmatpush3.msra.mxu1 %v12941_v54 }
0x1133   : > { %15017 = vmatprep.subr.mxu1 %v12956_v41 }
0x1134   : > { %15018 = vmatpush3.msra.mxu1 %v12940_v44 }
0x1135   : > { %15019 = vmatprep.subr.mxu1 %v12955_v22 }
0x1136   : > { %15020 = vmatpush3.msra.mxu1 %v12939_v56 }
0x1137   : > { %15021 = vmatprep.subr.mxu1 %v12954_v2 }
0x1138   : > { %15022 = vmatpush3.msra.mxu1 %v12938_v34 }
0x1139   : > { %15023 = vmatprep.subr.mxu1 %v12953_v13 }
0x113a   : > { %15024 = vmatpush3.msra.mxu1 %v12937_v58 }
0x113b   : > { %15025 = vmatprep.subr.mxu1 %v12952_v31 }
0x113c   : > { %15026 = vmatpush3.msra.mxu1 %v12936_v23 }
0x113d   : > { %15027 = vmatprep.subr.mxu1 %v12951_v26 }
0x113e   : > { %15028 = vmatpush3.msra.mxu1 %v12935_v7 }
0x113f   : > { %15029 = vmatprep.subr.mxu1 %v12950_v35 }
0x1140   : > { %15030 = vmatpush3.msra.mxu1 %v12934_v30 }
0x1141   : > { %15031 = vmatprep.subr.mxu1 %v12949_v51 }
0x1142   : > { %15032 = vmatpush3.msra.mxu1 %v12933_v12 }
0x1143   : > { %15033 = vmatprep.subr.mxu1 %v12948_v27 }
0x1144   : > { %15034 = vmatpush3.msra.mxu1 %v12932_v48 }
0x1145   : > { %15035 = vmatprep.subr.mxu1 %v12947_v63 }
0x1146   : > { %15036 = vmatpush3.msra.mxu1 %v12931_v5 }
0x1147   : > { %15037 = vmatprep.subr.mxu1 %v12946_v14 }
0x1148   : > { %15038 = vmatpush3.msra.mxu1 %v12930_v1 }
0x11a9   : > { %v12798_v57 = vpop.f32.mrf.mxu1  ;;  %v12839_v62 = vpop.f32.mrf.mxu0 }
0x11aa   : > { %v12799_v18 = vadd.f32 %v12798_v57, %v12757_v49 }
0x11ab   : > { %v12800_v38 = vpop.f32.mrf.mxu1  ;;  %v12841_v20 = vpop.f32.mrf.mxu0 }
0x11ac   : > { %v12801_v53 = vadd.f32 %v12800_v38, %v12761_v29  ;;  %v12840_v21 = vadd.f32 %v12839_v62, %v12799_v18 }
0x11ad   : > { %v12802_v61 = vpop.f32.mrf.mxu1  ;;  %v12843_v46 = vpop.f32.mrf.mxu0 }
0x11ae   : > { %v12842_v10 = vadd.f32 %v12841_v20, %v12801_v53 }
0x11af   : > { %v12803_v17 = vpop.f32.mrf.mxu1  ;;  %v12844_v33 = vpop.f32.mrf.mxu0 }
0x11e9   : > { %v12880_v36 = vpop.f32.mrf.mxu1  ;;  %v12921_v50 = vpop.f32.mrf.mxu0 }
0x11ea   : > { %v12881_v0 = vadd.f32 %v12880_v36, %v12840_v21 }
0x11eb   : > { %v12882_v19 = vpop.f32.mrf.mxu1  ;;  %v12923_v24 = vpop.f32.mrf.mxu0 }
0x11ec   : > { %v12883_v6 = vadd.f32 %v12882_v19, %v12842_v10  ;;  %v12922_v9 = vadd.f32 %v12921_v50, %v12881_v0 }
0x11ed   : > { %v12884_v52 = vpop.f32.mrf.mxu1  ;;  %v12925_v43 = vpop.f32.mrf.mxu0 }
0x11ee   : > { %v12924_v16 = vadd.f32 %v12923_v24, %v12883_v6  ;;  %v12928_v47 = vmax.f32 %v12922_v9, 0.0 }
0x11ef   : > { %v12885_v39 = vpop.f32.mrf.mxu1  ;;  %v12926_v55 = vpop.f32.mrf.mxu0 }
0x11f0   : > { %v12929_v11 = vmax.f32 %v12924_v16, 0.0 }
0x11f2   : > { %13027 = vmatprep.mubr.f32.mxu1 %v12929_v11 }
0x11f3   : > { %13028 = vmatmul.mubr.f32.vlgmr.msra.gmra.mxu1 %v12928_v47 }
0x12b3   : > { %v15039_v45 = vpop.f32.mrf.mxu1 }
0x12b5   : > { %v15040_v40 = vpop.f32.mrf.mxu1 }
0x12b6   : > { %v15041_v8 = vadd.f32 %v15040_v40, %v15039_v45 }
0x12b8   : > { %v13030_v25 = vadd.f32 %v15041_v8, %v12962_v3 }
0x12ba   : > { %13034 = vst.msk [vmem:[%s850_s25] sm:$0x1] %vm13033_vm9, %v13030_v25 }
0x12bb PF: > { %s39_s24 = sadd.s32 1, %s16177_s24  }
0x12bc   : > { %p36_p2 = scmp.ge.s32.totalorder %s39_s24, 4  }
0x12be   :  { %38 = sbr.rel (!%p36_p2) target bundleno = 14 (0xe), region = 177 }
0x12c3   :  { %13052 = vsyncpa [#allocation4], 1 }
0x12c4   :  { %13054 = vsyncpa [#allocation4 + $0x1], 1 }
0x12c5   :  { %13055 = vsyncpa [#allocation6], 1 }
0x12c6   :  { %13056 = vsyncpa [#allocation9], 1 }
0x12c7   :  { %13057 = vsyncpa [#allocation12], 1 }

</bundles_post_ra>
